<compile_context>
chip_gen: v7x
topology: tpu7x:2x2x1
jax: 0.10.0
libtpu: 0.0.40
codegen_flags: <defaults>
</compile_context>

<pallas_src>
import functools

import jax
import jax.numpy as jnp
from jax.experimental import pallas as pl
from jax.experimental.pallas import tpu as pltpu

LANE = 128  # TPU vreg lane width


def selfie_block_kernel(
    x_ref,             # (B, H, W*Cio)            f32   lane-dense input block
    w1_ref, b1_ref,    # (W*Cio, W*Cexp) bf16,    (1, W*Cexp) f32    conv1 1x1 (block-diag)
    dw_ref, dwb_ref,   # (25, W*Cexp) f32 (1/6 folded), (1, W*Cexp) f32   depthwise 5x5
    sw1_ref, sb1_ref,  # (Cexp, Cmid) f32,        (1, Cmid) f32      sub.conv1 1x1
    sw2_ref, sb2_ref,  # (Cmid, Cexp) f32,        (1, Cexp) f32      sub.conv2 1x1
    sw3_ref, sb3_ref,  # (W*Cexp, W*Cio) bf16 (1/6 folded), (1, W*Cio) f32  sub.conv3 (block-diag)
    o_ref,             # (B, H, W*Cio)            f32   lane-dense output block
    pad_ref,           # scratch: (B, H + 2P, WPAD*Cexp) f32
    *, B, H, W, Cio, Cexp, K, LPAD, RPAD,
):
    P = K // 2                   # depthwise halo (2)
    WL = W * Cexp                # interior lane width
    WPAD = LPAD + W + RPAD       # padded spatial width

    x2d = x_ref[...].reshape(B * H, W * Cio)                           # (B*H, W*Cio)

    # ---- conv1 (1x1): block-diagonal bf16 MXU matmul with M = B*H ----
    z1 = jnp.dot(x2d.astype(jnp.bfloat16), w1_ref[...],
                 preferred_element_type=jnp.float32) + b1_ref[...]
    # 6*hardswish(z1): the 1/6 is folded into the depthwise weights in the wrapper.
    h1 = z1 * jnp.clip(z1 + 3.0, 0.0, 6.0)                             # (B*H, W*Cexp)

    # ---- depthwise 5x5, stride 1, padding 2: zero-only-the-halo padded scratch ----
    # Halo is re-zeroed every step (NOT pl.when(step==0)): the batch axis is "parallel", so on
    # v7x each TensorCore owns a private scratch and only one core runs program_id 0. All four
    # zero stores below are whole 128-lane vregs (unmasked vst).
    pad_ref[:, pl.ds(0, P), :] = jnp.zeros((B, P, WPAD * Cexp), jnp.float32)
    pad_ref[:, pl.ds(H + P, P), :] = jnp.zeros((B, P, WPAD * Cexp), jnp.float32)
    pad_ref[:, pl.ds(P, H), pl.ds(0, LPAD * Cexp)] = jnp.zeros((B, H, LPAD * Cexp), jnp.float32)
    pad_ref[:, pl.ds(P, H), pl.ds((LPAD + W) * Cexp, RPAD * Cexp)] = (
        jnp.zeros((B, H, RPAD * Cexp), jnp.float32))
    # Interior store: lane offset LPAD*Cexp is a multiple of 128 -> unmasked, no lane rotate.
    pad_ref[:, pl.ds(P, H), pl.ds(LPAD * Cexp, WL)] = h1.reshape(B, H, WL)

    # Tap loop: accumulator starts at the broadcast bias; the expensive lane-offset (dx) slab is
    # hoisted to the outer loop (5 shifted slabs instead of 25 shifted slices).
    acc = jnp.broadcast_to(dwb_ref[...].reshape(1, 1, WL), (B, H, WL))
    for dx in range(K):
        slab = pad_ref[:, :, pl.ds((LPAD - P + dx) * Cexp, WL)]        # (B, H+2P, W*Cexp)
        for dy in range(K):
            w_tap = dw_ref[pl.ds(dy * K + dx, 1), :]                   # (1, W*Cexp), 1/6 folded
            acc = acc + slab[:, dy:dy + H, :] * w_tap
    h2 = acc                                                           # true conv2 output

    # ---- SelfieSubBlock (squeeze-excite + project) ----
    # 6*hardswish(h2): the 1/6 is folded into the pooling scale and into sw3.
    a6 = h2 * jnp.clip(h2 + 3.0, 0.0, 6.0)                             # (B, H, W*Cexp)

    # Per-image global average pool: reduce over H, then fold the W lane-tiles.
    col = jnp.sum(a6, axis=1)                                          # (B, W*Cexp)
    if W > 1 and (W & (W - 1)) == 0:
        # log2(W) roll butterfly on the XLU: afterwards every Cexp-wide tile holds the full sum.
        sh = WL // 2
        while sh >= Cexp:
            col = col + pltpu.roll(col, shift=sh, axis=1)
            sh //= 2
        pooled = col[:, :Cexp]
    else:
        pooled = jnp.zeros((B, Cexp), jnp.float32)
        for w in range(W):
            pooled = pooled + col[:, w * Cexp:(w + 1) * Cexp]
    m = pooled * (1.0 / (6.0 * H * W))                                 # (B, Cexp) = mean(hardswish)

    r = jnp.maximum(
        jnp.dot(m, sw1_ref[...], preferred_element_type=jnp.float32) + sb1_ref[...], 0.0)
    s = jax.nn.sigmoid(
        jnp.dot(r, sw2_ref[...], preferred_element_type=jnp.float32) + sb2_ref[...])  # (B, Cexp)

    # Broadcast the per-image gate across W: tile up to one 128-lane vreg, then replicate tiles.
    if LANE % Cexp == 0 and WL % LANE == 0:
        s_vreg = jnp.tile(s, (1, LANE // Cexp))                        # (B, 128)
        gate = jnp.tile(s_vreg, (1, WL // LANE))                       # (B, W*Cexp)
    else:
        gate = jnp.tile(s, (1, W))
    scaled = a6 * gate[:, None, :]                                     # = 6 * (a * gate)

    # ---- 1x1 projection back to io channels (block-diag bf16, 1/6 folded) + residual ----
    out = jnp.dot(scaled.reshape(B * H, WL).astype(jnp.bfloat16), sw3_ref[...],
                  preferred_element_type=jnp.float32) + sb3_ref[...]   # (B*H, W*Cio)
    o_ref[...] = (x2d + out).reshape(B, H, W * Cio)


def _pick_batch_block(n, min_grid_steps=2):
    """Largest per-step batch B dividing n while keeping >= min_grid_steps grid steps."""
    for steps in range(min_grid_steps, n + 1):
        if n % steps == 0:
            return n // steps
    return n  # n < min_grid_steps (or no divisor): single grid step


def selfie_block(x, params):
    """x: (N, H, W, Cio) float32, NHWC layout."""
    N, H, W, Cio = x.shape
    Cexp = params["w1"].shape[1]
    K = 5
    P = K // 2

    B = _pick_batch_block(N)
    grid = N // B

    # Halo widths: widen the left pad so the interior store is 128-lane aligned, and the right
    # pad so the padded row width is a whole number of 128-lane vregs (all stores unmasked).
    lpad = P
    while (lpad * Cexp) % LANE != 0 and (lpad - P) < LANE:
        lpad += 1
    if (lpad * Cexp) % LANE != 0:
        lpad = P                      # give up on alignment; still correct (masked stores)
    rpad = P
    while ((lpad + W + rpad) * Cexp) % LANE != 0 and (rpad - P) < LANE:
        rpad += 1
    if ((lpad + W + rpad) * Cexp) % LANE != 0:
        rpad = P
    wpad = lpad + W + rpad

    # ---- layout plumbing: channel-folded, lane-dense weights; hardswish 1/6 folded in ----
    eye_w = jnp.eye(W, dtype=jnp.float32)
    w1_bd = jnp.kron(eye_w, params["w1"]).astype(jnp.bfloat16)                   # (W*Cio, W*Cexp)
    sw3_bd = (jnp.kron(eye_w, params["sw3"]) * (1.0 / 6.0)).astype(jnp.bfloat16)  # (W*Cexp, W*Cio)
    b1_t = jnp.tile(params["b1"], (1, W))                                        # (1, W*Cexp)
    dw_t = jnp.tile(params["dw"], (1, W)) * (1.0 / 6.0)                          # (25, W*Cexp)
    dwb_t = jnp.tile(params["dwb"], (1, W))                                      # (1, W*Cexp)
    sb3_t = jnp.tile(params["sb3"], (1, W))                                      # (1, W*Cio)

    x_f = x.reshape(N, H, W * Cio)          # lane-dense I/O (last dim = W*Cio, e.g. 128)

    inputs = (x_f, w1_bd, b1_t, dw_t, dwb_t,
              params["sw1"], params["sb1"], params["sw2"], params["sb2"],
              sw3_bd, sb3_t)

    kernel = functools.partial(selfie_block_kernel, B=B, H=H, W=W, Cio=Cio, Cexp=Cexp,
                               K=K, LPAD=lpad, RPAD=rpad)

    def full_spec(arr):
        # Grid-invariant weight block. At production W the kron weights scale as W^2: single-
        # buffer them (pipeline_mode=pl.Buffered(1)) and/or drop the kron form to stay inside
        # v7x's 64 MiB VMEM.
        nd = arr.ndim
        return pl.BlockSpec(arr.shape, lambda n, _nd=nd: (0,) * _nd)

    grid_spec = pltpu.PrefetchScalarGridSpec(
        num_scalar_prefetch=0,
        grid=(grid,),
        in_specs=[pl.BlockSpec((B, H, W * Cio), lambda n: (n, 0, 0))]
        + [full_spec(a) for a in inputs[1:]],
        out_specs=pl.BlockSpec((B, H, W * Cio), lambda n: (n, 0, 0)),
        scratch_shapes=[pltpu.VMEM((B, H + 2 * P, wpad * Cexp), jnp.float32)],
    )

    out = pl.pallas_call(
        kernel,
        out_shape=jax.ShapeDtypeStruct((N, H, W * Cio), jnp.float32),
        grid_spec=grid_spec,
        # Batch blocks are independent -> "parallel" lets v7x shard the grid over both TCs.
        compiler_params=pltpu.CompilerParams(
            dimension_semantics=("parallel",),
            vmem_limit_bytes=32 * 1024 * 1024,
        ),
    )(*inputs)
    return out.reshape(N, H, W, Cio)


def reference(x, p):
    """Pure-JAX f32 reference of SelfieBlock.forward (NHWC)."""
    N, H, W, _ = x.shape

    def hswish(v):
        return v * jnp.clip(v + 3.0, 0.0, 6.0) * (1.0 / 6.0)

    h = hswish(jnp.einsum("nhwc,ce->nhwe", x, p["w1"]) + p["b1"])
    hp = jnp.pad(h, ((0, 0), (2, 2), (2, 2), (0, 0)))
    dw = p["dw"]  # (25, Cexp)
    acc = jnp.zeros_like(h)
    for dy in range(5):
        for dx in range(5):
            acc = acc + hp[:, dy:dy + H, dx:dx + W, :] * dw[dy * 5 + dx]
    h2 = acc + p["dwb"]
    a = hswish(h2)
    m = jnp.mean(a, axis=(1, 2), keepdims=True)
    r = jax.nn.relu(jnp.einsum("nhwc,cm->nhwm", m, p["sw1"]) + p["sb1"])
    s = jax.nn.sigmoid(jnp.einsum("nhwm,me->nhwe", r, p["sw2"]) + p["sb2"])
    out = jnp.einsum("nhwe,eo->nhwo", a * s, p["sw3"]) + p["sb3"]
    return x + out


def make_params(key, io_channels, exp_channels, mid_channels):
    ks = jax.random.split(key, 11)
    scale = 0.1
    return {
        # conv1: 1x1 io->exp            (PyTorch weight (exp, io, 1, 1) -> (io, exp))
        "w1": scale * jax.random.normal(ks[0], (io_channels, exp_channels), jnp.float32),
        "b1": scale * jax.random.normal(ks[1], (1, exp_channels), jnp.float32),
        # conv2: depthwise 5x5          (PyTorch weight (exp, 1, 5, 5) -> (25, exp))
        "dw": scale * jax.random.normal(ks[2], (25, exp_channels), jnp.float32),
        "dwb": scale * jax.random.normal(ks[3], (1, exp_channels), jnp.float32),
        # sub.conv1: 1x1 exp->mid
        "sw1": scale * jax.random.normal(ks[4], (exp_channels, mid_channels), jnp.float32),
        "sb1": scale * jax.random.normal(ks[5], (1, mid_channels), jnp.float32),
        # sub.conv2: 1x1 mid->exp
        "sw2": scale * jax.random.normal(ks[6], (mid_channels, exp_channels), jnp.float32),
        "sb2": scale * jax.random.normal(ks[7], (1, exp_channels), jnp.float32),
        # sub.conv3: 1x1 exp->io
        "sw3": scale * jax.random.normal(ks[8], (exp_channels, io_channels), jnp.float32),
        "sb3": scale * jax.random.normal(ks[9], (1, io_channels), jnp.float32),
    }


if __name__ == "__main__":
    # Small shapes: batch=4 (folded as 2 images per grid step, 2 grid steps), io_channels=8,
    # exp_channels=32, mid_channels=16, spatial=16x16.
    N, H, W = 4, 16, 16
    io_channels, exp_channels, mid_channels = 8, 32, 16

    key = jax.random.PRNGKey(0)
    kx, kp = jax.random.split(key)
    # NHWC input (equivalent PyTorch NCHW shape would be (4, 8, 16, 16)).
    x = jax.random.normal(kx, (N, H, W, io_channels), jnp.float32)
    params = make_params(kp, io_channels, exp_channels, mid_channels)

    out = jax.block_until_ready(selfie_block(x, params))
    ref = jax.block_until_ready(reference(x, params))

    assert out.shape == (N, H, W, io_channels)
    # bf16 MXU operands for the two big 1x1 convs -> tolerance relaxed vs the f32 reference.
    assert jnp.allclose(out, ref, atol=1e-2, rtol=1e-2), float(jnp.max(jnp.abs(out - ref)))

    print("KERNEL_OK")
</pallas_src>

<mosaic_0001>
module attributes {stable_mosaic.version = 11 : i64} {
  func.func @selfie_block_kernel(%arg0: i32, %arg1: memref<2x16x128xf32, #tpu.memory_space<vmem>>, %arg2: memref<128x512xbf16, #tpu.memory_space<vmem>>, %arg3: memref<1x512xf32, #tpu.memory_space<vmem>>, %arg4: memref<25x512xf32, #tpu.memory_space<vmem>>, %arg5: memref<1x512xf32, #tpu.memory_space<vmem>>, %arg6: memref<32x16xf32, #tpu.memory_space<vmem>>, %arg7: memref<1x16xf32, #tpu.memory_space<vmem>>, %arg8: memref<16x32xf32, #tpu.memory_space<vmem>>, %arg9: memref<1x32xf32, #tpu.memory_space<vmem>>, %arg10: memref<512x128xbf16, #tpu.memory_space<vmem>>, %arg11: memref<1x128xf32, #tpu.memory_space<vmem>>, %arg12: memref<2x16x128xf32, #tpu.memory_space<vmem>>, %arg13: memref<2x20x768xf32, #tpu.memory_space<vmem>>) attributes {dimension_semantics = [#tpu.dimension_semantics<parallel>], iteration_bounds = array<i64: 2>, scalar_prefetch = 0 : i64, scratch_operands = 1 : i64, tpu.core_type = #tpu.core_type<tc>, window_params = [{transform_indices = @transform_0, window_bounds = array<i64: 2, 16, 128>}, {pipeline_mode = #tpu.pipeline_mode<synchronous>, transform_indices = @transform_1, window_bounds = array<i64: 128, 512>}, {pipeline_mode = #tpu.pipeline_mode<synchronous>, transform_indices = @transform_2, window_bounds = array<i64: 1, 512>}, {pipeline_mode = #tpu.pipeline_mode<synchronous>, transform_indices = @transform_3, window_bounds = array<i64: 25, 512>}, {pipeline_mode = #tpu.pipeline_mode<synchronous>, transform_indices = @transform_4, window_bounds = array<i64: 1, 512>}, {pipeline_mode = #tpu.pipeline_mode<synchronous>, transform_indices = @transform_5, window_bounds = array<i64: 32, 16>}, {pipeline_mode = #tpu.pipeline_mode<synchronous>, transform_indices = @transform_6, window_bounds = array<i64: 1, 16>}, {pipeline_mode = #tpu.pipeline_mode<synchronous>, transform_indices = @transform_7, window_bounds = array<i64: 16, 32>}, {pipeline_mode = #tpu.pipeline_mode<synchronous>, transform_indices = @transform_8, window_bounds = array<i64: 1, 32>}, {pipeline_mode = #tpu.pipeline_mode<synchronous>, transform_indices = @transform_9, window_bounds = array<i64: 512, 128>}, {pipeline_mode = #tpu.pipeline_mode<synchronous>, transform_indices = @transform_10, window_bounds = array<i64: 1, 128>}, {transform_indices = @transform_11, window_bounds = array<i64: 2, 16, 128>}]} {
    %c0 = arith.constant 0 : index
    %c0_0 = arith.constant 0 : index
    %c0_1 = arith.constant 0 : index
    %0 = vector.load %arg1[%c0, %c0_0, %c0_1] : memref<2x16x128xf32, #tpu.memory_space<vmem>>, vector<2x16x128xf32>
    %1 = vector.shape_cast %0 : vector<2x16x128xf32> to vector<32x128xf32>
    %2 = arith.truncf %1 : vector<32x128xf32> to vector<32x128xbf16>
    %c0_2 = arith.constant 0 : index
    %c0_3 = arith.constant 0 : index
    %3 = vector.load %arg2[%c0_2, %c0_3] : memref<128x512xbf16, #tpu.memory_space<vmem>>, vector<128x512xbf16>
    %cst = arith.constant dense<0.000000e+00> : vector<32x512xf32>
    %4 = tpu.matmul %2, %3, %cst {dimension_numbers = #tpu.dot_dimension_numbers<[1], [0], [0], [1], [0, 0, 1, 1], [], []>} : vector<32x128xbf16>, vector<128x512xbf16>, vector<32x512xf32> -> vector<32x512xf32>
    %c0_4 = arith.constant 0 : index
    %c0_5 = arith.constant 0 : index
    %5 = vector.load %arg3[%c0_4, %c0_5] : memref<1x512xf32, #tpu.memory_space<vmem>>, vector<1x512xf32>
    %6 = vector.broadcast %5 : vector<1x512xf32> to vector<32x512xf32>
    %7 = arith.addf %4, %6 : vector<32x512xf32>
    %cst_6 = arith.constant 3.000000e+00 : f32
    %8 = vector.broadcast %cst_6 : f32 to vector<32x512xf32>
    %9 = arith.addf %7, %8 : vector<32x512xf32>
    %cst_7 = arith.constant 0.000000e+00 : f32
    %cst_8 = arith.constant 6.000000e+00 : f32
    %10 = vector.broadcast %cst_7 : f32 to vector<32x512xf32>
    %11 = arith.maximumf %10, %9 : vector<32x512xf32>
    %12 = vector.broadcast %cst_8 : f32 to vector<32x512xf32>
    %13 = arith.minimumf %12, %11 : vector<32x512xf32>
    %14 = arith.mulf %7, %13 : vector<32x512xf32>
    %cst_9 = arith.constant 0.000000e+00 : f32
    %15 = vector.broadcast %cst_9 : f32 to vector<2x2x768xf32>
    %c0_10 = arith.constant 0 : index
    %c0_11 = arith.constant 0 : index
    %c0_12 = arith.constant 0 : index
    %16 = vector.load %arg13[%c0_10, %c0_11, %c0_12] : memref<2x20x768xf32, #tpu.memory_space<vmem>>, vector<2x2x768xf32>
    tpu.vector_store %arg13[%c0_10, %c0_11, %c0_12], %15 {strides = array<i32>} : memref<2x20x768xf32, #tpu.memory_space<vmem>>, vector<2x2x768xf32>,
    %cst_13 = arith.constant 0.000000e+00 : f32
    %17 = vector.broadcast %cst_13 : f32 to vector<2x2x768xf32>
    %c0_14 = arith.constant 0 : index
    %c18 = arith.constant 18 : index
    %c0_15 = arith.constant 0 : index
    %18 = vector.load %arg13[%c0_14, %c18, %c0_15] : memref<2x20x768xf32, #tpu.memory_space<vmem>>, vector<2x2x768xf32>
    tpu.vector_store %arg13[%c0_14, %c18, %c0_15], %17 {strides = array<i32>} : memref<2x20x768xf32, #tpu.memory_space<vmem>>, vector<2x2x768xf32>,
    %cst_16 = arith.constant 0.000000e+00 : f32
    %19 = vector.broadcast %cst_16 : f32 to vector<2x16x128xf32>
    %c0_17 = arith.constant 0 : index
    %c2 = arith.constant 2 : index
    %c0_18 = arith.constant 0 : index
    %20 = vector.load %arg13[%c0_17, %c2, %c0_18] : memref<2x20x768xf32, #tpu.memory_space<vmem>>, vector<2x16x128xf32>
    tpu.vector_store %arg13[%c0_17, %c2, %c0_18], %19 {strides = array<i32>} : memref<2x20x768xf32, #tpu.memory_space<vmem>>, vector<2x16x128xf32>,
    %cst_19 = arith.constant 0.000000e+00 : f32
    %21 = vector.broadcast %cst_19 : f32 to vector<2x16x128xf32>
    %c0_20 = arith.constant 0 : index
    %c2_21 = arith.constant 2 : index
    %c640 = arith.constant 640 : index
    %22 = vector.load %arg13[%c0_20, %c2_21, %c640] : memref<2x20x768xf32, #tpu.memory_space<vmem>>, vector<2x16x128xf32>
    tpu.vector_store %arg13[%c0_20, %c2_21, %c640], %21 {strides = array<i32>} : memref<2x20x768xf32, #tpu.memory_space<vmem>>, vector<2x16x128xf32>,
    %23 = vector.shape_cast %14 : vector<32x512xf32> to vector<2x16x512xf32>
    %c0_22 = arith.constant 0 : index
    %c2_23 = arith.constant 2 : index
    %c128 = arith.constant 128 : index
    %24 = vector.load %arg13[%c0_22, %c2_23, %c128] : memref<2x20x768xf32, #tpu.memory_space<vmem>>, vector<2x16x512xf32>
    tpu.vector_store %arg13[%c0_22, %c2_23, %c128], %23 {strides = array<i32>} : memref<2x20x768xf32, #tpu.memory_space<vmem>>, vector<2x16x512xf32>,
    %c0_24 = arith.constant 0 : index
    %c0_25 = arith.constant 0 : index
    %25 = vector.load %arg5[%c0_24, %c0_25] : memref<1x512xf32, #tpu.memory_space<vmem>>, vector<1x512xf32>
    %26 = vector.shape_cast %25 : vector<1x512xf32> to vector<1x1x512xf32>
    %27 = vector.shape_cast %26 : vector<1x1x512xf32> to vector<1x1x512xf32>
    %28 = vector.broadcast %27 : vector<1x1x512xf32> to vector<2x16x512xf32>
    %c0_26 = arith.constant 0 : index
    %c0_27 = arith.constant 0 : index
    %c64 = arith.constant 64 : index
    %29 = vector.load %arg13[%c0_26, %c0_27, %c64] : memref<2x20x768xf32, #tpu.memory_space<vmem>>, vector<2x20x512xf32>
    %c0_28 = arith.constant 0 : index
    %c0_29 = arith.constant 0 : index
    %30 = vector.load %arg4[%c0_28, %c0_29] : memref<25x512xf32, #tpu.memory_space<vmem>>, vector<1x512xf32>
    %31 = vector.extract_strided_slice %29 {offsets = [0, 0, 0], sizes = [2, 16, 512], strides = [1, 1, 1]} : vector<2x20x512xf32> to vector<2x16x512xf32>
    %32 = vector.shape_cast %30 : vector<1x512xf32> to vector<1x1x512xf32>
    %33 = vector.broadcast %32 : vector<1x1x512xf32> to vector<2x16x512xf32>
    %34 = arith.mulf %31, %33 : vector<2x16x512xf32>
    %35 = arith.addf %28, %34 : vector<2x16x512xf32>
    %c5 = arith.constant 5 : index
    %c0_30 = arith.constant 0 : index
    %36 = vector.load %arg4[%c5, %c0_30] : memref<25x512xf32, #tpu.memory_space<vmem>>, vector<1x512xf32>
    %37 = vector.extract_strided_slice %29 {offsets = [0, 1, 0], sizes = [2, 16, 512], strides = [1, 1, 1]} : vector<2x20x512xf32> to vector<2x16x512xf32>
    %38 = vector.shape_cast %36 : vector<1x512xf32> to vector<1x1x512xf32>
    %39 = vector.broadcast %38 : vector<1x1x512xf32> to vector<2x16x512xf32>
    %40 = arith.mulf %37, %39 : vector<2x16x512xf32>
    %41 = arith.addf %35, %40 : vector<2x16x512xf32>
    %c10 = arith.constant 10 : index
    %c0_31 = arith.constant 0 : index
    %42 = vector.load %arg4[%c10, %c0_31] : memref<25x512xf32, #tpu.memory_space<vmem>>, vector<1x512xf32>
    %43 = vector.extract_strided_slice %29 {offsets = [0, 2, 0], sizes = [2, 16, 512], strides = [1, 1, 1]} : vector<2x20x512xf32> to vector<2x16x512xf32>
    %44 = vector.shape_cast %42 : vector<1x512xf32> to vector<1x1x512xf32>
    %45 = vector.broadcast %44 : vector<1x1x512xf32> to vector<2x16x512xf32>
    %46 = arith.mulf %43, %45 : vector<2x16x512xf32>
    %47 = arith.addf %41, %46 : vector<2x16x512xf32>
    %c15 = arith.constant 15 : index
    %c0_32 = arith.constant 0 : index
    %48 = vector.load %arg4[%c15, %c0_32] : memref<25x512xf32, #tpu.memory_space<vmem>>, vector<1x512xf32>
    %49 = vector.extract_strided_slice %29 {offsets = [0, 3, 0], sizes = [2, 16, 512], strides = [1, 1, 1]} : vector<2x20x512xf32> to vector<2x16x512xf32>
    %50 = vector.shape_cast %48 : vector<1x512xf32> to vector<1x1x512xf32>
    %51 = vector.broadcast %50 : vector<1x1x512xf32> to vector<2x16x512xf32>
    %52 = arith.mulf %49, %51 : vector<2x16x512xf32>
    %53 = arith.addf %47, %52 : vector<2x16x512xf32>
    %c20 = arith.constant 20 : index
    %c0_33 = arith.constant 0 : index
    %54 = vector.load %arg4[%c20, %c0_33] : memref<25x512xf32, #tpu.memory_space<vmem>>, vector<1x512xf32>
    %55 = vector.extract_strided_slice %29 {offsets = [0, 4, 0], sizes = [2, 16, 512], strides = [1, 1, 1]} : vector<2x20x512xf32> to vector<2x16x512xf32>
    %56 = vector.shape_cast %54 : vector<1x512xf32> to vector<1x1x512xf32>
    %57 = vector.broadcast %56 : vector<1x1x512xf32> to vector<2x16x512xf32>
    %58 = arith.mulf %55, %57 : vector<2x16x512xf32>
    %59 = arith.addf %53, %58 : vector<2x16x512xf32>
    %c0_34 = arith.constant 0 : index
    %c0_35 = arith.constant 0 : index
    %c96 = arith.constant 96 : index
    %60 = vector.load %arg13[%c0_34, %c0_35, %c96] : memref<2x20x768xf32, #tpu.memory_space<vmem>>, vector<2x20x512xf32>
    %c1 = arith.constant 1 : index
    %c0_36 = arith.constant 0 : index
    %61 = vector.load %arg4[%c1, %c0_36] : memref<25x512xf32, #tpu.memory_space<vmem>>, vector<1x512xf32>
    %62 = vector.extract_strided_slice %60 {offsets = [0, 0, 0], sizes = [2, 16, 512], strides = [1, 1, 1]} : vector<2x20x512xf32> to vector<2x16x512xf32>
    %63 = vector.shape_cast %61 : vector<1x512xf32> to vector<1x1x512xf32>
    %64 = vector.broadcast %63 : vector<1x1x512xf32> to vector<2x16x512xf32>
    %65 = arith.mulf %62, %64 : vector<2x16x512xf32>
    %66 = arith.addf %59, %65 : vector<2x16x512xf32>
    %c6 = arith.constant 6 : index
    %c0_37 = arith.constant 0 : index
    %67 = vector.load %arg4[%c6, %c0_37] : memref<25x512xf32, #tpu.memory_space<vmem>>, vector<1x512xf32>
    %68 = vector.extract_strided_slice %60 {offsets = [0, 1, 0], sizes = [2, 16, 512], strides = [1, 1, 1]} : vector<2x20x512xf32> to vector<2x16x512xf32>
    %69 = vector.shape_cast %67 : vector<1x512xf32> to vector<1x1x512xf32>
    %70 = vector.broadcast %69 : vector<1x1x512xf32> to vector<2x16x512xf32>
    %71 = arith.mulf %68, %70 : vector<2x16x512xf32>
    %72 = arith.addf %66, %71 : vector<2x16x512xf32>
    %c11 = arith.constant 11 : index
    %c0_38 = arith.constant 0 : index
    %73 = vector.load %arg4[%c11, %c0_38] : memref<25x512xf32, #tpu.memory_space<vmem>>, vector<1x512xf32>
    %74 = vector.extract_strided_slice %60 {offsets = [0, 2, 0], sizes = [2, 16, 512], strides = [1, 1, 1]} : vector<2x20x512xf32> to vector<2x16x512xf32>
    %75 = vector.shape_cast %73 : vector<1x512xf32> to vector<1x1x512xf32>
    %76 = vector.broadcast %75 : vector<1x1x512xf32> to vector<2x16x512xf32>
    %77 = arith.mulf %74, %76 : vector<2x16x512xf32>
    %78 = arith.addf %72, %77 : vector<2x16x512xf32>
    %c16 = arith.constant 16 : index
    %c0_39 = arith.constant 0 : index
    %79 = vector.load %arg4[%c16, %c0_39] : memref<25x512xf32, #tpu.memory_space<vmem>>, vector<1x512xf32>
    %80 = vector.extract_strided_slice %60 {offsets = [0, 3, 0], sizes = [2, 16, 512], strides = [1, 1, 1]} : vector<2x20x512xf32> to vector<2x16x512xf32>
    %81 = vector.shape_cast %79 : vector<1x512xf32> to vector<1x1x512xf32>
    %82 = vector.broadcast %81 : vector<1x1x512xf32> to vector<2x16x512xf32>
    %83 = arith.mulf %80, %82 : vector<2x16x512xf32>
    %84 = arith.addf %78, %83 : vector<2x16x512xf32>
    %c21 = arith.constant 21 : index
    %c0_40 = arith.constant 0 : index
    %85 = vector.load %arg4[%c21, %c0_40] : memref<25x512xf32, #tpu.memory_space<vmem>>, vector<1x512xf32>
    %86 = vector.extract_strided_slice %60 {offsets = [0, 4, 0], sizes = [2, 16, 512], strides = [1, 1, 1]} : vector<2x20x512xf32> to vector<2x16x512xf32>
    %87 = vector.shape_cast %85 : vector<1x512xf32> to vector<1x1x512xf32>
    %88 = vector.broadcast %87 : vector<1x1x512xf32> to vector<2x16x512xf32>
    %89 = arith.mulf %86, %88 : vector<2x16x512xf32>
    %90 = arith.addf %84, %89 : vector<2x16x512xf32>
    %c0_41 = arith.constant 0 : index
    %c0_42 = arith.constant 0 : index
    %c128_43 = arith.constant 128 : index
    %91 = vector.load %arg13[%c0_41, %c0_42, %c128_43] : memref<2x20x768xf32, #tpu.memory_space<vmem>>, vector<2x20x512xf32>
    %c2_44 = arith.constant 2 : index
    %c0_45 = arith.constant 0 : index
    %92 = vector.load %arg4[%c2_44, %c0_45] : memref<25x512xf32, #tpu.memory_space<vmem>>, vector<1x512xf32>
    %93 = vector.extract_strided_slice %91 {offsets = [0, 0, 0], sizes = [2, 16, 512], strides = [1, 1, 1]} : vector<2x20x512xf32> to vector<2x16x512xf32>
    %94 = vector.shape_cast %92 : vector<1x512xf32> to vector<1x1x512xf32>
    %95 = vector.broadcast %94 : vector<1x1x512xf32> to vector<2x16x512xf32>
    %96 = arith.mulf %93, %95 : vector<2x16x512xf32>
    %97 = arith.addf %90, %96 : vector<2x16x512xf32>
    %c7 = arith.constant 7 : index
    %c0_46 = arith.constant 0 : index
    %98 = vector.load %arg4[%c7, %c0_46] : memref<25x512xf32, #tpu.memory_space<vmem>>, vector<1x512xf32>
    %99 = vector.extract_strided_slice %91 {offsets = [0, 1, 0], sizes = [2, 16, 512], strides = [1, 1, 1]} : vector<2x20x512xf32> to vector<2x16x512xf32>
    %100 = vector.shape_cast %98 : vector<1x512xf32> to vector<1x1x512xf32>
    %101 = vector.broadcast %100 : vector<1x1x512xf32> to vector<2x16x512xf32>
    %102 = arith.mulf %99, %101 : vector<2x16x512xf32>
    %103 = arith.addf %97, %102 : vector<2x16x512xf32>
    %c12 = arith.constant 12 : index
    %c0_47 = arith.constant 0 : index
    %104 = vector.load %arg4[%c12, %c0_47] : memref<25x512xf32, #tpu.memory_space<vmem>>, vector<1x512xf32>
    %105 = vector.extract_strided_slice %91 {offsets = [0, 2, 0], sizes = [2, 16, 512], strides = [1, 1, 1]} : vector<2x20x512xf32> to vector<2x16x512xf32>
    %106 = vector.shape_cast %104 : vector<1x512xf32> to vector<1x1x512xf32>
    %107 = vector.broadcast %106 : vector<1x1x512xf32> to vector<2x16x512xf32>
    %108 = arith.mulf %105, %107 : vector<2x16x512xf32>
    %109 = arith.addf %103, %108 : vector<2x16x512xf32>
    %c17 = arith.constant 17 : index
    %c0_48 = arith.constant 0 : index
    %110 = vector.load %arg4[%c17, %c0_48] : memref<25x512xf32, #tpu.memory_space<vmem>>, vector<1x512xf32>
    %111 = vector.extract_strided_slice %91 {offsets = [0, 3, 0], sizes = [2, 16, 512], strides = [1, 1, 1]} : vector<2x20x512xf32> to vector<2x16x512xf32>
    %112 = vector.shape_cast %110 : vector<1x512xf32> to vector<1x1x512xf32>
    %113 = vector.broadcast %112 : vector<1x1x512xf32> to vector<2x16x512xf32>
    %114 = arith.mulf %111, %113 : vector<2x16x512xf32>
    %115 = arith.addf %109, %114 : vector<2x16x512xf32>
    %c22 = arith.constant 22 : index
    %c0_49 = arith.constant 0 : index
    %116 = vector.load %arg4[%c22, %c0_49] : memref<25x512xf32, #tpu.memory_space<vmem>>, vector<1x512xf32>
    %117 = vector.extract_strided_slice %91 {offsets = [0, 4, 0], sizes = [2, 16, 512], strides = [1, 1, 1]} : vector<2x20x512xf32> to vector<2x16x512xf32>
    %118 = vector.shape_cast %116 : vector<1x512xf32> to vector<1x1x512xf32>
    %119 = vector.broadcast %118 : vector<1x1x512xf32> to vector<2x16x512xf32>
    %120 = arith.mulf %117, %119 : vector<2x16x512xf32>
    %121 = arith.addf %115, %120 : vector<2x16x512xf32>
    %c0_50 = arith.constant 0 : index
    %c0_51 = arith.constant 0 : index
    %c160 = arith.constant 160 : index
    %122 = vector.load %arg13[%c0_50, %c0_51, %c160] : memref<2x20x768xf32, #tpu.memory_space<vmem>>, vector<2x20x512xf32>
    %c3 = arith.constant 3 : index
    %c0_52 = arith.constant 0 : index
    %123 = vector.load %arg4[%c3, %c0_52] : memref<25x512xf32, #tpu.memory_space<vmem>>, vector<1x512xf32>
    %124 = vector.extract_strided_slice %122 {offsets = [0, 0, 0], sizes = [2, 16, 512], strides = [1, 1, 1]} : vector<2x20x512xf32> to vector<2x16x512xf32>
    %125 = vector.shape_cast %123 : vector<1x512xf32> to vector<1x1x512xf32>
    %126 = vector.broadcast %125 : vector<1x1x512xf32> to vector<2x16x512xf32>
    %127 = arith.mulf %124, %126 : vector<2x16x512xf32>
    %128 = arith.addf %121, %127 : vector<2x16x512xf32>
    %c8 = arith.constant 8 : index
    %c0_53 = arith.constant 0 : index
    %129 = vector.load %arg4[%c8, %c0_53] : memref<25x512xf32, #tpu.memory_space<vmem>>, vector<1x512xf32>
    %130 = vector.extract_strided_slice %122 {offsets = [0, 1, 0], sizes = [2, 16, 512], strides = [1, 1, 1]} : vector<2x20x512xf32> to vector<2x16x512xf32>
    %131 = vector.shape_cast %129 : vector<1x512xf32> to vector<1x1x512xf32>
    %132 = vector.broadcast %131 : vector<1x1x512xf32> to vector<2x16x512xf32>
    %133 = arith.mulf %130, %132 : vector<2x16x512xf32>
    %134 = arith.addf %128, %133 : vector<2x16x512xf32>
    %c13 = arith.constant 13 : index
    %c0_54 = arith.constant 0 : index
    %135 = vector.load %arg4[%c13, %c0_54] : memref<25x512xf32, #tpu.memory_space<vmem>>, vector<1x512xf32>
    %136 = vector.extract_strided_slice %122 {offsets = [0, 2, 0], sizes = [2, 16, 512], strides = [1, 1, 1]} : vector<2x20x512xf32> to vector<2x16x512xf32>
    %137 = vector.shape_cast %135 : vector<1x512xf32> to vector<1x1x512xf32>
    %138 = vector.broadcast %137 : vector<1x1x512xf32> to vector<2x16x512xf32>
    %139 = arith.mulf %136, %138 : vector<2x16x512xf32>
    %140 = arith.addf %134, %139 : vector<2x16x512xf32>
    %c18_55 = arith.constant 18 : index
    %c0_56 = arith.constant 0 : index
    %141 = vector.load %arg4[%c18_55, %c0_56] : memref<25x512xf32, #tpu.memory_space<vmem>>, vector<1x512xf32>
    %142 = vector.extract_strided_slice %122 {offsets = [0, 3, 0], sizes = [2, 16, 512], strides = [1, 1, 1]} : vector<2x20x512xf32> to vector<2x16x512xf32>
    %143 = vector.shape_cast %141 : vector<1x512xf32> to vector<1x1x512xf32>
    %144 = vector.broadcast %143 : vector<1x1x512xf32> to vector<2x16x512xf32>
    %145 = arith.mulf %142, %144 : vector<2x16x512xf32>
    %146 = arith.addf %140, %145 : vector<2x16x512xf32>
    %c23 = arith.constant 23 : index
    %c0_57 = arith.constant 0 : index
    %147 = vector.load %arg4[%c23, %c0_57] : memref<25x512xf32, #tpu.memory_space<vmem>>, vector<1x512xf32>
    %148 = vector.extract_strided_slice %122 {offsets = [0, 4, 0], sizes = [2, 16, 512], strides = [1, 1, 1]} : vector<2x20x512xf32> to vector<2x16x512xf32>
    %149 = vector.shape_cast %147 : vector<1x512xf32> to vector<1x1x512xf32>
    %150 = vector.broadcast %149 : vector<1x1x512xf32> to vector<2x16x512xf32>
    %151 = arith.mulf %148, %150 : vector<2x16x512xf32>
    %152 = arith.addf %146, %151 : vector<2x16x512xf32>
    %c0_58 = arith.constant 0 : index
    %c0_59 = arith.constant 0 : index
    %c192 = arith.constant 192 : index
    %153 = vector.load %arg13[%c0_58, %c0_59, %c192] : memref<2x20x768xf32, #tpu.memory_space<vmem>>, vector<2x20x512xf32>
    %c4 = arith.constant 4 : index
    %c0_60 = arith.constant 0 : index
    %154 = vector.load %arg4[%c4, %c0_60] : memref<25x512xf32, #tpu.memory_space<vmem>>, vector<1x512xf32>
    %155 = vector.extract_strided_slice %153 {offsets = [0, 0, 0], sizes = [2, 16, 512], strides = [1, 1, 1]} : vector<2x20x512xf32> to vector<2x16x512xf32>
    %156 = vector.shape_cast %154 : vector<1x512xf32> to vector<1x1x512xf32>
    %157 = vector.broadcast %156 : vector<1x1x512xf32> to vector<2x16x512xf32>
    %158 = arith.mulf %155, %157 : vector<2x16x512xf32>
    %159 = arith.addf %152, %158 : vector<2x16x512xf32>
    %c9 = arith.constant 9 : index
    %c0_61 = arith.constant 0 : index
    %160 = vector.load %arg4[%c9, %c0_61] : memref<25x512xf32, #tpu.memory_space<vmem>>, vector<1x512xf32>
    %161 = vector.extract_strided_slice %153 {offsets = [0, 1, 0], sizes = [2, 16, 512], strides = [1, 1, 1]} : vector<2x20x512xf32> to vector<2x16x512xf32>
    %162 = vector.shape_cast %160 : vector<1x512xf32> to vector<1x1x512xf32>
    %163 = vector.broadcast %162 : vector<1x1x512xf32> to vector<2x16x512xf32>
    %164 = arith.mulf %161, %163 : vector<2x16x512xf32>
    %165 = arith.addf %159, %164 : vector<2x16x512xf32>
    %c14 = arith.constant 14 : index
    %c0_62 = arith.constant 0 : index
    %166 = vector.load %arg4[%c14, %c0_62] : memref<25x512xf32, #tpu.memory_space<vmem>>, vector<1x512xf32>
    %167 = vector.extract_strided_slice %153 {offsets = [0, 2, 0], sizes = [2, 16, 512], strides = [1, 1, 1]} : vector<2x20x512xf32> to vector<2x16x512xf32>
    %168 = vector.shape_cast %166 : vector<1x512xf32> to vector<1x1x512xf32>
    %169 = vector.broadcast %168 : vector<1x1x512xf32> to vector<2x16x512xf32>
    %170 = arith.mulf %167, %169 : vector<2x16x512xf32>
    %171 = arith.addf %165, %170 : vector<2x16x512xf32>
    %c19 = arith.constant 19 : index
    %c0_63 = arith.constant 0 : index
    %172 = vector.load %arg4[%c19, %c0_63] : memref<25x512xf32, #tpu.memory_space<vmem>>, vector<1x512xf32>
    %173 = vector.extract_strided_slice %153 {offsets = [0, 3, 0], sizes = [2, 16, 512], strides = [1, 1, 1]} : vector<2x20x512xf32> to vector<2x16x512xf32>
    %174 = vector.shape_cast %172 : vector<1x512xf32> to vector<1x1x512xf32>
    %175 = vector.broadcast %174 : vector<1x1x512xf32> to vector<2x16x512xf32>
    %176 = arith.mulf %173, %175 : vector<2x16x512xf32>
    %177 = arith.addf %171, %176 : vector<2x16x512xf32>
    %c24 = arith.constant 24 : index
    %c0_64 = arith.constant 0 : index
    %178 = vector.load %arg4[%c24, %c0_64] : memref<25x512xf32, #tpu.memory_space<vmem>>, vector<1x512xf32>
    %179 = vector.extract_strided_slice %153 {offsets = [0, 4, 0], sizes = [2, 16, 512], strides = [1, 1, 1]} : vector<2x20x512xf32> to vector<2x16x512xf32>
    %180 = vector.shape_cast %178 : vector<1x512xf32> to vector<1x1x512xf32>
    %181 = vector.broadcast %180 : vector<1x1x512xf32> to vector<2x16x512xf32>
    %182 = arith.mulf %179, %181 : vector<2x16x512xf32>
    %183 = arith.addf %177, %182 : vector<2x16x512xf32>
    %cst_65 = arith.constant 3.000000e+00 : f32
    %184 = vector.broadcast %cst_65 : f32 to vector<2x16x512xf32>
    %185 = arith.addf %183, %184 : vector<2x16x512xf32>
    %cst_66 = arith.constant 0.000000e+00 : f32
    %cst_67 = arith.constant 6.000000e+00 : f32
    %186 = vector.broadcast %cst_66 : f32 to vector<2x16x512xf32>
    %187 = arith.maximumf %186, %185 : vector<2x16x512xf32>
    %188 = vector.broadcast %cst_67 : f32 to vector<2x16x512xf32>
    %189 = arith.minimumf %188, %187 : vector<2x16x512xf32>
    %190 = arith.mulf %183, %189 : vector<2x16x512xf32>
    %cst_68 = arith.constant dense<0.000000e+00> : vector<2x512xf32>
    %191 = vector.multi_reduction <add>, %190, %cst_68 [1] : vector<2x16x512xf32> to vector<2x512xf32>
    %c256_i32 = arith.constant 256 : i32
    %192 = tpu.dynamic_rotate %191 by %c256_i32 dim 1 : vector<2x512xf32>, i32 -> vector<2x512xf32>
    %193 = arith.addf %191, %192 : vector<2x512xf32>
    %c128_i32 = arith.constant 128 : i32
    %194 = tpu.dynamic_rotate %193 by %c128_i32 dim 1 : vector<2x512xf32>, i32 -> vector<2x512xf32>
    %195 = arith.addf %193, %194 : vector<2x512xf32>
    %c64_i32 = arith.constant 64 : i32
    %196 = tpu.dynamic_rotate %195 by %c64_i32 dim 1 : vector<2x512xf32>, i32 -> vector<2x512xf32>
    %197 = arith.addf %195, %196 : vector<2x512xf32>
    %c32_i32 = arith.constant 32 : i32
    %198 = tpu.dynamic_rotate %197 by %c32_i32 dim 1 : vector<2x512xf32>, i32 -> vector<2x512xf32>
    %199 = arith.addf %197, %198 : vector<2x512xf32>
    %200 = vector.extract_strided_slice %199 {offsets = [0, 0], sizes = [2, 32], strides = [1, 1]} : vector<2x512xf32> to vector<2x32xf32>
    %cst_69 = arith.constant 6.51041686E-4 : f32
    %201 = vector.broadcast %cst_69 : f32 to vector<2x32xf32>
    %202 = arith.mulf %200, %201 : vector<2x32xf32>
    %c0_70 = arith.constant 0 : index
    %c0_71 = arith.constant 0 : index
    %203 = vector.load %arg6[%c0_70, %c0_71] : memref<32x16xf32, #tpu.memory_space<vmem>>, vector<32x16xf32>
    %cst_72 = arith.constant dense<0.000000e+00> : vector<2x16xf32>
    %204 = tpu.matmul %202, %203, %cst_72 {dimension_numbers = #tpu.dot_dimension_numbers<[1], [0], [0], [1], [0, 0, 1, 1], [], []>} : vector<2x32xf32>, vector<32x16xf32>, vector<2x16xf32> -> vector<2x16xf32>
    %c0_73 = arith.constant 0 : index
    %c0_74 = arith.constant 0 : index
    %205 = vector.load %arg7[%c0_73, %c0_74] : memref<1x16xf32, #tpu.memory_space<vmem>>, vector<1x16xf32>
    %206 = vector.broadcast %205 : vector<1x16xf32> to vector<2x16xf32>
    %207 = arith.addf %204, %206 : vector<2x16xf32>
    %cst_75 = arith.constant 0.000000e+00 : f32
    %208 = vector.broadcast %cst_75 : f32 to vector<2x16xf32>
    %209 = arith.maximumf %207, %208 : vector<2x16xf32>
    %c0_76 = arith.constant 0 : index
    %c0_77 = arith.constant 0 : index
    %210 = vector.load %arg8[%c0_76, %c0_77] : memref<16x32xf32, #tpu.memory_space<vmem>>, vector<16x32xf32>
    %cst_78 = arith.constant dense<0.000000e+00> : vector<2x32xf32>
    %211 = tpu.matmul %209, %210, %cst_78 {dimension_numbers = #tpu.dot_dimension_numbers<[1], [0], [0], [1], [0, 0, 1, 1], [], []>} : vector<2x16xf32>, vector<16x32xf32>, vector<2x32xf32> -> vector<2x32xf32>
    %c0_79 = arith.constant 0 : index
    %c0_80 = arith.constant 0 : index
    %212 = vector.load %arg9[%c0_79, %c0_80] : memref<1x32xf32, #tpu.memory_space<vmem>>, vector<1x32xf32>
    %213 = vector.broadcast %212 : vector<1x32xf32> to vector<2x32xf32>
    %214 = arith.addf %211, %213 : vector<2x32xf32>
    %215 = arith.negf %214 : vector<2x32xf32>
    %216 = math.exp %215 : vector<2x32xf32>
    %cst_81 = arith.constant 1.000000e+00 : f32
    %217 = vector.broadcast %cst_81 : f32 to vector<2x32xf32>
    %218 = arith.addf %217, %216 : vector<2x32xf32>
    %219 = arith.divf %217, %218 : vector<2x32xf32>
    %220 = tpu.concatenate %219, %219, %219, %219 in 1 : vector<2x32xf32>, vector<2x32xf32>, vector<2x32xf32>, vector<2x32xf32> -> vector<2x128xf32>
    %221 = tpu.concatenate %220, %220, %220, %220 in 1 : vector<2x128xf32>, vector<2x128xf32>, vector<2x128xf32>, vector<2x128xf32> -> vector<2x512xf32>
    %222 = vector.shape_cast %221 : vector<2x512xf32> to vector<2x1x512xf32>
    %223 = vector.broadcast %222 : vector<2x1x512xf32> to vector<2x16x512xf32>
    %224 = arith.mulf %190, %223 : vector<2x16x512xf32>
    %225 = vector.shape_cast %224 : vector<2x16x512xf32> to vector<32x512xf32>
    %226 = arith.truncf %225 : vector<32x512xf32> to vector<32x512xbf16>
    %c0_82 = arith.constant 0 : index
    %c0_83 = arith.constant 0 : index
    %227 = vector.load %arg10[%c0_82, %c0_83] : memref<512x128xbf16, #tpu.memory_space<vmem>>, vector<512x128xbf16>
    %cst_84 = arith.constant dense<0.000000e+00> : vector<32x128xf32>
    %228 = tpu.matmul %226, %227, %cst_84 {dimension_numbers = #tpu.dot_dimension_numbers<[1], [0], [0], [1], [0, 0, 1, 1], [], []>} : vector<32x512xbf16>, vector<512x128xbf16>, vector<32x128xf32> -> vector<32x128xf32>
    %c0_85 = arith.constant 0 : index
    %c0_86 = arith.constant 0 : index
    %229 = vector.load %arg11[%c0_85, %c0_86] : memref<1x128xf32, #tpu.memory_space<vmem>>, vector<1x128xf32>
    %230 = vector.broadcast %229 : vector<1x128xf32> to vector<32x128xf32>
    %231 = arith.addf %228, %230 : vector<32x128xf32>
    %232 = arith.addf %1, %231 : vector<32x128xf32>
    %233 = vector.shape_cast %232 : vector<32x128xf32> to vector<2x16x128xf32>
    %c0_87 = arith.constant 0 : index
    %c0_88 = arith.constant 0 : index
    %c0_89 = arith.constant 0 : index
    %234 = vector.load %arg12[%c0_87, %c0_88, %c0_89] : memref<2x16x128xf32, #tpu.memory_space<vmem>>, vector<2x16x128xf32>
    tpu.vector_store %arg12[%c0_87, %c0_88, %c0_89], %233 {strides = array<i32>} : memref<2x16x128xf32, #tpu.memory_space<vmem>>, vector<2x16x128xf32>,
    return
  }
  func.func @transform_0(%arg0: i32) -> (i32, i32, i32) {
    %c0_i32 = arith.constant 0 : i32
    %c0_i32_0 = arith.constant 0 : i32
    %c0_i32_1 = arith.constant 0 : i32
    return %arg0, %c0_i32, %c0_i32_0 : i32, i32, i32
  }
  func.func @transform_1(%arg0: i32) -> (i32, i32) {
    %c0_i32 = arith.constant 0 : i32
    %c0_i32_0 = arith.constant 0 : i32
    %c0_i32_1 = arith.constant 0 : i32
    return %c0_i32, %c0_i32_0 : i32, i32
  }
  func.func @transform_2(%arg0: i32) -> (i32, i32) {
    %c0_i32 = arith.constant 0 : i32
    %c0_i32_0 = arith.constant 0 : i32
    %c0_i32_1 = arith.constant 0 : i32
    return %c0_i32, %c0_i32_0 : i32, i32
  }
  func.func @transform_3(%arg0: i32) -> (i32, i32) {
    %c0_i32 = arith.constant 0 : i32
    %c0_i32_0 = arith.constant 0 : i32
    %c0_i32_1 = arith.constant 0 : i32
    return %c0_i32, %c0_i32_0 : i32, i32
  }
  func.func @transform_4(%arg0: i32) -> (i32, i32) {
    %c0_i32 = arith.constant 0 : i32
    %c0_i32_0 = arith.constant 0 : i32
    %c0_i32_1 = arith.constant 0 : i32
    return %c0_i32, %c0_i32_0 : i32, i32
  }
  func.func @transform_5(%arg0: i32) -> (i32, i32) {
    %c0_i32 = arith.constant 0 : i32
    %c0_i32_0 = arith.constant 0 : i32
    %c0_i32_1 = arith.constant 0 : i32
    return %c0_i32, %c0_i32_0 : i32, i32
  }
  func.func @transform_6(%arg0: i32) -> (i32, i32) {
    %c0_i32 = arith.constant 0 : i32
    %c0_i32_0 = arith.constant 0 : i32
    %c0_i32_1 = arith.constant 0 : i32
    return %c0_i32, %c0_i32_0 : i32, i32
  }
  func.func @transform_7(%arg0: i32) -> (i32, i32) {
    %c0_i32 = arith.constant 0 : i32
    %c0_i32_0 = arith.constant 0 : i32
    %c0_i32_1 = arith.constant 0 : i32
    return %c0_i32, %c0_i32_0 : i32, i32
  }
  func.func @transform_8(%arg0: i32) -> (i32, i32) {
    %c0_i32 = arith.constant 0 : i32
    %c0_i32_0 = arith.constant 0 : i32
    %c0_i32_1 = arith.constant 0 : i32
    return %c0_i32, %c0_i32_0 : i32, i32
  }
  func.func @transform_9(%arg0: i32) -> (i32, i32) {
    %c0_i32 = arith.constant 0 : i32
    %c0_i32_0 = arith.constant 0 : i32
    %c0_i32_1 = arith.constant 0 : i32
    return %c0_i32, %c0_i32_0 : i32, i32
  }
  func.func @transform_10(%arg0: i32) -> (i32, i32) {
    %c0_i32 = arith.constant 0 : i32
    %c0_i32_0 = arith.constant 0 : i32
    %c0_i32_1 = arith.constant 0 : i32
    return %c0_i32, %c0_i32_0 : i32, i32
  }
  func.func @transform_11(%arg0: i32) -> (i32, i32, i32) {
    %c0_i32 = arith.constant 0 : i32
    %c0_i32_0 = arith.constant 0 : i32
    %c0_i32_1 = arith.constant 0 : i32
    return %arg0, %c0_i32, %c0_i32_0 : i32, i32, i32
  }
}

</mosaic_0001>

<bundles_post_ra>
// kernel: tpu_custom_call.1
= control target key start
LH: loop header
LB: loop body
LE: loop exit
PB: predicated region body
PF: predicated region fallthrough
CT: control target
= control target key end

     0   :  { %s14433_s0 = inlined_call_operand.hbm [shape: f32[4,16,128], index: 0, kind: input, shape index: {}]   ;;  %s14434_s1 = inlined_call_operand.hbm [shape: bf16[128,512], index: 1, kind: input, shape index: {}]   ;;  %s14435_s2 = inlined_call_operand.vmem [shape: f32[1,512], index: 2, kind: input, shape index: {}]   ;;  %s14436_s3 = inlined_call_operand.hbm [shape: f32[25,512], index: 3, kind: input, shape index: {}]   ;;  %s14437_s4 = inlined_call_operand.vmem [shape: f32[1,512], index: 4, kind: input, shape index: {}]   ;;  %s14438_s5 = inlined_call_operand.vmem [shape: f32[32,16], index: 5, kind: input, shape index: {}]   ;;  %s14439_s6 = inlined_call_operand.vmem [shape: f32[1,16], index: 6, kind: input, shape index: {}]   ;;  %s14440_s7 = inlined_call_operand.vmem [shape: f32[16,32], index: 7, kind: input, shape index: {}]   ;;  %s14441_s8 = inlined_call_operand.vmem [shape: f32[1,32], index: 8, kind: input, shape index: {}]   ;;  %s14442_s9 = inlined_call_operand.hbm [shape: bf16[512,128], index: 9, kind: input, shape index: {}]   ;;  %s14443_s10 = inlined_call_operand.vmem [shape: f32[1,128], index: 10, kind: input, shape index: {}]   ;;  %s14444_s11 = inlined_call_operand.hbm [shape: f32[4,16,128], index: 11, kind: output, shape index: {}]  }
   0x1   :  { %14807 = sst [smem:[#allocation266_spill]] %s14434_s1 }
   0x2   :  { %14808 = sst [smem:[#allocation267_spill]] %s14443_s10 }
   0x3   :  { %14809 = sst [smem:[#allocation268_spill]] %s14444_s11 }
   0x4   :  { %16 = vsyncpa [#allocation4], 0 }
   0x5   :  { %18 = vsyncpa [#allocation4 + $0x1], 0 }
   0x6   :  { %19 = vsyncpa [#allocation7], 0 }
   0x7   :  { %20 = vsyncpa [#allocation10], 0 }
   0x8   :  { %21 = vsyncpa [#allocation5], 0 }
   0x9   :  { %23 = vsyncpa [#allocation5 + $0x1], 0  ;;  %s7803_s17 = smov 0   ;;  %s7805_s18 = smov 0  }
   0xa   :  { %s7807_s19 = smov 0   ;;  %s7809_s20 = smov 0  }
   0xb LB: > { %14810 = sst [smem:[#allocation16_spill]] %s7706_s17  ;;  %s7824_s21 = sadd.s32 4294967295, %s7718_s20   ;;  %s7718_s20 = sphi %s7809_s20, %s16148_s20   ;;  %s7714_s19 = sphi %s7807_s19, %s16147_s19   ;;  %s7710_s18 = sphi %s7805_s18, %s16146_s18   ;;  %s7706_s17 = sphi %s7803_s17, %s16145_s17  }
   0xc   : > { %s7046_s22 = sadd.s32 4294967294, %s7718_s20   ;;  %p49_p0 = scmp.ne.s32.totalorder %s7710_s18, %s7706_s17 }
   0xd   : > { %p14445_p1 = scmp.eq.s32.totalorder %s7824_s21, 0  ;;  %p289_p3 = scmp.eq.s32.totalorder %s7046_s22, 1 }
   0xe   : > { %p7047_p5 = scmp.ge.s32.totalorder %s7718_s20, 1  ;;  %p296_p7 = scmp.lt.s32.totalorder %s7718_s20, 3 }
   0xf   : > { %p7833_p4 = por %p14445_p1, %p49_p0  ;;  %p7838_p6 = por %p289_p3, %p49_p0 }
  0x10   : > { %p7843_p8 = pnand %p7047_p5, %p296_p7  ;;  %s7720_s26 = smov [#allocation6]  }
  0x11   : > { %s14811_s23 = scalar_select %p7833_p4, 1, 0 }
  0x12   : > { %s14812_s24 = scalar_select %p7838_p6, 1, 0 }
  0x13   : > { %s14814_s25 = scalar_select %p7843_p8, 1, 0 }
  0x14   : > { %14813 = sst [smem:[#allocation17_spill]] %s14812_s24  ;;  %s308_s27 = sshll.u32 %s7720_s26, 4  ;;  %s7847_s27 = int_to_ptr.vmem [resolvable:$true] %s308_s27 }
  0x15   : > { %p7249_p9 = pneg %p7843_p8  ;;  %s7721_s29 = smov [#allocation8]  }
  0x16   : > { %s324_s30 = sshll.u32 %s7721_s29, 4  ;;  %s14816_s1 = sld [smem:[#allocation266_spill]]  ;;  %s7858_s30 = int_to_ptr.vmem [resolvable:$true] %s324_s30 }
  0x17   : > { %p7854_p11 = pnand %p7249_p9, %p14445_p1 }
  0x19   : > { %p7868_p13 = pneg %p7854_p11 }
  0x1c   : > { %s7530_s14 = scalar_lea.hbm %s14816_s1, 4096 }
  0x1d   : > { %p7531_p12 = scmp.ne.s32.totalorder %s14816_s1, %s7530_s14  ;;  %p7537_p5 = scmp.lt.u32.totalorder %s7530_s14, %s14816_s1 }
  0x1f   : > { %p7533_p0 = pnand %p7868_p13, %p7531_p12 }
  0x21   : > { %p7534_p3 = pneg %p7533_p0 }
  0x23   : > { %p7539_p7 = pnand %p7537_p5, %p7534_p3 }
  0x25   : > { %7542 = shalt.err (!%p7539_p7)
}
  0x26   : > { %s7543_s12 = scalar_lea.vmem %s7847_s27, 4096  ;;  %p7551_p2 = scmp.lt.s32.totalorder %s7847_s27, %s7847_s27 }
  0x27   : > { %p7544_p9 = scmp.ne.s32.totalorder %s7847_s27, %s7543_s12  ;;  %p7552_p6 = scmp.lt.s32.totalorder %s7543_s12, %s7543_s12 }
  0x29   : > { %p7546_p10 = pnand %p7544_p9, %p7868_p13  ;;  %p7553_p12 = por %p7552_p6, %p7551_p2 }
  0x2b   : > { %p7547_p1 = pneg %p7546_p10 }
  0x2d   : > { %p7554_p0 = pnand %p7553_p12, %p7547_p1 }
  0x2f   : > { %7557 = shalt.err (!%p7554_p0)
}
  0x30   : > { %s7722_s13 = smov 256   ;;  %s7723_s14 = smov 16  }
  0x31   : > { %7252 = dma.hbm_to_vmem [thread:$0]  (!%p7854_p11), %s14816_s1, 4096, %s7847_s27, [#allocation7], %s7722_s13, %s7722_s13, %s7723_s14  }
  0x32   : > { %s7558_s24 = scalar_lea.hbm %s14436_s3, 2048 }
  0x33   : > { %p7559_p2 = scmp.ne.s32.totalorder %s14436_s3, %s7558_s24  ;;  %p7565_p10 = scmp.lt.u32.totalorder %s7558_s24, %s14436_s3 }
  0x35   : > { %p7561_p1 = pnand %p7559_p2, %p7868_p13 }
  0x37   : > { %p7562_p6 = pneg %p7561_p1 }
  0x39   : > { %p7567_p3 = pnand %p7565_p10, %p7562_p6 }
  0x3b   : > { %7570 = shalt.err (!%p7567_p3)
}
  0x3c   : > { %s7571_s27 = scalar_lea.vmem %s7858_s30, 2048  ;;  %p7579_p12 = scmp.lt.s32.totalorder %s7858_s30, %s7858_s30 }
  0x3d   : > { %p7572_p5 = scmp.ne.s32.totalorder %s7858_s30, %s7571_s27  ;;  %p7580_p0 = scmp.lt.s32.totalorder %s7571_s27, %s7571_s27 }
  0x3f   : > { %p7574_p7 = pnand %p7572_p5, %p7868_p13  ;;  %p7581_p2 = por %p7580_p0, %p7579_p12 }
  0x41   : > { %p7575_p9 = pneg %p7574_p7 }
  0x43   : > { %p7582_p1 = pnand %p7581_p2, %p7575_p9 }
  0x45   : > { %7585 = shalt.err (!%p7582_p1)
}
  0x46   : > { %s7724_s11 = smov 512   ;;  %s7725_s10 = smov 32  }
  0x47   : > { %7255 = dma.hbm_to_vmem [thread:$0]  (!%p7854_p11), %s14436_s3, 2048, %s7858_s30, [#allocation7], %s7724_s11, %s7724_s11, %s7725_s10  }
  0x48   : > { %s7726_s13 = smov [#allocation9]   ;;  %s7586_s26 = scalar_lea.hbm %s14442_s9, 4096 }
  0x49   : > { %s352_s14 = sshll.u32 %s7726_s13, 4  ;;  %p7587_p6 = scmp.ne.s32.totalorder %s14442_s9, %s7586_s26  ;;  %s353_s14 = int_to_ptr.vmem [resolvable:$true] %s352_s14 }
  0x4a   : > { %p7593_p5 = scmp.lt.u32.totalorder %s7586_s26, %s14442_s9 }
  0x4b   : > { %p7589_p10 = pnand %p7587_p6, %p7868_p13 }
  0x4d   : > { %p7590_p3 = pneg %p7589_p10 }
  0x4f   : > { %p7595_p7 = pnand %p7593_p5, %p7590_p3 }
  0x51   : > { %7598 = shalt.err (!%p7595_p7)
}
  0x52   : > { %s7599_s30 = scalar_lea.vmem %s353_s14, 4096  ;;  %p7607_p2 = scmp.lt.s32.totalorder %s353_s14, %s353_s14 }
  0x53   : > { %p7600_p9 = scmp.ne.s32.totalorder %s353_s14, %s7599_s30  ;;  %p7608_p1 = scmp.lt.s32.totalorder %s7599_s30, %s7599_s30 }
  0x55   : > { %p7602_p12 = pnand %p7600_p9, %p7868_p13  ;;  %p7609_p4 = por %p7608_p1, %p7607_p2 }
  0x57   : > { %p7603_p0 = pneg %p7602_p12 }
  0x59   : > { %p7610_p8 = pnand %p7609_p4, %p7603_p0 }
  0x5b   : > { %7613 = shalt.err (!%p7610_p8)
}
  0x5c   : > { %s7727_s11 = smov 64   ;;  %s7728_s1 = smov 4  }
  0x5d   : > { %7258 = dma.hbm_to_vmem [thread:$0]  (!%p7854_p11), %s14442_s9, 4096, %s353_s14, [#allocation10], %s7727_s11, %s7727_s11, %s7728_s1  }
  0x5e   : > { %s7931_s17 = sadd.s32 1, %s7718_s20   ;;  %s36_s13 = sadd.s32 1, %s7714_s19 }
  0x5f   : > { %s33_s24 = ssub.s32 %s7718_s20, %s7931_s17  ;;  %p43_p8 = scmp.ne.s32.totalorder %s7714_s19, %s7710_s18 }
  0x60   : > { %p34_p4 = scmp.eq.s32.totalorder %s33_s24, 0  ;;  %p44_p13 = scmp.eq.s32.totalorder %s7718_s20, 0 }
  0x61   : > { %p7270_p6 = scmp.lt.s32.totalorder %s7718_s20, 2  ;;  %p14818_p3 = scmp.eq.s32.totalorder %s7824_s21, 1 }
  0x62   : > { %s7941_s15 = scalar_select %p34_p4, %s7714_s19, %s36_s13  }
  0x63   : > { %p45_p10 = por %p44_p13, %p43_p8  ;;  %p7945_p5 = por %p14818_p3, %p43_p8 }
  0x64   : > { %s369_s28 = sand.u32 1, %s7714_s19   ;;  %s7139_s26 = sshll.u32 %s7718_s20, 9 }
  0x65   : > { %s7052_s14 = sshll.u32 %s369_s28, 5  ;;  %s7954_s27 = scalar_lea.hbm %s14433_s0, %s7139_s26 }
  0x66   : > { %s373_s30 = scalar_lea.vmem [#allocation3], %s7052_s14  ;;  %p7956_p11 = pnand %p7270_p6, %p45_p10 }
  0x67   : > { %s381_s11 = sshll.u32 %s373_s30, 4  ;;  %s7962_s22 = scalar_lea.sflag [#allocation4], %s369_s28  ;;  %s7960_s11 = int_to_ptr.vmem [resolvable:$true] %s381_s11 }
  0x68   : > { %s7614_s10 = scalar_lea.hbm %s7954_s27, 512  ;;  %p7616_p9 = pneg %p7956_p11 }
  0x69   : > { %p7615_p7 = scmp.ne.s32.totalorder %s7954_s27, %s7614_s10  ;;  %s7619_s26 = scalar_lea.hbm %s14433_s0, 1024 }
  0x6a   : > { %p7620_p2 = scmp.lt.u32.totalorder %s7954_s27, %s14433_s0  ;;  %p7621_p1 = scmp.lt.u32.totalorder %s7619_s26, %s7614_s10 }
  0x6b   : > { %p7617_p12 = pnand %p7616_p9, %p7615_p7  ;;  %p7623_p8 = scmp.lt.u32.totalorder %s7614_s10, %s7954_s27 }
  0x6c   : > { %p7622_p4 = por %p7621_p1, %p7620_p2 }
  0x6d   : > { %p7618_p0 = pneg %p7617_p12 }
  0x6e   : > { %p7624_p13 = por %p7623_p8, %p7622_p4 }
  0x70   : > { %p7625_p6 = pnand %p7624_p13, %p7618_p0 }
  0x72   : > { %7628 = shalt.err (!%p7625_p6)
}
  0x73   : > { %s7629_s28 = scalar_lea.vmem %s7960_s11, 512  ;;  %s7729_s12 = smov [#allocation3]  }
  0x74   : > { %p7630_p10 = scmp.ne.s32.totalorder %s7960_s11, %s7629_s28  ;;  %s7634_s30 = sshll.u32 %s7729_s12, 4  ;;  %s7635_s30 = int_to_ptr.vmem [resolvable:$false] %s7634_s30 }
  0x75   : > { %s7636_s24 = scalar_lea.vmem %s7635_s30, 1024  ;;  %p7637_p12 = scmp.lt.s32.totalorder %s7960_s11, %s7635_s30 }
  0x76   : > { %p7632_p3 = pnand %p7630_p10, %p7616_p9  ;;  %p7638_p2 = scmp.lt.s32.totalorder %s7636_s24, %s7629_s28 }
  0x78   : > { %p7633_p7 = pneg %p7632_p3  ;;  %p7639_p1 = por %p7638_p2, %p7637_p12 }
  0x7a   : > { %p7640_p4 = pnand %p7639_p1, %p7633_p7 }
  0x7c   : > { %7643 = shalt.err (!%p7640_p4)
}
  0x7d   : > { %s7730_s10 = smov 128   ;;  %s7731_s13 = smov 8  }
  0x7e   : > { %7262 = dma.hbm_to_vmem [thread:$0]  (!%p7956_p11), %s7954_s27, 512, %s7960_s11, %s7962_s22, %s7730_s10, %s7730_s10, %s7731_s13  }
  0x7f   : > { %p14821_p9 = scmp.ne.s32.totalorder %s14814_s25, 0 }
  0x81   : > { %393 = sbr.rel (%p14821_p9) target bundleno = 2457 (0x999), region = 64 }
  0x88   : > { %s7993_s26 = sand.u32 1, %s7710_s18   ;;  %p14822_p0 = scmp.ne.s32.totalorder %s14811_s23, 0 }
  0x89   : > { %s7057_s14 = sshll.u32 %s7993_s26, 5  ;;  %s396_s29 = scalar_lea.sflag [#allocation4], %s7993_s26 }
  0x8a   : > { %s7999_s28 = scalar_lea.vmem [#allocation3], %s7057_s14 }
  0x8b   : > { %7689 = dma.done.wait (%p14822_p0), %s396_s29, 512  }
  0x8c   : > { %7691 = vsyncadd (%p14822_p0), %s396_s29, 4294966784  ;;  %p14823_p11 = scmp.eq.s32.totalorder %s7824_s21, 0 }
  0x8e   : > { %7693 = dma.done.wait (%p14823_p11), [#allocation7], 6144   ;;  %p14824_p8 = pmov %p14823_p11 }
  0x90   : > { %7695 = vsyncadd (%p14824_p8), [#allocation7], 4294961152  ;;  %p14825_p13 = pmov %p14824_p8 }
  0x91   : > { %p14826_p6 = pmov %p14824_p8 }
  0x92   : > { %7697 = dma.done.wait (%p14825_p13), [#allocation10], 4096  }
  0x93   : > { %7699 = vsyncadd (%p14826_p6), [#allocation10], 4294963200  ;;  %v14451_v0 = vlaneseq  ;;  %v7732_v1 = vmov 0   ;;  %v1184_v7 = vld [vmem:[#allocation8 + $0x5] ss:$8 sm:$0xf] }
  0x94   : > { %705 = vmatprep.mubr.bf16.mxu0 %v7732_v1  ;;  %758 = vmatprep.mubr.bf16.mxu1 %v7732_v1  ;;  %v7328_v10 = vld [vmem:[#allocation6 + $0x4] ss:$16 sps:$4 sm:$0xff]   ;;  %v7330_v11 = vld [vmem:[#allocation6 + $0xc] ss:$16 sps:$4 sm:$0xff]   ;;  %v7332_v12 = vld [vmem:[#allocation6] ss:$16 sps:$4 sm:$0xff]  }
  0x95   : > { %v8016_v2 = vshrl.u32 %v14451_v0, 7  ;;  %v7333_v13 = vld [vmem:[#allocation6 + $0x8] ss:$16 sps:$4 sm:$0xff]   ;;  %s7733_s23 = smov 64   ;;  %v7334_v16 = vld [vmem:[#allocation6 + $0x24] ss:$16 sps:$4 sm:$0xff]   ;;  %673 = vmatprep.subr.bf16.mxu0 %v7328_v10  ;;  %726 = vmatprep.subr.bf16.mxu1 %v7330_v11 }
  0x96   : > { %v7336_v17 = vld [vmem:[#allocation6 + $0x2c] ss:$16 sps:$4 sm:$0xff]   ;;  %674 = vmatpush1.bf16.msra.mxu0 %v7332_v12  ;;  %727 = vmatpush1.bf16.msra.mxu1 %v7333_v13  ;;  %v7338_v18 = vld [vmem:[#allocation6 + $0x20] ss:$16 sps:$4 sm:$0xff]   ;;  %v7339_v19 = vld [vmem:[#allocation6 + $0x28] ss:$16 sps:$4 sm:$0xff]  }
  0x97   : > { %14827 = vst [vmem:[#allocation18_spill] sm:$0xff] %v8016_v2  ;;  %v8019_v3 = vsub.s32 2, %v8016_v2  ;;  %v8022_v4 = vsub.s32 0, %v8016_v2  ;;  %v8025_v5 = vsub.s32 3, %v8016_v2  ;;  %v8028_v6 = vsub.s32 1, %v8016_v2  ;;  %675 = vmatprep.subr.bf16.mxu0 %v7334_v16  ;;  %728 = vmatprep.subr.bf16.mxu1 %v7336_v17  ;;  %v453_v60 = vld [vmem:[%s7999_s28] sm:$0xff] }
  0x98   : > { %v1020_v20 = vld [vmem:[#allocation8] ss:$8 sm:$0xf]  ;;  %v7340_v21 = vld [vmem:[#allocation6 + $0x44] ss:$16 sps:$4 sm:$0xff]   ;;  %s7734_s25 = smov 96  }
  0x99   : > { %14828 = vst [vmem:[#allocation19_spill] sm:$0xff] %v8019_v3  ;;  %14829 = vst [vmem:[#allocation20_spill] sm:$0xff] %v8022_v4  ;;  %v1197_v8 = vrot.slane %v1184_v7, %v8019_v3  ;;  %v1189_v9 = vrot.slane %v1184_v7, %v8022_v4  ;;  %v1201_v14 = vrot.slane %v1184_v7, %v8025_v5  ;;  %v7342_v24 = vld [vmem:[#allocation6 + $0x4c] ss:$16 sps:$4 sm:$0xff]   ;;  %v7344_v25 = vld [vmem:[#allocation6 + $0x40] ss:$16 sps:$4 sm:$0xff]  }
  0x9a   : > { %14830 = vst [vmem:[#allocation21_spill] sm:$0xff] %v8025_v5  ;;  %14831 = vst [vmem:[#allocation22_spill] sm:$0xff] %v8028_v6  ;;  %v1193_v15 = vrot.slane %v1184_v7, %v8028_v6  ;;  %v1029_v22 = vrot.slane %v1020_v20, %v8028_v6  ;;  %v1025_v23 = vrot.slane %v1020_v20, %v8022_v4  ;;  %676 = vmatpush1.bf16.msra.mxu0 %v7338_v18  ;;  %v7345_v26 = vld [vmem:[#allocation6 + $0x48] ss:$16 sps:$4 sm:$0xff]   ;;  %v7346_v27 = vld [vmem:[#allocation6 + $0x64] ss:$16 sps:$4 sm:$0xff]  }
  0x9b   : > { %1206 = vrot.lane.b32.xlu1 %v1197_v8, %s7733_s23  ;;  %1202 = vrot.lane.b32.xlu0 %v1189_v9, %s7733_s23  ;;  %v7348_v28 = vld [vmem:[#allocation6 + $0x6c] ss:$16 sps:$4 sm:$0xff]   ;;  %v1037_v29 = vrot.slane %v1020_v20, %v8025_v5  ;;  %v1033_v30 = vrot.slane %v1020_v20, %v8019_v3  ;;  %v7350_v31 = vld [vmem:[#allocation6 + $0x60] ss:$16 sps:$4 sm:$0xff]   ;;  %v7351_v33 = vld [vmem:[#allocation6 + $0x68] ss:$16 sps:$4 sm:$0xff]  }
  0x9c   : > { %729 = vmatpush1.bf16.msra.mxu1 %v7339_v19  ;;  %677 = vmatprep.subr.bf16.mxu0 %v7340_v21  ;;  %v1418_v32 = vld [vmem:[#allocation8 + $0x22] ss:$8 sm:$0xf]  ;;  %v7352_v34 = vld [vmem:[#allocation6 + $0x84] ss:$16 sps:$4 sm:$0xff]   ;;  %s7736_s27 = smov 32  }
  0x9d   : > { %730 = vmatprep.subr.bf16.mxu1 %v7342_v24  ;;  %v7354_v35 = vld [vmem:[#allocation6 + $0x8c] ss:$16 sps:$4 sm:$0xff]   ;;  %v1427_v36 = vrot.slane %v1418_v32, %v8028_v6  ;;  %v1423_v37 = vrot.slane %v1418_v32, %v8022_v4  ;;  %v7356_v38 = vld [vmem:[#allocation6 + $0x80] ss:$16 sps:$4 sm:$0xff]   ;;  %v7357_v39 = vld [vmem:[#allocation6 + $0x88] ss:$16 sps:$4 sm:$0xff]   ;;  %v1435_v42 = vrot.slane %v1418_v32, %v8025_v5  ;;  %v1431_v43 = vrot.slane %v1418_v32, %v8019_v3 }
  0x9e   : > { %678 = vmatpush1.bf16.msra.mxu0 %v7344_v25  ;;  %v7358_v40 = vld [vmem:[#allocation6 + $0xa4] ss:$16 sps:$4 sm:$0xff]   ;;  %v7360_v41 = vld [vmem:[#allocation6 + $0xac] ss:$16 sps:$4 sm:$0xff]   ;;  %v7362_v44 = vld [vmem:[#allocation6 + $0xa0] ss:$16 sps:$4 sm:$0xff]  }
  0x9f   : > { %1208 = vrot.lane.b32.xlu1 %v1201_v14, %s7733_s23  ;;  %1204 = vrot.lane.b32.xlu0 %v1193_v15, %s7733_s23  ;;  %v1652_v45 = vld [vmem:[#allocation8 + $0x27] ss:$8 sm:$0xf]  ;;  %v7363_v46 = vld [vmem:[#allocation6 + $0xa8] ss:$16 sps:$4 sm:$0xff]   ;;  %vm1278_vm0 = vcmask 1046528  }
  0xa0   : > { %731 = vmatpush1.bf16.msra.mxu1 %v7345_v26  ;;  %679 = vmatprep.subr.bf16.mxu0 %v7346_v27  ;;  %v7364_v47 = vld [vmem:[#allocation6 + $0xc4] ss:$16 sps:$4 sm:$0xff]   ;;  %v7366_v48 = vld [vmem:[#allocation6 + $0xcc] ss:$16 sps:$4 sm:$0xff]   ;;  %v1661_v49 = vrot.slane %v1652_v45, %v8028_v6  ;;  %v1657_v50 = vrot.slane %v1652_v45, %v8022_v4  ;;  %v7368_v51 = vld [vmem:[#allocation6 + $0xc0] ss:$16 sps:$4 sm:$0xff]   ;;  %v1669_v55 = vrot.slane %v1652_v45, %v8025_v5 }
  0xa1   : > { %732 = vmatprep.subr.bf16.mxu1 %v7348_v28  ;;  %v7369_v52 = vld [vmem:[#allocation6 + $0xc8] ss:$16 sps:$4 sm:$0xff]   ;;  %v7370_v53 = vld [vmem:[#allocation6 + $0xe4] ss:$16 sps:$4 sm:$0xff]   ;;  %v7372_v54 = vld [vmem:[#allocation6 + $0xec] ss:$16 sps:$4 sm:$0xff]   ;;  %v1665_v56 = vrot.slane %v1652_v45, %v8019_v3 }
  0xa2   : > { %680 = vmatpush1.bf16.msra.mxu0 %v7350_v31  ;;  %v7374_v57 = vld [vmem:[#allocation6 + $0xe0] ss:$16 sps:$4 sm:$0xff]   ;;  %v1886_v58 = vld [vmem:[#allocation8 + $0x44] ss:$8 sm:$0xf]  ;;  %vm1512_vm1 = vcmask 1045504  }
  0xa3   : > { %1040 = vrot.lane.b32.xlu1 %v1029_v22, %s7733_s23  ;;  %1038 = vrot.lane.b32.xlu0 %v1025_v23, %s7733_s23  ;;  %v7375_v59 = vld [vmem:[#allocation6 + $0xe8] ss:$16 sps:$4 sm:$0xff]   ;;  %v1895_v62 = vrot.slane %v1886_v58, %v8028_v6  ;;  %v1891_v63 = vrot.slane %v1886_v58, %v8022_v4  ;;  %v2285_v8 = vld [vmem:[#allocation8 + $0x6] ss:$8 sm:$0xf]  ;;  %v1903_v9 = vrot.slane %v1886_v58, %v8025_v5  ;;  %v7735_v23 = vmov 0.0  }
  0xa4   : > { %733 = vmatpush1.bf16.msra.mxu1 %v7351_v33  ;;  %681 = vmatprep.subr.bf16.mxu0 %v7352_v34  ;;  %v454_v61 = vld [vmem:[%s7999_s28 + $0x8] sm:$0xff]  ;;  %v1899_v10 = vrot.slane %v1886_v58, %v8019_v3  ;;  %v455_v11 = vld [vmem:[%s7999_s28 + $0x10] sm:$0xff]  ;;  %v456_v12 = vld [vmem:[%s7999_s28 + $0x18] sm:$0xff]  ;;  %v2294_v13 = vrot.slane %v2285_v8, %v8028_v6  ;;  %v2290_v14 = vrot.slane %v2285_v8, %v8022_v4  ;;  %vm1746_vm2 = vcmask 1044480   ;;  %s449_s22 = scalar_lea.vmem [#allocation11], %s7057_s14  ;;  %s7141_s14 = sshll.u32 %s7824_s21, 9 }
  0xa5   : > { %734 = vmatprep.subr.bf16.mxu1 %v7354_v35  ;;  %v457_v7 = vpack.c.bf16 %v454_v61, %v453_v60  ;;  %v458_v15 = vpack.c.bf16 %v456_v12, %v455_v11  ;;  %v2120_v16 = vld [vmem:[#allocation8 + $0x1] ss:$8 sm:$0xf]  ;;  %v2302_v17 = vrot.slane %v2285_v8, %v8025_v5  ;;  %v2298_v18 = vrot.slane %v2285_v8, %v8019_v3  ;;  %v2518_v20 = vld [vmem:[#allocation8 + $0x23] ss:$8 sm:$0xf] }
  0xa6   : > { %682 = vmatpush1.bf16.msra.mxu0 %v7356_v38  ;;  %v2125_v19 = vrot.slane %v2120_v16, %v8022_v4  ;;  %v2137_v21 = vrot.slane %v2120_v16, %v8025_v5  ;;  %v2133_v22 = vrot.slane %v2120_v16, %v8019_v3  ;;  %868 = vst [vmem:[#allocation2 + $0x30] sm:$0xff] %v7735_v23  ;;  %843 = vst [vmem:[#allocation2] sm:$0x3] %v7735_v23  ;;  %v2751_v28 = vld [vmem:[#allocation8 + $0x40] ss:$8 sm:$0xf] }
  0xa7   : > { %1044 = vrot.lane.b32.xlu1 %v1037_v29, %s7733_s23  ;;  %1042 = vrot.lane.b32.xlu0 %v1033_v30, %s7733_s23  ;;  %844 = vst [vmem:[#allocation2 + $0x8] sm:$0x3] %v7735_v23  ;;  %845 = vst [vmem:[#allocation2 + $0x10] sm:$0x3] %v7735_v23  ;;  %v2527_v24 = vrot.slane %v2518_v20, %v8028_v6  ;;  %v2523_v25 = vrot.slane %v2518_v20, %v8022_v4  ;;  %vm895_vm3 = vcmask 1041408   ;;  %vm1046_vm4 = vcmask 523264  }
  0xa8   : > { %735 = vmatpush1.bf16.msra.mxu1 %v7357_v39  ;;  %683 = vmatprep.subr.bf16.mxu0 %v7358_v40  ;;  %846 = vst [vmem:[#allocation2 + $0x18] sm:$0x3] %v7735_v23  ;;  %847 = vst [vmem:[#allocation2 + $0x20] sm:$0x3] %v7735_v23  ;;  %v2535_v26 = vrot.slane %v2518_v20, %v8025_v5  ;;  %v2531_v27 = vrot.slane %v2518_v20, %v8019_v3  ;;  %vm1980_vm5 = vcmask 1043456   ;;  %vm2146_vm6 = vcmask 785408  }
  0xa9   : > { %736 = vmatprep.subr.bf16.mxu1 %v7360_v41  ;;  %848 = vst [vmem:[#allocation2 + $0x28] sm:$0x3] %v7735_v23  ;;  %849 = vst [vmem:[#allocation2 + $0x90] sm:$0x3] %v7735_v23  ;;  %v2760_v29 = vrot.slane %v2751_v28, %v8028_v6  ;;  %v2756_v30 = vrot.slane %v2751_v28, %v8022_v4  ;;  %v2768_v31 = vrot.slane %v2751_v28, %v8025_v5  ;;  %vm2235_vm7 = vcmask 261120   ;;  %s6944_s12 = sshll.u32 %s449_s22, 4  ;;  %s14382_s12 = int_to_ptr.vmem [resolvable:$true] %s6944_s12 }
  0xaa   : > { %684 = vmatpush1.bf16.msra.mxu0 %v7362_v44  ;;  %850 = vst [vmem:[#allocation2 + $0x98] sm:$0x3] %v7735_v23  ;;  %851 = vst [vmem:[#allocation2 + $0xa0] sm:$0x3] %v7735_v23  ;;  %v2764_v32 = vrot.slane %v2751_v28, %v8019_v3  ;;  %vm6167_vm8 = vcmask 1041409   ;;  %vm7738_vm10 = vmmov 0  }
  0xab   : > { %1438 = vrot.lane.b32.xlu1 %v1427_v36, %s7733_s23  ;;  %1436 = vrot.lane.b32.xlu0 %v1423_v37, %s7733_s23  ;;  %852 = vst [vmem:[#allocation2 + $0xa8] sm:$0x3] %v7735_v23  ;;  %853 = vst [vmem:[#allocation2 + $0xb0] sm:$0x3] %v7735_v23  ;;  %vm6378_vm12 = vcmask 130048   ;;  %s16139_s10 = sld [smem:[#allocation268_spill]] }
  0xac   : > { %737 = vmatpush1.bf16.msra.mxu1 %v7363_v46  ;;  %685 = vmatprep.subr.bf16.mxu0 %v7364_v47  ;;  %854 = vst [vmem:[#allocation2 + $0xb8] sm:$0x3] %v7735_v23  ;;  %855 = vst [vmem:[#allocation2 + $0x60] sm:$0xc] %v7735_v23  ;;  %s6930_s29 = scalar_lea.sflag [#allocation5], %s7993_s26  ;;  %s7644_s11 = scalar_lea.vmem %s14382_s12, 512 }
  0xad   : > { %738 = vmatprep.subr.bf16.mxu1 %v7366_v48  ;;  %856 = vst [vmem:[#allocation2 + $0x68] sm:$0xc] %v7735_v23  ;;  %857 = vst [vmem:[#allocation2 + $0x70] sm:$0xc] %v7735_v23  ;;  %p7645_p10 = scmp.ne.s32.totalorder %s14382_s12, %s7644_s11  ;;  %s7740_s21 = smov [#allocation11]  }
  0xae   : > { %686 = vmatpush1.bf16.msra.mxu0 %v7368_v51  ;;  %858 = vst [vmem:[#allocation2 + $0x78] sm:$0xc] %v7735_v23  ;;  %859 = vst [vmem:[#allocation2 + $0x80] sm:$0xc] %v7735_v23  ;;  %s7648_s1 = sshll.u32 %s7740_s21, 4  ;;  %s7649_s1 = int_to_ptr.vmem [resolvable:$false] %s7648_s1 }
  0xaf   : > { %1442 = vrot.lane.b32.xlu1 %v1435_v42, %s7733_s23  ;;  %1440 = vrot.lane.b32.xlu0 %v1431_v43, %s7733_s23  ;;  %860 = vst [vmem:[#allocation2 + $0x88] sm:$0xc] %v7735_v23  ;;  %861 = vst [vmem:[#allocation2 + $0xf0] sm:$0xc] %v7735_v23  ;;  %p7646_p3 = pnand %p7645_p10, %p7945_p5  ;;  %p7651_p12 = scmp.lt.s32.totalorder %s14382_s12, %s7649_s1 }
  0xb0   : > { %739 = vmatpush1.bf16.msra.mxu1 %v7369_v52  ;;  %687 = vmatprep.subr.bf16.mxu0 %v7370_v53  ;;  %862 = vst [vmem:[#allocation2 + $0xf8] sm:$0xc] %v7735_v23  ;;  %863 = vst [vmem:[#allocation2 + $0x100] sm:$0xc] %v7735_v23 }
  0xb1   : > { %740 = vmatprep.subr.bf16.mxu1 %v7372_v54  ;;  %864 = vst [vmem:[#allocation2 + $0x108] sm:$0xc] %v7735_v23  ;;  %865 = vst [vmem:[#allocation2 + $0x110] sm:$0xc] %v7735_v23  ;;  %s14388_s13 = scalar_lea.hbm %s16139_s10, %s7141_s14  ;;  %p7647_p7 = pneg %p7646_p3 }
  0xb2   : > { %688 = vmatpush1.bf16.msra.mxu0 %v7374_v57  ;;  %866 = vst [vmem:[#allocation2 + $0x118] sm:$0xc] %v7735_v23  ;;  %867 = vst [vmem:[#allocation2] sm:$0xfc] %v7735_v23 }
  0xb3   : > { %1672 = vrot.lane.b32.xlu1 %v1661_v49, %s7733_s23  ;;  %1670 = vrot.lane.b32.xlu0 %v1657_v50, %s7733_s23  ;;  %869 = vst [vmem:[#allocation2 + $0x60] sm:$0x3] %v7735_v23  ;;  %870 = vst [vmem:[#allocation2 + $0x90] sm:$0xfc] %v7735_v23 }
  0xb4   : > { %741 = vmatpush1.bf16.msra.mxu1 %v7375_v59  ;;  %872 = vst [vmem:[#allocation2 + $0xf0] sm:$0x3] %v7735_v23  ;;  %873 = vst [vmem:[#allocation2 + $0x28] sm:$0xfc] %v7735_v23 }
  0xb5   : > { %706 = vmatmul.mubr.bf16.vlgmr.msra.gmra.mrb[0].mxu0 %v457_v7  ;;  %875 = vst [vmem:[#allocation2 + $0x88] sm:$0x3] %v7735_v23  ;;  %876 = vst [vmem:[#allocation2 + $0xb8] sm:$0xfc] %v7735_v23 }
  0xb6   : > { %715 = vmatprep.mubr.bf16.mxu0 %v7732_v1  ;;  %878 = vst [vmem:[#allocation2 + $0x118] sm:$0x3] %v7735_v23  ;;  %v2984_v33 = vld [vmem:[#allocation8 + $0x45] ss:$8 sm:$0xf] }
  0xb7   : > { %1676 = vrot.lane.b32.xlu1 %v1669_v55, %s7733_s23  ;;  %1674 = vrot.lane.b32.xlu0 %v1665_v56, %s7733_s23  ;;  %v2993_v34 = vrot.slane %v2984_v33, %v8028_v6  ;;  %v2989_v35 = vrot.slane %v2984_v33, %v8022_v4  ;;  %v3001_v36 = vrot.slane %v2984_v33, %v8025_v5  ;;  %v4013_v38 = vld [vmem:[#allocation8 + $0x20] ss:$8 sm:$0xf]  ;;  %v3850_v43 = vld [vmem:[#allocation8 + $0x3] ss:$8 sm:$0xf] }
  0xb8   : > { %759 = vmatmul.mubr.bf16.vlgmr.msra.gmra.mrb[0].mxu1 %v457_v7  ;;  %v2997_v37 = vrot.slane %v2984_v33, %v8019_v3  ;;  %v4022_v39 = vrot.slane %v4013_v38, %v8028_v6  ;;  %v4018_v40 = vrot.slane %v4013_v38, %v8022_v4  ;;  %v4030_v41 = vrot.slane %v4013_v38, %v8025_v5  ;;  %v4246_v48 = vld [vmem:[#allocation8 + $0x25] ss:$8 sm:$0xf]  ;;  %v4479_v53 = vld [vmem:[#allocation8 + $0x42] ss:$8 sm:$0xf] }
  0xb9   : > { %768 = vmatprep.mubr.bf16.mxu1 %v7732_v1  ;;  %v2129_v1 = vrot.slane %v2120_v16, %v8028_v6  ;;  %v4026_v42 = vrot.slane %v4013_v38, %v8019_v3  ;;  %v3859_v44 = vrot.slane %v3850_v43, %v8028_v6  ;;  %v3855_v45 = vrot.slane %v3850_v43, %v8022_v4  ;;  %v4712_v58 = vld [vmem:[#allocation8 + $0x47] ss:$8 sm:$0xf]  ;;  %v5341_v23 = vld [vmem:[#allocation8 + $0x26] ss:$8 sm:$0xf] }
  0xba   : > { %v3867_v46 = vrot.slane %v3850_v43, %v8025_v5  ;;  %v3863_v47 = vrot.slane %v3850_v43, %v8019_v3  ;;  %v4255_v49 = vrot.slane %v4246_v48, %v8028_v6  ;;  %v4251_v50 = vrot.slane %v4246_v48, %v8022_v4 }
  0xbb   : > { %1906 = vrot.lane.b32.xlu1 %v1895_v62, %s7733_s23  ;;  %1904 = vrot.lane.b32.xlu0 %v1891_v63, %s7733_s23  ;;  %v4263_v51 = vrot.slane %v4246_v48, %v8025_v5  ;;  %v4259_v52 = vrot.slane %v4246_v48, %v8019_v3  ;;  %v4488_v54 = vrot.slane %v4479_v53, %v8028_v6  ;;  %v5108_v63 = vld [vmem:[#allocation8 + $0x21] ss:$8 sm:$0xf] }
  0xbc   : > { %v4484_v55 = vrot.slane %v4479_v53, %v8022_v4  ;;  %v4496_v56 = vrot.slane %v4479_v53, %v8025_v5  ;;  %v4492_v57 = vrot.slane %v4479_v53, %v8019_v3  ;;  %v4721_v59 = vrot.slane %v4712_v58, %v8028_v6 }
  0xbd   : > { %716 = vmatmul.mubr.bf16.gmra.mrb[4].mxu0 %v458_v15  ;;  %v4717_v60 = vrot.slane %v4712_v58, %v8022_v4  ;;  %v4729_v61 = vrot.slane %v4712_v58, %v8025_v5  ;;  %v4725_v62 = vrot.slane %v4712_v58, %v8019_v3  ;;  %v5358_v28 = vrot.slane %v5341_v23, %v8025_v5 }
  0xbf   : > { %1910 = vrot.lane.b32.xlu1 %v1903_v9, %s7733_s23  ;;  %1908 = vrot.lane.b32.xlu0 %v1899_v10, %s7733_s23  ;;  %v5117_v9 = vrot.slane %v5108_v63, %v8028_v6  ;;  %v5113_v10 = vrot.slane %v5108_v63, %v8022_v4 }
  0xc0   : > { %769 = vmatmul.mubr.bf16.gmra.mrb[4].mxu1 %v458_v15  ;;  %v4945_v15 = vld [vmem:[#allocation8 + $0x4] ss:$8 sm:$0xf] }
  0xc1   : > { %v4958_v20 = vrot.slane %v4945_v15, %v8019_v3 }
  0xc3   : > { %2305 = vrot.lane.b32.xlu1 %v2294_v13, %s7734_s25  ;;  %2303 = vrot.lane.b32.xlu0 %v2290_v14, %s7734_s25  ;;  %v5125_v13 = vrot.slane %v5108_v63, %v8025_v5  ;;  %v5121_v14 = vrot.slane %v5108_v63, %v8019_v3 }
  0xc7   : > { %2309 = vrot.lane.b32.xlu1 %v2302_v17, %s7734_s25  ;;  %2307 = vrot.lane.b32.xlu0 %v2298_v18, %s7734_s25  ;;  %v4954_v18 = vrot.slane %v4945_v15, %v8028_v6 }
  0xcb   : > { %2140 = vrot.lane.b32.xlu1 %v2129_v1, %s7734_s25  ;;  %2138 = vrot.lane.b32.xlu0 %v2125_v19, %s7734_s25  ;;  %v4950_v1 = vrot.slane %v4945_v15, %v8022_v4  ;;  %v4962_v19 = vrot.slane %v4945_v15, %v8025_v5 }
  0xcf   : > { %2144 = vrot.lane.b32.xlu1 %v2137_v21, %s7734_s25  ;;  %2142 = vrot.lane.b32.xlu0 %v2133_v22, %s7734_s25 }
  0xd3   : > { %2538 = vrot.lane.b32.xlu1 %v2527_v24, %s7734_s25  ;;  %2536 = vrot.lane.b32.xlu0 %v2523_v25, %s7734_s25  ;;  %v5350_v24 = vrot.slane %v5341_v23, %v8028_v6  ;;  %v5346_v25 = vrot.slane %v5341_v23, %v8022_v4 }
  0xd7   : > { %2542 = vrot.lane.b32.xlu1 %v2535_v26, %s7734_s25  ;;  %2540 = vrot.lane.b32.xlu0 %v2531_v27, %s7734_s25 }
  0xdb   : > { %2771 = vrot.lane.b32.xlu1 %v2760_v29, %s7734_s25  ;;  %2769 = vrot.lane.b32.xlu0 %v2756_v30, %s7734_s25  ;;  %v5354_v29 = vrot.slane %v5341_v23, %v8019_v3  ;;  %v5574_v30 = vld [vmem:[#allocation8 + $0x43] ss:$8 sm:$0xf] }
  0xdf   : > { %2775 = vrot.lane.b32.xlu1 %v2768_v31, %s7734_s25  ;;  %2773 = vrot.lane.b32.xlu0 %v2764_v32, %s7734_s25  ;;  %v5583_v31 = vrot.slane %v5574_v30, %v8028_v6  ;;  %v5579_v32 = vrot.slane %v5574_v30, %v8022_v4 }
  0xe3   : > { %3004 = vrot.lane.b32.xlu1 %v2993_v34, %s7734_s25  ;;  %3002 = vrot.lane.b32.xlu0 %v2989_v35, %s7734_s25  ;;  %v5591_v35 = vrot.slane %v5574_v30, %v8025_v5 }
  0xe7   : > { %3008 = vrot.lane.b32.xlu1 %v3001_v36, %s7734_s25  ;;  %3006 = vrot.lane.b32.xlu0 %v2997_v37, %s7734_s25  ;;  %v5587_v36 = vrot.slane %v5574_v30, %v8019_v3  ;;  %v5807_v37 = vld [vmem:[#allocation8 + $0x60] ss:$8 sm:$0xf] }
  0xe8   : > { %v5820_v43 = vrot.slane %v5807_v37, %v8019_v3 }
  0xeb   : > { %4033 = vrot.lane.b32.xlu1 %v4022_v39, %s7736_s27  ;;  %4031 = vrot.lane.b32.xlu0 %v4018_v40, %s7736_s27  ;;  %v5816_v40 = vrot.slane %v5807_v37, %v8028_v6 }
  0xef   : > { %4037 = vrot.lane.b32.xlu1 %v4030_v41, %s7736_s27  ;;  %4035 = vrot.lane.b32.xlu0 %v4026_v42, %s7736_s27  ;;  %v5812_v41 = vrot.slane %v5807_v37, %v8022_v4  ;;  %v5824_v42 = vrot.slane %v5807_v37, %v8025_v5 }
  0xf3   : > { %3870 = vrot.lane.b32.xlu1 %v3859_v44, %s7736_s27  ;;  %3868 = vrot.lane.b32.xlu0 %v3855_v45, %s7736_s27 }
  0xf7   : > { %3874 = vrot.lane.b32.xlu1 %v3867_v46, %s7736_s27  ;;  %3872 = vrot.lane.b32.xlu0 %v3863_v47, %s7736_s27  ;;  %v990_v46 = vld [vmem:[#allocation2] sm:$0xff] }
  0xf8   : > { %v1000_v47 = vld [vmem:[#allocation2 + $0x60] sm:$0xf] }
  0xfb   : > { %4266 = vrot.lane.b32.xlu1 %v4255_v49, %s7736_s27  ;;  %4264 = vrot.lane.b32.xlu0 %v4251_v50, %s7736_s27  ;;  %v1005_v50 = vld [vmem:[#allocation2 + $0x90] sm:$0xff] }
  0xff   : > { %4270 = vrot.lane.b32.xlu1 %v4263_v51, %s7736_s27  ;;  %4268 = vrot.lane.b32.xlu0 %v4259_v52, %s7736_s27 }
 0x103   : > { %4499 = vrot.lane.b32.xlu1 %v4488_v54, %s7736_s27  ;;  %4497 = vrot.lane.b32.xlu0 %v4484_v55, %s7736_s27  ;;  %v1015_v54 = vld [vmem:[#allocation2 + $0xf0] sm:$0xf] }
 0x107   : > { %4503 = vrot.lane.b32.xlu1 %v4496_v56, %s7736_s27  ;;  %4501 = vrot.lane.b32.xlu0 %v4492_v57, %s7736_s27 }
 0x10b   : > { %4732 = vrot.lane.b32.xlu1 %v4721_v59, %s7736_s27  ;;  %4730 = vrot.lane.b32.xlu0 %v4717_v60, %s7736_s27 }
 0x10d   : > { %v8154_v7 = vpop.permute.xlu1 %1206  ;;  %v8156_v8 = vpop.permute.xlu0 %1202 }
 0x10e   : > { %v1223_v51 = vmul.f32 0.0, %v8156_v8  ;;  %v1228_v52 = vmul.f32 %v8156_v8, %v1000_v47  ;;  %v1218_v53 = vmul.f32 %v8156_v8, %v990_v46  ;;  %v1243_v58 = vmul.f32 %v8156_v8, %v1015_v54 }
 0x10f   : > { %4736 = vrot.lane.b32.xlu1 %v4729_v61, %s7736_s27  ;;  %4734 = vrot.lane.b32.xlu0 %v4725_v62, %s7736_s27  ;;  %v1233_v62 = vmul.f32 %v8156_v8, %v1005_v50 }
 0x110   : > { %v1280_v59 = vrot.slane %v1223_v51, 1  ;;  %v1294_v60 = vrot.slane %v1228_v52, 1  ;;  %v1279_v61 = vrot.slane %v1218_v53, 1  ;;  %v1319_v63 = vrot.slane %v1243_v58, 1 }
 0x111   : > { %v8162_v11 = vpop.permute.xlu1 %1208  ;;  %v8164_v12 = vpop.permute.xlu0 %1204 }
 0x112   : > { %v1295_v15 = vsel %vm1278_vm0, %v1280_v59, %v1294_v60 }
 0x113   : > { %5128 = vrot.lane.b32.xlu1 %v5117_v9, %s7733_s23  ;;  %5126 = vrot.lane.b32.xlu0 %v5113_v10, %s7733_s23 }
 0x115   : > { %v8170_v16 = vpop.permute.xlu1 %1040  ;;  %v8172_v17 = vpop.permute.xlu0 %1038 }
 0x116   : > { %v1060_v48 = vmul.f32 0.0, %v8172_v17  ;;  %v1055_v49 = vmul.f32 %v8172_v17, %v990_v46  ;;  %v1065_v57 = vmul.f32 %v8172_v17, %v1005_v50 }
 0x117   : > { %5132 = vrot.lane.b32.xlu1 %v5125_v13, %s7733_s23  ;;  %5130 = vrot.lane.b32.xlu0 %v5121_v14, %s7733_s23 }
 0x119   : > { %v8182_v21 = vpop.permute.xlu1 %1044  ;;  %v8184_v22 = vpop.permute.xlu0 %1042 }
 0x11b   : > { %4965 = vrot.lane.b32.xlu1 %v4954_v18, %s7733_s23  ;;  %4963 = vrot.lane.b32.xlu0 %v4950_v1, %s7733_s23  ;;  %v1281_v18 = vsel %vm1278_vm0, %v1279_v61, %v1280_v59  ;;  %v1304_v1 = vrot.slane %v1233_v62, 1 }
 0x11d   : > { %v8190_v26 = vpop.permute.xlu1 %1438  ;;  %v8192_v27 = vpop.permute.xlu0 %1436 }
 0x11e   : > { %v1457_v9 = vmul.f32 0.0, %v8192_v27  ;;  %v1462_v10 = vmul.f32 %v8192_v27, %v1000_v47 }
 0x11f   : > { %4969 = vrot.lane.b32.xlu1 %v4962_v19, %s7733_s23  ;;  %4967 = vrot.lane.b32.xlu0 %v4958_v20, %s7733_s23  ;;  %v1452_v19 = vmul.f32 %v8192_v27, %v990_v46 }
 0x120   : > { %v1514_v20 = vrot.slane %v1457_v9, 2  ;;  %v1528_v23 = vrot.slane %v1462_v10, 2 }
 0x121   : > { %v8202_v33 = vpop.permute.xlu1 %1442  ;;  %v8204_v34 = vpop.permute.xlu0 %1440  ;;  %v1513_v30 = vrot.slane %v1452_v19, 2 }
 0x123   : > { %5361 = vrot.lane.b32.xlu1 %v5350_v24, %s7733_s23  ;;  %5359 = vrot.lane.b32.xlu0 %v5346_v25, %s7733_s23  ;;  %v1477_v24 = vmul.f32 %v8192_v27, %v1015_v54  ;;  %v1467_v25 = vmul.f32 %v8192_v27, %v1005_v50 }
 0x125   : > { %v8210_v38 = vpop.permute.xlu1 %1672  ;;  %v8212_v39 = vpop.permute.xlu0 %1670  ;;  %v1538_v37 = vrot.slane %v1467_v25, 2 }
 0x127   : > { %5365 = vrot.lane.b32.xlu1 %v5358_v28, %s7733_s23  ;;  %5363 = vrot.lane.b32.xlu0 %v5354_v29, %s7733_s23  ;;  %v1320_v28 = vsel %vm1278_vm0, %v1280_v59, %v1319_v63  ;;  %v1306_v29 = vsel %vm1278_vm0, %v1304_v1, %v1280_v59  ;;  %v1540_v51 = vsel %vm1512_vm1, %v1538_v37, %v1514_v20 }
 0x129   : > { %v8222_v44 = vpop.permute.xlu1 %1676  ;;  %v8224_v45 = vpop.permute.xlu0 %1674 }
 0x12b   : > { %5594 = vrot.lane.b32.xlu1 %v5583_v31, %s7733_s23  ;;  %5592 = vrot.lane.b32.xlu0 %v5579_v32, %s7733_s23 }
 0x12d   : > { %v8233_v55 = vpop.permute.xlu1 %1906  ;;  %v8235_v56 = vpop.permute.xlu0 %1904 }
 0x12f   : > { %5598 = vrot.lane.b32.xlu1 %v5591_v35, %s7733_s23  ;;  %5596 = vrot.lane.b32.xlu0 %v5587_v36, %s7733_s23  ;;  %v1529_v35 = vsel %vm1512_vm1, %v1514_v20, %v1528_v23  ;;  %v1553_v36 = vrot.slane %v1477_v24, 2 }
 0x131   : > { %v8246_v13 = vpop.permute.xlu1 %1910  ;;  %v8248_v14 = vpop.permute.xlu0 %1908 }
 0x133   : > { %5827 = vrot.lane.b32.xlu1 %v5816_v40, %s7733_s23  ;;  %5825 = vrot.lane.b32.xlu0 %v5812_v41, %s7733_s23  ;;  %v1515_v40 = vsel %vm1512_vm1, %v1513_v30, %v1514_v20  ;;  %v1691_v41 = vmul.f32 0.0, %v8212_v39 }
 0x135   : > { %v8259_v31 = vpop.permute.xlu1 %2305  ;;  %v8261_v32 = vpop.permute.xlu0 %2303  ;;  %v8278_v52 = vrot.slane %v1691_v41, 3 }
 0x136   : > { %14832 = vst [vmem:[#allocation23_spill] sm:$0xff] %v8259_v31  ;;  %14833 = vst [vmem:[#allocation24_spill] sm:$0xff] %v8261_v32 }
 0x137   : > { %5831 = vrot.lane.b32.xlu1 %v5824_v42, %s7733_s23  ;;  %5829 = vrot.lane.b32.xlu0 %v5820_v43, %s7733_s23  ;;  %v1696_v42 = vmul.f32 %v8212_v39, %v1000_v47  ;;  %v1686_v43 = vmul.f32 %v8212_v39, %v990_v46 }
 0x139   : > { %v8275_v50 = vpop.permute.xlu0 %2307  ;;  %v1762_v53 = vrot.slane %v1696_v42, 3  ;;  %v1747_v54 = vrot.slane %v1686_v43, 3 }
 0x13a   : > { %14835 = vst [vmem:[#allocation26_spill] sm:$0xff] %v8275_v50 }
 0x13b   : > { %1105 = vrot.lane.b32.xlu1 %v1060_v48, %s7733_s23  ;;  %1095 = vrot.lane.b32.xlu0 %v1055_v49, %s7733_s23  ;;  %v8273_v49 = vpop.permute.xlu1 %2309  ;;  %v1763_v46 = vsel %vm1746_vm2, %v8278_v52, %v1762_v53  ;;  %v1749_v47 = vsel %vm1746_vm2, %v1747_v54, %v8278_v52 }
 0x13c   : > { %14834 = vst [vmem:[#allocation25_spill] sm:$0xff] %v8273_v49 }
 0x13d   : > { %v8288_v58 = vpop.permute.xlu0 %2138 }
 0x13f   : > { %1125 = vrot.lane.b32.xlu1 %v1060_v48, %s7733_s23  ;;  %1115 = vrot.lane.b32.xlu0 %v1065_v57, %s7733_s23  ;;  %v1554_v48 = vsel %vm1512_vm1, %v1514_v20, %v1553_v36  ;;  %v8286_v57 = vpop.permute.xlu1 %2140 }
 0x141   : > { %v8294_v60 = vpop.permute.xlu0 %2142 }
 0x142   : > { %14836 = vst [vmem:[#allocation27_spill] sm:$0xff] %v8294_v60 }
 0x143   : > { %1339 = vrot.lane.b32.xlu1 %v1295_v15, %s7733_s23  ;;  %1329 = vrot.lane.b32.xlu0 %v1281_v18, %s7733_s23  ;;  %v8292_v59 = vpop.permute.xlu1 %2144 }
 0x145   : > { %v8298_v62 = vpop.permute.xlu0 %2536 }
 0x146   : > { %14838 = vst [vmem:[#allocation29_spill] sm:$0xff] %v8298_v62 }
 0x147   : > { %1359 = vrot.lane.b32.xlu1 %v1320_v28, %s7733_s23  ;;  %1349 = vrot.lane.b32.xlu0 %v1306_v29, %s7733_s23  ;;  %v8296_v61 = vpop.permute.xlu1 %2538 }
 0x148   : > { %14837 = vst [vmem:[#allocation28_spill] sm:$0xff] %v8296_v61 }
 0x149   : > { %v8302_v9 = vpop.permute.xlu0 %2540 }
 0x14a   : > { %14840 = vst [vmem:[#allocation31_spill] sm:$0xff] %v8302_v9 }
 0x14b   : > { %1573 = vrot.lane.b32.xlu1 %v1529_v35, %s7733_s23  ;;  %1563 = vrot.lane.b32.xlu0 %v1515_v40, %s7733_s23  ;;  %v8300_v63 = vpop.permute.xlu1 %2542  ;;  %v491_v35 = vld [vmem:[%s14435_s2] sm:$0xf] }
 0x14c   : > { %14839 = vst [vmem:[#allocation30_spill] sm:$0xff] %v8300_v63  ;;  %v8332_v36 = vrot.slane %v491_v35, %v8022_v4  ;;  %v8335_v37 = vrot.slane %v491_v35, %v8019_v3  ;;  %v8338_v40 = vrot.slane %v491_v35, %v8028_v6  ;;  %v8341_v41 = vrot.slane %v491_v35, %v8025_v5 }
 0x14d   : > { %v8306_v15 = vpop.permute.xlu0 %2769 }
 0x14e   : > { %14842 = vst [vmem:[#allocation33_spill] sm:$0xff] %v8306_v15 }
 0x14f   : > { %1593 = vrot.lane.b32.xlu1 %v1554_v48, %s7733_s23  ;;  %1583 = vrot.lane.b32.xlu0 %v1540_v51, %s7733_s23  ;;  %v8304_v10 = vpop.permute.xlu1 %2771 }
 0x150   : > { %14841 = vst [vmem:[#allocation32_spill] sm:$0xff] %v8304_v10 }
 0x151   : > { %v8310_v1 = vpop.permute.xlu0 %2773 }
 0x152   : > { %14844 = vst [vmem:[#allocation35_spill] sm:$0xff] %v8310_v1 }
 0x153   : > { %1807 = vrot.lane.b32.xlu1 %v1763_v46, %s7733_s23  ;;  %1797 = vrot.lane.b32.xlu0 %v1749_v47, %s7733_s23  ;;  %v8308_v18 = vpop.permute.xlu1 %2775 }
 0x154   : > { %14843 = vst [vmem:[#allocation34_spill] sm:$0xff] %v8308_v18 }
 0x155   : > { %v8314_v20 = vpop.permute.xlu0 %3002 }
 0x156   : > { %14846 = vst [vmem:[#allocation37_spill] sm:$0xff] %v8314_v20 }
 0x157   : > { %v8312_v19 = vpop.permute.xlu1 %3004 }
 0x158   : > { %14845 = vst [vmem:[#allocation36_spill] sm:$0xff] %v8312_v19 }
 0x159   : > { %v8318_v24 = vpop.permute.xlu0 %3006 }
 0x15a   : > { %14848 = vst [vmem:[#allocation39_spill] sm:$0xff] %v8318_v24 }
 0x15b   : > { %v8316_v23 = vpop.permute.xlu1 %3008 }
 0x15c   : > { %14847 = vst [vmem:[#allocation38_spill] sm:$0xff] %v8316_v23 }
 0x15d   : > { %v8322_v28 = vpop.permute.xlu0 %4031 }
 0x15e   : > { %14850 = vst [vmem:[#allocation41_spill] sm:$0xff] %v8322_v28 }
 0x15f   : > { %v8320_v25 = vpop.permute.xlu1 %4033 }
 0x160   : > { %14849 = vst [vmem:[#allocation40_spill] sm:$0xff] %v8320_v25 }
 0x161   : > { %v8326_v30 = vpop.permute.xlu0 %4035 }
 0x162   : > { %14852 = vst [vmem:[#allocation43_spill] sm:$0xff] %v8326_v30 }
 0x163   : > { %v8324_v29 = vpop.permute.xlu1 %4037 }
 0x164   : > { %14851 = vst [vmem:[#allocation42_spill] sm:$0xff] %v8324_v29 }
 0x165   : > { %v8345_v43 = vpop.permute.xlu0 %3868 }
 0x166   : > { %14854 = vst [vmem:[#allocation45_spill] sm:$0xff] %v8345_v43 }
 0x167   : > { %v8343_v42 = vpop.permute.xlu1 %3870 }
 0x168   : > { %14853 = vst [vmem:[#allocation44_spill] sm:$0xff] %v8343_v42 }
 0x169   : > { %v8355_v43 = vpop.permute.xlu0 %3872 }
 0x16a   : > { %14856 = vst [vmem:[#allocation47_spill] sm:$0xff] %v8355_v43 }
 0x188   : > { %v707_v48 = vpop.f32.mrb[0].mxu0 }
 0x189   : > { %v708_v53 = vadd.f32 %v707_v48, %v8332_v36  ;;  %v709_v46 = vpop.f32.mrb[1].mxu0 }
 0x18a   : > { %v710_v0 = vadd.f32 %v709_v46, %v8338_v40  ;;  %v711_v28 = vpop.f32.mrb[2].mxu0 }
 0x18b   : > { %v760_v51 = vpop.f32.mrb[0].mxu1  ;;  %v779_v35 = vadd.f32 3.0, %v708_v53  ;;  %v712_v6 = vadd.f32 %v711_v28, %v8332_v36  ;;  %v713_v48 = vpop.f32.mrb[3].mxu0 }
 0x18c   : > { %v761_v54 = vadd.f32 %v760_v51, %v8335_v37  ;;  %v762_v47 = vpop.f32.mrb[1].mxu1  ;;  %v780_v29 = vadd.f32 3.0, %v710_v0  ;;  %v8353_v51 = vpop.permute.xlu1 %3874  ;;  %v714_v19 = vadd.f32 %v713_v48, %v8338_v40 }
 0x18d   : > { %v763_v2 = vadd.f32 %v762_v47, %v8341_v41  ;;  %v764_v3 = vpop.f32.mrb[2].mxu1  ;;  %14855 = vst [vmem:[#allocation46_spill] sm:$0xff] %v8353_v51  ;;  %v795_v46 = vmax.f32 %v779_v35, 0.0  ;;  %v783_v47 = vadd.f32 3.0, %v712_v6 }
 0x18e   : > { %v781_v5 = vadd.f32 3.0, %v761_v54  ;;  %v765_v4 = vadd.f32 %v764_v3, %v8335_v37  ;;  %v766_v30 = vpop.f32.mrb[3].mxu1  ;;  %v796_v23 = vmax.f32 %v780_v29, 0.0  ;;  %v784_v63 = vadd.f32 3.0, %v714_v19 }
 0x18f   : > { %v782_v25 = vadd.f32 3.0, %v763_v2  ;;  %v767_v28 = vadd.f32 %v766_v30, %v8341_v41  ;;  %v811_v3 = vmin.f32 %v795_v46, 6.0  ;;  %v799_v18 = vmax.f32 %v783_v47, 0.0 }
 0x190   : > { %v797_v42 = vmax.f32 %v781_v5, 0.0  ;;  %v785_v24 = vadd.f32 3.0, %v765_v4  ;;  %v812_v10 = vmin.f32 %v796_v23, 6.0  ;;  %v717_v62 = vpop.f32.mrb[4].mxu0  ;;  %v800_v32 = vmax.f32 %v784_v63, 0.0  ;;  %v8359_v47 = vpop.permute.xlu1 %4266 }
 0x191   : > { %v798_v20 = vmax.f32 %v782_v25, 0.0  ;;  %v786_v51 = vadd.f32 3.0, %v767_v28  ;;  %v827_v35 = vmul.f32 %v811_v3, %v708_v53  ;;  %v815_v61 = vmin.f32 %v799_v18, 6.0  ;;  %v719_v29 = vpop.f32.mrb[5].mxu0  ;;  %14857 = vst [vmem:[#allocation48_spill] sm:$0xff] %v8359_v47  ;;  %v8361_v23 = vpop.permute.xlu0 %4264 }
 0x192   : > { %v813_v1 = vmin.f32 %v797_v42, 6.0  ;;  %v801_v15 = vmax.f32 %v785_v24, 0.0  ;;  %v828_v49 = vmul.f32 %v812_v10, %v710_v0  ;;  %v721_v46 = vpop.f32.mrb[6].mxu0  ;;  %14858 = vst [vmem:[#allocation49_spill] sm:$0xff] %v8361_v23  ;;  %v816_v18 = vmin.f32 %v800_v32, 6.0 }
 0x193   : > { %v814_v9 = vmin.f32 %v798_v20, 6.0  ;;  %v770_v43 = vpop.f32.mrb[4].mxu1  ;;  %v802_v30 = vmax.f32 %v786_v51, 0.0  ;;  %v896_v20 = vrot.slane %v827_v35, 6  ;;  %v831_v31 = vmul.f32 %v815_v61, %v712_v6 }
 0x194   : > { %v829_v5 = vmul.f32 %v813_v1, %v761_v54  ;;  %v817_v50 = vmin.f32 %v801_v15, 6.0  ;;  %v772_v25 = vpop.f32.mrb[5].mxu1  ;;  %v897_v53 = vrot.slane %v828_v49, 6  ;;  %v723_v54 = vpop.f32.mrb[7].mxu0  ;;  %v718_v63 = vadd.f32 %v717_v62, %v8332_v36 }
 0x195   : > { %v830_v48 = vmul.f32 %v814_v9, %v763_v2  ;;  %v774_v42 = vpop.f32.mrb[6].mxu1  ;;  %v818_v15 = vmin.f32 %v802_v30, 6.0  ;;  %944 = vst [vmem:[#allocation2 + $0x8] sm:$0xfc] %v896_v20  ;;  %v900_v0 = vrot.slane %v831_v31, 6  ;;  %v771_v9 = vadd.f32 %v770_v43, %v8335_v37 }
 0x196   : > { %v898_v24 = vrot.slane %v829_v5, 6  ;;  %v833_v60 = vmul.f32 %v817_v50, %v765_v4  ;;  %v776_v3 = vpop.f32.mrb[7].mxu1  ;;  %945 = vst [vmem:[#allocation2 + $0x10] sm:$0xfc] %v897_v53  ;;  %v832_v10 = vmul.f32 %v816_v18, %v714_v19  ;;  %v720_v4 = vadd.f32 %v719_v29, %v8338_v40  ;;  %v8377_v29 = vpop.permute.xlu1 %4270 }
 0x197   : > { %v899_v1 = vrot.slane %v830_v48, 6  ;;  %v834_v51 = vmul.f32 %v818_v15, %v767_v28  ;;  %v773_v6 = vadd.f32 %v772_v25, %v8341_v41  ;;  %v8368_v32 = vsel %vm895_vm3, %v896_v20, %v900_v0  ;;  %952 = vst [vmem:[#allocation2 + $0x68] sm:$0x3] %v900_v0  ;;  %14859 = vst [vmem:[#allocation50_spill] sm:$0xff] %v8377_v29  ;;  %v8379_v25 = vpop.permute.xlu0 %4268 }
 0x198   : > { %946 = vst [vmem:[#allocation2 + $0x18] sm:$0xfc] %v898_v24  ;;  %v904_v2 = vrot.slane %v833_v60, 6  ;;  %v787_v31 = vadd.f32 3.0, %v718_v63  ;;  %v789_v50 = vadd.f32 3.0, %v771_v9  ;;  %948 = vst [vmem:[#allocation2 + $0x38] sm:$0xff] %v8368_v32  ;;  %v722_v35 = vadd.f32 %v721_v46, %v8332_v36 }
 0x199   : > { %947 = vst [vmem:[#allocation2 + $0x20] sm:$0xfc] %v899_v1  ;;  %v902_v60 = vrot.slane %v832_v10, 6  ;;  %v906_v61 = vrot.slane %v834_v51, 6  ;;  %v788_v62 = vadd.f32 3.0, %v720_v4  ;;  %v790_v19 = vadd.f32 3.0, %v773_v6 }
 0x19a   : > { %v8371_v49 = vsel %vm895_vm3, %v898_v24, %v904_v2  ;;  %954 = vst [vmem:[#allocation2 + $0x78] sm:$0x3] %v904_v2  ;;  %v803_v43 = vmax.f32 %v787_v31, 0.0  ;;  %v805_v28 = vmax.f32 %v789_v50, 0.0  ;;  %v775_v5 = vadd.f32 %v774_v42, %v8335_v37 }
 0x19b   : > { %950 = vst [vmem:[#allocation2 + $0x48] sm:$0xff] %v8371_v49  ;;  %v8382_v48 = vsel %vm895_vm3, %v897_v53, %v902_v60  ;;  %953 = vst [vmem:[#allocation2 + $0x70] sm:$0x3] %v902_v60  ;;  %v8385_v30 = vsel %vm895_vm3, %v899_v1, %v906_v61  ;;  %v804_v20 = vmax.f32 %v788_v62, 0.0  ;;  %v806_v24 = vmax.f32 %v790_v19, 0.0 }
 0x19c   : > { %955 = vst [vmem:[#allocation2 + $0x80] sm:$0x3] %v906_v61  ;;  %949 = vst [vmem:[#allocation2 + $0x40] sm:$0xff] %v8382_v48  ;;  %v819_v36 = vmin.f32 %v803_v43, 6.0  ;;  %v821_v37 = vmin.f32 %v805_v28, 6.0  ;;  %v791_v46 = vadd.f32 3.0, %v722_v35  ;;  %v724_v31 = vadd.f32 %v723_v54, %v8338_v40 }
 0x19d   : > { %951 = vst [vmem:[#allocation2 + $0x50] sm:$0xff] %v8385_v30  ;;  %v793_v42 = vadd.f32 3.0, %v775_v5  ;;  %v820_v18 = vmin.f32 %v804_v20, 6.0  ;;  %v822_v15 = vmin.f32 %v806_v24, 6.0  ;;  %v777_v50 = vadd.f32 %v776_v3, %v8341_v41  ;;  %v8391_v60 = vld [vmem:[#allocation2 + $0x8] sm:$0xff]  ;;  %v8393_v61 = vld [vmem:[#allocation2 + $0x10] sm:$0xff]  ;;  %v8395_v20 = vpop.permute.xlu1 %4499 }
 0x19e   : > { %v835_v53 = vmul.f32 %v819_v36, %v718_v63  ;;  %v837_v0 = vmul.f32 %v821_v37, %v771_v9  ;;  %v807_v2 = vmax.f32 %v791_v46, 0.0  ;;  %14860 = vst [vmem:[#allocation51_spill] sm:$0xff] %v8395_v20  ;;  %v8397_v63 = vpop.permute.xlu0 %4497  ;;  %v8402_v40 = vsel %vm1046_vm4, %v8170_v16, %v8184_v22 }
 0x19f   : > { %v809_v10 = vmax.f32 %v793_v42, 0.0  ;;  %v836_v1 = vmul.f32 %v820_v18, %v720_v4  ;;  %v838_v51 = vmul.f32 %v822_v15, %v773_v6  ;;  %14861 = vst [vmem:[#allocation52_spill] sm:$0xff] %v8397_v63  ;;  %v792_v4 = vadd.f32 3.0, %v724_v31  ;;  %v8413_v18 = vld [vmem:[#allocation2 + $0x18] sm:$0xff] }
 0x1a0   : > { %v908_v62 = vrot.slane %v835_v53, 6  ;;  %v910_v19 = vrot.slane %v837_v0, 6  ;;  %v823_v43 = vmin.f32 %v807_v2, 6.0  ;;  %v794_v6 = vadd.f32 3.0, %v777_v50  ;;  %v8415_v15 = vld [vmem:[#allocation2 + $0x20] sm:$0xff] }
 0x1a1   : > { %v825_v28 = vmin.f32 %v809_v10, 6.0  ;;  %v909_v9 = vrot.slane %v836_v1, 6  ;;  %v911_v24 = vrot.slane %v838_v51, 6  ;;  %v8407_v3 = vsel %vm1046_vm4, %v8172_v17, %v8170_v16  ;;  %v8430_v10 = vpop.permute.xlu1 %4503 }
 0x1a2   : > { %956 = vst [vmem:[#allocation2 + $0x98] sm:$0xfc] %v908_v62  ;;  %958 = vst [vmem:[#allocation2 + $0xa8] sm:$0xfc] %v910_v19  ;;  %v839_v41 = vmul.f32 %v823_v43, %v722_v35  ;;  %v808_v36 = vmax.f32 %v792_v4, 0.0  ;;  %v810_v37 = vmax.f32 %v794_v6, 0.0  ;;  %v1056_v46 = vmul.f32 %v8407_v3, %v8391_v60  ;;  %v8432_v1 = vpop.permute.xlu0 %4501 }
 0x1a3   : > { %v841_v54 = vmul.f32 %v825_v28, %v775_v5  ;;  %957 = vst [vmem:[#allocation2 + $0xa0] sm:$0xfc] %v909_v9  ;;  %959 = vst [vmem:[#allocation2 + $0xb0] sm:$0xfc] %v911_v24  ;;  %v1057_v42 = vmul.f32 %v8402_v40, %v8393_v61  ;;  %v8422_v16 = vsel %vm1046_vm4, %v8184_v22, %v8182_v21  ;;  %v8440_v28 = vld [vmem:[#allocation2 + $0x68] sm:$0xf] }
 0x1a4   : > { %v912_v35 = vrot.slane %v839_v41, 6  ;;  %v824_v53 = vmin.f32 %v808_v36, 6.0  ;;  %v826_v0 = vmin.f32 %v810_v37, 6.0  ;;  %1097 = vrot.lane.b32.xlu1 %v1056_v46, %s7733_s23  ;;  %14862 = vst [vmem:[#allocation53_spill] sm:$0xff] %v8430_v10  ;;  %14863 = vst [vmem:[#allocation54_spill] sm:$0xff] %v8432_v1  ;;  %v1058_v22 = vmul.f32 %v8422_v16, %v8413_v18 }
 0x1a5   : > { %v916_v5 = vrot.slane %v841_v54, 6  ;;  %1099 = vrot.lane.b32.xlu0 %v1057_v42, %s7733_s23  ;;  %v8447_v6 = vsel %vm1046_vm4, %v8156_v8, %v8164_v12  ;;  %v1062_v41 = vmul.f32 %v8402_v40, %v8382_v48  ;;  %v1061_v54 = vmul.f32 %v8407_v3, %v8368_v32  ;;  %v8459_v36 = vld [vmem:[#allocation2 + $0x78] sm:$0xf] }
 0x1a6   : > { %v8425_v17 = vsel %vm895_vm3, %v908_v62, %v912_v35  ;;  %964 = vst [vmem:[#allocation2 + $0xf8] sm:$0x3] %v912_v35  ;;  %v840_v51 = vmul.f32 %v824_v53, %v724_v31  ;;  %v842_v43 = vmul.f32 %v826_v0, %v777_v50  ;;  %v1059_v62 = vmul.f32 %v8182_v21, %v8415_v15  ;;  %v8469_v37 = vpop.permute.xlu0 %4730 }
 0x1a7   : > { %v8428_v2 = vsel %vm895_vm3, %v910_v19, %v916_v5  ;;  %966 = vst [vmem:[#allocation2 + $0x108] sm:$0x3] %v916_v5  ;;  %960 = vst [vmem:[#allocation2 + $0xc8] sm:$0xff] %v8425_v17  ;;  %v1219_v8 = vmul.f32 %v8447_v6, %v8391_v60  ;;  %v1224_v46 = vmul.f32 %v8447_v6, %v8368_v32 }
 0x1a8   : > { %962 = vst [vmem:[#allocation2 + $0xd8] sm:$0xff] %v8428_v2  ;;  %v914_v19 = vrot.slane %v840_v51, 6  ;;  %v918_v4 = vrot.slane %v842_v43, 6  ;;  %1101 = vrot.lane.b32.xlu1 %v1058_v22, %s7733_s23  ;;  %14865 = vst [vmem:[#allocation56_spill] sm:$0xff] %v8469_v37  ;;  %v8478_v42 = vsel %vm1046_vm4, %v8154_v7, %v8162_v11  ;;  %v1064_v35 = vmul.f32 %v8182_v21, %v8385_v30 }
 0x1a9   : > { %1103 = vrot.lane.b32.xlu0 %v1059_v62, %s7733_s23  ;;  %v1063_v5 = vmul.f32 %v8422_v16, %v8371_v49  ;;  %v1221_v53 = vmul.f32 %v8478_v42, %v8413_v18  ;;  %v1231_v0 = vmul.f32 %v8478_v42, %v8459_v36  ;;  %v1282_v51 = vrot.slane %v1219_v8, 1 }
 0x1aa   : > { %v8450_v31 = vsel %vm895_vm3, %v909_v9, %v914_v19  ;;  %965 = vst [vmem:[#allocation2 + $0x100] sm:$0x3] %v914_v19  ;;  %v8453_v50 = vsel %vm895_vm3, %v911_v24, %v918_v4  ;;  %967 = vst [vmem:[#allocation2 + $0x110] sm:$0x3] %v918_v4  ;;  %v1229_v9 = vmul.f32 %v8447_v6, %v8440_v28  ;;  %v8467_v24 = vpop.permute.xlu1 %4732  ;;  %v1283_v62 = vrot.slane %v1224_v46, 1  ;;  %v8494_v4 = vpop.permute.xlu0 %4734 }
 0x1ab   : > { %961 = vst [vmem:[#allocation2 + $0xd0] sm:$0xff] %v8450_v31  ;;  %963 = vst [vmem:[#allocation2 + $0xe0] sm:$0xff] %v8453_v50  ;;  %v1226_v22 = vmul.f32 %v8478_v42, %v8371_v49  ;;  %v8499_v37 = vsel %vm1046_vm4, %v8192_v27, %v8190_v26  ;;  %v8512_v27 = vsel %vm1046_vm4, %v8204_v34, %v8202_v33 }
 0x1ac   : > { %14864 = vst [vmem:[#allocation55_spill] sm:$0xff] %v8467_v24  ;;  %1109 = vrot.lane.b32.xlu1 %v1062_v41, %s7733_s23  ;;  %v1296_v43 = vrot.slane %v1229_v9, 1  ;;  %14867 = vst [vmem:[#allocation58_spill] sm:$0xff] %v8494_v4  ;;  %v1288_v41 = vrot.slane %v1221_v53, 1  ;;  %v1284_v8 = vsel %vm1278_vm0, %v1282_v51, %v1283_v62  ;;  %v1463_v46 = vmul.f32 %v8499_v37, %v8440_v28 }
 0x1ad   : > { %1107 = vrot.lane.b32.xlu0 %v1061_v54, %s7733_s23  ;;  %v1300_v54 = vrot.slane %v1231_v0, 1  ;;  %v1458_v53 = vmul.f32 %v8499_v37, %v8368_v32  ;;  %v1455_v51 = vmul.f32 %v8512_v27, %v8413_v18  ;;  %v1222_v24 = vmul.f32 %v8162_v11, %v8415_v15 }
 0x1ae   : > { %v8492_v19 = vpop.permute.xlu1 %4736  ;;  %v1297_v9 = vsel %vm1278_vm0, %v1283_v62, %v1296_v43  ;;  %v8524_v63 = vpop.permute.xlu0 %5126 }
 0x1af   : > { %14866 = vst [vmem:[#allocation57_spill] sm:$0xff] %v8492_v19  ;;  %14869 = vst [vmem:[#allocation60_spill] sm:$0xff] %v8524_v63  ;;  %v1517_v23 = vrot.slane %v1458_v53, 2 }
 0x1b0   : > { %1113 = vrot.lane.b32.xlu1 %v1064_v35, %s7733_s23  ;;  %v1453_v35 = vmul.f32 %v8499_v37, %v8391_v60 }
 0x1b1   : > { %1111 = vrot.lane.b32.xlu0 %v1063_v5, %s7733_s23  ;;  %v1289_v5 = vrot.slane %v1226_v22, 1  ;;  %v1465_v22 = vmul.f32 %v8512_v27, %v8459_v36 }
 0x1b2   : > { %v1516_v62 = vrot.slane %v1453_v35, 2  ;;  %v8538_v35 = vsel %vm1046_vm4, %v8164_v12, %v8154_v7 }
 0x1b3   : > { %v1290_v0 = vsel %vm1278_vm0, %v1288_v41, %v1289_v5  ;;  %v1301_v43 = vsel %vm1278_vm0, %v1289_v5, %v1300_v54  ;;  %v1460_v41 = vmul.f32 %v8512_v27, %v8371_v49  ;;  %v8533_v54 = vsel %vm1046_vm4, %v8212_v39, %v8210_v38 }
 0x1b4   : > { %1331 = vrot.lane.b32.xlu1 %v1284_v8, %s7733_s23  ;;  %v1530_v8 = vrot.slane %v1463_v46, 2  ;;  %v1522_v46 = vrot.slane %v1455_v51, 2  ;;  %v1687_v5 = vmul.f32 %v8533_v54, %v8391_v60  ;;  %v1534_v63 = vrot.slane %v1465_v22, 2 }
 0x1b5   : > { %1341 = vrot.lane.b32.xlu0 %v1297_v9, %s7733_s23  ;;  %v8522_v9 = vpop.permute.xlu1 %5128  ;;  %v1220_v53 = vmul.f32 %v8538_v35, %v8393_v61  ;;  %v8550_v7 = vmul.f32 %v8533_v54, %v8368_v32  ;;  %v1225_v12 = vmul.f32 %v8538_v35, %v8382_v48 }
 0x1b6   : > { %14868 = vst [vmem:[#allocation59_spill] sm:$0xff] %v8522_v9  ;;  %v1523_v9 = vrot.slane %v1460_v41, 2  ;;  %v1750_v22 = vrot.slane %v1687_v5, 3  ;;  %v8564_v41 = vld [vmem:[#allocation2 + $0x70] sm:$0xf] }
 0x1b8   : > { %1335 = vrot.lane.b32.xlu1 %v1290_v0, %s7733_s23  ;;  %v1518_v0 = vsel %vm1512_vm1, %v1516_v62, %v1517_v23  ;;  %v8561_v62 = vpop.permute.xlu0 %5130 }
 0x1b9   : > { %1345 = vrot.lane.b32.xlu0 %v1301_v43, %s7733_s23  ;;  %v1531_v43 = vsel %vm1512_vm1, %v1517_v23, %v1530_v8  ;;  %v8557_v23 = vsel %vm1046_vm4, %v8224_v45, %v8222_v44  ;;  %v8559_v51 = vpop.permute.xlu1 %5132  ;;  %14871 = vst [vmem:[#allocation62_spill] sm:$0xff] %v8561_v62  ;;  %v1524_v8 = vsel %vm1512_vm1, %v1522_v46, %v1523_v9  ;;  %v1286_v62 = vrot.slane %v1225_v12, 1 }
 0x1ba   : > { %14870 = vst [vmem:[#allocation61_spill] sm:$0xff] %v8559_v51  ;;  %v1689_v19 = vmul.f32 %v8557_v23, %v8413_v18  ;;  %v1751_v51 = vrot.slane %v8550_v7, 3  ;;  %v8576_v46 = vmul.f32 %v8557_v23, %v8371_v49 }
 0x1bc   : > { %1565 = vrot.lane.b32.xlu1 %v1518_v0, %s7733_s23  ;;  %v1535_v0 = vsel %vm1512_vm1, %v1523_v9, %v1534_v63  ;;  %v1227_v63 = vmul.f32 %v8162_v11, %v8385_v30  ;;  %v8583_v9 = vsel %vm1046_vm4, %v8190_v26, %v8204_v34  ;;  %v1752_v5 = vsel %vm1746_vm2, %v1750_v22, %v1751_v51  ;;  %v8595_v20 = vpop.permute.xlu0 %4963 }
 0x1bd   : > { %1575 = vrot.lane.b32.xlu0 %v1531_v43, %s7733_s23  ;;  %v1285_v43 = vrot.slane %v1220_v53, 1  ;;  %v1230_v53 = vmul.f32 %v8538_v35, %v8564_v41  ;;  %v1756_v12 = vrot.slane %v1689_v19, 3  ;;  %v1454_v4 = vmul.f32 %v8583_v9, %v8393_v61  ;;  %v8593_v10 = vpop.permute.xlu1 %4965  ;;  %14873 = vst [vmem:[#allocation64_spill] sm:$0xff] %v8595_v20 }
 0x1be   : > { %14872 = vst [vmem:[#allocation63_spill] sm:$0xff] %v8593_v10  ;;  %v1757_v26 = vrot.slane %v8576_v46, 3  ;;  %v1292_v34 = vrot.slane %v1227_v63, 1  ;;  %v1459_v22 = vmul.f32 %v8583_v9, %v8382_v48  ;;  %v1461_v63 = vmul.f32 %v8202_v33, %v8385_v30 }
 0x1bf   : > { %v1287_v7 = vsel %vm1278_vm0, %v1285_v43, %v1286_v62  ;;  %v1298_v43 = vrot.slane %v1230_v53, 1  ;;  %v1519_v1 = vrot.slane %v1454_v4, 2  ;;  %v8615_v53 = vsel %vm1046_vm4, %v8210_v38, %v8224_v45 }
 0x1c0   : > { %1569 = vrot.lane.b32.xlu1 %v1524_v8, %s7733_s23  ;;  %v8588_v8 = vld [vmem:[#allocation2 + $0x80] sm:$0xf]  ;;  %v1758_v19 = vsel %vm1746_vm2, %v1756_v12, %v1757_v26  ;;  %v1520_v46 = vrot.slane %v1459_v22, 2  ;;  %v8619_v12 = vpop.permute.xlu0 %4967  ;;  %v1688_v22 = vmul.f32 %v8615_v53, %v8393_v61  ;;  %v1526_v38 = vrot.slane %v1461_v63, 2 }
 0x1c1   : > { %1579 = vrot.lane.b32.xlu0 %v1535_v0, %s7733_s23  ;;  %v1291_v0 = vrot.slane %v1222_v24, 1  ;;  %v1232_v24 = vmul.f32 %v8162_v11, %v8588_v8  ;;  %14875 = vst [vmem:[#allocation66_spill] sm:$0xff] %v8619_v12  ;;  %v1299_v4 = vsel %vm1278_vm0, %v1286_v62, %v1298_v43  ;;  %v8631_v45 = vmul.f32 %v8615_v53, %v8382_v48 }
 0x1c2   : > { %v1697_v43 = vmul.f32 %v8533_v54, %v8440_v28 }
 0x1c3   : > { %v1293_v10 = vsel %vm1278_vm0, %v1291_v0, %v1292_v34  ;;  %v1302_v0 = vrot.slane %v1232_v24, 1  ;;  %v14507_v12 = vrot.slane %v8631_v45, 3 }
 0x1c4   : > { %1799 = vrot.lane.b32.xlu1 %v1752_v5, %s7733_s23  ;;  %v1456_v5 = vmul.f32 %v8202_v33, %v8415_v15 }
 0x1c5   : > { %1333 = vrot.lane.b32.xlu0 %v1287_v7, %s7733_s23  ;;  %v8617_v7 = vpop.permute.xlu1 %4969  ;;  %v1303_v62 = vsel %vm1278_vm0, %v1292_v34, %v1302_v0  ;;  %v1764_v34 = vrot.slane %v1697_v43, 3  ;;  %v1699_v0 = vmul.f32 %v8557_v23, %v8459_v36 }
 0x1c6   : > { %14874 = vst [vmem:[#allocation65_spill] sm:$0xff] %v8617_v7  ;;  %v1525_v20 = vrot.slane %v1456_v5, 2  ;;  %v1753_v7 = vrot.slane %v1688_v22, 3 }
 0x1c7   : > { %v1768_v22 = vrot.slane %v1699_v0, 3  ;;  %v8687_v0 = vld [vmem:[#allocation2 + $0xb0] sm:$0xff] }
 0x1c8   : > { %1803 = vrot.lane.b32.xlu1 %v1758_v19, %s7733_s23  ;;  %v1521_v19 = vsel %vm1512_vm1, %v1519_v1, %v1520_v46  ;;  %v1466_v1 = vmul.f32 %v8202_v33, %v8588_v8  ;;  %v1527_v24 = vsel %vm1512_vm1, %v1525_v20, %v1526_v38  ;;  %v8652_v20 = vmul.f32 %v8222_v44, %v8385_v30 }
 0x1c9   : > { %1337 = vrot.lane.b32.xlu0 %v1293_v10, %s7733_s23  ;;  %v1464_v10 = vmul.f32 %v8583_v9, %v8564_v41  ;;  %v8641_v63 = vpop.permute.xlu1 %5361 }
 0x1ca   : > { %14876 = vst [vmem:[#allocation67_spill] sm:$0xff] %v8641_v63  ;;  %v1536_v43 = vrot.slane %v1466_v1, 2  ;;  %v8664_v63 = vsel %vm1746_vm2, %v1757_v26, %v1768_v22  ;;  %v14506_v29 = vrot.slane %v8652_v20, 3 }
 0x1cb   : > { %v1532_v5 = vrot.slane %v1464_v10, 2  ;;  %v8655_v10 = vsel %vm1746_vm2, %v1751_v51, %v1764_v34 }
 0x1cc   : > { %1343 = vrot.lane.b32.xlu1 %v1299_v4, %s7733_s23  ;;  %v1690_v4 = vmul.f32 %v8222_v44, %v8415_v15 }
 0x1cd   : > { %1567 = vrot.lane.b32.xlu0 %v1521_v19, %s7733_s23  ;;  %v8643_v19 = vpop.permute.xlu0 %5359  ;;  %v8667_v51 = vpop.permute.xlu1 %5365 }
 0x1ce   : > { %14877 = vst [vmem:[#allocation68_spill] sm:$0xff] %v8643_v19  ;;  %v1533_v19 = vsel %vm1512_vm1, %v1520_v46, %v1532_v5  ;;  %14878 = vst [vmem:[#allocation69_spill] sm:$0xff] %v8667_v51  ;;  %v8671_v46 = vld [vmem:[#allocation2 + $0x98] sm:$0xff]  ;;  %v8673_v5 = vld [vmem:[#allocation2 + $0xa0] sm:$0xff] }
 0x1cf   : > { %v1066_v26 = vmul.f32 %v8407_v3, %v8671_v46 }
 0x1d0   : > { %1347 = vrot.lane.b32.xlu1 %v1303_v62, %s7733_s23  ;;  %v1755_v62 = vsel %vm1746_vm2, %v1753_v7, %v14507_v12  ;;  %v1537_v7 = vsel %vm1512_vm1, %v1526_v38, %v1536_v43  ;;  %v1069_v43 = vmul.f32 %v8182_v21, %v8687_v0 }
 0x1d1   : > { %1571 = vrot.lane.b32.xlu0 %v1527_v24, %s7733_s23  ;;  %v1759_v24 = vrot.slane %v1690_v4, 3  ;;  %v8669_v34 = vpop.permute.xlu0 %5363  ;;  %v1067_v4 = vmul.f32 %v8402_v40, %v8673_v5  ;;  %v8689_v22 = vpop.permute.xlu1 %5594 }
 0x1d2   : > { %14879 = vst [vmem:[#allocation70_spill] sm:$0xff] %v8669_v34  ;;  %14880 = vst [vmem:[#allocation71_spill] sm:$0xff] %v8689_v22 }
 0x1d3   : > { %v1761_v1 = vsel %vm1746_vm2, %v1759_v24, %v14506_v29  ;;  %v8699_v24 = vld [vmem:[#allocation2 + $0xf8] sm:$0xf]  ;;  %v1234_v29 = vmul.f32 %v8447_v6, %v8671_v46 }
 0x1d4   : > { %1577 = vrot.lane.b32.xlu1 %v1533_v19, %s7733_s23  ;;  %v8685_v19 = vld [vmem:[#allocation2 + $0xa8] sm:$0xff]  ;;  %v1244_v12 = vmul.f32 %v8447_v6, %v8699_v24 }
 0x1d5   : > { %1801 = vrot.lane.b32.xlu0 %v1755_v62, %s7733_s23  ;;  %v8691_v38 = vpop.permute.xlu0 %5592  ;;  %v1068_v62 = vmul.f32 %v8422_v16, %v8685_v19 }
 0x1d6   : > { %14881 = vst [vmem:[#allocation72_spill] sm:$0xff] %v8691_v38  ;;  %v8715_v38 = vld [vmem:[#allocation2 + $0x108] sm:$0xf]  ;;  %v1321_v22 = vrot.slane %v1244_v12, 1 }
 0x1d8   : > { %1581 = vrot.lane.b32.xlu1 %v1537_v7, %s7733_s23  ;;  %v8703_v7 = vpop.permute.xlu1 %5598 }
 0x1d9   : > { %1805 = vrot.lane.b32.xlu0 %v1761_v1, %s7733_s23  ;;  %14882 = vst [vmem:[#allocation73_spill] sm:$0xff] %v8703_v7  ;;  %v8705_v1 = vpop.permute.xlu0 %5596  ;;  %v1307_v7 = vrot.slane %v1234_v29, 1  ;;  %v1468_v29 = vmul.f32 %v8499_v37, %v8671_v46 }
 0x1da   : > { %14883 = vst [vmem:[#allocation74_spill] sm:$0xff] %v8705_v1  ;;  %v1246_v1 = vmul.f32 %v8478_v42, %v8715_v38 }
 0x1dc   : > { %1117 = vrot.lane.b32.xlu1 %v1066_v26, %s7733_s23  ;;  %v1072_v26 = vmul.f32 %v8402_v40, %v8450_v31  ;;  %v1074_v40 = vmul.f32 %v8182_v21, %v8453_v50  ;;  %v1241_v21 = vmul.f32 %v8478_v42, %v8428_v2  ;;  %v1325_v34 = vrot.slane %v1246_v1, 1 }
 0x1dd   : > { %1119 = vrot.lane.b32.xlu0 %v1067_v4, %s7733_s23  ;;  %v1071_v4 = vmul.f32 %v8407_v3, %v8425_v17  ;;  %v1073_v3 = vmul.f32 %v8422_v16, %v8428_v2 }
 0x1e0   : > { %1121 = vrot.lane.b32.xlu1 %v1068_v62, %s7733_s23  ;;  %v1239_v62 = vmul.f32 %v8447_v6, %v8425_v17 }
 0x1e1   : > { %1123 = vrot.lane.b32.xlu0 %v1069_v43, %s7733_s23  ;;  %v1236_v43 = vmul.f32 %v8478_v42, %v8685_v19  ;;  %v1473_v42 = vmul.f32 %v8499_v37, %v8425_v17 }
 0x1e2   : > { %v1308_v16 = vrot.slane %v1239_v62, 1 }
 0x1e3   : > { %v1313_v6 = vrot.slane %v1236_v43, 1  ;;  %v1541_v43 = vrot.slane %v1468_v29, 2 }
 0x1e4   : > { %1129 = vrot.lane.b32.xlu1 %v1072_v26, %s7733_s23  ;;  %v8729_v26 = vpop.permute.xlu1 %5827  ;;  %v1309_v12 = vsel %vm1278_vm0, %v1307_v7, %v1308_v16  ;;  %v1322_v51 = vsel %vm1278_vm0, %v1308_v16, %v1321_v22  ;;  %v8752_v22 = vld [vmem:[#allocation2 + $0x100] sm:$0xf] }
 0x1e5   : > { %1127 = vrot.lane.b32.xlu0 %v1071_v4, %s7733_s23  ;;  %14884 = vst [vmem:[#allocation75_spill] sm:$0xff] %v8729_v26  ;;  %v8731_v4 = vpop.permute.xlu0 %5825 }
 0x1e6   : > { %14885 = vst [vmem:[#allocation76_spill] sm:$0xff] %v8731_v4  ;;  %v1478_v4 = vmul.f32 %v8499_v37, %v8699_v24  ;;  %v1542_v37 = vrot.slane %v1473_v42, 2  ;;  %v1235_v42 = vmul.f32 %v8538_v35, %v8673_v5 }
 0x1e8   : > { %1133 = vrot.lane.b32.xlu1 %v1074_v40, %s7733_s23  ;;  %v1314_v40 = vrot.slane %v1241_v21, 1  ;;  %v8747_v62 = vpop.permute.xlu1 %5831  ;;  %v1555_v16 = vrot.slane %v1478_v4, 2  ;;  %v1475_v21 = vmul.f32 %v8512_v27, %v8428_v2  ;;  %v1245_v4 = vmul.f32 %v8538_v35, %v8752_v22 }
 0x1e9   : > { %1131 = vrot.lane.b32.xlu0 %v1073_v3, %s7733_s23  ;;  %14886 = vst [vmem:[#allocation77_spill] sm:$0xff] %v8747_v62  ;;  %v8749_v3 = vpop.permute.xlu0 %5829 }
 0x1ea   : > { %14887 = vst [vmem:[#allocation78_spill] sm:$0xff] %v8749_v3  ;;  %v1315_v7 = vsel %vm1278_vm0, %v1313_v6, %v1314_v40  ;;  %v1326_v1 = vsel %vm1278_vm0, %v1314_v40, %v1325_v34  ;;  %v1543_v34 = vsel %vm1512_vm1, %v1541_v43, %v1542_v37  ;;  %v8770_v40 = vld [vmem:[#allocation2 + $0x110] sm:$0xf]  ;;  %v1556_v62 = vsel %vm1512_vm1, %v1542_v37, %v1555_v16 }
 0x1eb   : > { %v1548_v43 = vrot.slane %v1475_v21, 2 }
 0x1ec   : > { %1351 = vrot.lane.b32.xlu1 %v1309_v12, %s7733_s23  ;;  %v1470_v12 = vmul.f32 %v8512_v27, %v8685_v19  ;;  %v8763_v6 = vpop.permute.xlu1 %1105 }
 0x1ed   : > { %1361 = vrot.lane.b32.xlu0 %v1322_v51, %s7733_s23  ;;  %v1480_v51 = vmul.f32 %v8512_v27, %v8715_v38  ;;  %14888 = vst [vmem:[#allocation79_spill] sm:$0xff] %v8763_v6  ;;  %v8765_v29 = vpop.permute.xlu0 %1095  ;;  %v1240_v27 = vmul.f32 %v8538_v35, %v8450_v31  ;;  %v1247_v6 = vmul.f32 %v8162_v11, %v8770_v40 }
 0x1ef   : > { %v1559_v26 = vrot.slane %v1480_v51, 2  ;;  %v1237_v51 = vmul.f32 %v8162_v11, %v8687_v0  ;;  %v1311_v35 = vrot.slane %v1240_v27, 1 }
 0x1f0   : > { %1355 = vrot.lane.b32.xlu1 %v1315_v7, %s7733_s23  ;;  %v1547_v7 = vrot.slane %v1470_v12, 2  ;;  %v1310_v12 = vrot.slane %v1235_v42, 1  ;;  %v8785_v37 = vpop.permute.xlu1 %1125  ;;  %v1479_v42 = vmul.f32 %v8583_v9, %v8752_v22 }
 0x1f1   : > { %1365 = vrot.lane.b32.xlu0 %v1326_v1, %s7733_s23  ;;  %v1323_v1 = vrot.slane %v1245_v4, 1  ;;  %v1560_v16 = vsel %vm1512_vm1, %v1548_v43, %v1559_v26  ;;  %14889 = vst [vmem:[#allocation80_spill] sm:$0xff] %v8785_v37  ;;  %v1327_v4 = vrot.slane %v1247_v6, 1 }
 0x1f2   : > { %v1549_v3 = vsel %vm1512_vm1, %v1547_v7, %v1548_v43  ;;  %v1312_v26 = vsel %vm1278_vm0, %v1310_v12, %v1311_v35  ;;  %v1316_v7 = vrot.slane %v1237_v51, 1  ;;  %v1469_v43 = vmul.f32 %v8583_v9, %v8673_v5 }
 0x1f3   : > { %v1324_v21 = vsel %vm1278_vm0, %v1311_v35, %v1323_v1  ;;  %v1557_v51 = vrot.slane %v1479_v42, 2 }
 0x1f4   : > { %1585 = vrot.lane.b32.xlu1 %v1543_v34, %s7733_s23  ;;  %v8787_v34 = vpop.permute.xlu0 %1115  ;;  %v8803_v27 = vpop.permute.xlu1 %1339  ;;  %v1544_v35 = vrot.slane %v1469_v43, 2 }
 0x1f5   : > { %1595 = vrot.lane.b32.xlu0 %v1556_v62, %s7733_s23  ;;  %14890 = vst [vmem:[#allocation81_spill] sm:$0xff] %v8787_v34  ;;  %v1242_v62 = vmul.f32 %v8162_v11, %v8453_v50  ;;  %v1474_v11 = vmul.f32 %v8583_v9, %v8450_v31  ;;  %14891 = vst [vmem:[#allocation82_spill] sm:$0xff] %v8803_v27 }
 0x1f7   : > { %v1545_v9 = vrot.slane %v1474_v11, 2 }
 0x1f8   : > { %1589 = vrot.lane.b32.xlu1 %v1549_v3, %s7733_s23  ;;  %v1317_v3 = vrot.slane %v1242_v62, 1  ;;  %v8805_v6 = vpop.permute.xlu0 %1329  ;;  %v1476_v62 = vmul.f32 %v8202_v33, %v8453_v50  ;;  %v8821_v42 = vpop.permute.xlu1 %1359 }
 0x1f9   : > { %1599 = vrot.lane.b32.xlu0 %v1560_v16, %s7733_s23  ;;  %v1481_v16 = vmul.f32 %v8202_v33, %v8770_v40  ;;  %v1546_v37 = vsel %vm1512_vm1, %v1544_v35, %v1545_v9  ;;  %14892 = vst [vmem:[#allocation83_spill] sm:$0xff] %v8821_v42  ;;  %v8837_v35 = vld [vmem:[#allocation2 + $0x90] sm:$0xff] }
 0x1fa   : > { %v1328_v1 = vsel %vm1278_vm0, %v1317_v3, %v1327_v4  ;;  %v1318_v12 = vsel %vm1278_vm0, %v1316_v7, %v1317_v3  ;;  %v1558_v4 = vsel %vm1512_vm1, %v1545_v9, %v1557_v51  ;;  %v1698_v7 = vmul.f32 %v8615_v53, %v8564_v41 }
 0x1fb   : > { %v1551_v3 = vrot.slane %v1476_v62, 2  ;;  %v1702_v62 = vmul.f32 %v8533_v54, %v8671_v46 }
 0x1fc   : > { %1363 = vrot.lane.b32.xlu1 %v1324_v21, %s7733_s23  ;;  %v1471_v21 = vmul.f32 %v8202_v33, %v8687_v0  ;;  %v8823_v43 = vpop.permute.xlu0 %1349 }
 0x1fd   : > { %1353 = vrot.lane.b32.xlu0 %v1312_v26, %s7733_s23  ;;  %v1561_v26 = vrot.slane %v1481_v16, 2  ;;  %14893 = vst [vmem:[#allocation84_spill] sm:$0xff] %v8823_v43  ;;  %v1700_v16 = vmul.f32 %v8222_v44, %v8588_v8 }
 0x1fe   : > { %v1550_v34 = vrot.slane %v1471_v21, 2  ;;  %v14896_v21 = vrot.slane %v8631_v45, 3  ;;  %v14899_v45 = vrot.slane %v8652_v20, 3  ;;  %v1708_v20 = vmul.f32 %v8615_v53, %v8450_v31 }
 0x1ff   : > { %v1562_v33 = vsel %vm1512_vm1, %v1551_v3, %v1561_v26  ;;  %v1770_v9 = vrot.slane %v1700_v16, 3  ;;  %v1707_v26 = vmul.f32 %v8533_v54, %v8425_v17  ;;  %v1703_v16 = vmul.f32 %v8615_v53, %v8673_v5 }
 0x200   : > { %1367 = vrot.lane.b32.xlu1 %v1328_v1, %s7733_s23  ;;  %v1552_v11 = vsel %vm1512_vm1, %v1550_v34, %v1551_v3  ;;  %v1766_v1 = vrot.slane %v1698_v7, 3  ;;  %v8833_v51 = vpop.permute.xlu0 %1563 }
 0x201   : > { %1357 = vrot.lane.b32.xlu0 %v1318_v12, %s7733_s23  ;;  %v8831_v12 = vpop.permute.xlu1 %1573  ;;  %14895 = vst [vmem:[#allocation86_spill] sm:$0xff] %v8833_v51 }
 0x202   : > { %14894 = vst [vmem:[#allocation85_spill] sm:$0xff] %v8831_v12  ;;  %v1767_v34 = vsel %vm1746_vm2, %v14896_v21, %v1766_v1  ;;  %v1704_v1 = vmul.f32 %v8557_v23, %v8685_v19  ;;  %v8945_v12 = vsel %vm1046_vm4, %v8248_v14, %v8246_v13 }
 0x204   : > { %1597 = vrot.lane.b32.xlu1 %v1558_v4, %s7733_s23  ;;  %v8853_v7 = vpop.permute.xlu0 %1583 }
 0x205   : > { %1587 = vrot.lane.b32.xlu0 %v1546_v37, %s7733_s23  ;;  %v1701_v37 = vmul.f32 %v8837_v35, %v8212_v39  ;;  %v8851_v4 = vpop.permute.xlu1 %1593  ;;  %14898 = vst [vmem:[#allocation88_spill] sm:$0xff] %v8853_v7  ;;  %v1779_v7 = vrot.slane %v1708_v20, 3 }
 0x206   : > { %14897 = vst [vmem:[#allocation87_spill] sm:$0xff] %v8851_v4  ;;  %v1705_v4 = vmul.f32 %v8222_v44, %v8687_v0 }
 0x207   : > { %v1772_v3 = vrot.slane %v1701_v37, 3  ;;  %v8867_v37 = vmul.f32 %v8557_v23, %v8428_v2 }
 0x208   : > { %1601 = vrot.lane.b32.xlu1 %v1562_v33, %s7733_s23  ;;  %v1771_v33 = vsel %vm1746_vm2, %v14899_v45, %v1770_v9  ;;  %v1781_v45 = vrot.slane %v1704_v1, 3  ;;  %v1713_v1 = vmul.f32 %v8615_v53, %v8752_v22  ;;  %v1784_v43 = vrot.slane %v1705_v4, 3 }
 0x209   : > { %1591 = vrot.lane.b32.xlu0 %v1552_v11, %s7733_s23  ;;  %v1775_v11 = vrot.slane %v1702_v62, 3  ;;  %v8871_v21 = vpop.permute.xlu1 %1807  ;;  %v1774_v9 = vsel %vm1746_vm2, %v1772_v3, %v8278_v52  ;;  %v8877_v62 = vld [vmem:[#allocation2 + $0xf0] sm:$0xf]  ;;  %v1710_v3 = vmul.f32 %v8222_v44, %v8453_v50 }
 0x20a   : > { %14900 = vst [vmem:[#allocation89_spill] sm:$0xff] %v8871_v21  ;;  %v1782_v21 = vrot.slane %v8867_v37, 3  ;;  %v1712_v37 = vmul.f32 %v8533_v54, %v8699_v24  ;;  %v1714_v54 = vmul.f32 %v8557_v23, %v8715_v38  ;;  %v8927_v23 = vld [vmem:[#allocation2 + $0x30] sm:$0xff] }
 0x20b   : > { %v1785_v20 = vrot.slane %v1710_v3, 3 }
 0x20c   : > { %1811 = vrot.lane.b32.xlu1 %v1767_v34, %s7733_s23  ;;  %v8873_v34 = vpop.permute.xlu0 %1797 }
 0x20d   : > { %1809 = vrot.lane.b32.xlu0 %v8655_v10, %s7733_s23  ;;  %v1776_v10 = vrot.slane %v1707_v26, 3  ;;  %14901 = vst [vmem:[#allocation90_spill] sm:$0xff] %v8873_v34  ;;  %v1786_v4 = vsel %vm1746_vm2, %v1784_v43, %v1785_v20 }
 0x20f   : > { %v1777_v26 = vsel %vm1746_vm2, %v1775_v11, %v1776_v10 }
 0x210   : > { %1815 = vrot.lane.b32.xlu1 %v1771_v33, %s7733_s23  ;;  %v1778_v33 = vrot.slane %v1703_v16, 3  ;;  %v1783_v16 = vsel %vm1746_vm2, %v1781_v45, %v1782_v21  ;;  %v1791_v45 = vrot.slane %v1713_v1, 3 }
 0x211   : > { %1813 = vrot.lane.b32.xlu0 %v8664_v63, %s7733_s23  ;;  %v1711_v63 = vmul.f32 %v8877_v62, %v8212_v39 }
 0x212   : > { %v1792_v1 = vsel %vm1746_vm2, %v1779_v7, %v1791_v45 }
 0x213   : > { %v1787_v11 = vrot.slane %v1711_v63, 3  ;;  %v1715_v63 = vmul.f32 %v8222_v44, %v8770_v40  ;;  %v8921_v44 = vsel %vm1046_vm4, %v8235_v56, %v8233_v55 }
 0x214   : > { %1819 = vrot.lane.b32.xlu1 %v1777_v26, %s7733_s23  ;;  %v1780_v26 = vsel %vm1746_vm2, %v1778_v33, %v1779_v7  ;;  %v1789_v33 = vrot.slane %v1712_v37, 3  ;;  %v1926_v7 = vmul.f32 %v8921_v44, %v8368_v32 }
 0x215   : > { %1817 = vrot.lane.b32.xlu0 %v1774_v9, %s7733_s23  ;;  %v1788_v53 = vsel %vm1746_vm2, %v8278_v52, %v1787_v11  ;;  %v8923_v52 = vld [vmem:[#allocation2] sm:$0xff]  ;;  %v1925_v11 = vmul.f32 %v8927_v23, %v8235_v56 }
 0x216   : > { %v8889_v42 = vpop.permute.xlu1 %1097  ;;  %v1920_v43 = vmul.f32 %v8923_v52, %v8235_v56  ;;  %v1790_v37 = vsel %vm1746_vm2, %v1776_v10, %v1789_v33  ;;  %v1985_v32 = vrot.slane %v1926_v7, 4 }
 0x217   : > { %v8891_v39 = vpop.permute.xlu0 %1099  ;;  %v8953_v33 = vrot.slane %v1925_v11, 4 }
 0x218   : > { %1823 = vrot.lane.b32.xlu1 %v1783_v16, %s7733_s23  ;;  %v1981_v45 = vrot.slane %v1920_v43, 4  ;;  %v1928_v43 = vmul.f32 %v8945_v12, %v8371_v49  ;;  %v1924_v49 = vmul.f32 %v8246_v13, %v8415_v15 }
 0x219   : > { %1821 = vrot.lane.b32.xlu0 %v1780_v26, %s7733_s23  ;;  %v1795_v26 = vrot.slane %v1715_v63, 3  ;;  %v1921_v63 = vmul.f32 %v8921_v44, %v8391_v60 }
 0x21a   : > { %v8901_v9 = vpop.permute.xlu1 %1101 }
 0x21b   : > { %v8903_v34 = vpop.permute.xlu0 %1103 }
 0x21c   : > { %1827 = vrot.lane.b32.xlu1 %v1788_v53, %s7733_s23  ;;  %v1793_v53 = vrot.slane %v1714_v54, 3  ;;  %v1796_v54 = vsel %vm1746_vm2, %v1785_v20, %v1795_v26  ;;  %v8973_v26 = vld [vmem:[#allocation2 + $0x60] sm:$0xf] }
 0x21d   : > { %1825 = vrot.lane.b32.xlu0 %v1786_v4, %s7733_s23  ;;  %v8940_v4 = vsel %vm1046_vm4, %v8233_v55, %v8248_v14  ;;  %v1923_v55 = vmul.f32 %v8945_v12, %v8413_v18  ;;  %v1984_v14 = vrot.slane %v1921_v63, 4 }
 0x21e   : > { %v8914_v3 = vpop.permute.xlu1 %1109  ;;  %v1927_v11 = vmul.f32 %v8940_v4, %v8382_v48  ;;  %v1991_v48 = vrot.slane %v1928_v43, 4  ;;  %v1931_v43 = vmul.f32 %v8921_v44, %v8440_v28  ;;  %v1933_v28 = vmul.f32 %v8945_v12, %v8459_v36 }
 0x21f   : > { %v8916_v16 = vpop.permute.xlu0 %1107  ;;  %v1990_v63 = vrot.slane %v1923_v55, 4  ;;  %v1932_v55 = vmul.f32 %v8940_v4, %v8564_v41  ;;  %v1936_v36 = vmul.f32 %v8921_v44, %v8671_v46 }
 0x220   : > { %1831 = vrot.lane.b32.xlu1 %v1792_v1, %s7733_s23  ;;  %v1794_v1 = vsel %vm1746_vm2, %v1782_v21, %v1793_v53  ;;  %v1983_v21 = vsel %vm1980_vm5, %v1981_v45, %v8953_v33  ;;  %v1986_v53 = vsel %vm1980_vm5, %v1984_v14, %v1985_v32  ;;  %v1929_v45 = vmul.f32 %v8246_v13, %v8385_v30 }
 0x221   : > { %1829 = vrot.lane.b32.xlu0 %v1790_v37, %s7733_s23  ;;  %v1922_v37 = vmul.f32 %v8940_v4, %v8393_v61  ;;  %v1930_v61 = vmul.f32 %v8973_v26, %v8235_v56  ;;  %v1992_v14 = vsel %vm1980_vm5, %v1990_v63, %v1991_v48  ;;  %v1934_v63 = vmul.f32 %v8246_v13, %v8588_v8 }
 0x222   : > { %v8949_v10 = vpop.permute.xlu1 %1113  ;;  %v1994_v30 = vrot.slane %v1929_v45, 4 }
 0x223   : > { %v8951_v60 = vpop.permute.xlu0 %1111  ;;  %v1987_v7 = vrot.slane %v1922_v37, 4 }
 0x224   : > { %1835 = vrot.lane.b32.xlu1 %v1796_v54, %s7733_s23  ;;  %v1988_v54 = vrot.slane %v1927_v11, 4 }
 0x225   : > { %1833 = vrot.lane.b32.xlu0 %v1794_v1, %s7733_s23 }
 0x226   : > { %v8967_v51 = vpop.permute.xlu1 %1331  ;;  %v1989_v37 = vsel %vm1980_vm5, %v1987_v7, %v1988_v54 }
 0x227   : > { %v8969_v20 = vpop.permute.xlu0 %1341 }
 0x228   : > { %14902 = vst [vmem:[#allocation91_spill] sm:$0xff] %v8969_v20  ;;  %2033 = vrot.lane.b32.xlu1 %v1986_v53, %s7733_s23  ;;  %v1996_v20 = vrot.slane %v1930_v61, 4  ;;  %v1993_v53 = vrot.slane %v1924_v49, 4  ;;  %v2000_v49 = vrot.slane %v1932_v55, 4 }
 0x229   : > { %2031 = vrot.lane.b32.xlu0 %v1983_v21, %s7733_s23 }
 0x22a   : > { %v8984_v1 = vpop.permute.xlu1 %1335  ;;  %v1997_v61 = vsel %vm1980_vm5, %v8953_v33, %v1996_v20  ;;  %v1995_v7 = vsel %vm1980_vm5, %v1993_v53, %v1994_v30  ;;  %v1935_v20 = vmul.f32 %v8837_v35, %v8235_v56  ;;  %v2002_v53 = vrot.slane %v1933_v28, 4 }
 0x22b   : > { %14903 = vst [vmem:[#allocation92_spill] sm:$0xff] %v8984_v1  ;;  %v8986_v27 = vpop.permute.xlu0 %1345  ;;  %v2001_v1 = vsel %vm1980_vm5, %v1988_v54, %v2000_v49  ;;  %v1938_v49 = vmul.f32 %v8945_v12, %v8685_v19  ;;  %v1943_v28 = vmul.f32 %v8945_v12, %v8428_v2 }
 0x22c   : > { %14904 = vst [vmem:[#allocation93_spill] sm:$0xff] %v8986_v27  ;;  %2037 = vrot.lane.b32.xlu1 %v1992_v14, %s7733_s23  ;;  %v1998_v27 = vrot.slane %v1931_v43, 4  ;;  %v1941_v43 = vmul.f32 %v8921_v44, %v8425_v17  ;;  %v1937_v17 = vmul.f32 %v8940_v4, %v8673_v5 }
 0x22d   : > { %2035 = vrot.lane.b32.xlu0 %v1989_v37, %s7733_s23  ;;  %v2004_v37 = vrot.slane %v1934_v63, 4 }
 0x22e   : > { %v8996_v11 = vpop.permute.xlu1 %1565  ;;  %v1999_v55 = vsel %vm1980_vm5, %v1985_v32, %v1998_v27  ;;  %v2003_v27 = vsel %vm1980_vm5, %v1991_v48, %v2002_v53  ;;  %v2009_v32 = vrot.slane %v1936_v36, 4  ;;  %v1942_v48 = vmul.f32 %v8940_v4, %v8450_v31 }
 0x22f   : > { %v8998_v21 = vpop.permute.xlu0 %1575  ;;  %v2005_v54 = vsel %vm1980_vm5, %v1994_v30, %v2004_v37  ;;  %v2015_v53 = vrot.slane %v1938_v49, 4  ;;  %v1945_v36 = vmul.f32 %v8877_v62, %v8235_v56  ;;  %v2012_v2 = vrot.slane %v1937_v17, 4 }
 0x230   : > { %14905 = vst [vmem:[#allocation94_spill] sm:$0xff] %v8998_v21  ;;  %2041 = vrot.lane.b32.xlu1 %v1997_v61, %s7733_s23  ;;  %v9293_v21 = vld [vmem:[#allocation2 + $0x78] sm:$0xf] }
 0x231   : > { %2039 = vrot.lane.b32.xlu0 %v1995_v7, %s7733_s23  ;;  %v2006_v7 = vrot.slane %v1935_v20, 4  ;;  %v2021_v56 = vrot.slane %v1945_v36, 4 }
 0x232   : > { %v9009_v45 = vpop.permute.xlu1 %1569 }
 0x233   : > { %14906 = vst [vmem:[#allocation95_spill] sm:$0xff] %v9009_v45  ;;  %v9011_v14 = vpop.permute.xlu0 %1579 }
 0x234   : > { %14907 = vst [vmem:[#allocation96_spill] sm:$0xff] %v9011_v14  ;;  %2045 = vrot.lane.b32.xlu1 %v2001_v1, %s7733_s23  ;;  %v2010_v1 = vrot.slane %v1941_v43, 4  ;;  %v1939_v43 = vmul.f32 %v8246_v13, %v8687_v0 }
 0x235   : > { %2043 = vrot.lane.b32.xlu0 %v1999_v55, %s7733_s23  ;;  %v2008_v55 = vsel %vm1980_vm5, %v2006_v7, %v8953_v33  ;;  %v1944_v7 = vmul.f32 %v8246_v13, %v8453_v50 }
 0x236   : > { %v9023_v61 = vpop.permute.xlu1 %1799  ;;  %v2011_v37 = vsel %vm1980_vm5, %v2009_v32, %v2010_v1  ;;  %v2013_v32 = vrot.slane %v1942_v48, 4 }
 0x237   : > { %14908 = vst [vmem:[#allocation97_spill] sm:$0xff] %v9023_v61  ;;  %v9025_v63 = vpop.permute.xlu0 %1333  ;;  %v2019_v50 = vrot.slane %v1944_v7, 4 }
 0x238   : > { %14909 = vst [vmem:[#allocation98_spill] sm:$0xff] %v9025_v63  ;;  %2049 = vrot.lane.b32.xlu1 %v2005_v54, %s7733_s23  ;;  %v2016_v54 = vrot.slane %v1943_v28, 4  ;;  %v2014_v17 = vsel %vm1980_vm5, %v2012_v2, %v2013_v32  ;;  %v1946_v28 = vmul.f32 %v8921_v44, %v8699_v24  ;;  %v1948_v44 = vmul.f32 %v8945_v12, %v8715_v38 }
 0x239   : > { %2047 = vrot.lane.b32.xlu0 %v2003_v27, %s7733_s23 }
 0x23a   : > { %v9037_v20 = vpop.permute.xlu1 %1803  ;;  %v2017_v49 = vsel %vm1980_vm5, %v2015_v53, %v2016_v54  ;;  %v2022_v53 = vsel %vm1980_vm5, %v8953_v33, %v2021_v56 }
 0x23b   : > { %14910 = vst [vmem:[#allocation99_spill] sm:$0xff] %v9037_v20  ;;  %v9039_v30 = vpop.permute.xlu0 %1337 }
 0x23c   : > { %14911 = vst [vmem:[#allocation100_spill] sm:$0xff] %v9039_v30  ;;  %2053 = vrot.lane.b32.xlu1 %v2011_v37, %s7733_s23  ;;  %v1947_v37 = vmul.f32 %v8940_v4, %v8752_v22  ;;  %v1949_v4 = vmul.f32 %v8246_v13, %v8770_v40 }
 0x23d   : > { %2051 = vrot.lane.b32.xlu0 %v2008_v55, %s7733_s23  ;;  %v2018_v55 = vrot.slane %v1939_v43, 4  ;;  %v2023_v43 = vrot.slane %v1946_v28, 4 }
 0x23e   : > { %v9052_v27 = vpop.permute.xlu1 %1343  ;;  %v2025_v36 = vrot.slane %v1947_v37, 4  ;;  %v2029_v56 = vrot.slane %v1949_v4, 4  ;;  %v2027_v37 = vrot.slane %v1948_v44, 4 }
 0x23f   : > { %14912 = vst [vmem:[#allocation101_spill] sm:$0xff] %v9052_v27  ;;  %v9054_v20 = vpop.permute.xlu0 %1567  ;;  %v2020_v2 = vsel %vm1980_vm5, %v2018_v55, %v2019_v50  ;;  %v2024_v13 = vsel %vm1980_vm5, %v2010_v1, %v2023_v43  ;;  %v2147_v1 = vsel %vm2146_vm6, %v8288_v58, %v8286_v57  ;;  %v9262_v27 = vld [vmem:[#allocation2 + $0x20] sm:$0xff] }
 0x240   : > { %14913 = vst [vmem:[#allocation102_spill] sm:$0xff] %v9054_v20  ;;  %2057 = vrot.lane.b32.xlu1 %v2017_v49, %s7733_s23  ;;  %v2026_v33 = vsel %vm1980_vm5, %v2013_v32, %v2025_v36  ;;  %v2030_v12 = vsel %vm1980_vm5, %v2019_v50, %v2029_v56  ;;  %v2028_v28 = vsel %vm1980_vm5, %v2016_v54, %v2027_v37  ;;  %v9102_v36 = vld [vmem:[#allocation2 + $0x8] sm:$0xff] }
 0x241   : > { %2055 = vrot.lane.b32.xlu0 %v2014_v17, %s7733_s23  ;;  %v2156_v4 = vmul.f32 %v9102_v36, %v2147_v1  ;;  %v2155_v50 = vmul.f32 %v8923_v52, %v8288_v58  ;;  %v14922_v54 = vld [vmem:[#allocation27_spill] sm:$0xff] }
 0x242   : > { %v9066_v48 = vpop.permute.xlu1 %1347  ;;  %v2148_v43 = vsel %vm2146_vm6, %v8286_v57, %v14922_v54  ;;  %v2160_v57 = vmul.f32 %v8927_v23, %v8288_v58 }
 0x243   : > { %14914 = vst [vmem:[#allocation103_spill] sm:$0xff] %v9066_v48  ;;  %v9068_v14 = vpop.permute.xlu0 %1571  ;;  %v9237_v48 = vld [vmem:[#allocation2 + $0x18] sm:$0xff] }
 0x244   : > { %14915 = vst [vmem:[#allocation104_spill] sm:$0xff] %v9068_v14  ;;  %2061 = vrot.lane.b32.xlu1 %v2022_v53, %s7733_s23 }
 0x245   : > { %2059 = vrot.lane.b32.xlu0 %v2020_v2, %s7733_s23  ;;  %v9111_v2 = vsel %vm2146_vm6, %v14922_v54, %v8292_v59  ;;  %v9142_v54 = vld [vmem:[#allocation2 + $0x40] sm:$0xff] }
 0x246   : > { %v9079_v49 = vpop.permute.xlu1 %1577  ;;  %v2158_v56 = vmul.f32 %v9111_v2, %v8413_v18 }
 0x247   : > { %14916 = vst [vmem:[#allocation105_spill] sm:$0xff] %v9079_v49  ;;  %v9081_v7 = vpop.permute.xlu0 %1801 }
 0x248   : > { %14917 = vst [vmem:[#allocation106_spill] sm:$0xff] %v9081_v7  ;;  %2065 = vrot.lane.b32.xlu1 %v2026_v33, %s7733_s23  ;;  %v9233_v7 = vld [vmem:[#allocation2 + $0xd8] sm:$0xff] }
 0x249   : > { %2063 = vrot.lane.b32.xlu0 %v2024_v13, %s7733_s23  ;;  %v9123_v13 = vld [vmem:[#allocation2 + $0x10] sm:$0xff]  ;;  %v2173_v49 = vmul.f32 %v9233_v7, %v9111_v2 }
 0x24a   : > { %v9087_v17 = vpop.permute.xlu1 %1581  ;;  %v2157_v37 = vmul.f32 %v9123_v13, %v2148_v43 }
 0x24b   : > { %14918 = vst [vmem:[#allocation107_spill] sm:$0xff] %v9087_v17  ;;  %v9089_v55 = vpop.permute.xlu0 %1805 }
 0x24c   : > { %14919 = vst [vmem:[#allocation108_spill] sm:$0xff] %v9089_v55  ;;  %2069 = vrot.lane.b32.xlu1 %v2030_v12, %s7733_s23  ;;  %v9224_v55 = vld [vmem:[#allocation2 + $0xe0] sm:$0xff] }
 0x24d   : > { %2067 = vrot.lane.b32.xlu0 %v2028_v28, %s7733_s23  ;;  %v2174_v17 = vmul.f32 %v9224_v55, %v8292_v59 }
 0x24e   : > { %v9098_v32 = vpop.permute.xlu1 %1117 }
 0x24f   : > { %14920 = vst [vmem:[#allocation109_spill] sm:$0xff] %v9098_v32  ;;  %v9100_v53 = vpop.permute.xlu0 %1119 }
 0x250   : > { %14921 = vst [vmem:[#allocation110_spill] sm:$0xff] %v9100_v53  ;;  %2197 = vrot.lane.b32.xlu1 %v2156_v4, %s7736_s27  ;;  %v2159_v4 = vmul.f32 %v8292_v59, %v8415_v15 }
 0x251   : > { %2195 = vrot.lane.b32.xlu0 %v2155_v50, %s7736_s27 }
 0x252   : > { %v9117_v44 = vpop.permute.xlu1 %1121 }
 0x253   : > { %14923 = vst [vmem:[#allocation27_spill] sm:$0xff] %v9117_v44  ;;  %v9119_v33 = vpop.permute.xlu0 %1123 }
 0x254   : > { %14924 = vst [vmem:[#allocation111_spill] sm:$0xff] %v9119_v33  ;;  %2201 = vrot.lane.b32.xlu1 %v2158_v56, %s7736_s27  ;;  %v2162_v56 = vmul.f32 %v9142_v54, %v2148_v43 }
 0x255   : > { %2199 = vrot.lane.b32.xlu0 %v2157_v37, %s7736_s27  ;;  %v9145_v37 = vld [vmem:[#allocation2 + $0x38] sm:$0xff] }
 0x256   : > { %v9128_v12 = vpop.permute.xlu1 %1129 }
 0x257   : > { %14925 = vst [vmem:[#allocation112_spill] sm:$0xff] %v9128_v12  ;;  %v9130_v28 = vpop.permute.xlu0 %1127  ;;  %v2161_v12 = vmul.f32 %v9145_v37, %v2147_v1 }
 0x258   : > { %14926 = vst [vmem:[#allocation113_spill] sm:$0xff] %v9130_v28  ;;  %2205 = vrot.lane.b32.xlu1 %v2160_v57, %s7736_s27 }
 0x259   : > { %2203 = vrot.lane.b32.xlu0 %v2159_v4, %s7736_s27  ;;  %v9154_v4 = vld [vmem:[#allocation2 + $0x50] sm:$0xff] }
 0x25a   : > { %v9138_v18 = vpop.permute.xlu1 %1133 }
 0x25b   : > { %14927 = vst [vmem:[#allocation114_spill] sm:$0xff] %v9138_v18  ;;  %v9140_v50 = vpop.permute.xlu0 %1131  ;;  %v2164_v18 = vmul.f32 %v9154_v4, %v8292_v59 }
 0x25c   : > { %14928 = vst [vmem:[#allocation115_spill] sm:$0xff] %v9140_v50  ;;  %2209 = vrot.lane.b32.xlu1 %v2162_v56, %s7736_s27  ;;  %v9158_v50 = vld [vmem:[#allocation2 + $0x48] sm:$0xff] }
 0x25d   : > { %2207 = vrot.lane.b32.xlu0 %v2161_v12, %s7736_s27  ;;  %v2163_v33 = vmul.f32 %v9158_v50, %v9111_v2 }
 0x25e   : > { %v9150_v15 = vpop.permute.xlu1 %1351 }
 0x25f   : > { %14929 = vst [vmem:[#allocation116_spill] sm:$0xff] %v9150_v15  ;;  %v9152_v28 = vpop.permute.xlu0 %1361  ;;  %v2165_v15 = vmul.f32 %v8837_v35, %v8288_v58 }
 0x260   : > { %14930 = vst [vmem:[#allocation117_spill] sm:$0xff] %v9152_v28  ;;  %2213 = vrot.lane.b32.xlu1 %v2164_v18, %s7736_s27  ;;  %v2166_v28 = vmul.f32 %v2147_v1, %v8671_v46  ;;  %v2167_v18 = vmul.f32 %v2148_v43, %v8673_v5 }
 0x261   : > { %2211 = vrot.lane.b32.xlu0 %v2163_v33, %s7736_s27  ;;  %v2168_v33 = vmul.f32 %v9111_v2, %v8685_v19 }
 0x262   : > { %v9164_v56 = vpop.permute.xlu1 %1355 }
 0x263   : > { %14931 = vst [vmem:[#allocation118_spill] sm:$0xff] %v9164_v56  ;;  %v9166_v12 = vpop.permute.xlu0 %1365 }
 0x264   : > { %14932 = vst [vmem:[#allocation119_spill] sm:$0xff] %v9166_v12  ;;  %2217 = vrot.lane.b32.xlu1 %v2166_v28, %s7736_s27  ;;  %v2169_v28 = vmul.f32 %v8292_v59, %v8687_v0 }
 0x265   : > { %2215 = vrot.lane.b32.xlu0 %v2165_v15, %s7736_s27 }
 0x266   : > { %v9173_v44 = vpop.permute.xlu1 %1585 }
 0x267   : > { %14933 = vst [vmem:[#allocation120_spill] sm:$0xff] %v9173_v44  ;;  %v9175_v53 = vpop.permute.xlu0 %1595  ;;  %v14940_v44 = vld [vmem:[#allocation24_spill] sm:$0xff] }
 0x268   : > { %14934 = vst [vmem:[#allocation121_spill] sm:$0xff] %v9175_v53  ;;  %2221 = vrot.lane.b32.xlu1 %v2168_v33, %s7736_s27  ;;  %v2172_v53 = vmul.f32 %v2148_v43, %v8450_v31  ;;  %v14939_v33 = vld [vmem:[#allocation23_spill] sm:$0xff]  ;;  %v2324_v31 = vmul.f32 %v8927_v23, %v14940_v44  ;;  %v2329_v20 = vmul.f32 %v8973_v26, %v14940_v44 }
 0x269   : > { %2219 = vrot.lane.b32.xlu0 %v2167_v18, %s7736_s27  ;;  %v9198_v18 = vsel %vm2146_vm6, %v14940_v44, %v14939_v33 }
 0x26a   : > { %v9182_v56 = vpop.permute.xlu1 %1589  ;;  %v9213_v43 = vmul.f32 %v9145_v37, %v9198_v18  ;;  %v9242_v59 = vrot.slane %v2324_v31, 1 }
 0x26b   : > { %14935 = vst [vmem:[#allocation122_spill] sm:$0xff] %v9182_v56  ;;  %v9184_v58 = vpop.permute.xlu0 %1599  ;;  %v9200_v56 = vld [vmem:[#allocation2 + $0xc8] sm:$0xff] }
 0x26c   : > { %14936 = vst [vmem:[#allocation123_spill] sm:$0xff] %v9184_v58  ;;  %2225 = vrot.lane.b32.xlu1 %v2160_v57, %s7736_s27  ;;  %v2171_v58 = vmul.f32 %v9200_v56, %v2147_v1  ;;  %v2320_v57 = vmul.f32 %v9102_v36, %v9198_v18 }
 0x26d   : > { %2223 = vrot.lane.b32.xlu0 %v2169_v28, %s7736_s27  ;;  %v2319_v28 = vmul.f32 %v8923_v52, %v14940_v44 }
 0x26e   : > { %v9190_v15 = vpop.permute.xlu1 %1363  ;;  %v2382_v14 = vrot.slane %v2320_v57, 1 }
 0x26f   : > { %14937 = vst [vmem:[#allocation124_spill] sm:$0xff] %v9190_v15  ;;  %v9192_v12 = vpop.permute.xlu0 %1353  ;;  %v14942_v15 = vld [vmem:[#allocation26_spill] sm:$0xff] }
 0x270   : > { %14938 = vst [vmem:[#allocation125_spill] sm:$0xff] %v9192_v12  ;;  %2229 = vrot.lane.b32.xlu1 %v2172_v53, %s7736_s27  ;;  %v14941_v12 = vld [vmem:[#allocation25_spill] sm:$0xff] }
 0x271   : > { %2227 = vrot.lane.b32.xlu0 %v2171_v58, %s7736_s27  ;;  %v9218_v1 = vsel %vm2146_vm6, %v14942_v15, %v14941_v12  ;;  %v9231_v58 = vsel %vm2146_vm6, %v14939_v33, %v14942_v15  ;;  %v2383_v33 = vrot.slane %v9213_v43, 1 }
 0x272   : > { %v9220_v32 = vpop.permute.xlu1 %1367  ;;  %v2321_v15 = vmul.f32 %v9123_v13, %v9231_v58  ;;  %v2327_v2 = vmul.f32 %v9158_v50, %v9218_v1 }
 0x273   : > { %14943 = vst [vmem:[#allocation23_spill] sm:$0xff] %v9220_v32  ;;  %v9222_v53 = vpop.permute.xlu0 %1357  ;;  %v2379_v32 = vrot.slane %v2319_v28, 1  ;;  %v2384_v28 = vsel %vm1278_vm0, %v2382_v14, %v2383_v33 }
 0x274   : > { %14944 = vst [vmem:[#allocation24_spill] sm:$0xff] %v9222_v53  ;;  %v2322_v53 = vmul.f32 %v9237_v48, %v9218_v1  ;;  %2233 = vrot.lane.b32.xlu1 %v2174_v17, %s7736_s27  ;;  %v2326_v17 = vmul.f32 %v9142_v54, %v9231_v58  ;;  %v2385_v43 = vrot.slane %v2321_v15, 1  ;;  %v2331_v15 = vmul.f32 %v9231_v58, %v8564_v41 }
 0x275   : > { %2231 = vrot.lane.b32.xlu0 %v2173_v49, %s7736_s27  ;;  %v2381_v49 = vsel %vm1278_vm0, %v2379_v32, %v9242_v59  ;;  %v2394_v32 = vrot.slane %v2329_v20, 1 }
 0x276   : > { %v9250_v57 = vpop.permute.xlu1 %1597  ;;  %v2388_v31 = vrot.slane %v2322_v53, 1  ;;  %v2386_v53 = vrot.slane %v2326_v17, 1 }
 0x277   : > { %14945 = vst [vmem:[#allocation25_spill] sm:$0xff] %v9250_v57  ;;  %v9252_v45 = vpop.permute.xlu0 %1587  ;;  %v2389_v57 = vrot.slane %v2327_v2, 1  ;;  %v9278_v2 = vld [vmem:[#allocation2 + $0x68] sm:$0xf]  ;;  %v2395_v41 = vsel %vm1278_vm0, %v9242_v59, %v2394_v32 }
 0x278   : > { %14946 = vst [vmem:[#allocation26_spill] sm:$0xff] %v9252_v45  ;;  %2431 = vrot.lane.b32.xlu1 %v2384_v28, %s7736_s27  ;;  %v2323_v45 = vmul.f32 %v9262_v27, %v14941_v12  ;;  %v2328_v28 = vmul.f32 %v9154_v4, %v14941_v12  ;;  %v2387_v61 = vsel %vm1278_vm0, %v2385_v43, %v2386_v53 }
 0x279   : > { %2429 = vrot.lane.b32.xlu0 %v2381_v49, %s7736_s27  ;;  %v2390_v63 = vsel %vm1278_vm0, %v2388_v31, %v2389_v57  ;;  %v2398_v31 = vrot.slane %v2331_v15, 1 }
 0x27a   : > { %v9267_v30 = vpop.permute.xlu1 %1601  ;;  %v2391_v49 = vrot.slane %v2323_v45, 1  ;;  %v2392_v20 = vrot.slane %v2328_v28, 1 }
 0x27b   : > { %14947 = vst [vmem:[#allocation126_spill] sm:$0xff] %v9267_v30  ;;  %v9269_v14 = vpop.permute.xlu0 %1591  ;;  %v2399_v32 = vsel %vm1278_vm0, %v2386_v53, %v2398_v31 }
 0x27c   : > { %14948 = vst [vmem:[#allocation127_spill] sm:$0xff] %v9269_v14  ;;  %2435 = vrot.lane.b32.xlu1 %v2390_v63, %s7736_s27  ;;  %v2330_v14 = vmul.f32 %v9278_v2, %v9198_v18  ;;  %v2333_v63 = vmul.f32 %v14941_v12, %v8588_v8  ;;  %v2393_v45 = vsel %vm1278_vm0, %v2391_v49, %v2392_v20 }
 0x27d   : > { %2433 = vrot.lane.b32.xlu0 %v2387_v61, %s7736_s27  ;;  %v2332_v61 = vmul.f32 %v9293_v21, %v9218_v1  ;;  %v2335_v8 = vmul.f32 %v9198_v18, %v8671_v46 }
 0x27e   : > { %v9283_v17 = vpop.permute.xlu1 %1811  ;;  %v2396_v43 = vrot.slane %v2330_v14, 1  ;;  %v2402_v15 = vrot.slane %v2333_v63, 1  ;;  %v2337_v63 = vmul.f32 %v9218_v1, %v8685_v19 }
 0x27f   : > { %14949 = vst [vmem:[#allocation128_spill] sm:$0xff] %v9283_v17  ;;  %v9285_v30 = vpop.permute.xlu0 %1809  ;;  %v2400_v49 = vrot.slane %v2332_v61, 1  ;;  %v2407_v46 = vrot.slane %v2335_v8, 1  ;;  %v2336_v61 = vmul.f32 %v9231_v58, %v8673_v5  ;;  %v2344_v5 = vmul.f32 %v8877_v62, %v14940_v44 }
 0x280   : > { %14950 = vst [vmem:[#allocation129_spill] sm:$0xff] %v9285_v30  ;;  %2439 = vrot.lane.b32.xlu1 %v2395_v41, %s7736_s27  ;;  %v2397_v14 = vsel %vm1278_vm0, %v2383_v33, %v2396_v43  ;;  %v2334_v41 = vmul.f32 %v8837_v35, %v14940_v44  ;;  %v2403_v31 = vsel %vm1278_vm0, %v2392_v20, %v2402_v15  ;;  %v9330_v15 = vld [vmem:[#allocation2 + $0xd0] sm:$0xff]  ;;  %v2413_v8 = vrot.slane %v2337_v63, 1  ;;  %v15105_v30 = vld [vmem:[#allocation90_spill] sm:$0xff] }
 0x281   : > { %2437 = vrot.lane.b32.xlu0 %v2393_v45, %s7736_s27  ;;  %v2340_v45 = vmul.f32 %v9200_v56, %v9198_v18  ;;  %v2401_v33 = vsel %vm1278_vm0, %v2389_v57, %v2400_v49  ;;  %v2341_v19 = vmul.f32 %v9330_v15, %v9231_v58  ;;  %v2343_v44 = vmul.f32 %v9224_v55, %v14941_v12 }
 0x282   : > { %v9298_v28 = vpop.permute.xlu1 %1815  ;;  %v2404_v43 = vrot.slane %v2334_v41, 1  ;;  %v2410_v41 = vrot.slane %v2336_v61, 1 }
 0x283   : > { %14951 = vst [vmem:[#allocation130_spill] sm:$0xff] %v9298_v28  ;;  %v9300_v17 = vpop.permute.xlu0 %1813 }
 0x284   : > { %14952 = vst [vmem:[#allocation131_spill] sm:$0xff] %v9300_v17  ;;  %2443 = vrot.lane.b32.xlu1 %v2399_v32, %s7736_s27  ;;  %v2408_v32 = vrot.slane %v2340_v45, 1  ;;  %v2406_v49 = vsel %vm1278_vm0, %v2404_v43, %v9242_v59  ;;  %v2338_v45 = vmul.f32 %v14941_v12, %v8687_v0  ;;  %v2346_v43 = vmul.f32 %v9231_v58, %v8752_v22  ;;  %v15103_v17 = vld [vmem:[#allocation85_spill] sm:$0xff] }
 0x285   : > { %2441 = vrot.lane.b32.xlu0 %v2397_v14, %s7736_s27  ;;  %v2342_v14 = vmul.f32 %v9233_v7, %v9218_v1  ;;  %v2348_v22 = vmul.f32 %v14941_v12, %v8770_v40 }
 0x286   : > { %v9312_v28 = vpop.permute.xlu1 %1819  ;;  %v2409_v57 = vsel %vm1278_vm0, %v2407_v46, %v2408_v32  ;;  %v2411_v46 = vrot.slane %v2341_v19, 1  ;;  %v2416_v61 = vrot.slane %v2338_v45, 1 }
 0x287   : > { %14953 = vst [vmem:[#allocation132_spill] sm:$0xff] %v9312_v28  ;;  %v9314_v53 = vpop.permute.xlu0 %1817  ;;  %v2427_v12 = vrot.slane %v2348_v22, 1 }
 0x288   : > { %14954 = vst [vmem:[#allocation133_spill] sm:$0xff] %v9314_v53  ;;  %2447 = vrot.lane.b32.xlu1 %v2403_v31, %s7736_s27  ;;  %v2414_v31 = vrot.slane %v2342_v14, 1  ;;  %v2412_v0 = vsel %vm1278_vm0, %v2410_v41, %v2411_v46  ;;  %v2345_v14 = vmul.f32 %v9198_v18, %v8699_v24  ;;  %v2347_v24 = vmul.f32 %v9218_v1, %v8715_v38 }
 0x289   : > { %2445 = vrot.lane.b32.xlu0 %v2401_v33, %s7736_s27 }
 0x28a   : > { %v9326_v53 = vpop.permute.xlu1 %1823  ;;  %v2415_v63 = vsel %vm1278_vm0, %v2413_v8, %v2414_v31  ;;  %v2421_v41 = vrot.slane %v2345_v14, 1  ;;  %v2425_v1 = vrot.slane %v2347_v24, 1  ;;  %v14966_v14 = vld [vmem:[#allocation31_spill] sm:$0xff] }
 0x28b   : > { %14955 = vst [vmem:[#allocation134_spill] sm:$0xff] %v9326_v53  ;;  %v9328_v20 = vpop.permute.xlu0 %1821 }
 0x28c   : > { %14956 = vst [vmem:[#allocation135_spill] sm:$0xff] %v9328_v20  ;;  %2451 = vrot.lane.b32.xlu1 %v2409_v57, %s7736_s27  ;;  %v2419_v57 = vrot.slane %v2344_v5, 1  ;;  %v2423_v5 = vrot.slane %v2346_v43, 1  ;;  %v2422_v38 = vsel %vm1278_vm0, %v2408_v32, %v2421_v41 }
 0x28d   : > { %2449 = vrot.lane.b32.xlu0 %v2406_v49, %s7736_s27 }
 0x28e   : > { %v9343_v33 = vpop.permute.xlu1 %1827  ;;  %v2420_v8 = vsel %vm1278_vm0, %v9242_v59, %v2419_v57  ;;  %v14964_v59 = vld [vmem:[#allocation29_spill] sm:$0xff]  ;;  %v2424_v40 = vsel %vm1278_vm0, %v2411_v46, %v2423_v5 }
 0x28f   : > { %14957 = vst [vmem:[#allocation136_spill] sm:$0xff] %v9343_v33  ;;  %v9345_v53 = vpop.permute.xlu0 %1825  ;;  %v2417_v33 = vrot.slane %v2343_v44, 1  ;;  %v14963_v44 = vld [vmem:[#allocation28_spill] sm:$0xff]  ;;  %v2552_v43 = vmul.f32 %v8923_v52, %v14964_v59 }
 0x290   : > { %14958 = vst [vmem:[#allocation137_spill] sm:$0xff] %v9345_v53  ;;  %2455 = vrot.lane.b32.xlu1 %v2415_v63, %s7736_s27  ;;  %v9377_v63 = vsel %vm2146_vm6, %v14964_v59, %v14963_v44  ;;  %v9403_v22 = vsel %vm2146_vm6, %v14963_v44, %v14966_v14 }
 0x291   : > { %2453 = vrot.lane.b32.xlu0 %v2412_v0, %s7736_s27  ;;  %v2418_v58 = vsel %vm1278_vm0, %v2416_v61, %v2417_v33  ;;  %v2553_v57 = vmul.f32 %v9102_v36, %v9377_v63  ;;  %v2557_v0 = vmul.f32 %v8927_v23, %v14964_v59  ;;  %v2558_v46 = vmul.f32 %v9145_v37, %v9377_v63  ;;  %v14965_v61 = vld [vmem:[#allocation30_spill] sm:$0xff] }
 0x292   : > { %v9357_v19 = vpop.permute.xlu1 %1831 }
 0x293   : > { %14959 = vst [vmem:[#allocation138_spill] sm:$0xff] %v9357_v19  ;;  %v9359_v49 = vpop.permute.xlu0 %1829  ;;  %v2615_v41 = vrot.slane %v2553_v57, 2  ;;  %v2616_v44 = vrot.slane %v2558_v46, 2  ;;  %v9454_v19 = vld [vmem:[#allocation2 + $0x80] sm:$0xf] }
 0x294   : > { %14960 = vst [vmem:[#allocation139_spill] sm:$0xff] %v9359_v49  ;;  %2459 = vrot.lane.b32.xlu1 %v2420_v8, %s7736_s27  ;;  %v9394_v8 = vsel %vm2146_vm6, %v14966_v14, %v14965_v61  ;;  %v2559_v14 = vmul.f32 %v9142_v54, %v9403_v22 }
 0x295   : > { %2457 = vrot.lane.b32.xlu0 %v2418_v58, %s7736_s27  ;;  %v2428_v58 = vsel %vm1278_vm0, %v2417_v33, %v2427_v12  ;;  %v2555_v24 = vmul.f32 %v9237_v48, %v9394_v8  ;;  %v2560_v33 = vmul.f32 %v9158_v50, %v9394_v8 }
 0x296   : > { %v9370_v18 = vpop.permute.xlu1 %1835 }
 0x297   : > { %14961 = vst [vmem:[#allocation140_spill] sm:$0xff] %v9370_v18  ;;  %v9372_v45 = vpop.permute.xlu0 %1833  ;;  %v9410_v18 = vrot.slane %v2557_v0, 2 }
 0x298   : > { %14962 = vst [vmem:[#allocation141_spill] sm:$0xff] %v9372_v45  ;;  %2463 = vrot.lane.b32.xlu1 %v2424_v40, %s7736_s27  ;;  %v2426_v40 = vsel %vm1278_vm0, %v2414_v31, %v2425_v1  ;;  %v2617_v31 = vsel %vm1512_vm1, %v2615_v41, %v2616_v44  ;;  %v2621_v1 = vrot.slane %v2555_v24, 2  ;;  %v2619_v41 = vrot.slane %v2559_v14, 2  ;;  %v9439_v45 = vld [vmem:[#allocation2 + $0x70] sm:$0xf] }
 0x299   : > { %2461 = vrot.lane.b32.xlu0 %v2422_v38, %s7736_s27  ;;  %v2612_v38 = vrot.slane %v2552_v43, 2  ;;  %v2562_v43 = vmul.f32 %v8973_v26, %v14964_v59  ;;  %v2561_v24 = vmul.f32 %v9154_v4, %v14965_v61 }
 0x29a   : > { %v9396_v5 = vpop.permute.xlu1 %2033 }
 0x29b   : > { %14967 = vst [vmem:[#allocation28_spill] sm:$0xff] %v9396_v5  ;;  %v9398_v32 = vpop.permute.xlu0 %2031  ;;  %v2614_v0 = vsel %vm1512_vm1, %v2612_v38, %v9410_v18  ;;  %v2627_v5 = vrot.slane %v2562_v43, 2 }
 0x29c   : > { %14968 = vst [vmem:[#allocation29_spill] sm:$0xff] %v9398_v32  ;;  %2467 = vrot.lane.b32.xlu1 %v2428_v58, %s7736_s27  ;;  %v2554_v32 = vmul.f32 %v9123_v13, %v9403_v22  ;;  %v2556_v58 = vmul.f32 %v9262_v27, %v14965_v61 }
 0x29d   : > { %2465 = vrot.lane.b32.xlu0 %v2426_v40, %s7736_s27  ;;  %v2622_v40 = vrot.slane %v2560_v33, 2  ;;  %v2628_v43 = vsel %vm1512_vm1, %v9410_v18, %v2627_v5 }
 0x29e   : > { %v9417_v12 = vpop.permute.xlu1 %2037  ;;  %v2618_v46 = vrot.slane %v2554_v32, 2  ;;  %v2564_v32 = vmul.f32 %v9439_v45, %v9403_v22  ;;  %v2624_v33 = vrot.slane %v2556_v58, 2 }
 0x29f   : > { %14969 = vst [vmem:[#allocation30_spill] sm:$0xff] %v9417_v12  ;;  %v9419_v57 = vpop.permute.xlu0 %2035 }
 0x2a0   : > { %14970 = vst [vmem:[#allocation31_spill] sm:$0xff] %v9419_v57  ;;  %2664 = vrot.lane.b32.xlu1 %v2617_v31, %s7736_s27  ;;  %v2623_v31 = vsel %vm1512_vm1, %v2621_v1, %v2622_v40  ;;  %v2620_v38 = vsel %vm1512_vm1, %v2618_v46, %v2619_v41  ;;  %v2625_v1 = vrot.slane %v2561_v24, 2  ;;  %v2566_v46 = vmul.f32 %v9454_v19, %v14965_v61 }
 0x2a1   : > { %2662 = vrot.lane.b32.xlu0 %v2614_v0, %s7736_s27  ;;  %v2563_v0 = vmul.f32 %v9278_v2, %v9377_v63 }
 0x2a2   : > { %v9432_v12 = vpop.permute.xlu1 %2041  ;;  %v2626_v58 = vsel %vm1512_vm1, %v2624_v33, %v2625_v1 }
 0x2a3   : > { %14971 = vst [vmem:[#allocation142_spill] sm:$0xff] %v9432_v12  ;;  %v9434_v57 = vpop.permute.xlu0 %2039 }
 0x2a4   : > { %14972 = vst [vmem:[#allocation143_spill] sm:$0xff] %v9434_v57  ;;  %2668 = vrot.lane.b32.xlu1 %v2623_v31, %s7736_s27  ;;  %v2631_v57 = vrot.slane %v2564_v32, 2  ;;  %v2629_v31 = vrot.slane %v2563_v0, 2  ;;  %v2635_v32 = vrot.slane %v2566_v46, 2 }
 0x2a5   : > { %2666 = vrot.lane.b32.xlu0 %v2620_v38, %s7736_s27  ;;  %v2565_v38 = vmul.f32 %v9293_v21, %v9394_v8 }
 0x2a6   : > { %v9448_v14 = vpop.permute.xlu1 %2045  ;;  %v2632_v5 = vsel %vm1512_vm1, %v2619_v41, %v2631_v57  ;;  %v2630_v33 = vsel %vm1512_vm1, %v2616_v44, %v2629_v31  ;;  %v2636_v46 = vsel %vm1512_vm1, %v2625_v1, %v2635_v32  ;;  %v9500_v32 = vmul.f32 %v9233_v7, %v9394_v8 }
 0x2a7   : > { %14973 = vst [vmem:[#allocation144_spill] sm:$0xff] %v9448_v14  ;;  %v9450_v12 = vpop.permute.xlu0 %2043  ;;  %v2633_v0 = vrot.slane %v2565_v38, 2  ;;  %v9492_v38 = vld [vmem:[#allocation2 + $0xa0] sm:$0xff] }
 0x2a8   : > { %14974 = vst [vmem:[#allocation145_spill] sm:$0xff] %v9450_v12  ;;  %2672 = vrot.lane.b32.xlu1 %v2628_v43, %s7736_s27  ;;  %v9468_v12 = vld [vmem:[#allocation2 + $0x98] sm:$0xff] }
 0x2a9   : > { %2670 = vrot.lane.b32.xlu0 %v2626_v58, %s7736_s27  ;;  %v2568_v43 = vmul.f32 %v9468_v12, %v9377_v63  ;;  %v2567_v58 = vmul.f32 %v8837_v35, %v14964_v59  ;;  %v2634_v35 = vsel %vm1512_vm1, %v2622_v40, %v2633_v0 }
 0x2aa   : > { %v9463_v24 = vpop.permute.xlu1 %2049 }
 0x2ab   : > { %14975 = vst [vmem:[#allocation146_spill] sm:$0xff] %v9463_v24  ;;  %v9465_v14 = vpop.permute.xlu0 %2047  ;;  %v9479_v24 = vmul.f32 %v9200_v56, %v9377_v63  ;;  %v2637_v31 = vrot.slane %v2567_v58, 2 }
 0x2ac   : > { %14976 = vst [vmem:[#allocation147_spill] sm:$0xff] %v9465_v14  ;;  %2676 = vrot.lane.b32.xlu1 %v2632_v5, %s7736_s27  ;;  %v2640_v14 = vrot.slane %v2568_v43, 2  ;;  %v9486_v5 = vld [vmem:[#allocation2 + $0xa8] sm:$0xff] }
 0x2ad   : > { %2674 = vrot.lane.b32.xlu0 %v2630_v33, %s7736_s27  ;;  %v2570_v44 = vmul.f32 %v9486_v5, %v9394_v8  ;;  %v2569_v33 = vmul.f32 %v9492_v38, %v9403_v22  ;;  %v2641_v1 = vrot.slane %v9479_v24, 2  ;;  %v2639_v24 = vsel %vm1512_vm1, %v2637_v31, %v9410_v18 }
 0x2ae   : > { %v9481_v57 = vpop.permute.xlu1 %2053 }
 0x2af   : > { %14977 = vst [vmem:[#allocation148_spill] sm:$0xff] %v9481_v57  ;;  %v9483_v41 = vpop.permute.xlu0 %2051  ;;  %v2642_v0 = vsel %vm1512_vm1, %v2640_v14, %v2641_v1  ;;  %v2646_v58 = vrot.slane %v2570_v44, 2  ;;  %v9514_v57 = vld [vmem:[#allocation2 + $0xb0] sm:$0xff] }
 0x2b0   : > { %14978 = vst [vmem:[#allocation149_spill] sm:$0xff] %v9483_v41  ;;  %2680 = vrot.lane.b32.xlu1 %v2636_v46, %s7736_s27  ;;  %v2574_v46 = vmul.f32 %v9330_v15, %v9403_v22  ;;  %v2577_v41 = vmul.f32 %v8877_v62, %v14964_v59  ;;  %v2576_v62 = vmul.f32 %v9224_v55, %v14965_v61 }
 0x2b1   : > { %2678 = vrot.lane.b32.xlu0 %v2634_v35, %s7736_s27  ;;  %v2643_v35 = vrot.slane %v2569_v33, 2 }
 0x2b2   : > { %v9502_v43 = vpop.permute.xlu1 %2057  ;;  %v2644_v44 = vrot.slane %v2574_v46, 2  ;;  %v2652_v33 = vrot.slane %v2577_v41, 2  ;;  %v2650_v41 = vrot.slane %v2576_v62, 2 }
 0x2b3   : > { %14979 = vst [vmem:[#allocation150_spill] sm:$0xff] %v9502_v43  ;;  %v9506_v40 = vpop.permute.xlu0 %2055  ;;  %v2571_v43 = vmul.f32 %v9514_v57, %v14965_v61 }
 0x2b4   : > { %14980 = vst [vmem:[#allocation151_spill] sm:$0xff] %v9506_v40  ;;  %2684 = vrot.lane.b32.xlu1 %v2642_v0, %s7736_s27  ;;  %v2647_v40 = vrot.slane %v9500_v32, 2  ;;  %v9527_v0 = vld [vmem:[#allocation2 + $0x100] sm:$0xf]  ;;  %v2645_v32 = vsel %vm1512_vm1, %v2643_v35, %v2644_v44 }
 0x2b5   : > { %2682 = vrot.lane.b32.xlu0 %v2639_v24, %s7736_s27  ;;  %v2579_v49 = vmul.f32 %v9527_v0, %v9403_v22  ;;  %v2649_v24 = vrot.slane %v2571_v43, 2  ;;  %v2653_v22 = vsel %vm1512_vm1, %v9410_v18, %v2652_v33  ;;  %v14987_v18 = vld [vmem:[#allocation33_spill] sm:$0xff] }
 0x2b6   : > { %v9520_v14 = vpop.permute.xlu1 %2061  ;;  %v2648_v31 = vsel %vm1512_vm1, %v2646_v58, %v2647_v40 }
 0x2b7   : > { %14981 = vst [vmem:[#allocation152_spill] sm:$0xff] %v9520_v14  ;;  %v9524_v59 = vpop.permute.xlu0 %2059  ;;  %v9533_v14 = vld [vmem:[#allocation2 + $0xf8] sm:$0xf]  ;;  %v2656_v53 = vrot.slane %v2579_v49, 2  ;;  %v14986_v49 = vld [vmem:[#allocation32_spill] sm:$0xff] }
 0x2b8   : > { %14982 = vst [vmem:[#allocation153_spill] sm:$0xff] %v9524_v59  ;;  %2688 = vrot.lane.b32.xlu1 %v2648_v31, %s7736_s27  ;;  %v2578_v46 = vmul.f32 %v9533_v14, %v9377_v63  ;;  %v9544_v31 = vld [vmem:[#allocation2 + $0x110] sm:$0xf]  ;;  %v2651_v63 = vsel %vm1512_vm1, %v2649_v24, %v2650_v41  ;;  %v9560_v33 = vsel %vm2146_vm6, %v14987_v18, %v14986_v49 }
 0x2b9   : > { %2686 = vrot.lane.b32.xlu0 %v2645_v32, %s7736_s27  ;;  %v2581_v43 = vmul.f32 %v9544_v31, %v14965_v61  ;;  %v9550_v32 = vld [vmem:[#allocation2 + $0x108] sm:$0xf] }
 0x2ba   : > { %v9538_v59 = vpop.permute.xlu1 %2065  ;;  %v2654_v35 = vrot.slane %v2578_v46, 2  ;;  %v2580_v62 = vmul.f32 %v9550_v32, %v9394_v8  ;;  %v2786_v46 = vmul.f32 %v9102_v36, %v9560_v33 }
 0x2bb   : > { %14983 = vst [vmem:[#allocation154_spill] sm:$0xff] %v9538_v59  ;;  %v9540_v58 = vpop.permute.xlu0 %2063  ;;  %v2660_v24 = vrot.slane %v2581_v43, 2  ;;  %v14990_v43 = vld [vmem:[#allocation35_spill] sm:$0xff] }
 0x2bc   : > { %14984 = vst [vmem:[#allocation155_spill] sm:$0xff] %v9540_v58  ;;  %2692 = vrot.lane.b32.xlu1 %v2653_v22, %s7736_s27  ;;  %v2657_v22 = vsel %vm1512_vm1, %v2644_v44, %v2656_v53  ;;  %v2655_v8 = vsel %vm1512_vm1, %v2641_v1, %v2654_v35  ;;  %v2790_v58 = vmul.f32 %v8927_v23, %v14987_v18  ;;  %v14989_v44 = vld [vmem:[#allocation34_spill] sm:$0xff]  ;;  %v2848_v35 = vrot.slane %v2786_v46, 3 }
 0x2bd   : > { %2690 = vrot.lane.b32.xlu0 %v2651_v63, %s7736_s27  ;;  %v2658_v63 = vrot.slane %v2580_v62, 2  ;;  %v2791_v53 = vmul.f32 %v9145_v37, %v9560_v33  ;;  %v9586_v1 = vsel %vm2146_vm6, %v14986_v49, %v14990_v43  ;;  %v2661_v23 = vsel %vm1512_vm1, %v2650_v41, %v2660_v24 }
 0x2be   : > { %v9555_v59 = vpop.permute.xlu1 %2069  ;;  %v9595_v28 = vrot.slane %v2790_v58, 3  ;;  %v2792_v46 = vmul.f32 %v9142_v54, %v9586_v1  ;;  %v2795_v58 = vmul.f32 %v8973_v26, %v14987_v18 }
 0x2bf   : > { %14985 = vst [vmem:[#allocation156_spill] sm:$0xff] %v9555_v59  ;;  %v9562_v61 = vpop.permute.xlu0 %2067  ;;  %v2785_v59 = vmul.f32 %v8923_v52, %v14987_v18  ;;  %v2849_v49 = vrot.slane %v2791_v53, 3 }
 0x2c0   : > { %14988 = vst [vmem:[#allocation32_spill] sm:$0xff] %v9562_v61  ;;  %2696 = vrot.lane.b32.xlu1 %v2657_v22, %s7736_s27  ;;  %v9579_v61 = vsel %vm2146_vm6, %v14990_v43, %v14989_v44 }
 0x2c1   : > { %2694 = vrot.lane.b32.xlu0 %v2655_v8, %s7736_s27  ;;  %v2788_v62 = vmul.f32 %v9237_v48, %v9579_v61  ;;  %v2659_v8 = vsel %vm1512_vm1, %v2647_v40, %v2658_v63  ;;  %v2845_v20 = vrot.slane %v2785_v59, 3  ;;  %v2793_v41 = vmul.f32 %v9158_v50, %v9579_v61 }
 0x2c2   : > { %v9581_v22 = vpop.permute.xlu1 %2197  ;;  %v2850_v40 = vsel %vm1746_vm2, %v2848_v35, %v2849_v49  ;;  %v2794_v35 = vmul.f32 %v9154_v4, %v14989_v44 }
 0x2c3   : > { %14991 = vst [vmem:[#allocation33_spill] sm:$0xff] %v9581_v22  ;;  %v9588_v52 = vpop.permute.xlu0 %2195  ;;  %v2787_v22 = vmul.f32 %v9123_v13, %v9586_v1  ;;  %v2854_v59 = vrot.slane %v2788_v62, 3  ;;  %v2847_v63 = vsel %vm1746_vm2, %v2845_v20, %v9595_v28  ;;  %v2797_v20 = vmul.f32 %v9439_v45, %v9586_v1 }
 0x2c4   : > { %14992 = vst [vmem:[#allocation34_spill] sm:$0xff] %v9588_v52  ;;  %2700 = vrot.lane.b32.xlu1 %v2661_v23, %s7736_s27  ;;  %v2789_v23 = vmul.f32 %v9262_v27, %v14989_v44 }
 0x2c5   : > { %2698 = vrot.lane.b32.xlu0 %v2659_v8, %s7736_s27  ;;  %v2851_v53 = vrot.slane %v2787_v22, 3  ;;  %v2855_v8 = vrot.slane %v2793_v41, 3  ;;  %v2796_v41 = vmul.f32 %v9278_v2, %v9560_v33 }
 0x2c6   : > { %v9602_v24 = vpop.permute.xlu1 %2201 }
 0x2c7   : > { %14993 = vst [vmem:[#allocation35_spill] sm:$0xff] %v9602_v24  ;;  %v9606_v43 = vpop.permute.xlu0 %2199  ;;  %v2856_v26 = vsel %vm1746_vm2, %v2854_v59, %v2855_v8 }
 0x2c8   : > { %14994 = vst [vmem:[#allocation157_spill] sm:$0xff] %v9606_v43  ;;  %2897 = vrot.lane.b32.xlu1 %v2850_v40, %s7736_s27  ;;  %v2852_v43 = vrot.slane %v2792_v46, 3  ;;  %v2860_v40 = vrot.slane %v2795_v58, 3  ;;  %v2864_v58 = vrot.slane %v2797_v20, 3 }
 0x2c9   : > { %2895 = vrot.lane.b32.xlu0 %v2847_v63, %s7736_s27  ;;  %v2857_v63 = vrot.slane %v2789_v23, 3  ;;  %v2862_v23 = vrot.slane %v2796_v41, 3 }
 0x2ca   : > { %v9617_v24 = vpop.permute.xlu1 %2205  ;;  %v2853_v22 = vsel %vm1746_vm2, %v2851_v53, %v2852_v43  ;;  %v2861_v59 = vsel %vm1746_vm2, %v9595_v28, %v2860_v40  ;;  %v2865_v40 = vsel %vm1746_vm2, %v2852_v43, %v2864_v58 }
 0x2cb   : > { %14995 = vst [vmem:[#allocation158_spill] sm:$0xff] %v9617_v24  ;;  %v9621_v62 = vpop.permute.xlu0 %2203  ;;  %v2858_v24 = vrot.slane %v2794_v35, 3 }
 0x2cc   : > { %14996 = vst [vmem:[#allocation159_spill] sm:$0xff] %v9621_v62  ;;  %2901 = vrot.lane.b32.xlu1 %v2856_v26, %s7736_s27  ;;  %v2799_v26 = vmul.f32 %v9454_v19, %v14989_v44 }
 0x2cd   : > { %2899 = vrot.lane.b32.xlu0 %v2853_v22, %s7736_s27  ;;  %v2859_v53 = vsel %vm1746_vm2, %v2857_v63, %v2858_v24  ;;  %v2798_v22 = vmul.f32 %v9293_v21, %v9579_v61  ;;  %v2863_v63 = vsel %vm1746_vm2, %v2849_v49, %v2862_v23  ;;  %v2803_v49 = vmul.f32 %v9486_v5, %v9579_v61 }
 0x2ce   : > { %v9631_v46 = vpop.permute.xlu1 %2209  ;;  %v2868_v20 = vrot.slane %v2799_v26, 3 }
 0x2cf   : > { %14997 = vst [vmem:[#allocation160_spill] sm:$0xff] %v9631_v46  ;;  %v9633_v62 = vpop.permute.xlu0 %2207  ;;  %v2866_v41 = vrot.slane %v2798_v22, 3 }
 0x2d0   : > { %14998 = vst [vmem:[#allocation161_spill] sm:$0xff] %v9633_v62  ;;  %2905 = vrot.lane.b32.xlu1 %v2861_v59, %s7736_s27  ;;  %v2801_v62 = vmul.f32 %v9468_v12, %v9560_v33  ;;  %v9653_v59 = vld [vmem:[#allocation2 + $0x90] sm:$0xff]  ;;  %v2869_v26 = vsel %vm1746_vm2, %v2858_v24, %v2868_v20  ;;  %v2807_v24 = vmul.f32 %v9330_v15, %v9586_v1 }
 0x2d1   : > { %2903 = vrot.lane.b32.xlu0 %v2859_v53, %s7736_s27  ;;  %v2800_v53 = vmul.f32 %v9653_v59, %v14987_v18  ;;  %v2867_v23 = vsel %vm1746_vm2, %v2855_v8, %v2866_v41  ;;  %v2879_v8 = vrot.slane %v2803_v49, 3  ;;  %v9681_v41 = vld [vmem:[#allocation2 + $0xf0] sm:$0xf]  ;;  %v2809_v49 = vmul.f32 %v9224_v55, %v14989_v44 }
 0x2d2   : > { %v9644_v35 = vpop.permute.xlu1 %2213 }
 0x2d3   : > { %14999 = vst [vmem:[#allocation162_spill] sm:$0xff] %v9644_v35  ;;  %v9646_v46 = vpop.permute.xlu0 %2211  ;;  %v2806_v35 = vmul.f32 %v9200_v56, %v9560_v33  ;;  %v2870_v22 = vrot.slane %v2800_v53, 3  ;;  %v2810_v53 = vmul.f32 %v9681_v41, %v14987_v18 }
 0x2d4   : > { %15000 = vst [vmem:[#allocation163_spill] sm:$0xff] %v9646_v46  ;;  %2909 = vrot.lane.b32.xlu1 %v2865_v40, %s7736_s27  ;;  %v2873_v40 = vrot.slane %v2801_v62, 3 }
 0x2d5   : > { %2907 = vrot.lane.b32.xlu0 %v2863_v63, %s7736_s27  ;;  %v2802_v63 = vmul.f32 %v9492_v38, %v9586_v1  ;;  %v2874_v46 = vrot.slane %v2806_v35, 3  ;;  %v2872_v35 = vsel %vm1746_vm2, %v2870_v22, %v9595_v28  ;;  %v2812_v22 = vmul.f32 %v9527_v0, %v9586_v1 }
 0x2d6   : > { %v9660_v43 = vpop.permute.xlu1 %2217  ;;  %v2814_v1 = vmul.f32 %v9544_v31, %v14989_v44 }
 0x2d7   : > { %15001 = vst [vmem:[#allocation164_spill] sm:$0xff] %v9660_v43  ;;  %v9662_v58 = vpop.permute.xlu0 %2215  ;;  %v2875_v20 = vsel %vm1746_vm2, %v2873_v40, %v2874_v46  ;;  %v2877_v40 = vrot.slane %v2807_v24, 3 }
 0x2d8   : > { %15002 = vst [vmem:[#allocation165_spill] sm:$0xff] %v9662_v58  ;;  %2913 = vrot.lane.b32.xlu1 %v2869_v26, %s7736_s27  ;;  %v2808_v58 = vmul.f32 %v9233_v7, %v9579_v61  ;;  %v2876_v26 = vrot.slane %v2802_v63, 3 }
 0x2d9   : > { %2911 = vrot.lane.b32.xlu0 %v2867_v23, %s7736_s27  ;;  %v2804_v23 = vmul.f32 %v9514_v57, %v14989_v44 }
 0x2da   : > { %v9674_v43 = vpop.permute.xlu1 %2221  ;;  %v2878_v63 = vsel %vm1746_vm2, %v2876_v26, %v2877_v40 }
 0x2db   : > { %15003 = vst [vmem:[#allocation166_spill] sm:$0xff] %v9674_v43  ;;  %v9678_v62 = vpop.permute.xlu0 %2219  ;;  %v2880_v43 = vrot.slane %v2808_v58, 3  ;;  %v2811_v58 = vmul.f32 %v9533_v14, %v9560_v33  ;;  %v2813_v33 = vmul.f32 %v9550_v32, %v9579_v61 }
 0x2dc   : > { %15004 = vst [vmem:[#allocation167_spill] sm:$0xff] %v9678_v62  ;;  %2917 = vrot.lane.b32.xlu1 %v2875_v20, %s7736_s27  ;;  %v2885_v20 = vrot.slane %v2810_v53, 3  ;;  %v2889_v53 = vrot.slane %v2812_v22, 3  ;;  %v2893_v22 = vrot.slane %v2814_v1, 3 }
 0x2dd   : > { %2915 = vrot.lane.b32.xlu0 %v2872_v35, %s7736_s27  ;;  %v2881_v18 = vsel %vm1746_vm2, %v2879_v8, %v2880_v43  ;;  %v2882_v35 = vrot.slane %v2804_v23, 3  ;;  %v2887_v23 = vrot.slane %v2811_v58, 3  ;;  %v2891_v58 = vrot.slane %v2813_v33, 3 }
 0x2de   : > { %v9691_v62 = vpop.permute.xlu1 %2225  ;;  %v2886_v8 = vsel %vm1746_vm2, %v9595_v28, %v2885_v20  ;;  %v2890_v44 = vsel %vm1746_vm2, %v2877_v40, %v2889_v53  ;;  %v15014_v53 = vld [vmem:[#allocation38_spill] sm:$0xff] }
 0x2df   : > { %15005 = vst [vmem:[#allocation168_spill] sm:$0xff] %v9691_v62  ;;  %v9695_v52 = vpop.permute.xlu0 %2223  ;;  %v2883_v62 = vrot.slane %v2809_v49, 3  ;;  %v2888_v61 = vsel %vm1746_vm2, %v2874_v46, %v2887_v23 }
 0x2e0   : > { %15006 = vst [vmem:[#allocation169_spill] sm:$0xff] %v9695_v52  ;;  %2921 = vrot.lane.b32.xlu1 %v2881_v18, %s7736_s27  ;;  %v15010_v18 = vld [vmem:[#allocation36_spill] sm:$0xff] }
 0x2e1   : > { %2919 = vrot.lane.b32.xlu0 %v2878_v63, %s7736_s27  ;;  %v2884_v26 = vsel %vm1746_vm2, %v2882_v35, %v2883_v62  ;;  %v15011_v63 = vld [vmem:[#allocation37_spill] sm:$0xff] }
 0x2e2   : > { %v9705_v24 = vpop.permute.xlu1 %2229  ;;  %v9723_v28 = vsel %vm2146_vm6, %v15011_v63, %v15010_v18 }
 0x2e3   : > { %15007 = vst [vmem:[#allocation170_spill] sm:$0xff] %v9705_v24  ;;  %v9707_v52 = vpop.permute.xlu0 %2227  ;;  %v3019_v35 = vmul.f32 %v9102_v36, %v9723_v28  ;;  %v3024_v40 = vmul.f32 %v9145_v37, %v9723_v28  ;;  %v15015_v36 = vld [vmem:[#allocation39_spill] sm:$0xff] }
 0x2e4   : > { %15008 = vst [vmem:[#allocation171_spill] sm:$0xff] %v9707_v52  ;;  %2925 = vrot.lane.b32.xlu1 %v2886_v8, %s7736_s27  ;;  %v7443_v8 = vld [vmem:[#allocation2] sm:$0xff]  ;;  %v9743_v1 = vsel %vm2146_vm6, %v15015_v36, %v15014_v53  ;;  %v9750_v23 = vsel %vm2146_vm6, %v15010_v18, %v15015_v36 }
 0x2e5   : > { %2923 = vrot.lane.b32.xlu0 %v2884_v26, %s7736_s27  ;;  %v3018_v26 = vmul.f32 %v7443_v8, %v15011_v63  ;;  %v3021_v37 = vmul.f32 %v9237_v48, %v9743_v1  ;;  %v2892_v8 = vsel %vm1746_vm2, %v2880_v43, %v2891_v58  ;;  %v3082_v18 = vrot.slane %v3024_v40, 4  ;;  %v7445_v58 = vld [vmem:[#allocation2 + $0x60] sm:$0xf] }
 0x2e6   : > { %v9718_v49 = vpop.permute.xlu1 %2233 }
 0x2e7   : > { %15009 = vst [vmem:[#allocation172_spill] sm:$0xff] %v9718_v49  ;;  %v9725_v20 = vpop.permute.xlu0 %2231  ;;  %v9733_v49 = vld [vmem:[#allocation2 + $0x30] sm:$0xff] }
 0x2e8   : > { %15012 = vst [vmem:[#allocation36_spill] sm:$0xff] %v9725_v20  ;;  %2929 = vrot.lane.b32.xlu1 %v2890_v44, %s7736_s27  ;;  %15013 = vst [vmem:[#allocation37_spill] sm:$0xff] %v9733_v49  ;;  %v3023_v24 = vmul.f32 %v9733_v49, %v15011_v63  ;;  %v2894_v44 = vsel %vm1746_vm2, %v2883_v62, %v2893_v22  ;;  %v3078_v20 = vrot.slane %v3018_v26, 4 }
 0x2e9   : > { %2927 = vrot.lane.b32.xlu0 %v2888_v61, %s7736_s27  ;;  %v3081_v61 = vrot.slane %v3019_v35, 4  ;;  %v3026_v62 = vmul.f32 %v9158_v50, %v9743_v1  ;;  %v3025_v35 = vmul.f32 %v9142_v54, %v9750_v23  ;;  %v3028_v26 = vmul.f32 %v7445_v58, %v15011_v63 }
 0x2ea   : > { %v9745_v46 = vpop.permute.xlu1 %2431  ;;  %v9759_v52 = vrot.slane %v3023_v24, 4  ;;  %v3087_v24 = vrot.slane %v3021_v37, 4  ;;  %v3022_v50 = vmul.f32 %v9262_v27, %v15014_v53 }
 0x2eb   : > { %15016 = vst [vmem:[#allocation38_spill] sm:$0xff] %v9745_v46  ;;  %v9752_v33 = vpop.permute.xlu0 %2429  ;;  %v3020_v46 = vmul.f32 %v9123_v13, %v9750_v23  ;;  %v3083_v43 = vsel %vm1980_vm5, %v3081_v61, %v3082_v18  ;;  %v3088_v54 = vrot.slane %v3026_v62, 4  ;;  %v3027_v61 = vmul.f32 %v9154_v4, %v15014_v53 }
 0x2ec   : > { %15017 = vst [vmem:[#allocation39_spill] sm:$0xff] %v9752_v33  ;;  %2933 = vrot.lane.b32.xlu1 %v2894_v44, %s7736_s27  ;;  %v3080_v13 = vsel %vm1980_vm5, %v3078_v20, %v9759_v52  ;;  %v3093_v58 = vrot.slane %v3028_v26, 4  ;;  %v3030_v20 = vmul.f32 %v9439_v45, %v9750_v23  ;;  %v3029_v62 = vmul.f32 %v9278_v2, %v9723_v28  ;;  %v15076_v33 = vld [vmem:[#allocation70_spill] sm:$0xff] }
 0x2ed   : > { %2931 = vrot.lane.b32.xlu0 %v2892_v8, %s7736_s27  ;;  %v3084_v40 = vrot.slane %v3020_v46, 4  ;;  %v3085_v8 = vrot.slane %v3025_v35, 4  ;;  %v3091_v4 = vrot.slane %v3027_v61, 4  ;;  %v3031_v2 = vmul.f32 %v9293_v21, %v9743_v1 }
 0x2ee   : > { %v9766_v22 = vpop.permute.xlu1 %2435  ;;  %v3097_v26 = vrot.slane %v3030_v20, 4  ;;  %v3033_v21 = vmul.f32 %v9653_v59, %v15011_v63 }
 0x2ef   : > { %15018 = vst [vmem:[#allocation173_spill] sm:$0xff] %v9766_v22  ;;  %v9770_v36 = vpop.permute.xlu0 %2433  ;;  %v3086_v46 = vsel %vm1980_vm5, %v3084_v40, %v3085_v8  ;;  %v15071_v22 = vld [vmem:[#allocation63_spill] sm:$0xff] }
 0x2f0   : > { %15019 = vst [vmem:[#allocation174_spill] sm:$0xff] %v9770_v36  ;;  %3130 = vrot.lane.b32.xlu1 %v3083_v43, %s7736_s27  ;;  %v3089_v43 = vsel %vm1980_vm5, %v3087_v24, %v3088_v54  ;;  %v3094_v24 = vsel %vm1980_vm5, %v9759_v52, %v3093_v58  ;;  %v3098_v58 = vsel %vm1980_vm5, %v3085_v8, %v3097_v26  ;;  %v15073_v36 = vld [vmem:[#allocation65_spill] sm:$0xff] }
 0x2f1   : > { %3128 = vrot.lane.b32.xlu0 %v3080_v13, %s7736_s27  ;;  %v3090_v13 = vrot.slane %v3022_v50, 4  ;;  %v3095_v50 = vrot.slane %v3029_v62, 4  ;;  %v3099_v62 = vrot.slane %v3031_v2, 4 }
 0x2f2   : > { %v9780_v44 = vpop.permute.xlu1 %2439 }
 0x2f3   : > { %15020 = vst [vmem:[#allocation175_spill] sm:$0xff] %v9780_v44  ;;  %v9784_v37 = vpop.permute.xlu0 %2437  ;;  %v3092_v40 = vsel %vm1980_vm5, %v3090_v13, %v3091_v4  ;;  %v3096_v13 = vsel %vm1980_vm5, %v3082_v18, %v3095_v50  ;;  %v3041_v18 = vmul.f32 %v9233_v7, %v9743_v1  ;;  %v3100_v59 = vsel %vm1980_vm5, %v3088_v54, %v3099_v62 }
 0x2f4   : > { %15021 = vst [vmem:[#allocation176_spill] sm:$0xff] %v9784_v37  ;;  %3134 = vrot.lane.b32.xlu1 %v3089_v43, %s7736_s27  ;;  %v3032_v43 = vmul.f32 %v9454_v19, %v15014_v53  ;;  %v3103_v50 = vrot.slane %v3033_v21, 4  ;;  %v3043_v54 = vmul.f32 %v9681_v41, %v15011_v63  ;;  %v15070_v37 = vld [vmem:[#allocation66_spill] sm:$0xff] }
 0x2f5   : > { %3132 = vrot.lane.b32.xlu0 %v3086_v46, %s7736_s27 }
 0x2f6   : > { %v9794_v35 = vpop.permute.xlu1 %2443  ;;  %v3101_v20 = vrot.slane %v3032_v43, 4  ;;  %v3105_v62 = vsel %vm1980_vm5, %v3103_v50, %v9759_v52  ;;  %v3118_v63 = vrot.slane %v3043_v54, 4 }
 0x2f7   : > { %15022 = vst [vmem:[#allocation177_spill] sm:$0xff] %v9794_v35  ;;  %v9796_v44 = vpop.permute.xlu0 %2441  ;;  %v3034_v35 = vmul.f32 %v9468_v12, %v9723_v28 }
 0x2f8   : > { %15023 = vst [vmem:[#allocation178_spill] sm:$0xff] %v9796_v44  ;;  %3138 = vrot.lane.b32.xlu1 %v3094_v24, %s7736_s27  ;;  %v3039_v24 = vmul.f32 %v9200_v56, %v9723_v28  ;;  %v3102_v26 = vsel %vm1980_vm5, %v3091_v4, %v3101_v20  ;;  %v3035_v56 = vmul.f32 %v9492_v38, %v9750_v23 }
 0x2f9   : > { %3136 = vrot.lane.b32.xlu0 %v3092_v40, %s7736_s27  ;;  %v3106_v43 = vrot.slane %v3034_v35, 4  ;;  %v3040_v35 = vmul.f32 %v9330_v15, %v9750_v23 }
 0x2fa   : > { %v9807_v61 = vpop.permute.xlu1 %2447  ;;  %v3107_v2 = vrot.slane %v3039_v24, 4  ;;  %v3109_v21 = vrot.slane %v3035_v56, 4  ;;  %v3037_v24 = vmul.f32 %v9514_v57, %v15014_v53 }
 0x2fb   : > { %15024 = vst [vmem:[#allocation179_spill] sm:$0xff] %v9807_v61  ;;  %v9809_v46 = vpop.permute.xlu0 %2445 }
 0x2fc   : > { %15025 = vst [vmem:[#allocation180_spill] sm:$0xff] %v9809_v46  ;;  %3142 = vrot.lane.b32.xlu1 %v3098_v58, %s7736_s27  ;;  %v3036_v58 = vmul.f32 %v9486_v5, %v9743_v1  ;;  %v3108_v7 = vsel %vm1980_vm5, %v3106_v43, %v3107_v2  ;;  %v3042_v43 = vmul.f32 %v9224_v55, %v15014_v53  ;;  %v3115_v56 = vrot.slane %v3037_v24, 4  ;;  %v15068_v46 = vld [vmem:[#allocation61_spill] sm:$0xff] }
 0x2fd   : > { %3140 = vrot.lane.b32.xlu0 %v3096_v13, %s7736_s27 }
 0x2fe   : > { %v9821_v40 = vpop.permute.xlu1 %2451  ;;  %v3112_v20 = vrot.slane %v3036_v58, 4  ;;  %v3116_v55 = vrot.slane %v3042_v43, 4 }
 0x2ff   : > { %15026 = vst [vmem:[#allocation181_spill] sm:$0xff] %v9821_v40  ;;  %v9823_v8 = vpop.permute.xlu0 %2449 }
 0x300   : > { %15027 = vst [vmem:[#allocation182_spill] sm:$0xff] %v9823_v8  ;;  %3146 = vrot.lane.b32.xlu1 %v3102_v26, %s7736_s27  ;;  %v3113_v26 = vrot.slane %v3041_v18, 4  ;;  %v3045_v18 = vmul.f32 %v9527_v0, %v9750_v23  ;;  %v3047_v23 = vmul.f32 %v9544_v31, %v15014_v53  ;;  %v15065_v8 = vld [vmem:[#allocation59_spill] sm:$0xff] }
 0x301   : > { %3144 = vrot.lane.b32.xlu0 %v3100_v59, %s7736_s27  ;;  %v3110_v59 = vrot.slane %v3040_v35, 4 }
 0x302   : > { %v9835_v13 = vpop.permute.xlu1 %2455  ;;  %v3114_v41 = vsel %vm1980_vm5, %v3112_v20, %v3113_v26  ;;  %v3119_v20 = vsel %vm1980_vm5, %v9759_v52, %v3118_v63  ;;  %v3122_v54 = vrot.slane %v3045_v18, 4  ;;  %v3126_v63 = vrot.slane %v3047_v23, 4  ;;  %v9900_v23 = vld [vmem:[#allocation2 + $0x10] sm:$0xff] }
 0x303   : > { %15028 = vst [vmem:[#allocation183_spill] sm:$0xff] %v9835_v13  ;;  %v9839_v4 = vpop.permute.xlu0 %2453  ;;  %v3111_v50 = vsel %vm1980_vm5, %v3109_v21, %v3110_v59  ;;  %v3117_v21 = vsel %vm1980_vm5, %v3115_v56, %v3116_v55  ;;  %v15062_v13 = vld [vmem:[#allocation57_spill] sm:$0xff] }
 0x304   : > { %15029 = vst [vmem:[#allocation184_spill] sm:$0xff] %v9839_v4  ;;  %3150 = vrot.lane.b32.xlu1 %v3108_v7, %s7736_s27  ;;  %v3044_v7 = vmul.f32 %v9533_v14, %v9723_v28  ;;  %v3046_v28 = vmul.f32 %v9550_v32, %v9743_v1  ;;  %v3123_v52 = vsel %vm1980_vm5, %v3110_v59, %v3122_v54  ;;  %v15038_v59 = vld [vmem:[#allocation44_spill] sm:$0xff] }
 0x305   : > { %3148 = vrot.lane.b32.xlu0 %v3105_v62, %s7736_s27  ;;  %v3127_v56 = vsel %vm1980_vm5, %v3116_v55, %v3126_v63  ;;  %v9906_v55 = vld [vmem:[#allocation2 + $0x8] sm:$0xff] }
 0x306   : > { %v9850_v15 = vpop.permute.xlu1 %2459  ;;  %v3120_v24 = vrot.slane %v3044_v7, 4  ;;  %v3124_v18 = vrot.slane %v3046_v28, 4  ;;  %v15042_v28 = vld [vmem:[#allocation46_spill] sm:$0xff] }
 0x307   : > { %15030 = vst [vmem:[#allocation185_spill] sm:$0xff] %v9850_v15  ;;  %v9854_v58 = vpop.permute.xlu0 %2457  ;;  %v9971_v15 = vld [vmem:[#allocation2 + $0x28] sm:$0xff] }
 0x308   : > { %15031 = vst [vmem:[#allocation186_spill] sm:$0xff] %v9854_v58  ;;  %3154 = vrot.lane.b32.xlu1 %v3114_v41, %s7736_s27  ;;  %v3121_v53 = vsel %vm1980_vm5, %v3107_v2, %v3120_v24  ;;  %v3125_v7 = vsel %vm1980_vm5, %v3113_v26, %v3124_v18  ;;  %v3888_v61 = vmul.f32 %v15042_v28, %v9971_v15 }
 0x309   : > { %3152 = vrot.lane.b32.xlu0 %v3111_v50, %s7736_s27 }
 0x30a   : > { %v9864_v35 = vpop.permute.xlu1 %2463 }
 0x30b   : > { %15032 = vst [vmem:[#allocation187_spill] sm:$0xff] %v9864_v35  ;;  %v9866_v62 = vpop.permute.xlu0 %2461  ;;  %v9967_v35 = vld [vmem:[#allocation2 + $0x38] sm:$0xff] }
 0x30c   : > { %15033 = vst [vmem:[#allocation188_spill] sm:$0xff] %v9866_v62  ;;  %3158 = vrot.lane.b32.xlu1 %v3119_v20, %s7736_s27  ;;  %v15039_v20 = vld [vmem:[#allocation45_spill] sm:$0xff]  ;;  %15058 = vst [vmem:[#allocation194_spill] sm:$0xff] %v9967_v35  ;;  %v15060_v62 = vld [vmem:[#allocation55_spill] sm:$0xff] }
 0x30d   : > { %3156 = vrot.lane.b32.xlu0 %v3117_v21, %s7736_s27  ;;  %v9896_v2 = vsel %vm2235_vm7, %v15039_v20, %v15038_v59  ;;  %v3884_v26 = vmul.f32 %v9906_v55, %v15039_v20 }
 0x30e   : > { %v9877_v43 = vpop.permute.xlu1 %2467  ;;  %v3885_v21 = vmul.f32 %v9900_v23, %v9896_v2 }
 0x30f   : > { %15034 = vst [vmem:[#allocation189_spill] sm:$0xff] %v9877_v43  ;;  %v9879_v41 = vpop.permute.xlu0 %2465 }
 0x310   : > { %15035 = vst [vmem:[#allocation190_spill] sm:$0xff] %v9879_v41  ;;  %3162 = vrot.lane.b32.xlu1 %v3123_v52, %s7736_s27  ;;  %v15043_v52 = vld [vmem:[#allocation47_spill] sm:$0xff] }
 0x311   : > { %3160 = vrot.lane.b32.xlu0 %v3121_v53, %s7736_s27  ;;  %v9914_v63 = vsel %vm2235_vm7, %v15043_v52, %v15042_v28  ;;  %v9920_v53 = vsel %vm2235_vm7, %v15038_v59, %v15043_v52  ;;  %v15050_v52 = vld [vmem:[#allocation50_spill] sm:$0xff] }
 0x312   : > { %v9885_v50 = vpop.permute.xlu1 %2664 }
 0x313   : > { %15036 = vst [vmem:[#allocation191_spill] sm:$0xff] %v9885_v50  ;;  %v9887_v1 = vpop.permute.xlu0 %2662  ;;  %v15055_v50 = vld [vmem:[#allocation53_spill] sm:$0xff] }
 0x314   : > { %15037 = vst [vmem:[#allocation192_spill] sm:$0xff] %v9887_v1  ;;  %3166 = vrot.lane.b32.xlu1 %v3127_v56, %s7736_s27  ;;  %v3887_v56 = vmul.f32 %v9262_v27, %v9914_v63  ;;  %v15048_v1 = vld [vmem:[#allocation42_spill] sm:$0xff]  ;;  %v9944_v27 = vsel %vm2235_vm7, %v8359_v47, %v8379_v25 }
 0x315   : > { %3164 = vrot.lane.b32.xlu0 %v3125_v7, %s7736_s27 }
 0x316   : > { %v9898_v54 = vpop.permute.xlu1 %2668 }
 0x317   : > { %15040 = vst [vmem:[#allocation44_spill] sm:$0xff] %v9898_v54  ;;  %v9904_v24 = vpop.permute.xlu0 %2666  ;;  %v15046_v54 = vld [vmem:[#allocation43_spill] sm:$0xff] }
 0x318   : > { %15041 = vst [vmem:[#allocation45_spill] sm:$0xff] %v9904_v24  ;;  %3926 = vrot.lane.b32.xlu1 %v3885_v21, %s7734_s25  ;;  %v3886_v21 = vmul.f32 %v9237_v48, %v9920_v53  ;;  %v15047_v24 = vld [vmem:[#allocation40_spill] sm:$0xff]  ;;  %v9939_v59 = vsel %vm2235_vm7, %v15046_v54, %v15048_v1  ;;  %15049 = vst [vmem:[#allocation43_spill] sm:$0xff] %v9944_v27  ;;  %v968_v48 = vld [vmem:[%s14437_s4] sm:$0xf] }
 0x319   : > { %3924 = vrot.lane.b32.xlu0 %v3884_v26, %s7734_s25  ;;  %v9934_v26 = vsel %vm2235_vm7, %v15047_v24, %v15046_v54  ;;  %v15106_v27 = vld [vmem:[#allocation98_spill] sm:$0xff] }
 0x31a   : > { %v9922_v18 = vpop.permute.xlu1 %2672 }
 0x31b   : > { %15044 = vst [vmem:[#allocation46_spill] sm:$0xff] %v9922_v18  ;;  %v9926_v7 = vpop.permute.xlu0 %2670  ;;  %v15052_v18 = vld [vmem:[#allocation54_spill] sm:$0xff] }
 0x31c   : > { %15045 = vst [vmem:[#allocation47_spill] sm:$0xff] %v9926_v7  ;;  %3930 = vrot.lane.b32.xlu1 %v3887_v56, %s7734_s25  ;;  %v9953_v56 = vsel %vm2235_vm7, %v8379_v25, %v15050_v52  ;;  %v15053_v7 = vld [vmem:[#allocation51_spill] sm:$0xff]  ;;  %v9963_v43 = vsel %vm2235_vm7, %v15052_v18, %v15055_v50  ;;  %v15059_v25 = vld [vmem:[#allocation58_spill] sm:$0xff] }
 0x31d   : > { %3928 = vrot.lane.b32.xlu0 %v3886_v21, %s7734_s25  ;;  %15051 = vst [vmem:[#allocation40_spill] sm:$0xff] %v9953_v56  ;;  %v9958_v54 = vsel %vm2235_vm7, %v15053_v7, %v15052_v18  ;;  %15056 = vst [vmem:[#allocation54_spill] sm:$0xff] %v9963_v43  ;;  %v3889_v21 = vmul.f32 %v9967_v35, %v15039_v20  ;;  %v9976_v58 = vsel %vm2235_vm7, %v15060_v62, %v15059_v25  ;;  %v15064_v18 = vld [vmem:[#allocation62_spill] sm:$0xff]  ;;  %v15089_v62 = vld [vmem:[#allocation73_spill] sm:$0xff] }
 0x31e   : > { %15054 = vst [vmem:[#allocation42_spill] sm:$0xff] %v9958_v54  ;;  %v9965_v41 = vpop.permute.xlu1 %2676  ;;  %15061 = vst [vmem:[#allocation58_spill] sm:$0xff] %v9976_v58  ;;  %v9981_v4 = vsel %vm2235_vm7, %v15059_v25, %v15062_v13  ;;  %v9995_v44 = vsel %vm1046_vm4, %v15064_v18, %v15068_v46  ;;  %v10000_v25 = vsel %vm1046_vm4, %v15071_v22, %v15070_v37  ;;  %v15077_v13 = vld [vmem:[#allocation67_spill] sm:$0xff]  ;;  %v15079_v46 = vld [vmem:[#allocation69_spill] sm:$0xff] }
 0x31f   : > { %15057 = vst [vmem:[#allocation193_spill] sm:$0xff] %v9965_v41  ;;  %15063 = vst [vmem:[#allocation195_spill] sm:$0xff] %v9981_v4  ;;  %v9986_v41 = vsel %vm1046_vm4, %v15065_v8, %v15064_v18  ;;  %v9988_v40 = vpop.permute.xlu0 %2674  ;;  %v10005_v8 = vsel %vm1046_vm4, %v15070_v37, %v15073_v36  ;;  %v10014_v18 = vsel %vm1046_vm4, %v15077_v13, %v15076_v33  ;;  %v15082_v22 = vld [vmem:[#allocation71_spill] sm:$0xff]  ;;  %v15086_v58 = vld [vmem:[#allocation21_spill] sm:$0xff] }
 0x320   : > { %15066 = vst [vmem:[#allocation62_spill] sm:$0xff] %v9986_v41  ;;  %15067 = vst [vmem:[#allocation196_spill] sm:$0xff] %v9988_v40  ;;  %v15075_v41 = vld [vmem:[#allocation20_spill] sm:$0xff]  ;;  %3934 = vrot.lane.b32.xlu1 %v3889_v21, %s7734_s25  ;;  %v1135_v36 = vsel %vm1046_vm4, %v8765_v29, %v8889_v42  ;;  %v15084_v21 = vld [vmem:[#allocation22_spill] sm:$0xff]  ;;  %v1136_v29 = vsel %vm1046_vm4, %v8889_v42, %v8891_v39 }
 0x321   : > { %15069 = vst [vmem:[#allocation197_spill] sm:$0xff] %v9995_v44  ;;  %15072 = vst [vmem:[#allocation66_spill] sm:$0xff] %v10000_v25  ;;  %v10008_v40 = vrot.slane %v968_v48, %v15075_v41  ;;  %v10019_v44 = vsel %vm1046_vm4, %v15076_v33, %v15079_v46  ;;  %v15081_v25 = vld [vmem:[#allocation74_spill] sm:$0xff]  ;;  %3932 = vrot.lane.b32.xlu0 %v3888_v61, %s7734_s25  ;;  %v10037_v33 = vrot.slane %v968_v48, %v15086_v58  ;;  %v15092_v54 = vld [vmem:[#allocation75_spill] sm:$0xff] }
 0x322   : > { %15074 = vst [vmem:[#allocation198_spill] sm:$0xff] %v10005_v8  ;;  %15078 = vst [vmem:[#allocation70_spill] sm:$0xff] %v10014_v18  ;;  %v10024_v37 = vsel %vm1046_vm4, %v15082_v22, %v15081_v25  ;;  %v10031_v8 = vrot.slane %v968_v48, %v15084_v21  ;;  %v15085_v18 = vld [vmem:[#allocation19_spill] sm:$0xff]  ;;  %v10039_v46 = vpop.permute.xlu1 %2680  ;;  %v1137_v61 = vsel %vm1046_vm4, %v8891_v39, %v8901_v9  ;;  %v15091_v42 = vld [vmem:[#allocation78_spill] sm:$0xff] }
 0x323   : > { %15080 = vst [vmem:[#allocation199_spill] sm:$0xff] %v10019_v44  ;;  %15083 = vst [vmem:[#allocation74_spill] sm:$0xff] %v10024_v37  ;;  %v10034_v13 = vrot.slane %v968_v48, %v15085_v18  ;;  %v10041_v44 = vld [vmem:[#allocation2 + $0x48] sm:$0xff]  ;;  %v1138_v48 = vsel %vm1046_vm4, %v8901_v9, %v8903_v34  ;;  %v10054_v22 = vpop.permute.xlu0 %2678  ;;  %v10063_v50 = vsel %vm1046_vm4, %v15081_v25, %v15089_v62  ;;  %v15094_v43 = vld [vmem:[#allocation77_spill] sm:$0xff] }
 0x324   : > { %15087 = vst [vmem:[#allocation200_spill] sm:$0xff] %v10039_v46  ;;  %v3891_v37 = vmul.f32 %v10041_v44, %v9920_v53  ;;  %15088 = vst [vmem:[#allocation201_spill] sm:$0xff] %v10054_v22  ;;  %v10056_v46 = vld [vmem:[#allocation2 + $0x40] sm:$0xff]  ;;  %v10068_v39 = vsel %vm1046_vm4, %v15092_v54, %v15091_v42  ;;  %v10073_v34 = vsel %vm1046_vm4, %v15091_v42, %v15094_v43  ;;  %v15096_v22 = vld [vmem:[#allocation79_spill] sm:$0xff] }
 0x325   : > { %v3890_v4 = vmul.f32 %v10056_v46, %v9896_v2  ;;  %15090 = vst [vmem:[#allocation202_spill] sm:$0xff] %v10063_v50  ;;  %15093 = vst [vmem:[#allocation78_spill] sm:$0xff] %v10068_v39  ;;  %v1167_v9 = vadd.f32 %v1135_v36, %v10008_v40  ;;  %v1139_v7 = vsel %vm1046_vm4, %v15096_v22, %v8916_v16  ;;  %v15107_v56 = vld [vmem:[#allocation92_spill] sm:$0xff] }
 0x326   : > { %15095 = vst [vmem:[#allocation203_spill] sm:$0xff] %v10073_v34  ;;  %3938 = vrot.lane.b32.xlu1 %v3891_v37, %s7734_s25  ;;  %v1140_v25 = vsel %vm1046_vm4, %v8916_v16, %v8914_v3  ;;  %v1141_v39 = vsel %vm1046_vm4, %v8914_v3, %v8951_v60  ;;  %v1369_v42 = vsel %vm1046_vm4, %v8805_v6, %v8967_v51  ;;  %v10093_v43 = vpop.permute.xlu1 %2684  ;;  %v15098_v34 = vld [vmem:[#allocation91_spill] sm:$0xff]  ;;  %v15099_v6 = vld [vmem:[#allocation82_spill] sm:$0xff] }
 0x327   : > { %3936 = vrot.lane.b32.xlu0 %v3890_v4, %s7734_s25  ;;  %v1168_v36 = vadd.f32 %v1136_v29, %v10031_v8  ;;  %v1169_v37 = vadd.f32 %v1137_v61, %v10034_v13  ;;  %v1170_v22 = vadd.f32 %v1138_v48, %v10037_v33  ;;  %15097 = vst [vmem:[#allocation79_spill] sm:$0xff] %v10093_v43  ;;  %v15100_v29 = vld [vmem:[#allocation86_spill] sm:$0xff]  ;;  %v10108_v54 = vpop.permute.xlu0 %2682  ;;  %v10110_v48 = vld [vmem:[#allocation2 + $0x50] sm:$0xff] }
 0x328   : > { %v10097_v16 = vmul.f32 %v9733_v49, %v15042_v28  ;;  %v1142_v3 = vsel %vm1046_vm4, %v8951_v60, %v8949_v10  ;;  %v1373_v4 = vsel %vm1046_vm4, %v15099_v6, %v15098_v34  ;;  %v1603_v61 = vsel %vm1046_vm4, %v15100_v29, %v8996_v11  ;;  %15101 = vst [vmem:[#allocation91_spill] sm:$0xff] %v10108_v54  ;;  %v15102_v6 = vld [vmem:[#allocation94_spill] sm:$0xff]  ;;  %v15104_v54 = vld [vmem:[#allocation97_spill] sm:$0xff] }
 0x329   : > { %v3892_v62 = vmul.f32 %v10110_v48, %v9914_v63  ;;  %v1171_v50 = vadd.f32 %v1139_v7, %v10008_v40  ;;  %v1172_v43 = vadd.f32 %v1140_v25, %v10031_v8  ;;  %v1173_v10 = vadd.f32 %v1141_v39, %v10034_v13 }
 0x32a   : > { %v1401_v60 = vadd.f32 %v1369_v42, %v1167_v9  ;;  %3942 = vrot.lane.b32.xlu1 %v10097_v16, %s7734_s25  ;;  %v1607_v29 = vsel %vm1046_vm4, %v15103_v17, %v15102_v6  ;;  %v1837_v52 = vsel %vm1046_vm4, %v15105_v30, %v15104_v54  ;;  %v1370_v7 = vsel %vm1046_vm4, %v8967_v51, %v15106_v27  ;;  %v10133_v58 = vpop.permute.xlu1 %2688  ;;  %v15109_v30 = vld [vmem:[#allocation100_spill] sm:$0xff]  ;;  %v15110_v51 = vld [vmem:[#allocation101_spill] sm:$0xff] }
 0x32b   : > { %v1371_v39 = vsel %vm1046_vm4, %v15106_v27, %v15107_v56  ;;  %3940 = vrot.lane.b32.xlu0 %v3892_v62, %s7734_s25  ;;  %v1174_v9 = vadd.f32 %v1142_v3, %v10037_v33  ;;  %v1405_v25 = vadd.f32 %v1373_v4, %v1171_v50  ;;  %15108 = vst [vmem:[#allocation82_spill] sm:$0xff] %v10133_v58  ;;  %v15111_v27 = vld [vmem:[#allocation93_spill] sm:$0xff]  ;;  %v10146_v3 = vpop.permute.xlu0 %2686 }
 0x32c   : > { %v1635_v42 = vadd.f32 %v1603_v61, %v1401_v60  ;;  %v3895_v17 = vmul.f32 %v9492_v38, %v9896_v2  ;;  %v1372_v47 = vsel %vm1046_vm4, %v15107_v56, %v15109_v30  ;;  %v1374_v18 = vsel %vm1046_vm4, %v15098_v34, %v15110_v51  ;;  %15112 = vst [vmem:[#allocation86_spill] sm:$0xff] %v10146_v3  ;;  %v15115_v56 = vld [vmem:[#allocation102_spill] sm:$0xff]  ;;  %v15116_v30 = vld [vmem:[#allocation95_spill] sm:$0xff] }
 0x32d   : > { %v1375_v62 = vsel %vm1046_vm4, %v15110_v51, %v15111_v27  ;;  %v3894_v50 = vmul.f32 %v9468_v12, %v15039_v20  ;;  %v10150_v4 = vadd.f32 %v1607_v29, %v1405_v25  ;;  %v1402_v60 = vadd.f32 %v1370_v7, %v1168_v36  ;;  %v15117_v3 = vld [vmem:[#allocation103_spill] sm:$0xff]  ;;  %v15118_v29 = vld [vmem:[#allocation104_spill] sm:$0xff]  ;;  %v15120_v25 = vld [vmem:[#allocation105_spill] sm:$0xff] }
 0x32e   : > { %v10152_v61 = vadd.f32 %v1837_v52, %v1635_v42  ;;  %v1403_v58 = vadd.f32 %v1371_v39, %v1169_v37  ;;  %3946 = vrot.lane.b32.xlu1 %v3895_v17, %s7734_s25  ;;  %v1604_v34 = vsel %vm1046_vm4, %v8996_v11, %v15115_v56  ;;  %v1605_v51 = vsel %vm1046_vm4, %v15115_v56, %v15116_v30  ;;  %v10168_v39 = vpop.permute.xlu1 %2692  ;;  %v15121_v17 = vld [vmem:[#allocation96_spill] sm:$0xff] }
 0x32f   : > { %15113 = vst [vmem:[#allocation94_spill] sm:$0xff] %v10150_v4  ;;  %v1376_v21 = vsel %vm1046_vm4, %v15111_v27, %v15117_v3  ;;  %v1606_v52 = vsel %vm1046_vm4, %v15116_v30, %v15118_v29  ;;  %3944 = vrot.lane.b32.xlu0 %v3894_v50, %s7734_s25  ;;  %v1404_v36 = vadd.f32 %v1372_v47, %v1170_v22  ;;  %15119 = vst [vmem:[#allocation97_spill] sm:$0xff] %v10168_v39  ;;  %v10178_v3 = vpop.permute.xlu0 %2690  ;;  %v15125_v30 = vld [vmem:[#allocation99_spill] sm:$0xff] }
 0x330   : > { %15114 = vst [vmem:[#allocation85_spill] sm:$0xff] %v10152_v61  ;;  %v1406_v37 = vadd.f32 %v1374_v18, %v1172_v43  ;;  %v1407_v7 = vadd.f32 %v1375_v62, %v1173_v10  ;;  %v3897_v11 = vmul.f32 %v9514_v57, %v9914_v63  ;;  %v1608_v42 = vsel %vm1046_vm4, %v15102_v6, %v15120_v25  ;;  %v15123_v43 = vld [vmem:[#allocation41_spill] sm:$0xff]  ;;  %v15124_v6 = vld [vmem:[#allocation106_spill] sm:$0xff] }
 0x331   : > { %v1609_v27 = vsel %vm1046_vm4, %v15120_v25, %v15121_v17  ;;  %15122 = vst [vmem:[#allocation90_spill] sm:$0xff] %v10178_v3  ;;  %v3896_v47 = vmul.f32 %v9486_v5, %v9920_v53  ;;  %v10185_v18 = vsel %vm2235_vm7, %v15123_v43, %v15047_v24  ;;  %v1636_v22 = vadd.f32 %v1604_v34, %v1402_v60  ;;  %v10195_v25 = vld [vmem:[#allocation2 + $0xc8] sm:$0xff]  ;;  %v15146_v61 = vld [vmem:[#allocation110_spill] sm:$0xff] }
 0x332   : > { %v1637_v10 = vadd.f32 %v1605_v51, %v1403_v58  ;;  %v1408_v62 = vadd.f32 %v1376_v21, %v1174_v9  ;;  %v1638_v50 = vadd.f32 %v1606_v52, %v1404_v36  ;;  %3950 = vrot.lane.b32.xlu1 %v3897_v11, %s7734_s25  ;;  %v1838_v56 = vsel %vm1046_vm4, %v15104_v54, %v15124_v6  ;;  %v10199_v58 = vld [vmem:[#allocation2 + $0xb8] sm:$0xff]  ;;  %v10207_v54 = vpop.permute.xlu1 %2696  ;;  %v15130_v52 = vld [vmem:[#allocation107_spill] sm:$0xff]  ;;  %v15131_v36 = vld [vmem:[#allocation108_spill] sm:$0xff] }
 0x333   : > { %v1839_v29 = vsel %vm1046_vm4, %v15124_v6, %v15125_v30  ;;  %3948 = vrot.lane.b32.xlu0 %v3896_v47, %s7734_s25  ;;  %v3899_v24 = vmul.f32 %v10195_v25, %v15039_v20  ;;  %15126 = vst [vmem:[#allocation98_spill] sm:$0xff] %v10199_v58  ;;  %v4048_v21 = vmul.f32 %v9900_v23, %v10185_v18  ;;  %15129 = vst [vmem:[#allocation101_spill] sm:$0xff] %v10207_v54  ;;  %v10221_v11 = vpop.permute.xlu0 %2694  ;;  %v10238_v6 = vld [vmem:[#allocation2 + $0x20] sm:$0xff] }
 0x334   : > { %v10203_v9 = vadd.f32 %v1608_v42, %v1406_v37  ;;  %v10205_v60 = vadd.f32 %v1609_v27, %v1407_v7  ;;  %v3898_v34 = vmul.f32 %v15042_v28, %v10199_v58  ;;  %v10213_v51 = vmul.f32 %v10056_v46, %v10185_v18  ;;  %15132 = vst [vmem:[#allocation93_spill] sm:$0xff] %v10221_v11  ;;  %v10261_v54 = vld [vmem:[#allocation2 + $0xe0] sm:$0xff] }
 0x335   : > { %v1610_v20 = vsel %vm1046_vm4, %v15121_v17, %v15130_v52  ;;  %v1840_v37 = vsel %vm1046_vm4, %v15125_v30, %v15131_v36  ;;  %v4047_v7 = vmul.f32 %v9906_v55, %v15123_v43  ;;  %v10227_v28 = vmul.f32 %v9967_v35, %v15123_v43  ;;  %v10234_v17 = vld [vmem:[#allocation2 + $0xd8] sm:$0xff]  ;;  %15135 = vst [vmem:[#allocation103_spill] sm:$0xff] %v10238_v6  ;;  %v10243_v52 = vld [vmem:[#allocation2 + $0xd0] sm:$0xff] }
 0x336   : > { %15127 = vst [vmem:[#allocation92_spill] sm:$0xff] %v10203_v9  ;;  %15128 = vst [vmem:[#allocation100_spill] sm:$0xff] %v10205_v60  ;;  %v10229_v42 = vadd.f32 %v1838_v56, %v1636_v22  ;;  %v10231_v27 = vadd.f32 %v1839_v29, %v1637_v10  ;;  %3954 = vrot.lane.b32.xlu1 %v3899_v24, %s7734_s25  ;;  %v3901_v47 = vmul.f32 %v10234_v17, %v9920_v53  ;;  %v10251_v29 = vld [vmem:[#allocation2 + $0x18] sm:$0xff] }
 0x337   : > { %v4050_v30 = vmul.f32 %v10238_v6, %v9939_v59  ;;  %3952 = vrot.lane.b32.xlu0 %v3898_v34, %s7734_s25  ;;  %v3900_v22 = vmul.f32 %v10243_v52, %v9896_v2  ;;  %v4110_v10 = vrot.slane %v4048_v21, 1  ;;  %v10249_v56 = vmul.f32 %v10110_v48, %v9939_v59  ;;  %15136 = vst [vmem:[#allocation104_spill] sm:$0xff] %v10251_v29  ;;  %v10259_v34 = vpop.permute.xlu1 %2700  ;;  %v10265_v21 = vld [vmem:[#allocation2 + $0x68] sm:$0xf]  ;;  %v10269_v11 = vpop.permute.xlu0 %2698 }
 0x338   : > { %15133 = vst [vmem:[#allocation102_spill] sm:$0xff] %v10229_v42  ;;  %15134 = vst [vmem:[#allocation95_spill] sm:$0xff] %v10231_v27  ;;  %v4049_v53 = vmul.f32 %v10251_v29, %v9934_v26  ;;  %v10255_v24 = vadd.f32 %v1610_v20, %v1408_v62  ;;  %v10257_v36 = vadd.f32 %v1840_v37, %v1638_v50  ;;  %v4111_v3 = vrot.slane %v10213_v51, 1  ;;  %v10275_v37 = vld [vmem:[#allocation2 + $0x88] sm:$0xf] }
 0x339   : > { %15139 = vst [vmem:[#allocation41_spill] sm:$0xff] %v10259_v34  ;;  %v3902_v2 = vmul.f32 %v10261_v54, %v9914_v63  ;;  %15140 = vst [vmem:[#allocation106_spill] sm:$0xff] %v10265_v21  ;;  %v4057_v39 = vmul.f32 %v10265_v21, %v15123_v43  ;;  %v4107_v62 = vrot.slane %v4047_v7, 1  ;;  %v4108_v50 = vrot.slane %v10227_v28, 1  ;;  %v15144_v7 = vld [vmem:[#allocation109_spill] sm:$0xff] }
 0x33a   : > { %15137 = vst [vmem:[#allocation105_spill] sm:$0xff] %v10255_v24  ;;  %15138 = vst [vmem:[#allocation96_spill] sm:$0xff] %v10257_v36  ;;  %v4054_v20 = vmul.f32 %v10041_v44, %v9934_v26  ;;  %3958 = vrot.lane.b32.xlu1 %v3901_v47, %s7734_s25  ;;  %v4116_v63 = vrot.slane %v4050_v30, 1  ;;  %v4051_v34 = vmul.f32 %v15048_v1, %v9971_v15  ;;  %v15145_v28 = vld [vmem:[#allocation81_spill] sm:$0xff]  ;;  %v4113_v42 = vrot.slane %v4049_v53, 1 }
 0x33b   : > { %15141 = vst [vmem:[#allocation99_spill] sm:$0xff] %v10269_v11  ;;  %15142 = vst [vmem:[#allocation107_spill] sm:$0xff] %v10275_v37  ;;  %v4056_v36 = vmul.f32 %v9733_v49, %v15048_v1  ;;  %v10282_v11 = vld [vmem:[#allocation2 + $0x78] sm:$0xf]  ;;  %v1143_v27 = vsel %vm1046_vm4, %v15145_v28, %v15144_v7  ;;  %3956 = vrot.lane.b32.xlu0 %v3900_v22, %s7734_s25  ;;  %v4112_v47 = vsel %vm1278_vm0, %v4110_v10, %v4111_v3  ;;  %v10295_v60 = vpop.permute.xlu1 %2897  ;;  %v10304_v10 = vpop.permute.xlu0 %2895 }
 0x33c   : > { %15143 = vst [vmem:[#allocation108_spill] sm:$0xff] %v10282_v11  ;;  %v4059_v51 = vmul.f32 %v10282_v11, %v9934_v26  ;;  %v1144_v24 = vsel %vm1046_vm4, %v15144_v7, %v15146_v61  ;;  %15147 = vst [vmem:[#allocation109_spill] sm:$0xff] %v10295_v60  ;;  %v4122_v9 = vrot.slane %v4057_v39, 1  ;;  %v4058_v4 = vmul.f32 %v9439_v45, %v10185_v18  ;;  %v15148_v11 = vld [vmem:[#allocation27_spill] sm:$0xff] }
 0x33d   : > { %v4061_v28 = vmul.f32 %v15048_v1, %v10275_v37  ;;  %v1145_v22 = vsel %vm1046_vm4, %v15146_v61, %v15148_v11  ;;  %15149 = vst [vmem:[#allocation81_spill] sm:$0xff] %v10304_v10  ;;  %v4109_v53 = vsel %vm1278_vm0, %v4107_v62, %v4108_v50  ;;  %v4114_v30 = vrot.slane %v4054_v20, 1  ;;  %v15150_v60 = vld [vmem:[#allocation111_spill] sm:$0xff]  ;;  %v10404_v10 = vld [vmem:[#allocation2 + $0x118] sm:$0xf] }
 0x33e   : > { %v4060_v7 = vmul.f32 %v9454_v19, %v9939_v59  ;;  %v1146_v39 = vsel %vm1046_vm4, %v15148_v11, %v15150_v60  ;;  %3962 = vrot.lane.b32.xlu1 %v10097_v16, %s7734_s25  ;;  %v4119_v45 = vrot.slane %v4051_v34, 1  ;;  %v10314_v37 = vrot.slane %v4056_v36, 1 }
 0x33f   : > { %v4126_v49 = vrot.slane %v4059_v51, 1  ;;  %v10317_v61 = vadd.f32 %v1143_v27, %v10008_v40  ;;  %v10320_v62 = vadd.f32 %v1144_v24, %v10031_v8  ;;  %3960 = vrot.lane.b32.xlu0 %v3902_v2, %s7734_s25  ;;  %v15151_v19 = vrot.slane %v10249_v56, 1  ;;  %v10330_v11 = vpop.permute.xlu1 %2901  ;;  %v10336_v51 = vpop.permute.xlu0 %2899 }
 0x340   : > { %v4115_v60 = vsel %vm1278_vm0, %v4113_v42, %v4114_v30  ;;  %v10328_v16 = vadd.f32 %v1145_v22, %v10034_v13  ;;  %15152 = vst [vmem:[#allocation110_spill] sm:$0xff] %v10330_v11  ;;  %v4123_v36 = vsel %vm1278_vm0, %v4108_v50, %v4122_v9  ;;  %v4124_v27 = vrot.slane %v4058_v4, 1  ;;  %15153 = vst [vmem:[#allocation27_spill] sm:$0xff] %v10336_v51  ;;  %v15154_v22 = vld [vmem:[#allocation113_spill] sm:$0xff] }
 0x341   : > { %v4118_v20 = vsel %vm1278_vm0, %v4116_v63, %v15151_v19  ;;  %v4130_v34 = vrot.slane %v4061_v28, 1  ;;  %v10334_v24 = vadd.f32 %v1146_v39, %v10037_v33  ;;  %v4128_v2 = vrot.slane %v4060_v7, 1  ;;  %v15155_v19 = vld [vmem:[#allocation80_spill] sm:$0xff] }
 0x342   : > { %v4063_v63 = vmul.f32 %v9492_v38, %v10185_v18  ;;  %v10342_v42 = vmul.f32 %v10243_v52, %v10185_v18  ;;  %v1147_v11 = vsel %vm1046_vm4, %v15155_v19, %v15154_v22  ;;  %4159 = vrot.lane.b32.xlu1 %v4112_v47, %s7734_s25  ;;  %v4121_v4 = vsel %vm1278_vm0, %v4119_v45, %v10314_v37  ;;  %v15156_v28 = vld [vmem:[#allocation112_spill] sm:$0xff] }
 0x343   : > { %v4127_v9 = vsel %vm1278_vm0, %v4114_v30, %v4126_v49  ;;  %v4062_v50 = vmul.f32 %v9468_v12, %v15123_v43  ;;  %v1148_v38 = vsel %vm1046_vm4, %v15154_v22, %v15156_v28  ;;  %4157 = vrot.lane.b32.xlu0 %v4109_v53, %s7734_s25  ;;  %v4067_v7 = vmul.f32 %v10195_v25, %v15123_v43  ;;  %v10365_v49 = vpop.permute.xlu1 %2905  ;;  %v10377_v22 = vpop.permute.xlu0 %2903 }
 0x344   : > { %v4065_v47 = vmul.f32 %v9514_v57, %v9939_v59  ;;  %v10363_v39 = vmul.f32 %v10261_v54, %v9939_v59  ;;  %15157 = vst [vmem:[#allocation111_spill] sm:$0xff] %v10365_v49  ;;  %v4125_v12 = vsel %vm1278_vm0, %v4111_v3, %v4124_v27  ;;  %v10370_v30 = vsel %vm1278_vm0, %v10314_v37, %v4130_v34  ;;  %v15159_v34 = vld [vmem:[#allocation115_spill] sm:$0xff] }
 0x345   : > { %v4064_v53 = vmul.f32 %v9486_v5, %v9934_v26  ;;  %v4069_v45 = vmul.f32 %v10234_v17, %v9934_v26  ;;  %v1179_v57 = vadd.f32 %v1147_v11, %v10008_v40  ;;  %15158 = vst [vmem:[#allocation113_spill] sm:$0xff] %v10377_v22  ;;  %v4135_v19 = vrot.slane %v4063_v63, 1  ;;  %v15160_v11 = vld [vmem:[#allocation114_spill] sm:$0xff]  ;;  %15162 = vst [vmem:[#allocation112_spill] sm:$0xff] %v10404_v10 }
 0x346   : > { %v4136_v51 = vrot.slane %v10342_v42, 1  ;;  %v4072_v3 = vmul.f32 %v9533_v14, %v15123_v43  ;;  %v10383_v27 = vadd.f32 %v1148_v38, %v10031_v8  ;;  %v1149_v5 = vsel %vm1046_vm4, %v15156_v28, %v15159_v34  ;;  %4163 = vrot.lane.b32.xlu1 %v4118_v20, %s7734_s25  ;;  %v10396_v42 = vld [vmem:[#allocation8 + $0x7] ss:$8 sm:$0xf] }
 0x347   : > { %v4132_v49 = vrot.slane %v4062_v50, 1  ;;  %v4066_v40 = vmul.f32 %v15048_v1, %v10199_v58  ;;  %v1150_v63 = vsel %vm1046_vm4, %v15159_v34, %v15160_v11  ;;  %4161 = vrot.lane.b32.xlu0 %v4115_v60, %s7734_s25  ;;  %v4133_v14 = vrot.slane %v4067_v7, 1  ;;  %v10398_v38 = vpop.permute.xlu1 %2909  ;;  %v10409_v7 = vpop.permute.xlu0 %2907  ;;  %v15165_v11 = vld [vmem:[#allocation116_spill] sm:$0xff] }
 0x348   : > { %v4141_v43 = vrot.slane %v4065_v47, 1  ;;  %15161 = vst [vmem:[#allocation80_spill] sm:$0xff] %v10398_v38  ;;  %v4138_v28 = vrot.slane %v4064_v53, 1  ;;  %v4139_v20 = vrot.slane %v4069_v45, 1  ;;  %v4074_v50 = vmul.f32 %v9550_v32, %v9934_v26  ;;  %15163 = vst [vmem:[#allocation115_spill] sm:$0xff] %v10409_v7  ;;  %v15166_v32 = vld [vmem:[#allocation84_spill] sm:$0xff] }
 0x349   : > { %v4073_v22 = vmul.f32 %v9527_v0, %v10185_v18  ;;  %v10407_v60 = vadd.f32 %v1149_v5, %v10034_v13  ;;  %v15164_v47 = vrot.slane %v10249_v56, 1  ;;  %v10415_v53 = vsel %vm1278_vm0, %v4135_v19, %v4136_v51  ;;  %v15167_v0 = vld [vmem:[#allocation117_spill] sm:$0xff]  ;;  %v15168_v18 = vld [vmem:[#allocation83_spill] sm:$0xff] }
 0x34a   : > { %v4147_v45 = vrot.slane %v4072_v3, 1  ;;  %v1377_v26 = vsel %vm1046_vm4, %v15166_v32, %v15165_v11  ;;  %v1381_v8 = vsel %vm1046_vm4, %v15168_v18, %v15167_v0  ;;  %4167 = vrot.lane.b32.xlu1 %v4123_v36, %s7734_s25  ;;  %v4144_v13 = vrot.slane %v4066_v40, 1  ;;  %v10433_v3 = vld [vmem:[#allocation8 + $0x2] ss:$8 sm:$0xf] }
 0x34b   : > { %v4129_v34 = vsel %vm1278_vm0, %v15164_v47, %v4128_v2  ;;  %v10426_v56 = vrot.slane %v10396_v42, %v15075_v41  ;;  %v10429_v2 = vadd.f32 %v1150_v63, %v10037_v33  ;;  %4165 = vrot.lane.b32.xlu0 %v4121_v4, %s7734_s25  ;;  %v4134_v19 = vsel %vm1278_vm0, %v4132_v49, %v4133_v14  ;;  %v10439_v40 = vpop.permute.xlu1 %2913  ;;  %v10450_v38 = vpop.permute.xlu0 %2911 }
 0x34c   : > { %v4076_v5 = vmul.f32 %v15048_v1, %v10404_v10  ;;  %v4075_v36 = vmul.f32 %v9544_v31, %v9939_v59  ;;  %15169 = vst [vmem:[#allocation114_spill] sm:$0xff] %v10439_v40  ;;  %v15170_v47 = vrot.slane %v10363_v39, 1  ;;  %v10447_v33 = vsel %vm1278_vm0, %v4138_v28, %v4139_v20  ;;  %15171 = vst [vmem:[#allocation116_spill] sm:$0xff] %v10450_v38  ;;  %v15173_v28 = vld [vmem:[#allocation19_spill] sm:$0xff]  ;;  %v15181_v38 = vld [vmem:[#allocation88_spill] sm:$0xff] }
 0x34d   : > { %v4151_v4 = vrot.slane %v4074_v50, 1  ;;  %v4149_v49 = vrot.slane %v4073_v22, 1  ;;  %v1409_v63 = vadd.f32 %v1377_v26, %v10317_v61  ;;  %v1413_v18 = vadd.f32 %v1381_v8, %v1179_v57  ;;  %v15172_v57 = vld [vmem:[#allocation22_spill] sm:$0xff] }
 0x34e   : > { %v10444_v32 = vsel %vm1278_vm0, %v4141_v43, %v15170_v47  ;;  %v10453_v1 = vsel %vm1278_vm0, %v4133_v14, %v4147_v45  ;;  %v3294_v31 = vmul.f32 %v9906_v55, %v10426_v56  ;;  %4171 = vrot.lane.b32.xlu1 %v4127_v9, %s7734_s25  ;;  %v10460_v59 = vsel %vm1278_vm0, %v4144_v13, %v10314_v37 }
 0x34f   : > { %v10464_v22 = vrot.slane %v10433_v3, %v15075_v41  ;;  %v10468_v61 = vmul.f32 %v9967_v35, %v10426_v56  ;;  %v10472_v14 = vrot.slane %v10396_v42, %v15172_v57  ;;  %4169 = vrot.lane.b32.xlu0 %v4125_v12, %s7734_s25  ;;  %v4155_v43 = vrot.slane %v4076_v5, 1  ;;  %v10483_v45 = vpop.permute.xlu1 %2917 }
 0x350   : > { %v4153_v9 = vrot.slane %v4075_v36, 1  ;;  %v10477_v8 = vrot.slane %v10433_v3, %v15172_v57  ;;  %v10481_v50 = vrot.slane %v10396_v42, %v15173_v28  ;;  %15174 = vst [vmem:[#allocation84_spill] sm:$0xff] %v10483_v45  ;;  %v10486_v26 = vsel %vm1278_vm0, %v4139_v20, %v4151_v4  ;;  %v10497_v36 = vpop.permute.xlu0 %2915  ;;  %v15179_v4 = vld [vmem:[#allocation49_spill] sm:$0xff]  ;;  %v15180_v45 = vld [vmem:[#allocation120_spill] sm:$0xff]  ;;  %v15184_v57 = vld [vmem:[#allocation87_spill] sm:$0xff] }
 0x351   : > { %v10489_v13 = vsel %vm1278_vm0, %v4136_v51, %v4149_v49  ;;  %v10493_v12 = vmul.f32 %v9906_v55, %v10464_v22  ;;  %v3295_v5 = vmul.f32 %v9900_v23, %v10472_v14  ;;  %15176 = vst [vmem:[#allocation83_spill] sm:$0xff] %v10497_v36  ;;  %v3342_v47 = vrot.slane %v3294_v31, 1  ;;  %v15178_v51 = vld [vmem:[#allocation48_spill] sm:$0xff] }
 0x352   : > { %v10501_v40 = vrot.slane %v10433_v3, %v15173_v28  ;;  %v10505_v20 = vmul.f32 %v9900_v23, %v10477_v8  ;;  %v10510_v49 = vsel %vm2235_vm7, %v15179_v4, %v15178_v51  ;;  %4175 = vrot.lane.b32.xlu1 %v10370_v30, %s7734_s25  ;;  %v3296_v31 = vmul.f32 %v10251_v29, %v10481_v50 }
 0x353   : > { %15175 = vst [vmem:[#allocation117_spill] sm:$0xff] %v10493_v12  ;;  %v10519_v36 = vmul.f32 %v10056_v46, %v10472_v14  ;;  %v1611_v51 = vsel %vm1046_vm4, %v15181_v38, %v15180_v45  ;;  %4173 = vrot.lane.b32.xlu0 %v4129_v34, %s7734_s25  ;;  %v10529_v30 = vsel %vm1278_vm0, %v10314_v37, %v4155_v43  ;;  %v15182_v12 = vrot.slane %v10363_v39, 1  ;;  %v10543_v38 = vpop.permute.xlu1 %2921 }
 0x354   : > { %15177 = vst [vmem:[#allocation204_spill] sm:$0xff] %v10505_v20  ;;  %v4281_v20 = vmul.f32 %v9900_v23, %v10510_v49  ;;  %v10538_v28 = vmul.f32 %v10041_v44, %v10481_v50  ;;  %v15183_v23 = vld [vmem:[#allocation121_spill] sm:$0xff]  ;;  %15185 = vst [vmem:[#allocation48_spill] sm:$0xff] %v10543_v38  ;;  %v3345_v34 = vrot.slane %v3295_v5, 1  ;;  %v10547_v37 = vmul.f32 %v10056_v46, %v10510_v49  ;;  %v10551_v43 = vpop.permute.xlu0 %2919 }
 0x355   : > { %v10534_v7 = vsel %vm1278_vm0, %v15182_v12, %v4153_v9  ;;  %v1615_v10 = vsel %vm1046_vm4, %v15184_v57, %v15183_v23  ;;  %v4280_v39 = vmul.f32 %v9906_v55, %v15179_v4  ;;  %15186 = vst [vmem:[#allocation49_spill] sm:$0xff] %v10551_v43  ;;  %v15187_v9 = vrot.slane %v10468_v61, 1  ;;  %v15190_v38 = vld [vmem:[#allocation21_spill] sm:$0xff] }
 0x356   : > { %v10560_v57 = vmul.f32 %v10251_v29, %v10501_v40  ;;  %v10564_v5 = vmul.f32 %v9967_v35, %v15179_v4  ;;  %v10568_v41 = vrot.slane %v10396_v42, %v15190_v38  ;;  %v10570_v55 = vadd.f32 %v1611_v51, %v1409_v63  ;;  %4179 = vrot.lane.b32.xlu1 %v10415_v53, %s7734_s25  ;;  %v15193_v42 = vld [vmem:[#allocation40_spill] sm:$0xff] }
 0x357   : > { %v10556_v12 = vsel %vm1278_vm0, %v3342_v47, %v15187_v9  ;;  %v14643_v47 = vrot.slane %v10519_v36, 1  ;;  %v3348_v9 = vrot.slane %v3296_v31, 1  ;;  %v10575_v43 = vadd.f32 %v1615_v10, %v1413_v18  ;;  %4177 = vrot.lane.b32.xlu0 %v4134_v19, %s7734_s25  ;;  %v10583_v51 = vpop.permute.xlu1 %2925 }
 0x358   : > { %15188 = vst [vmem:[#allocation120_spill] sm:$0xff] %v10556_v12  ;;  %15189 = vst [vmem:[#allocation88_spill] sm:$0xff] %v10560_v57  ;;  %v4343_v12 = vrot.slane %v4281_v20, 2  ;;  %v3297_v58 = vmul.f32 %v10238_v6, %v10568_v41  ;;  %v4283_v63 = vmul.f32 %v10238_v6, %v15193_v42  ;;  %v14645_v10 = vrot.slane %v10547_v37, 2  ;;  %v15196_v20 = vld [vmem:[#allocation124_spill] sm:$0xff]  ;;  %v10598_v57 = vpop.permute.xlu0 %2923 }
 0x359   : > { %15191 = vst [vmem:[#allocation121_spill] sm:$0xff] %v10570_v55  ;;  %15192 = vst [vmem:[#allocation87_spill] sm:$0xff] %v10575_v43  ;;  %v10588_v53 = vsel %vm1278_vm0, %v3345_v34, %v14643_v47  ;;  %v4340_v18 = vrot.slane %v4280_v39, 2  ;;  %v10593_v19 = vrot.slane %v10433_v3, %v15190_v38  ;;  %v1382_v31 = vsel %vm1046_vm4, %v15167_v0, %v15196_v20  ;;  %v15199_v39 = vld [vmem:[#allocation119_spill] sm:$0xff]  ;;  %v15203_v38 = vld [vmem:[#allocation125_spill] sm:$0xff] }
 0x35a   : > { %15194 = vst [vmem:[#allocation40_spill] sm:$0xff] %v10583_v51  ;;  %15195 = vst [vmem:[#allocation205_spill] sm:$0xff] %v10588_v53  ;;  %v10603_v43 = vmul.f32 %v10110_v48, %v10568_v41  ;;  %v10607_v34 = vmul.f32 %v10110_v48, %v15193_v42  ;;  %v1383_v3 = vsel %vm1046_vm4, %v15196_v20, %v15199_v39  ;;  %4183 = vrot.lane.b32.xlu1 %v10444_v32, %s7734_s25  ;;  %v15202_v53 = vld [vmem:[#allocation43_spill] sm:$0xff]  ;;  %v15204_v55 = vld [vmem:[#allocation118_spill] sm:$0xff] }
 0x35b   : > { %15197 = vst [vmem:[#allocation124_spill] sm:$0xff] %v10598_v57  ;;  %v15200_v0 = vrot.slane %v10538_v28, 1  ;;  %v10622_v51 = vsel %vm1512_vm1, %v4343_v12, %v14645_v10  ;;  %v4282_v57 = vmul.f32 %v10251_v29, %v15202_v53  ;;  %v1378_v20 = vsel %vm1046_vm4, %v15165_v11, %v15203_v38  ;;  %4181 = vrot.lane.b32.xlu0 %v10447_v33, %s7734_s25  ;;  %v10635_v12 = vpop.permute.xlu1 %2929  ;;  %v15208_v33 = vld [vmem:[#allocation23_spill] sm:$0xff] }
 0x35c   : > { %15198 = vst [vmem:[#allocation206_spill] sm:$0xff] %v10607_v34  ;;  %v1379_v32 = vsel %vm1046_vm4, %v15203_v38, %v15204_v55  ;;  %15205 = vst [vmem:[#allocation43_spill] sm:$0xff] %v10635_v12  ;;  %v15206_v10 = vrot.slane %v10564_v5, 2  ;;  %v10644_v11 = vmul.f32 %v10238_v6, %v10593_v19  ;;  %v10648_v38 = vmul.f32 %v10041_v44, %v15202_v53 }
 0x35d   : > { %v10617_v47 = vsel %vm1278_vm0, %v3348_v9, %v15200_v0  ;;  %v3351_v9 = vrot.slane %v3297_v58, 1  ;;  %v4349_v0 = vrot.slane %v4283_v63, 2  ;;  %v1384_v58 = vsel %vm1046_vm4, %v15199_v39, %v15208_v33 }
 0x35e   : > { %15201 = vst [vmem:[#allocation119_spill] sm:$0xff] %v10617_v47  ;;  %v1414_v47 = vadd.f32 %v1382_v31, %v10383_v27  ;;  %v10640_v29 = vsel %vm1512_vm1, %v4340_v18, %v15206_v10  ;;  %15207 = vst [vmem:[#allocation125_spill] sm:$0xff] %v10644_v11  ;;  %v15209_v27 = vld [vmem:[#allocation24_spill] sm:$0xff]  ;;  %v10656_v31 = vpop.permute.xlu0 %2927  ;;  %v14651_v10 = vrot.slane %v10603_v43, 1  ;;  %v14650_v18 = vrot.slane %v10607_v34, 2  ;;  %4187 = vrot.lane.b32.xlu1 %v10453_v1, %s7734_s25  ;;  %v15227_v34 = vld [vmem:[#allocation126_spill] sm:$0xff] }
 0x35f   : > { %v1380_v63 = vsel %vm1046_vm4, %v15204_v55, %v15209_v27  ;;  %15210 = vst [vmem:[#allocation118_spill] sm:$0xff] %v10656_v31  ;;  %v1415_v11 = vadd.f32 %v1383_v3, %v10407_v60  ;;  %v1410_v12 = vadd.f32 %v1378_v20, %v10320_v62  ;;  %v1411_v6 = vadd.f32 %v1379_v32, %v10328_v16  ;;  %v15215_v32 = vld [vmem:[#allocation25_spill] sm:$0xff]  ;;  %v15218_v27 = vld [vmem:[#allocation26_spill] sm:$0xff] }
 0x360   : > { %v4346_v39 = vrot.slane %v4282_v57, 2  ;;  %4185 = vrot.lane.b32.xlu0 %v10460_v59, %s7734_s25  ;;  %v10670_v55 = vsel %vm1278_vm0, %v3351_v9, %v14651_v10  ;;  %v10675_v60 = vsel %vm1512_vm1, %v4349_v0, %v14650_v18  ;;  %v10679_v62 = vmul.f32 %v9967_v35, %v10464_v22  ;;  %v10687_v57 = vpop.permute.xlu1 %2933  ;;  %v15216_v0 = vld [vmem:[#allocation123_spill] sm:$0xff]  ;;  %v15219_v18 = vld [vmem:[#allocation122_spill] sm:$0xff] }
 0x361   : > { %15211 = vst [vmem:[#allocation23_spill] sm:$0xff] %v10670_v55  ;;  %v10683_v16 = vmul.f32 %v10056_v46, %v10477_v8  ;;  %v1416_v1 = vadd.f32 %v1384_v58, %v10429_v2  ;;  %v1412_v59 = vadd.f32 %v1380_v63, %v10334_v24  ;;  %15214 = vst [vmem:[#allocation208_spill] sm:$0xff] %v10687_v57  ;;  %v14652_v3 = vrot.slane %v10648_v38, 2  ;;  %v10700_v2 = vld [vmem:[#allocation2 + $0x70] sm:$0xf]  ;;  %v15220_v10 = vld [vmem:[#allocation50_spill] sm:$0xff] }
 0x362   : > { %15212 = vst [vmem:[#allocation24_spill] sm:$0xff] %v10679_v62  ;;  %v3302_v20 = vmul.f32 %v10265_v21, %v10426_v56  ;;  %v1616_v9 = vsel %vm1046_vm4, %v15183_v23, %v15215_v32  ;;  %v1617_v46 = vsel %vm1046_vm4, %v15215_v32, %v15216_v0  ;;  %v10698_v33 = vpop.permute.xlu0 %2931  ;;  %v3303_v24 = vmul.f32 %v10700_v2, %v10472_v14  ;;  %v10731_v57 = vld [vmem:[#allocation2 + $0x80] sm:$0xf] }
 0x363   : > { %15213 = vst [vmem:[#allocation207_spill] sm:$0xff] %v10683_v16  ;;  %15217 = vst [vmem:[#allocation25_spill] sm:$0xff] %v10698_v33  ;;  %v4290_v58 = vmul.f32 %v10265_v21, %v15179_v4  ;;  %v1612_v63 = vsel %vm1046_vm4, %v15180_v45, %v15218_v27  ;;  %v1613_v23 = vsel %vm1046_vm4, %v15218_v27, %v15219_v18  ;;  %4191 = vrot.lane.b32.xlu1 %v10486_v26, %s7734_s25  ;;  %v15221_v45 = vld [vmem:[#allocation37_spill] sm:$0xff]  ;;  %v15223_v26 = vld [vmem:[#allocation108_spill] sm:$0xff] }
 0x364   : > { %v10717_v32 = vsel %vm1512_vm1, %v4346_v39, %v14652_v3  ;;  %v4284_v16 = vmul.f32 %v15220_v10, %v9971_v15  ;;  %4189 = vrot.lane.b32.xlu0 %v10489_v13, %s7734_s25  ;;  %v4289_v62 = vmul.f32 %v15221_v45, %v15220_v10  ;;  %v10727_v27 = vmul.f32 %v10041_v44, %v10501_v40  ;;  %v10739_v13 = vpop.permute.xlu1 %3130 }
 0x365   : > { %v3304_v55 = vmul.f32 %v15223_v26, %v10481_v50  ;;  %v3305_v39 = vmul.f32 %v10731_v57, %v10568_v41  ;;  %v10735_v3 = vadd.f32 %v1616_v9, %v1414_v47  ;;  %v10737_v15 = vadd.f32 %v1617_v46, %v1415_v11  ;;  %15224 = vst [vmem:[#allocation26_spill] sm:$0xff] %v10739_v13  ;;  %v15228_v11 = vld [vmem:[#allocation127_spill] sm:$0xff] }
 0x366   : > { %15222 = vst [vmem:[#allocation123_spill] sm:$0xff] %v10727_v27  ;;  %v3354_v33 = vrot.slane %v3302_v20, 1  ;;  %v10743_v45 = vmul.f32 %v10110_v48, %v10593_v19  ;;  %v10745_v44 = vadd.f32 %v1612_v63, %v1410_v12  ;;  %v10747_v27 = vadd.f32 %v1613_v23, %v1411_v6  ;;  %v10749_v31 = vpop.permute.xlu0 %3128 }
 0x367   : > { %15226 = vst [vmem:[#allocation50_spill] sm:$0xff] %v10749_v31  ;;  %v3356_v21 = vrot.slane %v3303_v24, 1  ;;  %v4355_v35 = vrot.slane %v4290_v58, 2  ;;  %v1618_v47 = vsel %vm1046_vm4, %v15216_v0, %v15227_v34  ;;  %v1614_v20 = vsel %vm1046_vm4, %v15219_v18, %v15228_v11  ;;  %4195 = vrot.lane.b32.xlu1 %v10529_v30, %s7734_s25  ;;  %v10774_v24 = vld [vmem:[#allocation2 + $0x98] sm:$0xff] }
 0x368   : > { %15225 = vst [vmem:[#allocation122_spill] sm:$0xff] %v10743_v45  ;;  %v4292_v48 = vmul.f32 %v15223_v26, %v15202_v53  ;;  %v4291_v6 = vmul.f32 %v10700_v2, %v10510_v49  ;;  %4193 = vrot.lane.b32.xlu0 %v10534_v7, %s7734_s25  ;;  %v4352_v12 = vrot.slane %v4284_v16, 2  ;;  %v10765_v9 = vrot.slane %v4289_v62, 2  ;;  %v10767_v46 = vpop.permute.xlu1 %3134  ;;  %15232 = vst [vmem:[#allocation126_spill] sm:$0xff] %v10774_v24  ;;  %v15233_v62 = vld [vmem:[#allocation107_spill] sm:$0xff]  ;;  %v15239_v45 = vld [vmem:[#allocation89_spill] sm:$0xff] }
 0x369   : > { %v3358_v34 = vrot.slane %v3304_v55, 1  ;;  %v3360_v0 = vrot.slane %v3305_v39, 1  ;;  %15229 = vst [vmem:[#allocation37_spill] sm:$0xff] %v10767_v46  ;;  %v15230_v18 = vrot.slane %v10468_v61, 1  ;;  %v3306_v58 = vmul.f32 %v10774_v24, %v10426_v56  ;;  %v15240_v46 = vld [vmem:[#allocation128_spill] sm:$0xff] }
 0x36a   : > { %v10780_v7 = vmul.f32 %v10195_v25, %v10426_v56  ;;  %v4294_v55 = vmul.f32 %v15220_v10, %v15233_v62  ;;  %v10784_v16 = vadd.f32 %v1618_v47, %v1416_v1  ;;  %v10786_v63 = vadd.f32 %v1614_v20, %v1412_v59  ;;  %v10788_v61 = vpop.permute.xlu0 %3132 }
 0x36b   : > { %v10772_v30 = vsel %vm1278_vm0, %v15230_v18, %v3354_v33  ;;  %15234 = vst [vmem:[#allocation127_spill] sm:$0xff] %v10788_v61  ;;  %v15235_v33 = vrot.slane %v10519_v36, 1  ;;  %v15237_v39 = vrot.slane %v10564_v5, 2  ;;  %v15238_v18 = vld [vmem:[#allocation129_spill] sm:$0xff]  ;;  %4392 = vrot.lane.b32.xlu1 %v10622_v51, %s7734_s25  ;;  %v4359_v59 = vrot.slane %v4292_v48, 2  ;;  %v15253_v48 = vld [vmem:[#allocation131_spill] sm:$0xff] }
 0x36c   : > { %15231 = vst [vmem:[#allocation108_spill] sm:$0xff] %v10772_v30  ;;  %v1841_v30 = vsel %vm1046_vm4, %v15239_v45, %v15238_v18  ;;  %v1842_v1 = vsel %vm1046_vm4, %v15238_v18, %v15240_v46  ;;  %v4357_v36 = vrot.slane %v4291_v6, 2  ;;  %4390 = vrot.lane.b32.xlu0 %v10640_v29, %s7734_s25  ;;  %v15243_v45 = vrot.slane %v10603_v43, 1  ;;  %v10824_v20 = vpop.permute.xlu1 %3138  ;;  %v15248_v43 = vld [vmem:[#allocation92_spill] sm:$0xff] }
 0x36d   : > { %v10793_v23 = vsel %vm1278_vm0, %v15235_v33, %v3356_v21  ;;  %v4356_v11 = vsel %vm1512_vm1, %v15237_v39, %v4355_v35  ;;  %v4354_v21 = vsel %vm1512_vm1, %v4352_v12, %v10765_v9  ;;  %v15241_v35 = vrot.slane %v10538_v28, 1  ;;  %15246 = vst [vmem:[#allocation209_spill] sm:$0xff] %v10824_v20  ;;  %v15247_v12 = vld [vmem:[#allocation94_spill] sm:$0xff] }
 0x36e   : > { %15236 = vst [vmem:[#allocation107_spill] sm:$0xff] %v10793_v23  ;;  %v10818_v47 = vsel %vm1278_vm0, %v15243_v45, %v3360_v0  ;;  %v10822_v51 = vmul.f32 %v10774_v24, %v10464_v22  ;;  %v3362_v29 = vrot.slane %v3306_v58, 1  ;;  %v4363_v6 = vrot.slane %v4294_v55, 2  ;;  %v10835_v0 = vpop.permute.xlu0 %3136  ;;  %v10837_v39 = vld [vmem:[#allocation2 + $0xa0] sm:$0xff]  ;;  %v10841_v58 = vld [vmem:[#allocation2 + $0xa8] sm:$0xff] }
 0x36f   : > { %v10813_v5 = vsel %vm1278_vm0, %v15241_v35, %v3358_v34  ;;  %15244 = vst [vmem:[#allocation89_spill] sm:$0xff] %v10818_v47  ;;  %v4293_v28 = vmul.f32 %v10731_v57, %v15193_v42  ;;  %v10830_v34 = vadd.f32 %v1841_v30, %v15247_v12  ;;  %v10833_v33 = vadd.f32 %v1842_v1, %v15248_v43  ;;  %v15254_v47 = vld [vmem:[#allocation130_spill] sm:$0xff] }
 0x370   : > { %15242 = vst [vmem:[#allocation129_spill] sm:$0xff] %v10813_v5  ;;  %15245 = vst [vmem:[#allocation128_spill] sm:$0xff] %v10822_v51  ;;  %v3307_v18 = vmul.f32 %v10837_v39, %v10472_v14  ;;  %v3308_v55 = vmul.f32 %v10841_v58, %v10481_v50  ;;  %4396 = vrot.lane.b32.xlu1 %v10675_v60, %s7734_s25  ;;  %v15251_v30 = vrot.slane %v10648_v38, 2  ;;  %v15252_v35 = vrot.slane %v10547_v37, 2 }
 0x371   : > { %15249 = vst [vmem:[#allocation94_spill] sm:$0xff] %v10835_v0  ;;  %15250 = vst [vmem:[#allocation92_spill] sm:$0xff] %v10841_v58  ;;  %v10855_v12 = vmul.f32 %v10243_v52, %v10472_v14  ;;  %v10859_v43 = vmul.f32 %v10234_v17, %v10481_v50  ;;  %v1843_v60 = vsel %vm1046_vm4, %v15240_v46, %v15253_v48  ;;  %4394 = vrot.lane.b32.xlu0 %v10717_v32, %s7734_s25 }
 0x372   : > { %v4360_v1 = vsel %vm1512_vm1, %v15251_v30, %v4359_v59  ;;  %v4358_v45 = vsel %vm1512_vm1, %v15252_v35, %v4357_v36  ;;  %v1844_v38 = vsel %vm1046_vm4, %v15253_v48, %v15254_v47  ;;  %v10871_v37 = vmul.f32 %v10837_v39, %v10477_v8  ;;  %v10877_v36 = vpop.permute.xlu1 %3142  ;;  %v10888_v35 = vpop.permute.xlu0 %3140 }
 0x373   : > { %v10875_v59 = vmul.f32 %v10841_v58, %v10501_v40  ;;  %15257 = vst [vmem:[#allocation210_spill] sm:$0xff] %v10877_v36  ;;  %v15258_v30 = vrot.slane %v10780_v7, 1  ;;  %v4364_v47 = vsel %vm1512_vm1, %v10765_v9, %v4363_v6  ;;  %v4361_v48 = vrot.slane %v4293_v28, 2  ;;  %15260 = vst [vmem:[#allocation212_spill] sm:$0xff] %v10888_v35  ;;  %v15265_v36 = vld [vmem:[#allocation105_spill] sm:$0xff]  ;;  %v10913_v35 = vld [vmem:[#allocation2 + $0xb0] sm:$0xff] }
 0x374   : > { %15255 = vst [vmem:[#allocation131_spill] sm:$0xff] %v10871_v37  ;;  %v4296_v32 = vmul.f32 %v10837_v39, %v10510_v49  ;;  %v3365_v37 = vrot.slane %v3307_v18, 1  ;;  %v3368_v5 = vrot.slane %v3308_v55, 1  ;;  %v4295_v51 = vmul.f32 %v10774_v24, %v15179_v4  ;;  %4400 = vrot.lane.b32.xlu1 %v4356_v11, %s7734_s25  ;;  %v15263_v55 = vld [vmem:[#allocation100_spill] sm:$0xff]  ;;  %v15269_v6 = vld [vmem:[#allocation206_spill] sm:$0xff] }
 0x375   : > { %15256 = vst [vmem:[#allocation130_spill] sm:$0xff] %v10875_v59  ;;  %v10882_v46 = vsel %vm1278_vm0, %v3362_v29, %v15258_v30  ;;  %v10892_v59 = vmul.f32 %v10243_v52, %v10510_v49  ;;  %v15261_v29 = vld [vmem:[#allocation132_spill] sm:$0xff]  ;;  %v15262_v30 = vld [vmem:[#allocation133_spill] sm:$0xff]  ;;  %v10904_v18 = vmul.f32 %v10195_v25, %v15179_v4  ;;  %v10907_v23 = vadd.f32 %v1843_v60, %v15263_v55 }
 0x376   : > { %15259 = vst [vmem:[#allocation211_spill] sm:$0xff] %v10882_v46  ;;  %v1845_v46 = vsel %vm1046_vm4, %v15262_v30, %v15261_v29  ;;  %v10910_v20 = vadd.f32 %v1844_v38, %v15265_v36  ;;  %4398 = vrot.lane.b32.xlu0 %v4354_v21, %s7734_s25  ;;  %15267 = vst [vmem:[#allocation100_spill] sm:$0xff] %v10913_v35  ;;  %v3309_v11 = vmul.f32 %v10913_v35, %v10568_v41  ;;  %v10921_v28 = vpop.permute.xlu1 %3146  ;;  %v15271_v36 = vld [vmem:[#allocation121_spill] sm:$0xff]  ;;  %v10935_v31 = vpop.permute.xlu0 %3144 }
 0x377   : > { %15264 = vst [vmem:[#allocation132_spill] sm:$0xff] %v10907_v23  ;;  %v10919_v30 = vmul.f32 %v10261_v54, %v10568_v41  ;;  %15268 = vst [vmem:[#allocation105_spill] sm:$0xff] %v10921_v28  ;;  %v15270_v0 = vrot.slane %v15269_v6, 2  ;;  %v4368_v55 = vrot.slane %v4296_v32, 2  ;;  %v4298_v38 = vmul.f32 %v10913_v35, %v15193_v42  ;;  %v10961_v23 = vld [vmem:[#allocation2 + $0xf8] sm:$0xf] }
 0x378   : > { %15266 = vst [vmem:[#allocation133_spill] sm:$0xff] %v10910_v20  ;;  %v10930_v21 = vmul.f32 %v10261_v54, %v15193_v42  ;;  %v10933_v61 = vadd.f32 %v1845_v46, %v15271_v36  ;;  %15273 = vst [vmem:[#allocation121_spill] sm:$0xff] %v10935_v31  ;;  %v4297_v6 = vmul.f32 %v10841_v58, %v15202_v53  ;;  %4404 = vrot.lane.b32.xlu1 %v4360_v1, %s7734_s25  ;;  %v15278_v31 = vld [vmem:[#allocation135_spill] sm:$0xff] }
 0x379   : > { %v4362_v60 = vsel %vm1512_vm1, %v15270_v0, %v4361_v48  ;;  %v10942_v0 = vmul.f32 %v10234_v17, %v15202_v53  ;;  %v15274_v48 = vrot.slane %v10855_v12, 1  ;;  %v15276_v46 = vrot.slane %v10859_v43, 1  ;;  %15279 = vst [vmem:[#allocation135_spill] sm:$0xff] %v10961_v23 }
 0x37a   : > { %15272 = vst [vmem:[#allocation206_spill] sm:$0xff] %v10933_v61  ;;  %v4365_v13 = vrot.slane %v4295_v51, 2  ;;  %v1846_v61 = vsel %vm1046_vm4, %v15261_v29, %v15278_v31  ;;  %4402 = vrot.lane.b32.xlu0 %v4358_v45, %s7734_s25  ;;  %v3371_v1 = vrot.slane %v3309_v11, 1  ;;  %v10968_v51 = vpop.permute.xlu1 %3150  ;;  %v4374_v29 = vrot.slane %v4298_v38, 2  ;;  %v10975_v11 = vpop.permute.xlu0 %3148  ;;  %v15285_v38 = vld [vmem:[#allocation137_spill] sm:$0xff] }
 0x37b   : > { %v10948_v32 = vsel %vm1278_vm0, %v3365_v37, %v15274_v48  ;;  %v10953_v36 = vsel %vm1278_vm0, %v3368_v5, %v15276_v46  ;;  %v3314_v37 = vmul.f32 %v10961_v23, %v10426_v56  ;;  %v15280_v48 = vld [vmem:[#allocation134_spill] sm:$0xff]  ;;  %v10972_v46 = vmul.f32 %v10913_v35, %v10593_v19  ;;  %15283 = vst [vmem:[#allocation216_spill] sm:$0xff] %v10975_v11 }
 0x37c   : > { %15275 = vst [vmem:[#allocation213_spill] sm:$0xff] %v10948_v32  ;;  %15277 = vst [vmem:[#allocation214_spill] sm:$0xff] %v10953_v36  ;;  %v1847_v5 = vsel %vm1046_vm4, %v15278_v31, %v15280_v48  ;;  %v15284_v20 = vrot.slane %v10892_v59, 2  ;;  %v4371_v56 = vrot.slane %v4297_v6, 2  ;;  %v10981_v32 = vld [vmem:[#allocation2 + $0x100] sm:$0xf]  ;;  %v1848_v45 = vsel %vm1046_vm4, %v15280_v48, %v15285_v38  ;;  %4408 = vrot.lane.b32.xlu1 %v4364_v47, %s7734_s25 }
 0x37d   : > { %15281 = vst [vmem:[#allocation134_spill] sm:$0xff] %v10968_v51  ;;  %15282 = vst [vmem:[#allocation215_spill] sm:$0xff] %v10972_v46  ;;  %v3315_v31 = vmul.f32 %v10981_v32, %v10472_v14  ;;  %v10986_v51 = vadd.f32 %v1846_v61, %v10745_v44  ;;  %v10997_v36 = vadd.f32 %v1847_v5, %v10747_v27  ;;  %v15287_v14 = vrot.slane %v10904_v18, 2 }
 0x37e   : > { %v4370_v28 = vsel %vm1512_vm1, %v4368_v55, %v15284_v20  ;;  %v4305_v20 = vmul.f32 %v10961_v23, %v15179_v4  ;;  %v15286_v55 = vld [vmem:[#allocation98_spill] sm:$0xff]  ;;  %4406 = vrot.lane.b32.xlu0 %v4362_v60, %s7734_s25  ;;  %v15288_v61 = vrot.slane %v10919_v30, 1  ;;  %v3374_v47 = vrot.slane %v3314_v37, 1  ;;  %v11008_v38 = vpop.permute.xlu1 %3154 }
 0x37f   : > { %v4299_v6 = vmul.f32 %v15220_v10, %v15286_v55  ;;  %v4367_v44 = vsel %vm1512_vm1, %v4365_v13, %v15287_v14  ;;  %15290 = vst [vmem:[#allocation98_spill] sm:$0xff] %v11008_v38  ;;  %v15291_v4 = vrot.slane %v10930_v21, 2  ;;  %v11015_v27 = vmul.f32 %v10195_v25, %v10464_v22  ;;  %v11021_v13 = vld [vmem:[#allocation2 + $0x108] sm:$0xf]  ;;  %v11033_v25 = vpop.permute.xlu0 %3152  ;;  %v15353_v38 = vld [vmem:[#allocation54_spill] sm:$0xff] }
 0x380   : > { %v11006_v48 = vsel %vm1278_vm0, %v3371_v1, %v15288_v61  ;;  %v11019_v60 = vmul.f32 %v10243_v52, %v10477_v8  ;;  %v3316_v1 = vmul.f32 %v11021_v13, %v10481_v50  ;;  %v11025_v37 = vld [vmem:[#allocation8 + $0x24] ss:$8 sm:$0xf]  ;;  %v11028_v5 = vadd.f32 %v1848_v45, %v10786_v63  ;;  %4412 = vrot.lane.b32.xlu1 %v4370_v28, %s7734_s25 }
 0x381   : > { %15289 = vst [vmem:[#allocation137_spill] sm:$0xff] %v11006_v48  ;;  %v4376_v55 = vsel %vm1512_vm1, %v4374_v29, %v15291_v4  ;;  %15292 = vst [vmem:[#allocation217_spill] sm:$0xff] %v11015_v27  ;;  %v15295_v14 = vld [vmem:[#allocation139_spill] sm:$0xff]  ;;  %v15296_v29 = vld [vmem:[#allocation136_spill] sm:$0xff]  ;;  %v15298_v22 = vrot.slane %v10942_v0, 2  ;;  %v3376_v8 = vrot.slane %v3315_v31, 1  ;;  %v11062_v28 = vmul.f32 %v10261_v54, %v10593_v19 }
 0x382   : > { %15293 = vst [vmem:[#allocation218_spill] sm:$0xff] %v11019_v60  ;;  %15294 = vst [vmem:[#allocation219_spill] sm:$0xff] %v11028_v5  ;;  %v1849_v61 = vsel %vm1046_vm4, %v15296_v29, %v15295_v14  ;;  %v11038_v4 = vld [vmem:[#allocation8 + $0x41] ss:$8 sm:$0xf]  ;;  %v4380_v63 = vrot.slane %v4305_v20, 2  ;;  %4410 = vrot.lane.b32.xlu0 %v4367_v44, %s7734_s25  ;;  %v11069_v44 = vpop.permute.xlu1 %3158 }
 0x383   : > { %15297 = vst [vmem:[#allocation139_spill] sm:$0xff] %v11033_v25  ;;  %v4373_v52 = vsel %vm1512_vm1, %v4371_v56, %v15298_v22  ;;  %v15299_v48 = vld [vmem:[#allocation138_spill] sm:$0xff]  ;;  %v4377_v45 = vrot.slane %v4299_v6, 2  ;;  %v11044_v60 = vld [vmem:[#allocation2 + $0x110] sm:$0xf]  ;;  %v15300_v56 = vrot.slane %v10780_v7, 1  ;;  %v11080_v54 = vpop.permute.xlu0 %3156 }
 0x384   : > { %v1850_v50 = vsel %vm1046_vm4, %v15295_v14, %v15299_v48  ;;  %v3317_v29 = vmul.f32 %v11044_v60, %v10568_v41  ;;  %v11048_v27 = vld [vmem:[#allocation8 + $0x46] ss:$8 sm:$0xf]  ;;  %v11058_v14 = vmul.f32 %v10234_v17, %v10501_v40  ;;  %15303 = vst [vmem:[#allocation220_spill] sm:$0xff] %v11062_v28  ;;  %v4307_v41 = vmul.f32 %v11021_v13, %v15202_v53 }
 0x385   : > { %v11054_v31 = vsel %vm1278_vm0, %v15300_v56, %v3374_v47  ;;  %v15304_v20 = vld [vmem:[#allocation87_spill] sm:$0xff]  ;;  %15306 = vst [vmem:[#allocation221_spill] sm:$0xff] %v11069_v44  ;;  %v3378_v7 = vrot.slane %v3316_v1, 1  ;;  %v4306_v47 = vmul.f32 %v10981_v32, %v10510_v49  ;;  %v15307_v22 = vld [vmem:[#allocation20_spill] sm:$0xff]  ;;  %v11078_v40 = vadd.f32 %v1850_v50, %v10735_v3  ;;  %15309 = vst [vmem:[#allocation223_spill] sm:$0xff] %v11080_v54 }
 0x386   : > { %15301 = vst [vmem:[#allocation136_spill] sm:$0xff] %v11054_v31  ;;  %15302 = vst [vmem:[#allocation138_spill] sm:$0xff] %v11058_v14  ;;  %v11067_v6 = vadd.f32 %v1849_v61, %v15304_v20  ;;  %v11075_v17 = vrot.slane %v11025_v37, %v15307_v22  ;;  %v15310_v53 = vrot.slane %v10855_v12, 1  ;;  %v11089_v1 = vrot.slane %v11038_v4, %v15307_v22  ;;  %v15315_v20 = vld [vmem:[#allocation141_spill] sm:$0xff]  ;;  %v15322_v31 = vld [vmem:[#allocation28_spill] sm:$0xff] }
 0x387   : > { %15308 = vst [vmem:[#allocation222_spill] sm:$0xff] %v11078_v40  ;;  %v11093_v49 = vrot.slane %v11048_v27, %v15307_v22  ;;  %4416 = vrot.lane.b32.xlu1 %v4376_v55, %s7734_s25  ;;  %v15313_v3 = vrot.slane %v10904_v18, 2  ;;  %v4379_v12 = vsel %vm1512_vm1, %v4377_v45, %v10765_v9  ;;  %v3380_v50 = vrot.slane %v3317_v29, 1  ;;  %4414 = vrot.lane.b32.xlu0 %v4373_v52, %s7734_s25  ;;  %v15316_v45 = vld [vmem:[#allocation140_spill] sm:$0xff]  ;;  %v15320_v52 = vld [vmem:[#allocation194_spill] sm:$0xff]  ;;  %v15323_v28 = vld [vmem:[#allocation29_spill] sm:$0xff]  ;;  %v11130_v46 = vpop.permute.xlu0 %3160 }
 0x388   : > { %15305 = vst [vmem:[#allocation87_spill] sm:$0xff] %v11067_v6  ;;  %v11085_v19 = vsel %vm1278_vm0, %v15310_v53, %v3376_v8  ;;  %v11101_v8 = vld [vmem:[#allocation2 + $0x8] sm:$0xff]  ;;  %v1851_v53 = vsel %vm1046_vm4, %v15299_v48, %v15315_v20  ;;  %v4384_v55 = vrot.slane %v4307_v41, 2  ;;  %v1852_v29 = vsel %vm1046_vm4, %v15315_v20, %v15316_v45  ;;  %15324 = vst [vmem:[#allocation28_spill] sm:$0xff] %v11130_v46  ;;  %v11132_v44 = vld [vmem:[#allocation2 + $0x38] sm:$0xff] }
 0x389   : > { %15311 = vst [vmem:[#allocation224_spill] sm:$0xff] %v11085_v19  ;;  %15312 = vst [vmem:[#allocation225_spill] sm:$0xff] %v11093_v49  ;;  %v4381_v61 = vsel %vm1512_vm1, %v15313_v3, %v4380_v63  ;;  %v3437_v56 = vmul.f32 %v11101_v8, %v11075_v17  ;;  %v3580_v18 = vmul.f32 %v11101_v8, %v11089_v1  ;;  %v11116_v3 = vpop.permute.xlu1 %3162  ;;  %v15318_v22 = vrot.slane %v10859_v43, 1  ;;  %v15334_v46 = vld [vmem:[#allocation85_spill] sm:$0xff]  ;;  %v15354_v25 = vld [vmem:[#allocation103_spill] sm:$0xff] }
 0x38a   : > { %15314 = vst [vmem:[#allocation226_spill] sm:$0xff] %v11101_v8  ;;  %v3723_v63 = vmul.f32 %v11101_v8, %v11093_v49  ;;  %15317 = vst [vmem:[#allocation141_spill] sm:$0xff] %v11116_v3  ;;  %v4382_v48 = vrot.slane %v4306_v47, 2  ;;  %v11125_v41 = vmul.f32 %v15320_v52, %v11075_v17  ;;  %v2071_v14 = vsel %vm1046_vm4, %v15323_v28, %v15322_v31 }
 0x38b   : > { %v11121_v19 = vsel %vm1278_vm0, %v15318_v22, %v3378_v7  ;;  %15325 = vst [vmem:[#allocation29_spill] sm:$0xff] %v11132_v44  ;;  %v11136_v20 = vmul.f32 %v11132_v44, %v11089_v1  ;;  %v11140_v43 = vmul.f32 %v11132_v44, %v11093_v49  ;;  %v15328_v7 = vld [vmem:[#allocation112_spill] sm:$0xff]  ;;  %v11145_v22 = vadd.f32 %v1851_v53, %v10737_v15 }
 0x38c   : > { %15319 = vst [vmem:[#allocation140_spill] sm:$0xff] %v11121_v19  ;;  %15321 = vst [vmem:[#allocation194_spill] sm:$0xff] %v11125_v41  ;;  %v4309_v47 = vmul.f32 %v15220_v10, %v15328_v7  ;;  %4420 = vrot.lane.b32.xlu1 %v4381_v61, %s7734_s25  ;;  %v15330_v28 = vrot.slane %v10919_v30, 1  ;;  %v3485_v52 = vrot.slane %v3437_v56, 2  ;;  %v4308_v19 = vmul.f32 %v11044_v60, %v15193_v42  ;;  %v15381_v49 = vld [vmem:[#allocation144_spill] sm:$0xff] }
 0x38d   : > { %15326 = vst [vmem:[#allocation227_spill] sm:$0xff] %v11136_v20  ;;  %15327 = vst [vmem:[#allocation228_spill] sm:$0xff] %v11140_v43  ;;  %v11156_v3 = vadd.f32 %v1852_v29, %v10784_v16  ;;  %4418 = vrot.lane.b32.xlu0 %v4379_v12, %s7734_s25  ;;  %v15333_v10 = vrot.slane %v10942_v0, 2  ;;  %v3628_v53 = vrot.slane %v3580_v18, 3  ;;  %v3771_v61 = vrot.slane %v3723_v63, 4  ;;  %v15338_v29 = vld [vmem:[#allocation51_spill] sm:$0xff]  ;;  %v11176_v0 = vpop.permute.xlu0 %3164 }
 0x38e   : > { %15329 = vst [vmem:[#allocation112_spill] sm:$0xff] %v11145_v22  ;;  %v11151_v45 = vsel %vm1278_vm0, %v15330_v28, %v3380_v50  ;;  %v11163_v30 = vadd.f32 %v2071_v14, %v15334_v46  ;;  %v11165_v50 = vpop.permute.xlu1 %3166  ;;  %v15337_v56 = vrot.slane %v10892_v59, 2  ;;  %v14668_v16 = vrot.slane %v11125_v41, 2  ;;  %v15339_v28 = vld [vmem:[#allocation52_spill] sm:$0xff]  ;;  %15340 = vst [vmem:[#allocation51_spill] sm:$0xff] %v11176_v0  ;;  %v15350_v0 = vld [vmem:[#allocation19_spill] sm:$0xff] }
 0x38f   : > { %15331 = vst [vmem:[#allocation229_spill] sm:$0xff] %v11151_v45  ;;  %15332 = vst [vmem:[#allocation230_spill] sm:$0xff] %v11156_v3  ;;  %v4385_v15 = vsel %vm1512_vm1, %v15333_v10, %v4384_v55  ;;  %v11174_v12 = vsel %vm2235_vm7, %v15339_v28, %v15338_v29  ;;  %v14670_v55 = vrot.slane %v11136_v20, 3  ;;  %v4388_v14 = vrot.slane %v4309_v47, 2  ;;  %v11180_v18 = vld [vmem:[#allocation2 + $0x10] sm:$0xff]  ;;  %v15342_v10 = vld [vmem:[#allocation22_spill] sm:$0xff] }
 0x390   : > { %15335 = vst [vmem:[#allocation85_spill] sm:$0xff] %v11163_v30  ;;  %15336 = vst [vmem:[#allocation231_spill] sm:$0xff] %v11165_v50  ;;  %v4383_v42 = vsel %vm1512_vm1, %v15337_v56, %v4382_v48  ;;  %v4514_v59 = vmul.f32 %v11180_v18, %v11174_v12  ;;  %4424 = vrot.lane.b32.xlu1 %v4385_v15, %s7734_s25  ;;  %v11188_v63 = vsel %vm1512_vm1, %v3485_v52, %v14668_v16  ;;  %v15343_v29 = vld [vmem:[#allocation31_spill] sm:$0xff]  ;;  %v11210_v16 = vld [vmem:[#allocation2 + $0x40] sm:$0xff] }
 0x391   : > { %15341 = vst [vmem:[#allocation52_spill] sm:$0xff] %v11188_v63  ;;  %v4386_v48 = vrot.slane %v4308_v19, 2  ;;  %v11192_v56 = vrot.slane %v11025_v37, %v15342_v10  ;;  %v4513_v47 = vmul.f32 %v11101_v8, %v15339_v28  ;;  %v2072_v46 = vsel %vm1046_vm4, %v15322_v31, %v15343_v29  ;;  %4422 = vrot.lane.b32.xlu0 %v4383_v42, %s7734_s25  ;;  %v15348_v50 = vld [vmem:[#allocation30_spill] sm:$0xff]  ;;  %v15359_v22 = vld [vmem:[#allocation104_spill] sm:$0xff]  ;;  %v15368_v20 = vld [vmem:[#allocation53_spill] sm:$0xff] }
 0x392   : > { %v11203_v15 = vsel %vm1746_vm2, %v3628_v53, %v14670_v55  ;;  %v15345_v19 = vrot.slane %v11140_v43, 4  ;;  %15347 = vst [vmem:[#allocation233_spill] sm:$0xff] %v11210_v16  ;;  %v11214_v45 = vmul.f32 %v11210_v16, %v11174_v12  ;;  %v2073_v31 = vsel %vm1046_vm4, %v15343_v29, %v15348_v50  ;;  %v11219_v42 = vpop.permute.xlu1 %3926  ;;  %v11233_v55 = vpop.permute.xlu0 %3924  ;;  %v15358_v3 = vld [vmem:[#allocation42_spill] sm:$0xff]  ;;  %v11291_v43 = vld [vmem:[#allocation2 + $0x28] sm:$0xff]  ;;  %v11295_v41 = vld [vmem:[#allocation2 + $0x30] sm:$0xff] }
 0x393   : > { %15344 = vst [vmem:[#allocation31_spill] sm:$0xff] %v11203_v15  ;;  %15349 = vst [vmem:[#allocation30_spill] sm:$0xff] %v11219_v42  ;;  %v11223_v53 = vrot.slane %v11025_v37, %v15350_v0  ;;  %v4389_v54 = vsel %vm1512_vm1, %v10765_v9, %v4388_v14  ;;  %v3438_v29 = vmul.f32 %v11180_v18, %v11192_v56  ;;  %v4576_v42 = vrot.slane %v4514_v59, 3  ;;  %v15360_v14 = vld [vmem:[#allocation95_spill] sm:$0xff] }
 0x394   : > { %v11208_v52 = vsel %vm1980_vm5, %v3771_v61, %v15345_v19  ;;  %v11227_v61 = vrot.slane %v11038_v4, %v15342_v10  ;;  %v11231_v19 = vmul.f32 %v11132_v44, %v15339_v28  ;;  %15352 = vst [vmem:[#allocation235_spill] sm:$0xff] %v11233_v55  ;;  %v4516_v11 = vmul.f32 %v15354_v25, %v15353_v38 }
 0x395   : > { %15346 = vst [vmem:[#allocation232_spill] sm:$0xff] %v11208_v52  ;;  %15351 = vst [vmem:[#allocation234_spill] sm:$0xff] %v11223_v53  ;;  %v15355_v52 = vld [vmem:[#allocation102_spill] sm:$0xff]  ;;  %4428 = vrot.lane.b32.xlu1 %v4389_v54, %s7734_s25  ;;  %v15357_v63 = vrot.slane %v10930_v21, 2  ;;  %v4573_v55 = vrot.slane %v4513_v47, 3  ;;  %v4515_v9 = vmul.f32 %v15359_v22, %v15358_v3  ;;  %v11251_v40 = vadd.f32 %v2073_v31, %v15360_v14  ;;  %v11259_v54 = vld [vmem:[#allocation2 + $0x50] sm:$0xff] }
 0x396   : > { %v11242_v15 = vadd.f32 %v2072_v46, %v15355_v52  ;;  %v11256_v25 = vmul.f32 %v15359_v22, %v11223_v53  ;;  %v14681_v46 = vrot.slane %v11214_v45, 3  ;;  %15362 = vst [vmem:[#allocation102_spill] sm:$0xff] %v11259_v54  ;;  %v11263_v21 = vmul.f32 %v11259_v54, %v15353_v38  ;;  %v11265_v59 = vpop.permute.xlu1 %3930  ;;  %v11282_v14 = vpop.permute.xlu0 %3928  ;;  %15369 = vst [vmem:[#allocation53_spill] sm:$0xff] %v11295_v41 }
 0x397   : > { %v4387_v30 = vsel %vm1512_vm1, %v15357_v63, %v4386_v48  ;;  %15361 = vst [vmem:[#allocation103_spill] sm:$0xff] %v11251_v40  ;;  %15363 = vst [vmem:[#allocation42_spill] sm:$0xff] %v11265_v59  ;;  %v11269_v63 = vmul.f32 %v11210_v16, %v11192_v56  ;;  %v11271_v48 = vld [vmem:[#allocation2 + $0x48] sm:$0xff]  ;;  %v4574_v47 = vrot.slane %v11231_v19, 3  ;;  %v3488_v31 = vrot.slane %v3438_v29, 2 }
 0x398   : > { %15356 = vst [vmem:[#allocation54_spill] sm:$0xff] %v11242_v15  ;;  %4426 = vrot.lane.b32.xlu0 %v4387_v30, %s7734_s25  ;;  %15364 = vst [vmem:[#allocation104_spill] sm:$0xff] %v11271_v48  ;;  %v11275_v30 = vmul.f32 %v11271_v48, %v11223_v53  ;;  %v11280_v52 = vmul.f32 %v11271_v48, %v15358_v3  ;;  %v4578_v59 = vsel %vm1746_vm2, %v4576_v42, %v14681_v46  ;;  %v15366_v15 = vld [vmem:[#allocation106_spill] sm:$0xff] }
 0x399   : > { %15365 = vst [vmem:[#allocation95_spill] sm:$0xff] %v11282_v14  ;;  %v4582_v40 = vrot.slane %v4516_v11, 3  ;;  %v4523_v6 = vmul.f32 %v15366_v15, %v15339_v28  ;;  %4625 = vrot.lane.b32.xlu1 %v4578_v59, %s7734_s25  ;;  %v4575_v53 = vsel %vm1746_vm2, %v4573_v55, %v4574_v47  ;;  %v4579_v19 = vrot.slane %v4515_v9, 3  ;;  %15367 = vst [vmem:[#allocation106_spill] sm:$0xff] %v11291_v43  ;;  %v15370_v9 = vld [vmem:[#allocation143_spill] sm:$0xff] }
 0x39a   : > { %v4517_v29 = vmul.f32 %v11291_v43, %v15368_v20  ;;  %v4522_v14 = vmul.f32 %v11295_v41, %v15368_v20  ;;  %v3491_v11 = vrot.slane %v11256_v25, 2  ;;  %v11302_v15 = vrot.slane %v11038_v4, %v15350_v0  ;;  %v11316_v41 = vpop.permute.xlu1 %3934 }
 0x39b   : > { %v3581_v55 = vmul.f32 %v11180_v18, %v11227_v61  ;;  %v14692_v42 = vrot.slane %v11263_v21, 3  ;;  %v2074_v59 = vsel %vm1046_vm4, %v15348_v50, %v15370_v9  ;;  %v11314_v25 = vmul.f32 %v11210_v16, %v11227_v61  ;;  %15371 = vst [vmem:[#allocation143_spill] sm:$0xff] %v11316_v41 }
 0x39c   : > { %4623 = vrot.lane.b32.xlu0 %v4575_v53, %s7734_s25  ;;  %v4580_v43 = vrot.slane %v11280_v52, 3  ;;  %v3582_v44 = vmul.f32 %v15359_v22, %v11302_v15  ;;  %v11321_v53 = vpop.permute.xlu0 %3932  ;;  %v4588_v50 = vrot.slane %v4523_v6, 3  ;;  %v4525_v9 = vmul.f32 %v15223_v26, %v15358_v3  ;;  %v15373_v52 = vld [vmem:[#allocation96_spill] sm:$0xff] }
 0x39d   : > { %15372 = vst [vmem:[#allocation236_spill] sm:$0xff] %v11321_v53  ;;  %v4584_v5 = vsel %vm1746_vm2, %v4582_v40, %v14692_v42  ;;  %v4585_v41 = vrot.slane %v4517_v29, 3  ;;  %v11330_v8 = vrot.slane %v4522_v14, 3  ;;  %v4524_v22 = vmul.f32 %v10700_v2, %v11174_v12  ;;  %v15379_v42 = vld [vmem:[#allocation142_spill] sm:$0xff] }
 0x39e   : > { %4629 = vrot.lane.b32.xlu1 %v4584_v5, %s7734_s25  ;;  %v4581_v46 = vsel %vm1746_vm2, %v4579_v19, %v4580_v43  ;;  %v11335_v53 = vadd.f32 %v2074_v59, %v15373_v52  ;;  %v11340_v6 = vmul.f32 %v11271_v48, %v11302_v15  ;;  %v3631_v26 = vrot.slane %v3581_v55, 3  ;;  %v11349_v19 = vpop.permute.xlu1 %3938  ;;  %v15378_v52 = vld [vmem:[#allocation145_spill] sm:$0xff] }
 0x39f   : > { %v15375_v5 = vrot.slane %v11269_v63, 2  ;;  %15377 = vst [vmem:[#allocation238_spill] sm:$0xff] %v11349_v19  ;;  %v4527_v29 = vmul.f32 %v15368_v20, %v15233_v62  ;;  %v4526_v59 = vmul.f32 %v10731_v57, %v15353_v38  ;;  %v2075_v55 = vsel %vm1046_vm4, %v15379_v42, %v15378_v52 }
 0x3a0   : > { %15374 = vst [vmem:[#allocation96_spill] sm:$0xff] %v11335_v53  ;;  %4627 = vrot.lane.b32.xlu0 %v4581_v46, %s7734_s25  ;;  %v11360_v46 = vrot.slane %v11048_v27, %v15342_v10  ;;  %v4592_v14 = vrot.slane %v4525_v9, 3  ;;  %v2076_v62 = vsel %vm1046_vm4, %v15378_v52, %v15381_v49  ;;  %v3634_v19 = vrot.slane %v3582_v44, 3 }
 0x3a1   : > { %v11346_v40 = vsel %vm1512_vm1, %v3488_v31, %v15375_v5  ;;  %v11362_v31 = vpop.permute.xlu0 %3936  ;;  %v4589_v5 = vsel %vm1746_vm2, %v4574_v47, %v4588_v50  ;;  %v4590_v42 = vrot.slane %v4524_v22, 3  ;;  %v15382_v53 = vrot.slane %v11275_v30, 2 }
 0x3a2   : > { %15376 = vst [vmem:[#allocation237_spill] sm:$0xff] %v11346_v40  ;;  %15380 = vst [vmem:[#allocation145_spill] sm:$0xff] %v11362_v31  ;;  %4633 = vrot.lane.b32.xlu1 %v4589_v5, %s7734_s25  ;;  %v4587_v40 = vsel %vm1746_vm2, %v4585_v41, %v11330_v8  ;;  %v11379_v47 = vrot.slane %v11048_v27, %v15350_v0  ;;  %v11383_v44 = vmul.f32 %v11180_v18, %v11360_v46  ;;  %v15396_v0 = vld [vmem:[#allocation21_spill] sm:$0xff] }
 0x3a3   : > { %v11374_v10 = vsel %vm1512_vm1, %v3491_v11, %v15382_v53  ;;  %v11387_v41 = vadd.f32 %v2075_v55, %v10830_v34  ;;  %v15385_v50 = vrot.slane %v11314_v25, 3  ;;  %v11394_v53 = vpop.permute.xlu1 %3942  ;;  %v4596_v9 = vrot.slane %v4527_v29, 3 }
 0x3a4   : > { %15383 = vst [vmem:[#allocation142_spill] sm:$0xff] %v11374_v10  ;;  %4631 = vrot.lane.b32.xlu0 %v4587_v40, %s7734_s25  ;;  %15387 = vst [vmem:[#allocation240_spill] sm:$0xff] %v11394_v53  ;;  %v4594_v22 = vrot.slane %v4526_v59, 3  ;;  %v11397_v52 = vadd.f32 %v2076_v62, %v10833_v33  ;;  %v4593_v31 = vsel %vm1746_vm2, %v4580_v43, %v4592_v14  ;;  %v11404_v40 = vld [vmem:[#allocation2 + $0xd0] sm:$0xff]  ;;  %v15391_v55 = vrot.slane %v11340_v6, 3  ;;  %v11421_v59 = vld [vmem:[#allocation2 + $0xc8] sm:$0xff] }
 0x3a5   : > { %15384 = vst [vmem:[#allocation144_spill] sm:$0xff] %v11387_v41  ;;  %v11392_v11 = vsel %vm1746_vm2, %v3631_v26, %v15385_v50  ;;  %v11399_v5 = vpop.permute.xlu0 %3940  ;;  %v4529_v34 = vmul.f32 %v10837_v39, %v11174_v12  ;;  %15390 = vst [vmem:[#allocation243_spill] sm:$0xff] %v11404_v40  ;;  %v11408_v26 = vmul.f32 %v11404_v40, %v11174_v12  ;;  %v15393_v33 = vrot.slane %v11214_v45, 3  ;;  %v11427_v50 = vld [vmem:[#allocation2 + $0x18] sm:$0xff]  ;;  %v11460_v41 = vld [vmem:[#allocation2 + $0xe0] sm:$0xff] }
 0x3a6   : > { %15386 = vst [vmem:[#allocation239_spill] sm:$0xff] %v11392_v11  ;;  %15388 = vst [vmem:[#allocation241_spill] sm:$0xff] %v11397_v52  ;;  %v11413_v29 = vsel %vm1746_vm2, %v3634_v19, %v15391_v55  ;;  %4637 = vrot.lane.b32.xlu1 %v4593_v31, %s7734_s25  ;;  %v4528_v14 = vmul.f32 %v10774_v24, %v15339_v28  ;;  %v11425_v62 = vmul.f32 %v11421_v59, %v15339_v28  ;;  %v15395_v55 = vld [vmem:[#allocation147_spill] sm:$0xff]  ;;  %v15402_v52 = vld [vmem:[#allocation146_spill] sm:$0xff] }
 0x3a7   : > { %15389 = vst [vmem:[#allocation242_spill] sm:$0xff] %v11399_v5  ;;  %15392 = vst [vmem:[#allocation244_spill] sm:$0xff] %v11413_v29  ;;  %v4591_v43 = vsel %vm1746_vm2, %v15393_v33, %v4590_v42  ;;  %v3725_v19 = vmul.f32 %v11427_v50, %v11379_v47  ;;  %v11433_v31 = vmul.f32 %v11210_v16, %v11360_v46  ;;  %v3774_v42 = vrot.slane %v11383_v44, 4  ;;  %v11448_v5 = vpop.permute.xlu1 %3946  ;;  %v15420_v24 = vld [vmem:[#allocation206_spill] sm:$0xff] }
 0x3a8   : > { %15394 = vst [vmem:[#allocation245_spill] sm:$0xff] %v11421_v59  ;;  %v11437_v45 = vmul.f32 %v11271_v48, %v11379_v47  ;;  %4635 = vrot.lane.b32.xlu0 %v4591_v43, %s7734_s25  ;;  %v2077_v33 = vsel %vm1046_vm4, %v15381_v49, %v15395_v55  ;;  %v11446_v53 = vrot.slane %v11025_v37, %v15396_v0  ;;  %15397 = vst [vmem:[#allocation147_spill] sm:$0xff] %v11448_v5 }
 0x3a9   : > { %v4597_v29 = vsel %vm1746_vm2, %v11330_v8, %v4596_v9  ;;  %v15398_v11 = vrot.slane %v11263_v21, 3  ;;  %v11455_v44 = vpop.permute.xlu0 %3944  ;;  %v4601_v43 = vrot.slane %v4529_v34, 3  ;;  %v4531_v49 = vmul.f32 %v10913_v35, %v15353_v38  ;;  %15400 = vst [vmem:[#allocation247_spill] sm:$0xff] %v11460_v41 }
 0x3aa   : > { %15399 = vst [vmem:[#allocation246_spill] sm:$0xff] %v11455_v44  ;;  %v11464_v37 = vmul.f32 %v11460_v41, %v15353_v38  ;;  %4641 = vrot.lane.b32.xlu1 %v4597_v29, %s7734_s25  ;;  %v4598_v9 = vrot.slane %v4528_v14, 3  ;;  %v4599_v21 = vrot.slane %v11425_v62, 3  ;;  %v2078_v44 = vsel %vm1046_vm4, %v15395_v55, %v15402_v52  ;;  %v15403_v14 = vld [vmem:[#allocation132_spill] sm:$0xff] }
 0x3ab   : > { %v4595_v10 = vsel %vm1746_vm2, %v15398_v11, %v4594_v22  ;;  %v4530_v11 = vmul.f32 %v10841_v58, %v15358_v3  ;;  %v11470_v22 = vld [vmem:[#allocation2 + $0xd8] sm:$0xff]  ;;  %v3777_v41 = vrot.slane %v3725_v19, 4  ;;  %v11482_v29 = vrot.slane %v11038_v4, %v15396_v0  ;;  %v11497_v19 = vpop.permute.xlu1 %3950 }
 0x3ac   : > { %15401 = vst [vmem:[#allocation248_spill] sm:$0xff] %v11470_v22  ;;  %v11474_v34 = vmul.f32 %v11470_v22, %v15358_v3  ;;  %4639 = vrot.lane.b32.xlu0 %v4595_v10, %s7734_s25  ;;  %v11486_v62 = vadd.f32 %v2077_v33, %v15403_v14  ;;  %v11489_v22 = vld [vmem:[#allocation2 + $0x20] sm:$0xff]  ;;  %v11495_v52 = vrot.slane %v11048_v27, %v15396_v0  ;;  %15405 = vst [vmem:[#allocation132_spill] sm:$0xff] %v11497_v19  ;;  %v11510_v19 = vld [vmem:[#allocation2 + $0xb8] sm:$0xff] }
 0x3ad   : > { %v3440_v35 = vmul.f32 %v11489_v22, %v11446_v53  ;;  %v11499_v4 = vpop.permute.xlu0 %3948  ;;  %v15407_v10 = vrot.slane %v11408_v26, 3  ;;  %v4607_v33 = vrot.slane %v4531_v49, 3  ;;  %v4538_v58 = vmul.f32 %v10961_v23, %v15339_v28  ;;  %15408 = vst [vmem:[#allocation250_spill] sm:$0xff] %v11510_v19 }
 0x3ae   : > { %15404 = vst [vmem:[#allocation146_spill] sm:$0xff] %v11486_v62  ;;  %15406 = vst [vmem:[#allocation249_spill] sm:$0xff] %v11499_v4  ;;  %v4600_v5 = vsel %vm1746_vm2, %v4598_v9, %v4599_v21  ;;  %v4604_v27 = vrot.slane %v4530_v11, 3  ;;  %v4605_v0 = vrot.slane %v11474_v34, 3  ;;  %v4532_v4 = vmul.f32 %v11510_v19, %v15368_v20  ;;  %v15409_v62 = vld [vmem:[#allocation133_spill] sm:$0xff]  ;;  %v15411_v11 = vld [vmem:[#allocation148_spill] sm:$0xff] }
 0x3af   : > { %v4603_v55 = vsel %vm1746_vm2, %v4601_v43, %v15407_v10  ;;  %v11515_v43 = vadd.f32 %v2078_v44, %v15409_v62  ;;  %v11519_v49 = vmul.f32 %v11259_v54, %v11446_v53  ;;  %v3583_v28 = vmul.f32 %v11489_v22, %v11482_v29  ;;  %v15412_v34 = vld [vmem:[#allocation149_spill] sm:$0xff] }
 0x3b0   : > { %4645 = vrot.lane.b32.xlu1 %v4603_v55, %s7734_s25  ;;  %v11525_v9 = vmul.f32 %v11259_v54, %v11482_v29  ;;  %4643 = vrot.lane.b32.xlu0 %v4600_v5, %s7734_s25  ;;  %v2079_v10 = vsel %vm1046_vm4, %v15412_v34, %v15411_v11  ;;  %v15413_v44 = vrot.slane %v11433_v31, 4  ;;  %v3726_v55 = vmul.f32 %v11489_v22, %v11495_v52 }
 0x3b1   : > { %15410 = vst [vmem:[#allocation133_spill] sm:$0xff] %v11515_v43  ;;  %v11540_v14 = vmul.f32 %v11259_v54, %v11495_v52  ;;  %v11542_v43 = vpop.permute.xlu1 %3954  ;;  %v3494_v19 = vrot.slane %v3440_v35, 2  ;;  %v11544_v5 = vpop.permute.xlu0 %3952  ;;  %v15417_v23 = vrot.slane %v11464_v37, 3  ;;  %v4613_v59 = vrot.slane %v4538_v58, 3 }
 0x3b2   : > { %v11534_v62 = vsel %vm1980_vm5, %v3774_v42, %v15413_v44  ;;  %15415 = vst [vmem:[#allocation149_spill] sm:$0xff] %v11542_v43  ;;  %15416 = vst [vmem:[#allocation251_spill] sm:$0xff] %v11544_v5  ;;  %v4540_v42 = vmul.f32 %v11021_v13, %v15358_v3  ;;  %v15418_v44 = vrot.slane %v11437_v45, 4  ;;  %v4606_v43 = vsel %vm1746_vm2, %v4604_v27, %v4605_v0  ;;  %v11585_v3 = vld [vmem:[#allocation2 + $0x68] sm:$0xf] }
 0x3b3   : > { %15414 = vst [vmem:[#allocation148_spill] sm:$0xff] %v11534_v62  ;;  %v4609_v34 = vsel %vm1746_vm2, %v4607_v33, %v15417_v23  ;;  %v4610_v35 = vrot.slane %v4532_v4, 3  ;;  %v4539_v5 = vmul.f32 %v10981_v32, %v11174_v12  ;;  %v11561_v40 = vadd.f32 %v2079_v10, %v15420_v24  ;;  %15426 = vst [vmem:[#allocation253_spill] sm:$0xff] %v11585_v3 }
 0x3b4   : > { %v11554_v62 = vsel %vm1980_vm5, %v3777_v41, %v15418_v44  ;;  %4649 = vrot.lane.b32.xlu1 %v4609_v34, %s7734_s25  ;;  %v14718_v23 = vrot.slane %v11519_v49, 2  ;;  %v3637_v58 = vrot.slane %v3583_v28, 3  ;;  %4647 = vrot.lane.b32.xlu0 %v4606_v43, %s7734_s25  ;;  %v15421_v41 = vld [vmem:[#allocation151_spill] sm:$0xff]  ;;  %v15422_v34 = vld [vmem:[#allocation150_spill] sm:$0xff]  ;;  %v3780_v27 = vrot.slane %v3726_v55, 4 }
 0x3b5   : > { %15419 = vst [vmem:[#allocation252_spill] sm:$0xff] %v11554_v62  ;;  %v2080_v33 = vsel %vm1046_vm4, %v15411_v11, %v15421_v41  ;;  %v2081_v4 = vsel %vm1046_vm4, %v15421_v41, %v15422_v34  ;;  %v11573_v24 = vpop.permute.xlu1 %3958  ;;  %v11580_v10 = vpop.permute.xlu0 %3956  ;;  %v4614_v43 = vsel %vm1746_vm2, %v4599_v21, %v4613_v59  ;;  %v4617_v44 = vrot.slane %v4540_v42, 3 }
 0x3b6   : > { %15423 = vst [vmem:[#allocation206_spill] sm:$0xff] %v11573_v24  ;;  %v11578_v28 = vsel %vm1512_vm1, %v3494_v19, %v14718_v23  ;;  %15425 = vst [vmem:[#allocation150_spill] sm:$0xff] %v11580_v10  ;;  %v4542_v11 = vmul.f32 %v15368_v20, %v15328_v7  ;;  %v3445_v55 = vmul.f32 %v11585_v3, %v11075_v17  ;;  %v4615_v19 = vrot.slane %v4539_v5, 3 }
 0x3b7   : > { %15424 = vst [vmem:[#allocation151_spill] sm:$0xff] %v11578_v28  ;;  %v4612_v41 = vsel %vm1746_vm2, %v4610_v35, %v11330_v8  ;;  %v4541_v23 = vmul.f32 %v11044_v60, %v15353_v38  ;;  %v11595_v59 = vadd.f32 %v2080_v33, %v10986_v51  ;;  %v11598_v21 = vadd.f32 %v2081_v4, %v10997_v36  ;;  %v15430_v38 = vld [vmem:[#allocation225_spill] sm:$0xff]  ;;  %v15432_v33 = vld [vmem:[#allocation55_spill] sm:$0xff]  ;;  %v15433_v4 = vld [vmem:[#allocation56_spill] sm:$0xff] }
 0x3b8   : > { %4653 = vrot.lane.b32.xlu1 %v4614_v43, %s7734_s25  ;;  %v15428_v20 = vrot.slane %v11525_v9, 3  ;;  %v3446_v42 = vmul.f32 %v10700_v2, %v11192_v56  ;;  %4651 = vrot.lane.b32.xlu0 %v4612_v41, %s7734_s25  ;;  %v3588_v5 = vmul.f32 %v11585_v3, %v11089_v1  ;;  %v3589_v51 = vmul.f32 %v10700_v2, %v11227_v61  ;;  %v15434_v43 = vld [vmem:[#allocation153_spill] sm:$0xff]  ;;  %v15437_v28 = vld [vmem:[#allocation226_spill] sm:$0xff] }
 0x3b9   : > { %15427 = vst [vmem:[#allocation254_spill] sm:$0xff] %v11598_v21  ;;  %v3731_v36 = vmul.f32 %v11585_v3, %v15430_v38  ;;  %v11614_v35 = vpop.permute.xlu1 %3962  ;;  %v2082_v41 = vsel %vm1046_vm4, %v15422_v34, %v15434_v43  ;;  %v4618_v12 = vsel %vm1746_vm2, %v4605_v0, %v4617_v44  ;;  %v4621_v24 = vrot.slane %v4542_v11, 3 }
 0x3ba   : > { %v11603_v7 = vsel %vm1746_vm2, %v3637_v58, %v15428_v20  ;;  %15431 = vst [vmem:[#allocation225_spill] sm:$0xff] %v11614_v35  ;;  %v11619_v58 = vsel %vm2235_vm7, %v15433_v4, %v15432_v33  ;;  %v11624_v20 = vpop.permute.xlu0 %3960  ;;  %v15436_v35 = vrot.slane %v11408_v26, 3  ;;  %v4619_v62 = vrot.slane %v4541_v23, 3 }
 0x3bb   : > { %15429 = vst [vmem:[#allocation255_spill] sm:$0xff] %v11603_v7  ;;  %15435 = vst [vmem:[#allocation55_spill] sm:$0xff] %v11624_v20  ;;  %v4747_v10 = vmul.f32 %v11180_v18, %v11619_v58  ;;  %v3497_v7 = vrot.slane %v3445_v55, 2  ;;  %v4746_v21 = vmul.f32 %v15437_v28, %v15433_v4  ;;  %v15438_v34 = vrot.slane %v11540_v14, 4 }
 0x3bc   : > { %4657 = vrot.lane.b32.xlu1 %v4618_v12, %s7734_s25  ;;  %v4616_v33 = vsel %vm1746_vm2, %v15436_v35, %v4615_v19  ;;  %v3499_v0 = vrot.slane %v3446_v42, 2  ;;  %v3732_v44 = vmul.f32 %v10700_v2, %v11360_v46  ;;  %v11645_v26 = vmul.f32 %v11210_v16, %v11619_v58  ;;  %v15440_v12 = vld [vmem:[#allocation219_spill] sm:$0xff] }
 0x3bd   : > { %v11638_v43 = vsel %vm1980_vm5, %v3780_v27, %v15438_v34  ;;  %4655 = vrot.lane.b32.xlu0 %v4616_v33, %s7734_s25  ;;  %v11648_v23 = vadd.f32 %v2082_v41, %v15440_v12  ;;  %v3640_v11 = vrot.slane %v3588_v5, 3  ;;  %v3642_v55 = vrot.slane %v3589_v51, 3  ;;  %v11650_v19 = vpop.permute.xlu1 %4159  ;;  %v15443_v27 = vld [vmem:[#allocation29_spill] sm:$0xff]  ;;  %v15446_v41 = vld [vmem:[#allocation194_spill] sm:$0xff] }
 0x3be   : > { %15439 = vst [vmem:[#allocation56_spill] sm:$0xff] %v11638_v43  ;;  %15442 = vst [vmem:[#allocation226_spill] sm:$0xff] %v11650_v19  ;;  %v11654_v35 = vmul.f32 %v15443_v27, %v15433_v4  ;;  %v3783_v42 = vrot.slane %v3731_v36, 4  ;;  %v11656_v34 = vpop.permute.xlu0 %4157  ;;  %v4622_v33 = vsel %vm1746_vm2, %v11330_v8, %v4621_v24  ;;  %v4809_v20 = vrot.slane %v4747_v10, 4  ;;  %v15445_v43 = vld [vmem:[#allocation195_spill] sm:$0xff] }
 0x3bf   : > { %15441 = vst [vmem:[#allocation153_spill] sm:$0xff] %v11648_v23  ;;  %15444 = vst [vmem:[#allocation219_spill] sm:$0xff] %v11656_v34  ;;  %v4749_v16 = vmul.f32 %v11489_v22, %v15445_v43  ;;  %v15447_v12 = vrot.slane %v15446_v41, 2  ;;  %v15449_v51 = vrot.slane %v11464_v37, 3  ;;  %v4806_v19 = vrot.slane %v4746_v21, 4  ;;  %v15450_v34 = vld [vmem:[#allocation58_spill] sm:$0xff] }
 0x3c0   : > { %4661 = vrot.lane.b32.xlu1 %v4622_v33, %s7734_s25  ;;  %v4748_v27 = vmul.f32 %v11427_v50, %v15450_v34  ;;  %v15451_v8 = vrot.slane %v11269_v63, 2  ;;  %v3785_v10 = vrot.slane %v3732_v44, 4  ;;  %v11682_v33 = vmul.f32 %v11259_v54, %v15445_v43  ;;  %v15453_v37 = vld [vmem:[#allocation227_spill] sm:$0xff] }
 0x3c1   : > { %v11665_v5 = vsel %vm1512_vm1, %v15447_v12, %v3497_v7  ;;  %v4620_v36 = vsel %vm1746_vm2, %v15449_v51, %v4619_v62  ;;  %v14726_v7 = vrot.slane %v11645_v26, 4  ;;  %v15454_v62 = vrot.slane %v15453_v37, 3  ;;  %v15459_v51 = vld [vmem:[#allocation228_spill] sm:$0xff]  ;;  %v11770_v23 = vld [vmem:[#allocation2 + $0x88] sm:$0xf] }
 0x3c2   : > { %15448 = vst [vmem:[#allocation195_spill] sm:$0xff] %v11665_v5  ;;  %v11676_v24 = vsel %vm1512_vm1, %v15451_v8, %v3499_v0  ;;  %4659 = vrot.lane.b32.xlu0 %v4620_v36, %s7734_s25  ;;  %v15456_v41 = vrot.slane %v11314_v25, 3  ;;  %v11694_v0 = vpop.permute.xlu1 %4163  ;;  %v4807_v44 = vrot.slane %v11654_v35, 4  ;;  %v11699_v12 = vmul.f32 %v11271_v48, %v15450_v34  ;;  %v15476_v48 = vld [vmem:[#allocation87_spill] sm:$0xff] }
 0x3c3   : > { %15452 = vst [vmem:[#allocation194_spill] sm:$0xff] %v11676_v24  ;;  %v11687_v21 = vsel %vm1746_vm2, %v15454_v62, %v3640_v11  ;;  %15458 = vst [vmem:[#allocation256_spill] sm:$0xff] %v11694_v0  ;;  %v15460_v36 = vrot.slane %v15459_v51, 4  ;;  %v11706_v11 = vpop.permute.xlu0 %4161  ;;  %v4811_v25 = vsel %vm1980_vm5, %v4809_v20, %v14726_v7  ;;  %v4756_v37 = vmul.f32 %v11585_v3, %v15433_v4  ;;  %v15464_v51 = vld [vmem:[#allocation106_spill] sm:$0xff]  ;;  %v11722_v20 = vld [vmem:[#allocation2 + $0x78] sm:$0xf] }
 0x3c4   : > { %15455 = vst [vmem:[#allocation58_spill] sm:$0xff] %v11687_v21  ;;  %v11692_v63 = vsel %vm1746_vm2, %v15456_v41, %v3642_v55  ;;  %15462 = vst [vmem:[#allocation257_spill] sm:$0xff] %v11706_v11  ;;  %v4815_v55 = vrot.slane %v4749_v16, 4  ;;  %4858 = vrot.lane.b32.xlu1 %v4811_v25, %s7734_s25  ;;  %v4808_v35 = vsel %vm1980_vm5, %v4806_v19, %v4807_v44  ;;  %v4812_v62 = vrot.slane %v4748_v27, 4  ;;  %v15463_v41 = vld [vmem:[#allocation57_spill] sm:$0xff]  ;;  %v15466_v11 = vld [vmem:[#allocation155_spill] sm:$0xff] }
 0x3c5   : > { %15457 = vst [vmem:[#allocation227_spill] sm:$0xff] %v11692_v63  ;;  %v11704_v8 = vsel %vm1980_vm5, %v15460_v36, %v3783_v42  ;;  %v4750_v0 = vmul.f32 %v15464_v51, %v15463_v41  ;;  %v15465_v42 = vld [vmem:[#allocation53_spill] sm:$0xff]  ;;  %15468 = vst [vmem:[#allocation57_spill] sm:$0xff] %v11722_v20  ;;  %v15469_v16 = vld [vmem:[#allocation234_spill] sm:$0xff]  ;;  %v3448_v25 = vmul.f32 %v10731_v57, %v11446_v53  ;;  %v15471_v24 = vrot.slane %v11433_v31, 4 }
 0x3c6   : > { %15461 = vst [vmem:[#allocation228_spill] sm:$0xff] %v11704_v8  ;;  %v4755_v36 = vmul.f32 %v15465_v42, %v15463_v41  ;;  %v15467_v8 = vld [vmem:[#allocation152_spill] sm:$0xff]  ;;  %v3447_v7 = vmul.f32 %v11722_v20, %v15469_v16  ;;  %4856 = vrot.lane.b32.xlu0 %v4808_v35, %s7734_s25  ;;  %v15470_v27 = vld [vmem:[#allocation154_spill] sm:$0xff]  ;;  %v3590_v5 = vmul.f32 %v11722_v20, %v11302_v15  ;;  %v11740_v3 = vpop.permute.xlu1 %4167  ;;  %v4813_v54 = vrot.slane %v11699_v12, 4 }
 0x3c7   : > { %v2083_v63 = vsel %vm1046_vm4, %v15467_v8, %v15466_v11  ;;  %v2084_v21 = vsel %vm1046_vm4, %v15466_v11, %v15470_v27  ;;  %v11736_v8 = vsel %vm1980_vm5, %v15471_v24, %v3785_v10  ;;  %15473 = vst [vmem:[#allocation152_spill] sm:$0xff] %v11740_v3  ;;  %v3591_v35 = vmul.f32 %v10731_v57, %v11482_v29  ;;  %v11745_v19 = vpop.permute.xlu0 %4165  ;;  %v15478_v51 = vld [vmem:[#allocation32_spill] sm:$0xff] }
 0x3c8   : > { %15472 = vst [vmem:[#allocation155_spill] sm:$0xff] %v11736_v8  ;;  %15474 = vst [vmem:[#allocation234_spill] sm:$0xff] %v11745_v19  ;;  %v15475_v42 = vrot.slane %v11682_v33, 4  ;;  %v4821_v31 = vrot.slane %v4756_v37, 4  ;;  %v4758_v24 = vmul.f32 %v11722_v20, %v15450_v34  ;;  %v4814_v10 = vsel %vm1980_vm5, %v4812_v62, %v4813_v54 }
 0x3c9   : > { %v4818_v3 = vrot.slane %v4750_v0, 4  ;;  %v11754_v8 = vrot.slane %v4755_v36, 4  ;;  %v4757_v12 = vmul.f32 %v10700_v2, %v11619_v58  ;;  %v11759_v19 = vadd.f32 %v2083_v63, %v15476_v48  ;;  %15481 = vst [vmem:[#allocation32_spill] sm:$0xff] %v11770_v23  ;;  %v15482_v63 = vld [vmem:[#allocation222_spill] sm:$0xff] }
 0x3ca   : > { %v4817_v11 = vsel %vm1980_vm5, %v4815_v55, %v15475_v42  ;;  %v2085_v55 = vsel %vm1046_vm4, %v15470_v27, %v15478_v51  ;;  %v3501_v37 = vrot.slane %v3447_v7, 2  ;;  %v3503_v42 = vrot.slane %v3448_v25, 2  ;;  %4860 = vrot.lane.b32.xlu0 %v4814_v10, %s7734_s25  ;;  %v11768_v36 = vpop.permute.xlu1 %4171  ;;  %v15485_v10 = vld [vmem:[#allocation112_spill] sm:$0xff] }
 0x3cb   : > { %4862 = vrot.lane.b32.xlu1 %v4817_v11, %s7734_s25  ;;  %15477 = vst [vmem:[#allocation154_spill] sm:$0xff] %v11759_v19  ;;  %v15479_v11 = vld [vmem:[#allocation156_spill] sm:$0xff]  ;;  %v3644_v62 = vrot.slane %v3590_v5, 3  ;;  %15480 = vst [vmem:[#allocation87_spill] sm:$0xff] %v11768_v36  ;;  %v4760_v2 = vmul.f32 %v11770_v23, %v15463_v41  ;;  %v4759_v48 = vmul.f32 %v10731_v57, %v15445_v43  ;;  %v11781_v27 = vpop.permute.xlu0 %4169  ;;  %v3646_v36 = vrot.slane %v3591_v35, 3 }
 0x3cc   : > { %v2086_v0 = vsel %vm1046_vm4, %v15478_v51, %v15479_v11  ;;  %v11777_v7 = vadd.f32 %v2084_v21, %v15482_v63  ;;  %v3733_v25 = vmul.f32 %v11722_v20, %v11379_v47  ;;  %15484 = vst [vmem:[#allocation222_spill] sm:$0xff] %v11781_v27  ;;  %v4822_v5 = vsel %vm1980_vm5, %v4807_v44, %v4821_v31  ;;  %v15487_v21 = vld [vmem:[#allocation230_spill] sm:$0xff] }
 0x3cd   : > { %v4825_v51 = vrot.slane %v4758_v24, 4  ;;  %v11785_v11 = vadd.f32 %v2085_v55, %v15485_v10  ;;  %v4820_v23 = vsel %vm1980_vm5, %v4818_v3, %v11754_v8  ;;  %v4823_v19 = vrot.slane %v4757_v12, 4  ;;  %v15493_v3 = vld [vmem:[#allocation33_spill] sm:$0xff]  ;;  %v15494_v24 = vld [vmem:[#allocation34_spill] sm:$0xff] }
 0x3ce   : > { %15483 = vst [vmem:[#allocation156_spill] sm:$0xff] %v11777_v7  ;;  %v11791_v63 = vadd.f32 %v2086_v0, %v15487_v21  ;;  %v15489_v20 = vrot.slane %v11275_v30, 2  ;;  %v15491_v44 = vrot.slane %v11519_v49, 2  ;;  %v3734_v35 = vmul.f32 %v10731_v57, %v11495_v52  ;;  %4864 = vrot.lane.b32.xlu0 %v4820_v23, %s7734_s25 }
 0x3cf   : > { %15486 = vst [vmem:[#allocation112_spill] sm:$0xff] %v11785_v11  ;;  %4866 = vrot.lane.b32.xlu1 %v4822_v5, %s7734_s25  ;;  %v2236_v12 = vsel %vm2235_vm7, %v15494_v24, %v15493_v3  ;;  %v15495_v55 = vrot.slane %v11340_v6, 3  ;;  %v4829_v49 = vrot.slane %v4760_v2, 4  ;;  %v11816_v0 = vpop.permute.xlu0 %4173  ;;  %v4826_v57 = vsel %vm1980_vm5, %v4813_v54, %v4825_v51  ;;  %v15499_v5 = vld [vmem:[#allocation243_spill] sm:$0xff]  ;;  %v15503_v54 = vld [vmem:[#allocation126_spill] sm:$0xff]  ;;  %v15504_v51 = vld [vmem:[#allocation245_spill] sm:$0xff] }
 0x3d0   : > { %15488 = vst [vmem:[#allocation230_spill] sm:$0xff] %v11791_v63  ;;  %v11796_v27 = vsel %vm1512_vm1, %v15489_v20, %v3501_v37  ;;  %v11801_v31 = vsel %vm1512_vm1, %v15491_v44, %v3503_v42  ;;  %v11814_v20 = vpop.permute.xlu1 %4175  ;;  %v4827_v37 = vrot.slane %v4759_v48, 4  ;;  %v3787_v42 = vrot.slane %v3733_v25, 4  ;;  %15498 = vst [vmem:[#allocation260_spill] sm:$0xff] %v11816_v0  ;;  %v15505_v44 = vld [vmem:[#allocation85_spill] sm:$0xff] }
 0x3d1   : > { %15490 = vst [vmem:[#allocation258_spill] sm:$0xff] %v11796_v27  ;;  %15492 = vst [vmem:[#allocation259_spill] sm:$0xff] %v11801_v31  ;;  %v11812_v30 = vsel %vm1746_vm2, %v15495_v55, %v3644_v62  ;;  %v4762_v23 = vmul.f32 %v10837_v39, %v11619_v58  ;;  %v11823_v10 = vmul.f32 %v15499_v5, %v11619_v58  ;;  %v15500_v6 = vrot.slane %v11525_v9, 3 }
 0x3d2   : > { %15496 = vst [vmem:[#allocation33_spill] sm:$0xff] %v11812_v30  ;;  %15497 = vst [vmem:[#allocation34_spill] sm:$0xff] %v11814_v20  ;;  %v15502_v2 = vrot.slane %v11645_v26, 4  ;;  %v4761_v25 = vmul.f32 %v15503_v54, %v15433_v4  ;;  %v11838_v21 = vmul.f32 %v15504_v51, %v15433_v4  ;;  %v11841_v24 = vadd.f32 %v2236_v12, %v15505_v44  ;;  %v15510_v20 = vld [vmem:[#allocation100_spill] sm:$0xff] }
 0x3d3   : > { %v11828_v62 = vsel %vm1746_vm2, %v15500_v6, %v3646_v36  ;;  %4870 = vrot.lane.b32.xlu1 %v4826_v57, %s7734_s25  ;;  %v3789_v9 = vrot.slane %v3734_v35, 4  ;;  %v3449_v36 = vmul.f32 %v15503_v54, %v11075_v17  ;;  %v11847_v55 = vmul.f32 %v15504_v51, %v11075_v17 }
 0x3d4   : > { %15501 = vst [vmem:[#allocation261_spill] sm:$0xff] %v11828_v62  ;;  %v4824_v48 = vsel %vm1980_vm5, %v15502_v2, %v4823_v19  ;;  %15506 = vst [vmem:[#allocation126_spill] sm:$0xff] %v11841_v24  ;;  %v3592_v26 = vmul.f32 %v15503_v54, %v11089_v1  ;;  %v11854_v19 = vmul.f32 %v15504_v51, %v11089_v1  ;;  %v11856_v57 = vpop.permute.xlu1 %4179  ;;  %v15508_v12 = vrot.slane %v11682_v33, 4  ;;  %v11863_v2 = vpop.permute.xlu0 %4177  ;;  %v15511_v62 = vld [vmem:[#allocation247_spill] sm:$0xff]  ;;  %v15512_v33 = vld [vmem:[#allocation92_spill] sm:$0xff] }
 0x3d5   : > { %4868 = vrot.lane.b32.xlu0 %v4824_v48, %s7734_s25  ;;  %15507 = vst [vmem:[#allocation245_spill] sm:$0xff] %v11856_v57  ;;  %v4830_v35 = vsel %vm1980_vm5, %v11754_v8, %v4829_v49  ;;  %15509 = vst [vmem:[#allocation85_spill] sm:$0xff] %v11863_v2  ;;  %v4834_v44 = vrot.slane %v4762_v23, 4  ;;  %v4764_v0 = vmul.f32 %v15510_v20, %v15445_v43  ;;  %v4831_v57 = vrot.slane %v4761_v25, 4  ;;  %v15514_v48 = vld [vmem:[#allocation157_spill] sm:$0xff]  ;;  %v15522_v24 = vld [vmem:[#allocation250_spill] sm:$0xff] }
 0x3d6   : > { %v4828_v6 = vsel %vm1980_vm5, %v15508_v12, %v4827_v37  ;;  %v11870_v30 = vmul.f32 %v15511_v62, %v15445_v43  ;;  %v4832_v49 = vrot.slane %v11838_v21, 4  ;;  %v4763_v37 = vmul.f32 %v15512_v33, %v15450_v34  ;;  %v15513_v12 = vld [vmem:[#allocation248_spill] sm:$0xff]  ;;  %v15517_v21 = vld [vmem:[#allocation35_spill] sm:$0xff] }
 0x3d7   : > { %4874 = vrot.lane.b32.xlu1 %v4830_v35, %s7734_s25  ;;  %v11878_v23 = vmul.f32 %v15513_v12, %v15450_v34  ;;  %v2237_v20 = vsel %vm2235_vm7, %v15493_v3, %v15514_v48  ;;  %v15515_v2 = vrot.slane %v11437_v45, 4  ;;  %v3505_v35 = vrot.slane %v3449_v36, 2 }
 0x3d8   : > { %v11890_v25 = vmul.f32 %v15503_v54, %v15430_v38  ;;  %v2238_v27 = vsel %vm2235_vm7, %v15514_v48, %v15517_v21  ;;  %v3648_v63 = vrot.slane %v3592_v26, 3  ;;  %v11898_v45 = vpop.permute.xlu1 %4183  ;;  %v15520_v36 = vrot.slane %v11823_v10, 4 }
 0x3d9   : > { %v11886_v31 = vsel %vm1980_vm5, %v15515_v2, %v3787_v42  ;;  %4872 = vrot.lane.b32.xlu0 %v4828_v6, %s7734_s25  ;;  %15518 = vst [vmem:[#allocation92_spill] sm:$0xff] %v11898_v45  ;;  %v11900_v42 = vpop.permute.xlu0 %4181  ;;  %v4840_v2 = vrot.slane %v4764_v0, 4  ;;  %v14740_v6 = vrot.slane %v11870_v30, 4  ;;  %v4833_v26 = vsel %vm1980_vm5, %v4831_v57, %v4832_v49  ;;  %v15527_v57 = vld [vmem:[#allocation159_spill] sm:$0xff] }
 0x3da   : > { %15516 = vst [vmem:[#allocation100_spill] sm:$0xff] %v11886_v31  ;;  %15519 = vst [vmem:[#allocation157_spill] sm:$0xff] %v11900_v42  ;;  %v4836_v54 = vsel %vm1980_vm5, %v4834_v44, %v15520_v36  ;;  %v15521_v31 = vld [vmem:[#allocation135_spill] sm:$0xff]  ;;  %v4837_v48 = vrot.slane %v4763_v37, 4  ;;  %v4838_v3 = vrot.slane %v11878_v23, 4  ;;  %v4765_v45 = vmul.f32 %v15522_v24, %v15463_v41  ;;  %v15523_v42 = vld [vmem:[#allocation54_spill] sm:$0xff] }
 0x3db   : > { %v4771_v11 = vmul.f32 %v15521_v31, %v15433_v4  ;;  %4878 = vrot.lane.b32.xlu1 %v4836_v54, %s7734_s25  ;;  %v11914_v7 = vadd.f32 %v2237_v20, %v15523_v42  ;;  %v15524_v44 = vld [vmem:[#allocation103_spill] sm:$0xff]  ;;  %v15525_v36 = vrot.slane %v11540_v14, 4  ;;  %v11926_v31 = vmul.f32 %v15504_v51, %v15430_v38 }
 0x3dc   : > { %v11917_v0 = vadd.f32 %v2238_v27, %v15524_v44  ;;  %v2239_v37 = vsel %vm2235_vm7, %v15517_v21, %v15527_v57  ;;  %v15528_v23 = vrot.slane %v11847_v55, 2  ;;  %v15530_v14 = vrot.slane %v11854_v19, 3  ;;  %v11943_v42 = vpop.permute.xlu1 %4187  ;;  %v15534_v57 = vld [vmem:[#allocation96_spill] sm:$0xff] }
 0x3dd   : > { %v11922_v4 = vsel %vm1980_vm5, %v15525_v36, %v3789_v9  ;;  %4876 = vrot.lane.b32.xlu0 %v4833_v26, %s7734_s25  ;;  %v3791_v20 = vrot.slane %v11890_v25, 4  ;;  %15532 = vst [vmem:[#allocation54_spill] sm:$0xff] %v11943_v42  ;;  %v3450_v54 = vmul.f32 %v10837_v39, %v11192_v56  ;;  %v11947_v26 = vpop.permute.xlu0 %4185  ;;  %v4842_v21 = vsel %vm1980_vm5, %v4840_v2, %v14740_v6  ;;  %v11973_v2 = vld [vmem:[#allocation2 + $0xa0] sm:$0xff]  ;;  %v11994_v6 = vld [vmem:[#allocation2 + $0x118] sm:$0xf] }
 0x3de   : > { %15526 = vst [vmem:[#allocation35_spill] sm:$0xff] %v11922_v4  ;;  %v11935_v27 = vsel %vm1512_vm1, %v3505_v35, %v15528_v23  ;;  %v11940_v9 = vsel %vm1746_vm2, %v3648_v63, %v15530_v14  ;;  %15533 = vst [vmem:[#allocation103_spill] sm:$0xff] %v11947_v26  ;;  %v4846_v35 = vrot.slane %v4771_v11, 4  ;;  %v4773_v44 = vmul.f32 %v11021_v13, %v15450_v34 }
 0x3df   : > { %15529 = vst [vmem:[#allocation135_spill] sm:$0xff] %v11935_v27  ;;  %15531 = vst [vmem:[#allocation250_spill] sm:$0xff] %v11940_v9  ;;  %v11956_v63 = vmul.f32 %v15499_v5, %v11192_v56  ;;  %4882 = vrot.lane.b32.xlu1 %v4842_v21, %s7734_s25  ;;  %v4839_v25 = vsel %vm1980_vm5, %v4837_v48, %v4838_v3  ;;  %v4843_v36 = vrot.slane %v4765_v45, 4  ;;  %v3508_v14 = vrot.slane %v3450_v54, 2  ;;  %v15547_v27 = vld [vmem:[#allocation144_spill] sm:$0xff] }
 0x3e0   : > { %v4772_v39 = vmul.f32 %v10981_v32, %v11619_v58  ;;  %v11963_v23 = vadd.f32 %v2239_v37, %v15534_v57  ;;  %v3451_v13 = vmul.f32 %v15512_v33, %v15469_v16  ;;  %v11970_v34 = vmul.f32 %v15513_v12, %v15469_v16  ;;  %15535 = vst [vmem:[#allocation159_spill] sm:$0xff] %v11973_v2  ;;  %v11977_v32 = vld [vmem:[#allocation2 + $0xa8] sm:$0xff]  ;;  %v11989_v37 = vpop.permute.xlu1 %4191 }
 0x3e1   : > { %4880 = vrot.lane.b32.xlu0 %v4839_v25, %s7734_s25  ;;  %v3593_v45 = vmul.f32 %v11973_v2, %v11227_v61  ;;  %v3594_v58 = vmul.f32 %v11977_v32, %v11302_v15  ;;  %v11983_v48 = vmul.f32 %v15499_v5, %v11227_v61  ;;  %v11987_v33 = vmul.f32 %v15513_v12, %v11302_v15  ;;  %v11991_v21 = vpop.permute.xlu0 %4189 }
 0x3e2   : > { %15536 = vst [vmem:[#allocation96_spill] sm:$0xff] %v11989_v37  ;;  %15537 = vst [vmem:[#allocation262_spill] sm:$0xff] %v11991_v21  ;;  %v4847_v25 = vsel %vm1980_vm5, %v4832_v49, %v4846_v35  ;;  %v4850_v57 = vrot.slane %v4773_v44, 4  ;;  %v4775_v11 = vmul.f32 %v11994_v6, %v15463_v41  ;;  %v4845_v26 = vsel %vm1980_vm5, %v4843_v36, %v11754_v8  ;;  %v15539_v37 = vld [vmem:[#allocation161_spill] sm:$0xff]  ;;  %v15540_v21 = vld [vmem:[#allocation158_spill] sm:$0xff] }
 0x3e3   : > { %15538 = vst [vmem:[#allocation263_spill] sm:$0xff] %v11994_v6  ;;  %4886 = vrot.lane.b32.xlu1 %v4847_v25, %s7734_s25  ;;  %v4848_v4 = vrot.slane %v4772_v39, 4  ;;  %v4774_v54 = vmul.f32 %v11044_v60, %v15445_v43  ;;  %v2240_v49 = vsel %vm2235_vm7, %v15540_v21, %v15539_v37  ;;  %v15541_v35 = vld [vmem:[#allocation160_spill] sm:$0xff]  ;;  %v3511_v41 = vrot.slane %v3451_v13, 2  ;;  %v12138_v6 = vld [vmem:[#allocation2 + $0x100] sm:$0xf] }
 0x3e4   : > { %v2241_v44 = vsel %vm2235_vm7, %v15539_v37, %v15541_v35  ;;  %v3651_v25 = vrot.slane %v3593_v45, 3  ;;  %v3654_v39 = vrot.slane %v3594_v58, 3  ;;  %v12014_v60 = vpop.permute.xlu1 %4195  ;;  %v3736_v43 = vmul.f32 %v11973_v2, %v11360_v46 }
 0x3e5   : > { %4884 = vrot.lane.b32.xlu0 %v4845_v26, %s7734_s25  ;;  %15542 = vst [vmem:[#allocation161_spill] sm:$0xff] %v12014_v60  ;;  %v12020_v21 = vmul.f32 %v15499_v5, %v11360_v46  ;;  %v12022_v13 = vpop.permute.xlu0 %4193  ;;  %v4851_v37 = vsel %vm1980_vm5, %v4838_v3, %v4850_v57  ;;  %v4854_v26 = vrot.slane %v4775_v11, 4  ;;  %v15544_v45 = vrot.slane %v11926_v31, 4  ;;  %v15548_v3 = vld [vmem:[#allocation241_spill] sm:$0xff] }
 0x3e6   : > { %15543 = vst [vmem:[#allocation158_spill] sm:$0xff] %v12022_v13  ;;  %v3737_v9 = vmul.f32 %v11977_v32, %v11379_v47  ;;  %v15546_v36 = vrot.slane %v11823_v10, 4  ;;  %v4852_v60 = vrot.slane %v4774_v54, 4  ;;  %v12037_v13 = vadd.f32 %v2240_v49, %v15547_v27  ;;  %v15551_v10 = vld [vmem:[#allocation163_spill] sm:$0xff]  ;;  %v15552_v27 = vld [vmem:[#allocation162_spill] sm:$0xff] }
 0x3e7   : > { %v12028_v58 = vsel %vm1980_vm5, %v3791_v20, %v15544_v45  ;;  %4890 = vrot.lane.b32.xlu1 %v4851_v37, %s7734_s25  ;;  %v12040_v11 = vadd.f32 %v2241_v44, %v15548_v3  ;;  %v15549_v57 = vrot.slane %v11956_v63, 2  ;;  %v12049_v45 = vmul.f32 %v15513_v12, %v11379_v47  ;;  %v15578_v12 = vld [vmem:[#allocation169_spill] sm:$0xff] }
 0x3e8   : > { %15545 = vst [vmem:[#allocation160_spill] sm:$0xff] %v12028_v58  ;;  %v4849_v42 = vsel %vm1980_vm5, %v15546_v36, %v4848_v4  ;;  %v2242_v4 = vsel %vm2235_vm7, %v15541_v35, %v15551_v10  ;;  %v2243_v54 = vsel %vm2235_vm7, %v15551_v10, %v15552_v27  ;;  %v15553_v49 = vrot.slane %v11970_v34, 2  ;;  %v12068_v37 = vpop.permute.xlu1 %4392 }
 0x3e9   : > { %v12045_v20 = vsel %vm1512_vm1, %v3508_v14, %v15549_v57  ;;  %4888 = vrot.lane.b32.xlu0 %v4849_v42, %s7734_s25  ;;  %v15555_v14 = vrot.slane %v11983_v48, 3  ;;  %15557 = vst [vmem:[#allocation162_spill] sm:$0xff] %v12068_v37  ;;  %v15558_v42 = vrot.slane %v11987_v33, 3  ;;  %v3794_v3 = vrot.slane %v3736_v43, 4  ;;  %v12076_v10 = vpop.permute.xlu0 %4390  ;;  %v15563_v57 = vld [vmem:[#allocation64_spill] sm:$0xff]  ;;  %v15566_v37 = vld [vmem:[#allocation133_spill] sm:$0xff] }
 0x3ea   : > { %15550 = vst [vmem:[#allocation144_spill] sm:$0xff] %v12045_v20  ;;  %v12061_v44 = vsel %vm1512_vm1, %v3511_v41, %v15553_v49  ;;  %15560 = vst [vmem:[#allocation265_spill] sm:$0xff] %v12076_v10  ;;  %v4855_v41 = vsel %vm1980_vm5, %v11754_v8, %v4854_v26  ;;  %v3797_v27 = vrot.slane %v3737_v9, 4  ;;  %v12080_v49 = vld [vmem:[#allocation2 + $0xb0] sm:$0xff]  ;;  %v12097_v9 = vmul.f32 %v15511_v62, %v11482_v29  ;;  %v15562_v26 = vld [vmem:[#allocation63_spill] sm:$0xff] }
 0x3eb   : > { %15554 = vst [vmem:[#allocation241_spill] sm:$0xff] %v12061_v44  ;;  %v12066_v36 = vsel %vm1746_vm2, %v3651_v25, %v15555_v14  ;;  %v12073_v35 = vsel %vm1746_vm2, %v3654_v39, %v15558_v42  ;;  %v3452_v25 = vmul.f32 %v12080_v49, %v11446_v53  ;;  %v12086_v14 = vmul.f32 %v15511_v62, %v11446_v53  ;;  %v15570_v44 = vld [vmem:[#allocation164_spill] sm:$0xff]  ;;  %v15575_v20 = vld [vmem:[#allocation166_spill] sm:$0xff] }
 0x3ec   : > { %15556 = vst [vmem:[#allocation163_spill] sm:$0xff] %v12066_v36  ;;  %15559 = vst [vmem:[#allocation264_spill] sm:$0xff] %v12073_v35  ;;  %4894 = vrot.lane.b32.xlu1 %v4855_v41, %s7734_s25  ;;  %v15561_v39 = vrot.slane %v11870_v30, 4  ;;  %v3595_v8 = vmul.f32 %v12080_v49, %v11482_v29  ;;  %v12103_v10 = vsel %vm1046_vm4, %v15563_v57, %v15562_v26  ;;  %v15564_v41 = vld [vmem:[#allocation146_spill] sm:$0xff]  ;;  %v12114_v42 = vpop.permute.xlu1 %4396  ;;  %v15567_v26 = vrot.slane %v12020_v21, 4 }
 0x3ed   : > { %v12106_v30 = vadd.f32 %v2242_v4, %v15564_v41  ;;  %15565 = vst [vmem:[#allocation63_spill] sm:$0xff] %v12114_v42  ;;  %v12119_v58 = vadd.f32 %v2243_v54, %v15566_v37  ;;  %v12126_v41 = vld [vmem:[#allocation2 + $0xf8] sm:$0xf]  ;;  %v12130_v36 = vpop.permute.xlu0 %4394  ;;  %v4979_v42 = vmul.f32 %v15437_v28, %v15563_v57  ;;  %v3514_v37 = vrot.slane %v3452_v25, 2  ;;  %v15580_v25 = vld [vmem:[#allocation66_spill] sm:$0xff] }
 0x3ee   : > { %v4853_v43 = vsel %vm1980_vm5, %v15561_v39, %v4852_v60  ;;  %v3738_v60 = vmul.f32 %v12080_v49, %v11495_v52  ;;  %v12112_v39 = vmul.f32 %v15511_v62, %v11495_v52  ;;  %v12124_v4 = vsel %vm1980_vm5, %v3794_v3, %v15567_v26  ;;  %15569 = vst [vmem:[#allocation146_spill] sm:$0xff] %v12130_v36 }
 0x3ef   : > { %4892 = vrot.lane.b32.xlu0 %v4853_v43, %s7734_s25  ;;  %v4980_v43 = vmul.f32 %v11180_v18, %v12103_v10  ;;  %15568 = vst [vmem:[#allocation64_spill] sm:$0xff] %v12124_v4  ;;  %v3457_v35 = vmul.f32 %v12126_v41, %v11075_v17  ;;  %v15571_v18 = vld [vmem:[#allocation165_spill] sm:$0xff]  ;;  %v3458_v3 = vmul.f32 %v12138_v6, %v11192_v56  ;;  %v15572_v17 = vld [vmem:[#allocation167_spill] sm:$0xff]  ;;  %v15573_v28 = vrot.slane %v12049_v45, 4 }
 0x3f0   : > { %v2244_v54 = vsel %vm2235_vm7, %v15571_v18, %v15570_v44  ;;  %v2245_v26 = vsel %vm2235_vm7, %v15570_v44, %v15572_v17  ;;  %v3657_v18 = vrot.slane %v3595_v8, 3  ;;  %v2246_v56 = vsel %vm2235_vm7, %v15572_v17, %v15575_v20  ;;  %v12157_v62 = vpop.permute.xlu1 %4400  ;;  %v15577_v44 = vld [vmem:[#allocation198_spill] sm:$0xff] }
 0x3f1   : > { %5021 = vrot.lane.b32.xlu1 %v4980_v43, %s7733_s23  ;;  %v12149_v36 = vsel %vm1980_vm5, %v3797_v27, %v15573_v28  ;;  %v3800_v4 = vrot.slane %v3738_v60, 4  ;;  %15576 = vst [vmem:[#allocation164_spill] sm:$0xff] %v12157_v62  ;;  %v4982_v5 = vmul.f32 %v11489_v22, %v15577_v44  ;;  %v2247_v27 = vsel %vm2235_vm7, %v15575_v20, %v15578_v12  ;;  %v12166_v28 = vpop.permute.xlu0 %4398 }
 0x3f2   : > { %15574 = vst [vmem:[#allocation133_spill] sm:$0xff] %v12149_v36  ;;  %v3517_v8 = vrot.slane %v3457_v35, 2  ;;  %15579 = vst [vmem:[#allocation165_spill] sm:$0xff] %v12166_v28  ;;  %v4981_v60 = vmul.f32 %v11427_v50, %v15580_v25  ;;  %v12171_v17 = vadd.f32 %v2244_v54, %v11561_v40  ;;  %v12174_v43 = vadd.f32 %v2245_v26, %v11595_v59 }
 0x3f3   : > { %5019 = vrot.lane.b32.xlu0 %v4979_v42, %s7733_s23  ;;  %v3600_v42 = vmul.f32 %v12126_v41, %v11089_v1  ;;  %v15581_v62 = vrot.slane %v12086_v14, 2  ;;  %v3519_v12 = vrot.slane %v3458_v3, 2  ;;  %v15583_v1 = vld [vmem:[#allocation254_spill] sm:$0xff]  ;;  %v15584_v35 = vrot.slane %v12097_v9, 3 }
 0x3f4   : > { %v12183_v20 = vadd.f32 %v2246_v56, %v15583_v1  ;;  %v3601_v40 = vmul.f32 %v12138_v6, %v11227_v61  ;;  %v3743_v59 = vmul.f32 %v12126_v41, %v15430_v38  ;;  %v15589_v26 = vrot.slane %v12112_v39, 4  ;;  %v12206_v56 = vpop.permute.xlu1 %4404  ;;  %v15592_v61 = vld [vmem:[#allocation29_spill] sm:$0xff] }
 0x3f5   : > { %v12179_v36 = vsel %vm1512_vm1, %v3514_v37, %v15581_v62  ;;  %5025 = vrot.lane.b32.xlu1 %v4982_v5, %s7733_s23  ;;  %v12188_v28 = vsel %vm1746_vm2, %v3657_v18, %v15584_v35  ;;  %v15586_v62 = vld [vmem:[#allocation153_spill] sm:$0xff]  ;;  %v15587_v5 = vld [vmem:[#allocation171_spill] sm:$0xff]  ;;  %v15588_v37 = vld [vmem:[#allocation168_spill] sm:$0xff]  ;;  %15591 = vst [vmem:[#allocation169_spill] sm:$0xff] %v12206_v56  ;;  %v4984_v1 = vmul.f32 %v15592_v61, %v15563_v57  ;;  %v15593_v38 = vrot.slane %v11847_v55, 2 }
 0x3f6   : > { %15582 = vst [vmem:[#allocation167_spill] sm:$0xff] %v12179_v36  ;;  %15585 = vst [vmem:[#allocation166_spill] sm:$0xff] %v12188_v28  ;;  %v12196_v54 = vadd.f32 %v2247_v27, %v15586_v62  ;;  %v2248_v3 = vsel %vm2235_vm7, %v15588_v37, %v15587_v5  ;;  %v12204_v18 = vsel %vm1980_vm5, %v3800_v4, %v15589_v26  ;;  %v3660_v27 = vrot.slane %v3600_v42, 3  ;;  %v12217_v62 = vpop.permute.xlu0 %4402  ;;  %v15596_v37 = vld [vmem:[#allocation65_spill] sm:$0xff]  ;;  %v15597_v28 = vld [vmem:[#allocation106_spill] sm:$0xff] }
 0x3f7   : > { %5023 = vrot.lane.b32.xlu0 %v4981_v60, %s7733_s23  ;;  %15590 = vst [vmem:[#allocation198_spill] sm:$0xff] %v12204_v18  ;;  %v12213_v60 = vsel %vm1512_vm1, %v15593_v38, %v3517_v8  ;;  %v3744_v35 = vmul.f32 %v12138_v6, %v11360_v46  ;;  %15595 = vst [vmem:[#allocation254_spill] sm:$0xff] %v12217_v62  ;;  %v4983_v4 = vmul.f32 %v15597_v28, %v15596_v37  ;;  %v15598_v26 = vld [vmem:[#allocation170_spill] sm:$0xff]  ;;  %v12229_v8 = vld [vmem:[#allocation2 + $0x108] sm:$0xf] }
 0x3f8   : > { %15594 = vst [vmem:[#allocation66_spill] sm:$0xff] %v12213_v60  ;;  %v2249_v56 = vsel %vm2235_vm7, %v15587_v5, %v15598_v26  ;;  %v15599_v61 = vrot.slane %v11956_v63, 2  ;;  %v3459_v42 = vmul.f32 %v12229_v8, %v15469_v16  ;;  %v12233_v46 = vld [vmem:[#allocation2 + $0x110] sm:$0xf]  ;;  %v15601_v28 = vld [vmem:[#allocation154_spill] sm:$0xff]  ;;  %v3662_v5 = vrot.slane %v3601_v40, 3 }
 0x3f9   : > { %v3460_v38 = vmul.f32 %v12233_v46, %v11446_v53  ;;  %5029 = vrot.lane.b32.xlu1 %v4984_v1, %s7733_s23  ;;  %v12239_v62 = vadd.f32 %v2248_v3, %v15601_v28  ;;  %v3803_v63 = vrot.slane %v3743_v59, 4  ;;  %v3603_v16 = vmul.f32 %v12233_v46, %v11482_v29  ;;  %v12250_v1 = vpop.permute.xlu1 %4408  ;;  %v15603_v3 = vld [vmem:[#allocation104_spill] sm:$0xff]  ;;  %v15687_v36 = vld [vmem:[#allocation45_spill] sm:$0xff] }
 0x3fa   : > { %v12227_v55 = vsel %vm1512_vm1, %v15599_v61, %v3519_v12  ;;  %v3602_v12 = vmul.f32 %v12229_v8, %v11302_v15  ;;  %v3745_v61 = vmul.f32 %v12229_v8, %v11379_v47  ;;  %v3746_v53 = vmul.f32 %v12233_v46, %v11495_v52  ;;  %15602 = vst [vmem:[#allocation171_spill] sm:$0xff] %v12250_v1  ;;  %v15604_v59 = vld [vmem:[#allocation156_spill] sm:$0xff]  ;;  %v12262_v18 = vpop.permute.xlu0 %4406  ;;  %v15608_v47 = vld [vmem:[#allocation233_spill] sm:$0xff] }
 0x3fb   : > { %15600 = vst [vmem:[#allocation153_spill] sm:$0xff] %v12227_v55  ;;  %5027 = vrot.lane.b32.xlu0 %v4983_v4, %s7733_s23  ;;  %v4986_v40 = vmul.f32 %v15603_v3, %v15580_v25  ;;  %v12255_v28 = vadd.f32 %v2249_v56, %v15604_v59  ;;  %v15605_v15 = vrot.slane %v11854_v19, 3  ;;  %v3805_v29 = vrot.slane %v3744_v35, 4  ;;  %15607 = vst [vmem:[#allocation29_spill] sm:$0xff] %v12262_v18  ;;  %v15609_v52 = vld [vmem:[#allocation36_spill] sm:$0xff]  ;;  %v15611_v19 = vld [vmem:[#allocation38_spill] sm:$0xff] }
 0x3fc   : > { %v4985_v55 = vmul.f32 %v15608_v47, %v12103_v10  ;;  %v2250_v1 = vsel %vm2235_vm7, %v15598_v26, %v15609_v52  ;;  %v15610_v60 = vld [vmem:[#allocation172_spill] sm:$0xff]  ;;  %v3521_v3 = vrot.slane %v3459_v42, 2  ;;  %v3523_v59 = vrot.slane %v3460_v38, 2 }
 0x3fd   : > { %v12260_v4 = vsel %vm1746_vm2, %v15605_v15, %v3660_v27  ;;  %v2251_v56 = vsel %vm2235_vm7, %v15609_v52, %v15610_v60  ;;  %5033 = vrot.lane.b32.xlu1 %v4986_v40, %s7733_s23  ;;  %v15612_v27 = vld [vmem:[#allocation39_spill] sm:$0xff]  ;;  %v15613_v15 = vrot.slane %v11983_v48, 3  ;;  %v15615_v18 = vrot.slane %v11926_v31, 4  ;;  %v12287_v40 = vpop.permute.xlu1 %4412  ;;  %v15618_v52 = vld [vmem:[#allocation53_spill] sm:$0xff]  ;;  %v15619_v48 = vld [vmem:[#allocation112_spill] sm:$0xff] }
 0x3fe   : > { %15606 = vst [vmem:[#allocation168_spill] sm:$0xff] %v12260_v4  ;;  %v2469_v35 = vsel %vm2235_vm7, %v15612_v27, %v15611_v19  ;;  %v3664_v4 = vrot.slane %v3602_v12, 3  ;;  %v3666_v60 = vrot.slane %v3603_v16, 3  ;;  %v3807_v42 = vrot.slane %v3745_v61, 4  ;;  %15617 = vst [vmem:[#allocation170_spill] sm:$0xff] %v12287_v40  ;;  %v15624_v12 = vld [vmem:[#allocation102_spill] sm:$0xff] }
 0x3ff   : > { %v12279_v47 = vsel %vm1746_vm2, %v15613_v15, %v3662_v5  ;;  %v12284_v26 = vsel %vm1980_vm5, %v15615_v18, %v3803_v63  ;;  %5031 = vrot.lane.b32.xlu0 %v4985_v55, %s7733_s23  ;;  %v3809_v38 = vrot.slane %v3746_v53, 4  ;;  %v12291_v27 = vmul.f32 %v15618_v52, %v15596_v37  ;;  %v15620_v15 = vld [vmem:[#allocation230_spill] sm:$0xff]  ;;  %v12304_v55 = vpop.permute.xlu0 %4410  ;;  %v15626_v52 = vld [vmem:[#allocation173_spill] sm:$0xff] }
 0x400   : > { %15614 = vst [vmem:[#allocation65_spill] sm:$0xff] %v12279_v47  ;;  %15616 = vst [vmem:[#allocation106_spill] sm:$0xff] %v12284_v26  ;;  %v12294_v5 = vadd.f32 %v2250_v1, %v15619_v48  ;;  %v12297_v31 = vadd.f32 %v2251_v56, %v15620_v15  ;;  %v15621_v18 = vrot.slane %v12020_v21, 4  ;;  %v4987_v16 = vmul.f32 %v15624_v12, %v15577_v44  ;;  %v15625_v61 = vld [vmem:[#allocation174_spill] sm:$0xff]  ;;  %v15672_v40 = vld [vmem:[#allocation197_spill] sm:$0xff] }
 0x401   : > { %15623 = vst [vmem:[#allocation104_spill] sm:$0xff] %v12304_v55  ;;  %v2470_v53 = vsel %vm2235_vm7, %v15611_v19, %v15625_v61  ;;  %v2471_v1 = vsel %vm2235_vm7, %v15625_v61, %v15626_v52  ;;  %v15627_v56 = vrot.slane %v11970_v34, 2  ;;  %5037 = vrot.lane.b32.xlu1 %v12291_v27, %s7733_s23  ;;  %v15631_v15 = vld [vmem:[#allocation126_spill] sm:$0xff]  ;;  %v15632_v19 = vld [vmem:[#allocation176_spill] sm:$0xff]  ;;  %v15634_v34 = vld [vmem:[#allocation175_spill] sm:$0xff] }
 0x402   : > { %v12302_v63 = vsel %vm1980_vm5, %v15621_v18, %v3805_v29  ;;  %v15629_v29 = vrot.slane %v12086_v14, 2  ;;  %v12327_v18 = vadd.f32 %v2469_v35, %v15631_v15  ;;  %v2472_v12 = vsel %vm2235_vm7, %v15626_v52, %v15632_v19  ;;  %v15633_v61 = vld [vmem:[#allocation178_spill] sm:$0xff] }
 0x403   : > { %15622 = vst [vmem:[#allocation154_spill] sm:$0xff] %v12302_v63  ;;  %v12317_v21 = vsel %vm1512_vm1, %v15627_v56, %v3521_v3  ;;  %v2473_v3 = vsel %vm2235_vm7, %v15634_v34, %v15633_v61  ;;  %v15635_v56 = vrot.slane %v11987_v33, 3  ;;  %5035 = vrot.lane.b32.xlu0 %v4987_v16, %s7733_s23  ;;  %v15641_v15 = vrot.slane %v12112_v39, 4  ;;  %v12356_v33 = vpop.permute.xlu1 %4416  ;;  %v12369_v16 = vpop.permute.xlu0 %4414  ;;  %v12371_v39 = vld [vmem:[#allocation2 + $0x98] sm:$0xff] }
 0x404   : > { %15628 = vst [vmem:[#allocation156_spill] sm:$0xff] %v12317_v21  ;;  %v12322_v48 = vsel %vm1512_vm1, %v15629_v29, %v3523_v59  ;;  %v15637_v59 = vrot.slane %v12097_v9, 3  ;;  %v15639_v29 = vrot.slane %v12049_v45, 4  ;;  %15643 = vst [vmem:[#allocation53_spill] sm:$0xff] %v12356_v33  ;;  %v12361_v9 = vadd.f32 %v2470_v53, %v11914_v7  ;;  %v15644_v45 = vld [vmem:[#allocation177_spill] sm:$0xff]  ;;  %v15646_v53 = vld [vmem:[#allocation180_spill] sm:$0xff] }
 0x405   : > { %15630 = vst [vmem:[#allocation233_spill] sm:$0xff] %v12322_v48  ;;  %v12338_v14 = vsel %vm1746_vm2, %v15635_v56, %v3664_v4  ;;  %v12354_v19 = vsel %vm1980_vm5, %v15641_v15, %v3809_v38  ;;  %v4990_v4 = vmul.f32 %v11973_v2, %v12103_v10  ;;  %15645 = vst [vmem:[#allocation112_spill] sm:$0xff] %v12369_v16  ;;  %v15648_v56 = vld [vmem:[#allocation181_spill] sm:$0xff]  ;;  %v15650_v15 = vld [vmem:[#allocation184_spill] sm:$0xff] }
 0x406   : > { %15636 = vst [vmem:[#allocation36_spill] sm:$0xff] %v12338_v14  ;;  %v12344_v35 = vsel %vm1746_vm2, %v15637_v59, %v3666_v60  ;;  %v12349_v52 = vsel %vm1980_vm5, %v15639_v29, %v3807_v42  ;;  %15642 = vst [vmem:[#allocation39_spill] sm:$0xff] %v12354_v19  ;;  %v12364_v60 = vadd.f32 %v2471_v1, %v11917_v0  ;;  %v15647_v1 = vld [vmem:[#allocation179_spill] sm:$0xff]  ;;  %v15649_v59 = vld [vmem:[#allocation182_spill] sm:$0xff] }
 0x407   : > { %15638 = vst [vmem:[#allocation172_spill] sm:$0xff] %v12344_v35  ;;  %15640 = vst [vmem:[#allocation38_spill] sm:$0xff] %v12349_v52  ;;  %v2474_v42 = vsel %vm2235_vm7, %v15633_v61, %v15644_v45  ;;  %v4989_v38 = vmul.f32 %v12371_v39, %v15563_v57  ;;  %v12376_v34 = vadd.f32 %v2472_v12, %v11963_v23  ;;  %5041 = vrot.lane.b32.xlu1 %v4990_v4, %s7733_s23  ;;  %v15655_v33 = vld [vmem:[#allocation187_spill] sm:$0xff]  ;;  %v12410_v16 = vpop.permute.xlu1 %4420  ;;  %v15681_v14 = vld [vmem:[#allocation61_spill] sm:$0xff] }
 0x408   : > { %v12379_v7 = vadd.f32 %v2473_v3, %v12037_v13  ;;  %v2475_v0 = vsel %vm2235_vm7, %v15644_v45, %v15646_v53  ;;  %v2476_v61 = vsel %vm2235_vm7, %v15646_v53, %v15647_v1  ;;  %v2477_v29 = vsel %vm2235_vm7, %v15649_v59, %v15648_v56  ;;  %v15651_v13 = vld [vmem:[#allocation183_spill] sm:$0xff]  ;;  %v15652_v3 = vld [vmem:[#allocation186_spill] sm:$0xff]  ;;  %v15653_v53 = vld [vmem:[#allocation188_spill] sm:$0xff]  ;;  %15656 = vst [vmem:[#allocation230_spill] sm:$0xff] %v12410_v16 }
 0x409   : > { %v2478_v23 = vsel %vm2235_vm7, %v15648_v56, %v15650_v15  ;;  %v2479_v12 = vsel %vm2235_vm7, %v15650_v15, %v15651_v13  ;;  %v2480_v45 = vsel %vm2235_vm7, %v15651_v13, %v15652_v3  ;;  %5039 = vrot.lane.b32.xlu0 %v4989_v38, %s7733_s23  ;;  %v12402_v4 = vadd.f32 %v2474_v42, %v12040_v11  ;;  %v15654_v1 = vld [vmem:[#allocation185_spill] sm:$0xff]  ;;  %v12420_v11 = vpop.permute.xlu0 %4418  ;;  %v15658_v3 = vld [vmem:[#allocation59_spill] sm:$0xff]  ;;  %v12544_v21 = vld [vmem:[#allocation2 + $0x80] sm:$0xf] }
 0x40a   : > { %v2481_v59 = vsel %vm2235_vm7, %v15654_v1, %v15653_v53  ;;  %v2482_v56 = vsel %vm2235_vm7, %v15653_v53, %v15655_v33  ;;  %v4992_v15 = vmul.f32 %v12080_v49, %v15577_v44  ;;  %v12415_v13 = vadd.f32 %v2475_v0, %v12106_v30  ;;  %15657 = vst [vmem:[#allocation102_spill] sm:$0xff] %v12420_v11  ;;  %v15659_v1 = vld [vmem:[#allocation60_spill] sm:$0xff]  ;;  %v12510_v19 = vld [vmem:[#allocation2 + $0x48] sm:$0xff] }
 0x40b   : > { %v12418_v38 = vadd.f32 %v2476_v61, %v12119_v58  ;;  %v4991_v42 = vmul.f32 %v11977_v32, %v15580_v25  ;;  %v12427_v53 = vsel %vm1046_vm4, %v15659_v1, %v15658_v3  ;;  %v12430_v16 = vadd.f32 %v2477_v29, %v12171_v17  ;;  %v15663_v3 = vld [vmem:[#allocation190_spill] sm:$0xff]  ;;  %v12457_v29 = vpop.permute.xlu1 %4424  ;;  %v12525_v35 = vld [vmem:[#allocation2 + $0x28] sm:$0xff]  ;;  %15686 = vst [vmem:[#allocation186_spill] sm:$0xff] %v12544_v21 }
 0x40c   : > { %v12433_v55 = vadd.f32 %v2478_v23, %v12174_v43  ;;  %v12436_v30 = vadd.f32 %v2479_v12, %v12183_v20  ;;  %v12439_v58 = vadd.f32 %v2480_v45, %v12196_v54  ;;  %5045 = vrot.lane.b32.xlu1 %v4992_v15, %s7733_s23  ;;  %v12443_v0 = vadd.f32 %v2481_v59, %v12239_v62  ;;  %v15664_v20 = vld [vmem:[#allocation189_spill] sm:$0xff]  ;;  %v12459_v62 = vld [vmem:[#allocation2 + $0x10] sm:$0xff]  ;;  %v12463_v23 = vld [vmem:[#allocation2 + $0x40] sm:$0xff] }
 0x40d   : > { %v12446_v61 = vadd.f32 %v2482_v56, %v12255_v28  ;;  %v2483_v17 = vsel %vm2235_vm7, %v15655_v33, %v15663_v3  ;;  %5043 = vrot.lane.b32.xlu0 %v4991_v42, %s7733_s23  ;;  %v4994_v43 = vmul.f32 %v15504_v51, %v15563_v57  ;;  %v2484_v54 = vsel %vm2235_vm7, %v15663_v3, %v15664_v20  ;;  %v12469_v12 = vld [vmem:[#allocation2 + $0x8] sm:$0xff]  ;;  %v15667_v45 = vld [vmem:[#allocation192_spill] sm:$0xff]  ;;  %v12476_v56 = vpop.permute.xlu0 %4422  ;;  %v12482_v20 = vld [vmem:[#allocation2 + $0x38] sm:$0xff] }
 0x40e   : > { %15660 = vst [vmem:[#allocation174_spill] sm:$0xff] %v12439_v58  ;;  %15661 = vst [vmem:[#allocation173_spill] sm:$0xff] %v12443_v0  ;;  %v5143_v28 = vmul.f32 %v12459_v62, %v12427_v53  ;;  %v12467_v33 = vmul.f32 %v12463_v23, %v12427_v53  ;;  %v5142_v51 = vmul.f32 %v12469_v12, %v15659_v1  ;;  %v15666_v57 = vld [vmem:[#allocation191_spill] sm:$0xff]  ;;  %v15669_v42 = vld [vmem:[#allocation248_spill] sm:$0xff] }
 0x40f   : > { %15662 = vst [vmem:[#allocation126_spill] sm:$0xff] %v12446_v61  ;;  %15665 = vst [vmem:[#allocation176_spill] sm:$0xff] %v12457_v29  ;;  %v2702_v59 = vsel %vm2235_vm7, %v15667_v45, %v15666_v57  ;;  %v4993_v15 = vmul.f32 %v15522_v24, %v15596_v37  ;;  %v4996_v3 = vmul.f32 %v15669_v42, %v15580_v25  ;;  %v15671_v45 = vld [vmem:[#allocation243_spill] sm:$0xff]  ;;  %v12496_v37 = vld [vmem:[#allocation2 + $0x50] sm:$0xff]  ;;  %v12517_v63 = vpop.permute.xlu1 %4428 }
 0x410   : > { %15668 = vst [vmem:[#allocation178_spill] sm:$0xff] %v12476_v56  ;;  %v12486_v29 = vmul.f32 %v12482_v20, %v15659_v1  ;;  %v12489_v11 = vadd.f32 %v2483_v17, %v12294_v5  ;;  %5049 = vrot.lane.b32.xlu1 %v4994_v43, %s7733_s23  ;;  %v4995_v56 = vmul.f32 %v15671_v45, %v12103_v10  ;;  %v15674_v5 = vld [vmem:[#allocation247_spill] sm:$0xff]  ;;  %v15675_v43 = vld [vmem:[#allocation62_spill] sm:$0xff]  ;;  %15677 = vst [vmem:[#allocation179_spill] sm:$0xff] %v12517_v63 }
 0x411   : > { %v5145_v24 = vmul.f32 %v11489_v22, %v15672_v40  ;;  %v12500_v25 = vmul.f32 %v12496_v37, %v15672_v40  ;;  %v12503_v42 = vadd.f32 %v2484_v54, %v12297_v31  ;;  %5047 = vrot.lane.b32.xlu0 %v4993_v15, %s7733_s23  ;;  %v4997_v17 = vmul.f32 %v15674_v5, %v15577_v44  ;;  %v12520_v26 = vpop.permute.xlu0 %4426  ;;  %v12537_v63 = vld [vmem:[#allocation2 + $0x70] sm:$0xf] }
 0x412   : > { %15670 = vst [vmem:[#allocation175_spill] sm:$0xff] %v12489_v11  ;;  %v5144_v10 = vmul.f32 %v11427_v50, %v15675_v43  ;;  %v5149_v22 = vmul.f32 %v12510_v19, %v15675_v43  ;;  %v12515_v52 = vadd.f32 %v2702_v59, %v12327_v18  ;;  %v5205_v31 = vrot.slane %v5143_v28, 1  ;;  %15678 = vst [vmem:[#allocation181_spill] sm:$0xff] %v12520_v26  ;;  %v15679_v50 = vld [vmem:[#allocation253_spill] sm:$0xff]  ;;  %v12529_v18 = vld [vmem:[#allocation2 + $0x30] sm:$0xff] }
 0x413   : > { %15673 = vst [vmem:[#allocation177_spill] sm:$0xff] %v12503_v42  ;;  %v5206_v54 = vrot.slane %v12467_v33, 1  ;;  %v5202_v15 = vrot.slane %v5142_v51, 1  ;;  %v5203_v44 = vrot.slane %v12486_v29, 1  ;;  %v5152_v5 = vmul.f32 %v15679_v50, %v15659_v1  ;;  %15680 = vst [vmem:[#allocation182_spill] sm:$0xff] %v12525_v35  ;;  %v15683_v29 = vld [vmem:[#allocation57_spill] sm:$0xff] }
 0x414   : > { %15676 = vst [vmem:[#allocation180_spill] sm:$0xff] %v12515_v52  ;;  %v5146_v47 = vmul.f32 %v12525_v35, %v15681_v14  ;;  %15682 = vst [vmem:[#allocation184_spill] sm:$0xff] %v12529_v18  ;;  %v5151_v28 = vmul.f32 %v12529_v18, %v15681_v14  ;;  %5053 = vrot.lane.b32.xlu1 %v4996_v3, %s7733_s23  ;;  %v5211_v33 = vrot.slane %v5145_v24, 1  ;;  %v5212_v51 = vrot.slane %v12500_v25, 1  ;;  %v15685_v26 = vld [vmem:[#allocation32_spill] sm:$0xff] }
 0x415   : > { %v5154_v59 = vmul.f32 %v15683_v29, %v15675_v43  ;;  %15684 = vst [vmem:[#allocation183_spill] sm:$0xff] %v12537_v63  ;;  %v5153_v50 = vmul.f32 %v12537_v63, %v12427_v53  ;;  %5051 = vrot.lane.b32.xlu0 %v4995_v56, %s7733_s23  ;;  %v5156_v48 = vmul.f32 %v15685_v26, %v15681_v14  ;;  %v12557_v56 = vpop.permute.xlu1 %4625  ;;  %v5208_v11 = vrot.slane %v5144_v10, 1  ;;  %v15689_v0 = vld [vmem:[#allocation44_spill] sm:$0xff]  ;;  %v15691_v63 = vld [vmem:[#allocation47_spill] sm:$0xff] }
 0x416   : > { %v5155_v3 = vmul.f32 %v12544_v21, %v15672_v40  ;;  %v5158_v24 = vmul.f32 %v11973_v2, %v12427_v53  ;;  %v12552_v25 = vmul.f32 %v15671_v45, %v12427_v53  ;;  %v2703_v52 = vsel %vm2235_vm7, %v15666_v57, %v15687_v36  ;;  %15688 = vst [vmem:[#allocation188_spill] sm:$0xff] %v12557_v56  ;;  %v12563_v21 = vpop.permute.xlu0 %4623 }
 0x417   : > { %v5207_v42 = vsel %vm1278_vm0, %v5205_v31, %v5206_v54  ;;  %v5209_v61 = vrot.slane %v5149_v22, 1  ;;  %v2704_v58 = vsel %vm2235_vm7, %v15687_v36, %v15689_v0  ;;  %15690 = vst [vmem:[#allocation185_spill] sm:$0xff] %v12563_v21  ;;  %v5217_v2 = vrot.slane %v5152_v5, 1 }
 0x418   : > { %v5214_v26 = vrot.slane %v5146_v47, 1  ;;  %v12565_v45 = vrot.slane %v5151_v28, 1  ;;  %v2705_v57 = vsel %vm2235_vm7, %v15689_v0, %v15691_v63  ;;  %5057 = vrot.lane.b32.xlu1 %v12291_v27, %s7733_s23  ;;  %v5204_v10 = vsel %vm1278_vm0, %v5202_v15, %v5203_v44 }
 0x419   : > { %v5221_v22 = vrot.slane %v5154_v59, 1  ;;  %v5219_v31 = vrot.slane %v5153_v50, 1  ;;  %5055 = vrot.lane.b32.xlu0 %v4997_v17, %s7733_s23  ;;  %v5225_v36 = vrot.slane %v5156_v48, 1  ;;  %v5223_v56 = vrot.slane %v5155_v3, 1  ;;  %v12581_v63 = vpop.permute.xlu1 %4629  ;;  %v15697_v59 = vld [vmem:[#allocation196_spill] sm:$0xff]  ;;  %v15698_v50 = vld [vmem:[#allocation46_spill] sm:$0xff] }
 0x41a   : > { %v5230_v21 = vrot.slane %v5158_v24, 1  ;;  %v14768_v47 = vrot.slane %v12552_v25, 1  ;;  %v12576_v5 = vadd.f32 %v2703_v52, %v12361_v9  ;;  %v12579_v28 = vadd.f32 %v2704_v58, %v12364_v60  ;;  %15694 = vst [vmem:[#allocation60_spill] sm:$0xff] %v12581_v63  ;;  %v12588_v48 = vpop.permute.xlu0 %4627  ;;  %v12599_v58 = vld [vmem:[#allocation2 + $0xc8] sm:$0xff]  ;;  %v15702_v63 = vld [vmem:[#allocation193_spill] sm:$0xff] }
 0x41b   : > { %v5213_v27 = vsel %vm1278_vm0, %v5211_v33, %v5212_v51  ;;  %v5210_v0 = vsel %vm1278_vm0, %v5208_v11, %v5209_v61  ;;  %v12586_v15 = vadd.f32 %v2705_v57, %v12376_v34  ;;  %15696 = vst [vmem:[#allocation189_spill] sm:$0xff] %v12588_v48  ;;  %v5218_v17 = vsel %vm1278_vm0, %v5203_v44, %v5217_v2  ;;  %v12605_v2 = vld [vmem:[#allocation2 + $0xe0] sm:$0xff]  ;;  %v12634_v57 = vld [vmem:[#allocation2 + $0xd8] sm:$0xff] }
 0x41c   : > { %15692 = vst [vmem:[#allocation187_spill] sm:$0xff] %v12576_v5  ;;  %15693 = vst [vmem:[#allocation59_spill] sm:$0xff] %v12579_v28  ;;  %v5216_v52 = vsel %vm1278_vm0, %v5214_v26, %v12565_v45  ;;  %v5157_v9 = vmul.f32 %v12371_v39, %v15659_v1  ;;  %5254 = vrot.lane.b32.xlu1 %v5207_v42, %s7733_s23  ;;  %v12597_v60 = vsel %vm1278_vm0, %v5209_v61, %v5221_v22  ;;  %v12642_v22 = vld [vmem:[#allocation2 + $0xb8] sm:$0xff] }
 0x41d   : > { %15695 = vst [vmem:[#allocation190_spill] sm:$0xff] %v12586_v15  ;;  %v5162_v34 = vmul.f32 %v12599_v58, %v15659_v1  ;;  %v5160_v11 = vmul.f32 %v12080_v49, %v15672_v40  ;;  %v12609_v26 = vmul.f32 %v12605_v2, %v15672_v40  ;;  %5252 = vrot.lane.b32.xlu0 %v5204_v10, %s7733_s23  ;;  %v12630_v24 = vpop.permute.xlu1 %4633 }
 0x41e   : > { %v12613_v42 = vsel %vm1278_vm0, %v5206_v54, %v5219_v31  ;;  %v12617_v61 = vsel %vm1278_vm0, %v12565_v45, %v5225_v36  ;;  %v12620_v44 = vsel %vm1278_vm0, %v5212_v51, %v5223_v56  ;;  %v12625_v33 = vsel %vm1278_vm0, %v5230_v21, %v14768_v47  ;;  %15699 = vst [vmem:[#allocation191_spill] sm:$0xff] %v12630_v24  ;;  %v12640_v10 = vpop.permute.xlu0 %4631 }
 0x41f   : > { %v2706_v3 = vsel %vm2235_vm7, %v15698_v50, %v15697_v59  ;;  %v5159_v54 = vmul.f32 %v11977_v32, %v15675_v43  ;;  %v5164_v51 = vmul.f32 %v12634_v57, %v15675_v43  ;;  %v5167_v56 = vmul.f32 %v12126_v41, %v15659_v1  ;;  %15700 = vst [vmem:[#allocation192_spill] sm:$0xff] %v12640_v10  ;;  %v15701_v10 = vld [vmem:[#allocation263_spill] sm:$0xff] }
 0x420   : > { %v5227_v21 = vrot.slane %v5157_v9, 1  ;;  %v5161_v31 = vmul.f32 %v12642_v22, %v15681_v14  ;;  %v5169_v36 = vmul.f32 %v12229_v8, %v15675_v43  ;;  %v5168_v50 = vmul.f32 %v12138_v6, %v12427_v53  ;;  %5258 = vrot.lane.b32.xlu1 %v5213_v27, %s7733_s23  ;;  %v15704_v43 = vld [vmem:[#allocation201_spill] sm:$0xff] }
 0x421   : > { %v5228_v47 = vrot.slane %v5162_v34, 1  ;;  %v5236_v24 = vrot.slane %v5160_v11, 1  ;;  %v5237_v1 = vrot.slane %v12609_v26, 1  ;;  %v5171_v9 = vmul.f32 %v15701_v10, %v15681_v14  ;;  %5256 = vrot.lane.b32.xlu0 %v5210_v0, %s7733_s23  ;;  %v15705_v34 = vld [vmem:[#allocation200_spill] sm:$0xff]  ;;  %v12669_v11 = vpop.permute.xlu1 %4637 }
 0x422   : > { %v2707_v48 = vsel %vm2235_vm7, %v15697_v59, %v15702_v63  ;;  %v12658_v15 = vadd.f32 %v2706_v3, %v12379_v7  ;;  %v2708_v53 = vsel %vm2235_vm7, %v15702_v63, %v15704_v43  ;;  %v5170_v27 = vmul.f32 %v12233_v46, %v15672_v40  ;;  %15706 = vst [vmem:[#allocation243_spill] sm:$0xff] %v12669_v11  ;;  %v12671_v7 = vpop.permute.xlu0 %4635  ;;  %v15708_v63 = vld [vmem:[#allocation67_spill] sm:$0xff]  ;;  %v15709_v10 = vld [vmem:[#allocation68_spill] sm:$0xff] }
 0x423   : > { %v2709_v14 = vsel %vm2235_vm7, %v15704_v43, %v15705_v34  ;;  %v5233_v26 = vrot.slane %v5159_v54, 1  ;;  %v5234_v59 = vrot.slane %v5164_v51, 1  ;;  %v5242_v28 = vrot.slane %v5167_v56, 1  ;;  %15707 = vst [vmem:[#allocation197_spill] sm:$0xff] %v12671_v7 }
 0x424   : > { %15703 = vst [vmem:[#allocation248_spill] sm:$0xff] %v12658_v15  ;;  %v5239_v3 = vrot.slane %v5161_v31, 1  ;;  %v5246_v15 = vrot.slane %v5169_v36, 1  ;;  %v5244_v5 = vrot.slane %v5168_v50, 1  ;;  %v12676_v0 = vsel %vm1046_vm4, %v15709_v10, %v15708_v63  ;;  %5262 = vrot.lane.b32.xlu1 %v5218_v17, %s7733_s23  ;;  %v15712_v31 = vld [vmem:[#allocation79_spill] sm:$0xff] }
 0x425   : > { %v12679_v40 = vadd.f32 %v2707_v48, %v12402_v4  ;;  %v12683_v43 = vsel %vm1278_vm0, %v5227_v21, %v5228_v47  ;;  %v12686_v54 = vsel %vm1278_vm0, %v5236_v24, %v5237_v1  ;;  %v5250_v51 = vrot.slane %v5171_v9, 1  ;;  %v15713_v36 = vld [vmem:[#allocation91_spill] sm:$0xff]  ;;  %5260 = vrot.lane.b32.xlu0 %v5216_v52, %s7733_s23  ;;  %v12700_v21 = vpop.permute.xlu1 %4641 }
 0x426   : > { %v12689_v56 = vadd.f32 %v2708_v53, %v12415_v13  ;;  %v2710_v50 = vsel %vm2235_vm7, %v15713_v36, %v15712_v31  ;;  %v5248_v4 = vrot.slane %v5170_v27, 1  ;;  %v5376_v48 = vmul.f32 %v12459_v62, %v12676_v0  ;;  %15715 = vst [vmem:[#allocation61_spill] sm:$0xff] %v12700_v21  ;;  %v12711_v52 = vpop.permute.xlu0 %4639  ;;  %v15723_v21 = vld [vmem:[#allocation70_spill] sm:$0xff] }
 0x427   : > { %15710 = vst [vmem:[#allocation247_spill] sm:$0xff] %v12679_v40  ;;  %v12698_v17 = vadd.f32 %v2709_v14, %v12418_v38  ;;  %v12703_v24 = vsel %vm1278_vm0, %v5233_v26, %v5234_v59  ;;  %v12707_v13 = vmul.f32 %v12463_v23, %v12676_v0  ;;  %v5375_v9 = vmul.f32 %v12469_v12, %v15709_v10  ;;  %v15734_v40 = vld [vmem:[#allocation186_spill] sm:$0xff] }
 0x428   : > { %15711 = vst [vmem:[#allocation62_spill] sm:$0xff] %v12689_v56  ;;  %15716 = vst [vmem:[#allocation57_spill] sm:$0xff] %v12711_v52  ;;  %v12714_v53 = vsel %vm1278_vm0, %v5228_v47, %v5242_v28  ;;  %v12718_v38 = vsel %vm1278_vm0, %v5239_v3, %v12565_v45  ;;  %v12721_v27 = vsel %vm1278_vm0, %v5234_v59, %v5246_v15  ;;  %v15717_v34 = vrot.slane %v12552_v25, 1  ;;  %v12739_v15 = vld [vmem:[#allocation2 + $0x20] sm:$0xff]  ;;  %v15719_v59 = vld [vmem:[#allocation199_spill] sm:$0xff] }
 0x429   : > { %15714 = vst [vmem:[#allocation253_spill] sm:$0xff] %v12698_v17  ;;  %v12729_v26 = vadd.f32 %v2710_v50, %v12430_v16  ;;  %5266 = vrot.lane.b32.xlu1 %v12597_v60, %s7733_s23  ;;  %v12735_v47 = vsel %vm1278_vm0, %v12565_v45, %v5250_v51  ;;  %v5380_v28 = vmul.f32 %v12482_v20, %v15709_v10  ;;  %v15721_v3 = vld [vmem:[#allocation82_spill] sm:$0xff]  ;;  %v5438_v63 = vrot.slane %v5376_v48, 2  ;;  %v12754_v51 = vpop.permute.xlu1 %4645  ;;  %v15726_v48 = vld [vmem:[#allocation69_spill] sm:$0xff] }
 0x42a   : > { %v12726_v14 = vsel %vm1278_vm0, %v15717_v34, %v5244_v5  ;;  %v5378_v25 = vmul.f32 %v12739_v15, %v15719_v59  ;;  %v15720_v5 = vld [vmem:[#allocation86_spill] sm:$0xff]  ;;  %5264 = vrot.lane.b32.xlu0 %v12613_v42, %s7733_s23  ;;  %v12752_v45 = vsel %vm1278_vm0, %v5237_v1, %v5248_v4  ;;  %15722 = vst [vmem:[#allocation44_spill] sm:$0xff] %v12754_v51  ;;  %v5439_v36 = vrot.slane %v12707_v13, 2  ;;  %v12765_v52 = vpop.permute.xlu0 %4643  ;;  %v12769_v1 = vld [vmem:[#allocation2 + $0x68] sm:$0xf] }
 0x42b   : > { %15718 = vst [vmem:[#allocation45_spill] sm:$0xff] %v12729_v26  ;;  %v2711_v16 = vsel %vm2235_vm7, %v15712_v31, %v15720_v5  ;;  %v2712_v60 = vsel %vm2235_vm7, %v15720_v5, %v15721_v3  ;;  %v5435_v50 = vrot.slane %v5375_v9, 2  ;;  %v12759_v34 = vmul.f32 %v12496_v37, %v15719_v59  ;;  %v12761_v31 = vld [vmem:[#allocation2 + $0x18] sm:$0xff]  ;;  %15724 = vst [vmem:[#allocation47_spill] sm:$0xff] %v12765_v52  ;;  %v15729_v51 = vld [vmem:[#allocation183_spill] sm:$0xff] }
 0x42c   : > { %v5377_v5 = vmul.f32 %v12761_v31, %v15723_v21  ;;  %v5382_v42 = vmul.f32 %v12510_v19, %v15723_v21  ;;  %15725 = vst [vmem:[#allocation196_spill] sm:$0xff] %v12769_v1  ;;  %v5385_v4 = vmul.f32 %v12769_v1, %v15709_v10  ;;  %v5379_v13 = vmul.f32 %v12525_v35, %v15726_v48  ;;  %v15737_v35 = vld [vmem:[#allocation97_spill] sm:$0xff] }
 0x42d   : > { %v5384_v9 = vmul.f32 %v12529_v18, %v15726_v48  ;;  %v12778_v11 = vadd.f32 %v2711_v16, %v12433_v55  ;;  %v12781_v7 = vadd.f32 %v2712_v60, %v12436_v30  ;;  %5270 = vrot.lane.b32.xlu1 %v12617_v61, %s7733_s23  ;;  %v5387_v52 = vmul.f32 %v15683_v29, %v15723_v21  ;;  %v15731_v30 = vld [vmem:[#allocation32_spill] sm:$0xff] }
 0x42e   : > { %v5386_v26 = vmul.f32 %v15729_v51, %v12676_v0  ;;  %5268 = vrot.lane.b32.xlu0 %v12620_v44, %s7733_s23  ;;  %v12792_v17 = vsel %vm1512_vm1, %v5438_v63, %v5439_v36  ;;  %v5436_v55 = vrot.slane %v5380_v28, 2  ;;  %v5444_v16 = vrot.slane %v5378_v25, 2  ;;  %v12804_v51 = vpop.permute.xlu0 %4647 }
 0x42f   : > { %15727 = vst [vmem:[#allocation46_spill] sm:$0xff] %v12778_v11  ;;  %15728 = vst [vmem:[#allocation193_spill] sm:$0xff] %v12781_v7  ;;  %v5389_v60 = vmul.f32 %v15731_v30, %v15726_v48  ;;  %v15732_v7 = vld [vmem:[#allocation90_spill] sm:$0xff]  ;;  %v12799_v11 = vpop.permute.xlu1 %4649  ;;  %v5445_v29 = vrot.slane %v12759_v34, 2  ;;  %v5441_v56 = vrot.slane %v5377_v5, 2  ;;  %v5388_v44 = vmul.f32 %v15734_v40, %v15719_v59  ;;  %v15736_v30 = vld [vmem:[#allocation93_spill] sm:$0xff] }
 0x430   : > { %15730 = vst [vmem:[#allocation201_spill] sm:$0xff] %v12792_v17  ;;  %v2713_v61 = vsel %vm2235_vm7, %v15721_v3, %v15732_v7  ;;  %15733 = vst [vmem:[#allocation200_spill] sm:$0xff] %v12799_v11  ;;  %v5442_v63 = vrot.slane %v5382_v42, 2  ;;  %v5450_v28 = vrot.slane %v5385_v4, 2  ;;  %v5447_v25 = vrot.slane %v5379_v13, 2  ;;  %v15738_v7 = vld [vmem:[#allocation101_spill] sm:$0xff] }
 0x431   : > { %15735 = vst [vmem:[#allocation67_spill] sm:$0xff] %v12804_v51  ;;  %v12806_v18 = vrot.slane %v5384_v9, 2  ;;  %v2714_v17 = vsel %vm2235_vm7, %v15737_v35, %v15736_v30  ;;  %v2715_v3 = vsel %vm2235_vm7, %v15736_v30, %v15738_v7  ;;  %5274 = vrot.lane.b32.xlu1 %v12625_v33, %s7733_s23  ;;  %v5454_v34 = vrot.slane %v5387_v52, 2  ;;  %v15739_v13 = vld [vmem:[#allocation159_spill] sm:$0xff]  ;;  %v12823_v35 = vld [vmem:[#allocation2 + $0xd0] sm:$0xff]  ;;  %v15741_v11 = vld [vmem:[#allocation174_spill] sm:$0xff] }
 0x432   : > { %v5452_v5 = vrot.slane %v5386_v26, 2  ;;  %5272 = vrot.lane.b32.xlu0 %v12683_v43, %s7733_s23  ;;  %v12819_v42 = vsel %vm1512_vm1, %v5435_v50, %v5436_v55  ;;  %v5458_v4 = vrot.slane %v5389_v60, 2  ;;  %v5391_v9 = vmul.f32 %v15739_v13, %v12676_v0  ;;  %15740 = vst [vmem:[#allocation68_spill] sm:$0xff] %v12823_v35  ;;  %v15743_v60 = vld [vmem:[#allocation173_spill] sm:$0xff]  ;;  %v15745_v13 = vld [vmem:[#allocation126_spill] sm:$0xff] }
 0x433   : > { %v12827_v30 = vmul.f32 %v12823_v35, %v12676_v0  ;;  %v12830_v33 = vadd.f32 %v2713_v61, %v15741_v11  ;;  %v12832_v52 = vpop.permute.xlu1 %4653  ;;  %v12835_v43 = vsel %vm1512_vm1, %v5444_v16, %v5445_v29  ;;  %v12838_v26 = vsel %vm1512_vm1, %v5441_v56, %v5442_v63  ;;  %v12846_v35 = vpop.permute.xlu0 %4651 }
 0x434   : > { %15742 = vst [vmem:[#allocation79_spill] sm:$0xff] %v12832_v52  ;;  %v5456_v50 = vrot.slane %v5388_v44, 2  ;;  %v12841_v51 = vadd.f32 %v2714_v17, %v15743_v60  ;;  %v12844_v40 = vadd.f32 %v2715_v3, %v15745_v13  ;;  %15747 = vst [vmem:[#allocation86_spill] sm:$0xff] %v12846_v35  ;;  %v12849_v11 = vsel %vm1512_vm1, %v5436_v55, %v5450_v28  ;;  %v15748_v44 = vld [vmem:[#allocation99_spill] sm:$0xff]  ;;  %v15757_v35 = vld [vmem:[#allocation81_spill] sm:$0xff] }
 0x435   : > { %v12853_v61 = vsel %vm1512_vm1, %v5447_v25, %v12806_v18  ;;  %5278 = vrot.lane.b32.xlu1 %v12686_v54, %s7733_s23  ;;  %v12858_v56 = vsel %vm1512_vm1, %v5442_v63, %v5454_v34  ;;  %v12861_v17 = vsel %vm1512_vm1, %v5439_v36, %v5452_v5  ;;  %v5390_v16 = vmul.f32 %v12371_v39, %v15709_v10  ;;  %v15749_v25 = vld [vmem:[#allocation41_spill] sm:$0xff] }
 0x436   : > { %15744 = vst [vmem:[#allocation91_spill] sm:$0xff] %v12841_v51  ;;  %15746 = vst [vmem:[#allocation199_spill] sm:$0xff] %v12844_v40  ;;  %v5395_v55 = vmul.f32 %v12599_v58, %v15709_v10  ;;  %v2716_v28 = vsel %vm2235_vm7, %v15738_v7, %v15748_v44  ;;  %5276 = vrot.lane.b32.xlu0 %v12703_v24, %s7733_s23  ;;  %v12874_v54 = vsel %vm1512_vm1, %v12806_v18, %v5458_v4  ;;  %v15761_v40 = vld [vmem:[#allocation180_spill] sm:$0xff] }
 0x437   : > { %v5463_v63 = vrot.slane %v5391_v9, 2  ;;  %v5464_v36 = vrot.slane %v12827_v30, 2  ;;  %v2717_v3 = vsel %vm2235_vm7, %v15748_v44, %v15749_v25  ;;  %v12880_v34 = vpop.permute.xlu1 %4657  ;;  %v12883_v5 = vsel %vm1512_vm1, %v5445_v29, %v5456_v50  ;;  %v12889_v4 = vpop.permute.xlu0 %4655  ;;  %v15752_v50 = vld [vmem:[#allocation175_spill] sm:$0xff] }
 0x438   : > { %15750 = vst [vmem:[#allocation82_spill] sm:$0xff] %v12880_v34  ;;  %v5393_v7 = vmul.f32 %v12080_v49, %v15719_v59  ;;  %v5398_v24 = vmul.f32 %v12605_v2, %v15719_v59  ;;  %15751 = vst [vmem:[#allocation70_spill] sm:$0xff] %v12889_v4  ;;  %v5392_v13 = vmul.f32 %v11977_v32, %v15723_v21  ;;  %v5460_v44 = vrot.slane %v5390_v16, 2  ;;  %v15754_v34 = vld [vmem:[#allocation177_spill] sm:$0xff] }
 0x439   : > { %v5397_v9 = vmul.f32 %v12634_v57, %v15723_v21  ;;  %v5400_v30 = vmul.f32 %v12126_v41, %v15709_v10  ;;  %v5394_v29 = vmul.f32 %v12642_v22, %v15726_v48  ;;  %v12900_v60 = vadd.f32 %v2716_v28, %v15752_v50  ;;  %5282 = vrot.lane.b32.xlu1 %v12714_v53, %s7733_s23  ;;  %v15756_v4 = vld [vmem:[#allocation109_spill] sm:$0xff] }
 0x43a   : > { %v5461_v25 = vrot.slane %v5395_v55, 2  ;;  %v5402_v32 = vmul.f32 %v12229_v8, %v15723_v21  ;;  %v12907_v52 = vadd.f32 %v2717_v3, %v15754_v34  ;;  %v2935_v10 = vsel %vm2235_vm7, %v15757_v35, %v15756_v4  ;;  %5280 = vrot.lane.b32.xlu0 %v12718_v38, %s7733_s23  ;;  %v15759_v3 = vld [vmem:[#allocation263_spill] sm:$0xff] }
 0x43b   : > { %15753 = vst [vmem:[#allocation69_spill] sm:$0xff] %v12900_v60  ;;  %v12915_v28 = vsel %vm1512_vm1, %v5463_v63, %v5464_v36  ;;  %v5401_v53 = vmul.f32 %v12138_v6, %v12676_v0  ;;  %v12919_v16 = vpop.permute.xlu1 %4661  ;;  %v5469_v55 = vrot.slane %v5393_v7, 2  ;;  %v5470_v21 = vrot.slane %v5398_v24, 2  ;;  %v12925_v35 = vpop.permute.xlu0 %4659  ;;  %v15762_v0 = vld [vmem:[#allocation27_spill] sm:$0xff]  ;;  %v15763_v24 = vld [vmem:[#allocation110_spill] sm:$0xff] }
 0x43c   : > { %15755 = vst [vmem:[#allocation32_spill] sm:$0xff] %v12907_v52  ;;  %15758 = vst [vmem:[#allocation90_spill] sm:$0xff] %v12919_v16  ;;  %v5404_v34 = vmul.f32 %v15759_v3, %v15726_v48  ;;  %v5403_v50 = vmul.f32 %v12233_v46, %v15719_v59  ;;  %v5466_v52 = vrot.slane %v5392_v13, 2  ;;  %v5467_v38 = vrot.slane %v5397_v9, 2  ;;  %v15764_v9 = vld [vmem:[#allocation71_spill] sm:$0xff] }
 0x43d   : > { %15760 = vst [vmem:[#allocation93_spill] sm:$0xff] %v12925_v35  ;;  %v5475_v60 = vrot.slane %v5400_v30, 2  ;;  %v5472_v63 = vrot.slane %v5394_v29, 2  ;;  %v12928_v51 = vadd.f32 %v2935_v10, %v15761_v40  ;;  %v2936_v7 = vsel %vm2235_vm7, %v15756_v4, %v15762_v0  ;;  %5286 = vrot.lane.b32.xlu1 %v12721_v27, %s7733_s23  ;;  %v15765_v30 = vld [vmem:[#allocation72_spill] sm:$0xff] }
 0x43e   : > { %v12936_v48 = vsel %vm1512_vm1, %v5460_v44, %v5461_v25  ;;  %v5479_v59 = vrot.slane %v5402_v32, 2  ;;  %v2937_v13 = vsel %vm2235_vm7, %v15762_v0, %v15763_v24  ;;  %5284 = vrot.lane.b32.xlu0 %v12726_v14, %s7733_s23  ;;  %v5477_v40 = vrot.slane %v5401_v53, 2  ;;  %v15789_v35 = vld [vmem:[#allocation184_spill] sm:$0xff] }
 0x43f   : > { %v12946_v29 = vsel %vm1046_vm4, %v15765_v30, %v15764_v9  ;;  %v5608_v27 = vmul.f32 %v12469_v12, %v15765_v30  ;;  %v12950_v4 = vpop.permute.xlu1 %4858  ;;  %v12953_v44 = vsel %vm1512_vm1, %v5469_v55, %v5470_v21  ;;  %v5483_v32 = vrot.slane %v5404_v34, 2  ;;  %v12957_v14 = vpop.permute.xlu0 %4856  ;;  %v15771_v34 = vld [vmem:[#allocation187_spill] sm:$0xff] }
 0x440   : > { %15766 = vst [vmem:[#allocation97_spill] sm:$0xff] %v12950_v4  ;;  %v5481_v10 = vrot.slane %v5403_v50, 2  ;;  %v5609_v3 = vmul.f32 %v12459_v62, %v12946_v29  ;;  %15767 = vst [vmem:[#allocation101_spill] sm:$0xff] %v12957_v14  ;;  %v12960_v53 = vsel %vm1512_vm1, %v5466_v52, %v5467_v38  ;;  %v12963_v0 = vsel %vm1512_vm1, %v5461_v25, %v5475_v60  ;;  %v15773_v4 = vld [vmem:[#allocation59_spill] sm:$0xff]  ;;  %v15776_v25 = vld [vmem:[#allocation113_spill] sm:$0xff] }
 0x441   : > { %15768 = vst [vmem:[#allocation174_spill] sm:$0xff] %v12960_v53  ;;  %15769 = vst [vmem:[#allocation173_spill] sm:$0xff] %v12963_v0  ;;  %v12967_v9 = vsel %vm1512_vm1, %v5472_v63, %v12806_v18  ;;  %v12971_v55 = vmul.f32 %v12482_v20, %v15765_v30  ;;  %v12974_v50 = vadd.f32 %v2936_v7, %v15771_v34  ;;  %5290 = vrot.lane.b32.xlu1 %v12735_v47, %s7733_s23  ;;  %v15788_v14 = vld [vmem:[#allocation182_spill] sm:$0xff] }
 0x442   : > { %15770 = vst [vmem:[#allocation126_spill] sm:$0xff] %v12967_v9  ;;  %v12977_v16 = vadd.f32 %v2937_v13, %v15773_v4  ;;  %v12982_v52 = vsel %vm1512_vm1, %v5467_v38, %v5479_v59  ;;  %v12986_v60 = vmul.f32 %v12463_v23, %v12946_v29  ;;  %v2938_v63 = vsel %vm2235_vm7, %v15763_v24, %v15776_v25  ;;  %v15778_v4 = vld [vmem:[#allocation202_spill] sm:$0xff] }
 0x443   : > { %15772 = vst [vmem:[#allocation99_spill] sm:$0xff] %v12974_v50  ;;  %15775 = vst [vmem:[#allocation175_spill] sm:$0xff] %v12982_v52  ;;  %5288 = vrot.lane.b32.xlu0 %v12752_v45, %s7733_s23  ;;  %v12994_v7 = vsel %vm1512_vm1, %v5464_v36, %v5477_v40  ;;  %v5668_v13 = vrot.slane %v5608_v27, 3  ;;  %v5611_v47 = vmul.f32 %v12739_v15, %v15778_v4  ;;  %v12998_v38 = vpop.permute.xlu1 %4862  ;;  %v5671_v24 = vrot.slane %v5609_v3, 3  ;;  %v13011_v36 = vpop.permute.xlu0 %4860  ;;  %v15783_v27 = vld [vmem:[#allocation74_spill] sm:$0xff]  ;;  %v15793_v52 = vld [vmem:[#allocation115_spill] sm:$0xff] }
 0x444   : > { %15774 = vst [vmem:[#allocation41_spill] sm:$0xff] %v12977_v16  ;;  %15777 = vst [vmem:[#allocation177_spill] sm:$0xff] %v12994_v7  ;;  %v13002_v59 = vsel %vm1512_vm1, %v12806_v18, %v5483_v32  ;;  %v13005_v34 = vsel %vm1512_vm1, %v5470_v21, %v5481_v10  ;;  %v13009_v45 = vmul.f32 %v12496_v37, %v15778_v4  ;;  %v5669_v40 = vrot.slane %v12971_v55, 3  ;;  %v15784_v21 = vld [vmem:[#allocation190_spill] sm:$0xff]  ;;  %v15786_v10 = vld [vmem:[#allocation201_spill] sm:$0xff] }
 0x445   : > { %15779 = vst [vmem:[#allocation109_spill] sm:$0xff] %v12998_v38  ;;  %15780 = vst [vmem:[#allocation81_spill] sm:$0xff] %v13002_v59  ;;  %v5610_v25 = vmul.f32 %v12761_v31, %v15783_v27  ;;  %v5615_v38 = vmul.f32 %v12510_v19, %v15783_v27  ;;  %v5618_v18 = vmul.f32 %v12769_v1, %v15765_v30  ;;  %5487 = vrot.lane.b32.xlu1 %v15786_v10, %s7733_s23 }
 0x446   : > { %15781 = vst [vmem:[#allocation263_spill] sm:$0xff] %v13005_v34  ;;  %15782 = vst [vmem:[#allocation180_spill] sm:$0xff] %v13011_v36  ;;  %v13021_v32 = vadd.f32 %v2938_v63, %v15784_v21  ;;  %v5672_v3 = vrot.slane %v12986_v60, 3  ;;  %v15787_v36 = vld [vmem:[#allocation73_spill] sm:$0xff]  ;;  %v13033_v59 = vsel %vm1746_vm2, %v5668_v13, %v5669_v40  ;;  %v5677_v7 = vrot.slane %v5611_v47, 3  ;;  %v15792_v60 = vld [vmem:[#allocation183_spill] sm:$0xff] }
 0x447   : > { %v5612_v55 = vmul.f32 %v15788_v14, %v15787_v36  ;;  %v5617_v34 = vmul.f32 %v15789_v35, %v15787_v36  ;;  %5485 = vrot.lane.b32.xlu0 %v12819_v42, %s7733_s23  ;;  %15790 = vst [vmem:[#allocation110_spill] sm:$0xff] %v13033_v59  ;;  %v13035_v63 = vld [vmem:[#allocation2 + $0x78] sm:$0xf]  ;;  %v5619_v10 = vmul.f32 %v15792_v60, %v12946_v29  ;;  %v13044_v0 = vpop.permute.xlu1 %4866  ;;  %v5678_v13 = vrot.slane %v13009_v45, 3  ;;  %v13050_v47 = vld [vmem:[#allocation2 + $0x88] sm:$0xf]  ;;  %v13057_v35 = vpop.permute.xlu0 %4864 }
 0x448   : > { %15785 = vst [vmem:[#allocation27_spill] sm:$0xff] %v13021_v32  ;;  %15791 = vst [vmem:[#allocation71_spill] sm:$0xff] %v13035_v63  ;;  %v5620_v21 = vmul.f32 %v13035_v63, %v15783_v27  ;;  %v15794_v32 = vld [vmem:[#allocation111_spill] sm:$0xff]  ;;  %v13047_v42 = vsel %vm1746_vm2, %v5671_v24, %v5672_v3  ;;  %v5622_v59 = vmul.f32 %v13050_v47, %v15787_v36  ;;  %v15798_v63 = vld [vmem:[#allocation80_spill] sm:$0xff]  ;;  %v5674_v16 = vrot.slane %v5610_v25, 3 }
 0x449   : > { %v2939_v9 = vsel %vm2235_vm7, %v15794_v32, %v15793_v52  ;;  %15795 = vst [vmem:[#allocation72_spill] sm:$0xff] %v13044_v0  ;;  %15796 = vst [vmem:[#allocation187_spill] sm:$0xff] %v13047_v42  ;;  %v2940_v60 = vsel %vm2235_vm7, %v15793_v52, %v15798_v63  ;;  %v5675_v32 = vrot.slane %v5615_v38, 3  ;;  %v5683_v14 = vrot.slane %v5618_v18, 3  ;;  %v15800_v0 = vld [vmem:[#allocation116_spill] sm:$0xff]  ;;  %v15801_v42 = vld [vmem:[#allocation114_spill] sm:$0xff]  ;;  %5491 = vrot.lane.b32.xlu1 %v12835_v43, %s7733_s23 }
 0x44a   : > { %15797 = vst [vmem:[#allocation59_spill] sm:$0xff] %v13050_v47  ;;  %15799 = vst [vmem:[#allocation113_spill] sm:$0xff] %v13057_v35  ;;  %v2941_v24 = vsel %vm2235_vm7, %v15798_v63, %v15800_v0  ;;  %v2942_v45 = vsel %vm2235_vm7, %v15800_v0, %v15801_v42  ;;  %v5680_v47 = vrot.slane %v5612_v55, 3  ;;  %v13067_v50 = vrot.slane %v5617_v34, 3  ;;  %v15802_v52 = vld [vmem:[#allocation248_spill] sm:$0xff]  ;;  %v15803_v18 = vld [vmem:[#allocation186_spill] sm:$0xff] }
 0x44b   : > { %v13070_v1 = vadd.f32 %v2939_v9, %v15802_v52  ;;  %5489 = vrot.lane.b32.xlu0 %v12838_v26, %s7733_s23  ;;  %v5687_v38 = vrot.slane %v5620_v21, 3  ;;  %v5685_v25 = vrot.slane %v5619_v10, 3  ;;  %v5621_v63 = vmul.f32 %v15803_v18, %v15778_v4  ;;  %v15804_v35 = vld [vmem:[#allocation247_spill] sm:$0xff]  ;;  %v13079_v0 = vpop.permute.xlu1 %4870  ;;  %v15807_v42 = vld [vmem:[#allocation62_spill] sm:$0xff]  ;;  %v15808_v26 = vld [vmem:[#allocation253_spill] sm:$0xff]  ;;  %v13092_v10 = vpop.permute.xlu0 %4868 }
 0x44c   : > { %v13077_v53 = vadd.f32 %v2940_v60, %v15804_v35  ;;  %15805 = vst [vmem:[#allocation202_spill] sm:$0xff] %v13079_v0  ;;  %v13082_v43 = vsel %vm1746_vm2, %v5677_v7, %v5678_v13  ;;  %v5691_v34 = vrot.slane %v5622_v59, 3  ;;  %v15806_v9 = vld [vmem:[#allocation159_spill] sm:$0xff]  ;;  %v13087_v52 = vadd.f32 %v2941_v24, %v15807_v42  ;;  %15809 = vst [vmem:[#allocation74_spill] sm:$0xff] %v13092_v10  ;;  %v15810_v59 = vld [vmem:[#allocation68_spill] sm:$0xff] }
 0x44d   : > { %v5624_v55 = vmul.f32 %v15806_v9, %v12946_v29  ;;  %v13090_v21 = vadd.f32 %v2942_v45, %v15808_v26  ;;  %v13095_v35 = vsel %vm1746_vm2, %v5674_v16, %v5675_v32  ;;  %v13098_v60 = vsel %vm1746_vm2, %v5669_v40, %v5683_v14  ;;  %5495 = vrot.lane.b32.xlu1 %v12849_v11, %s7733_s23  ;;  %v15812_v9 = vld [vmem:[#allocation84_spill] sm:$0xff]  ;;  %v15813_v42 = vld [vmem:[#allocation83_spill] sm:$0xff] }
 0x44e   : > { %v13104_v7 = vsel %vm1746_vm2, %v5680_v47, %v13067_v50  ;;  %v13108_v24 = vmul.f32 %v15810_v59, %v12946_v29  ;;  %v5623_v45 = vmul.f32 %v12371_v39, %v15765_v30  ;;  %v5628_v16 = vmul.f32 %v12599_v58, %v15765_v30 }
 0x44f   : > { %5493 = vrot.lane.b32.xlu0 %v12853_v61, %s7733_s23  ;;  %v13117_v14 = vsel %vm1746_vm2, %v5675_v32, %v5687_v38  ;;  %v13120_v11 = vsel %vm1746_vm2, %v5672_v3, %v5685_v25  ;;  %v5689_v40 = vrot.slane %v5621_v63, 3  ;;  %v5626_v47 = vmul.f32 %v12080_v49, %v15778_v4  ;;  %v13127_v0 = vpop.permute.xlu1 %4874  ;;  %v13135_v3 = vpop.permute.xlu0 %4872  ;;  %v13137_v38 = vld [vmem:[#allocation2 + $0xa8] sm:$0xff] }
 0x450   : > { %15811 = vst [vmem:[#allocation190_spill] sm:$0xff] %v13120_v11  ;;  %v2943_v26 = vsel %vm2235_vm7, %v15813_v42, %v15812_v9  ;;  %15814 = vst [vmem:[#allocation201_spill] sm:$0xff] %v13127_v0  ;;  %v13131_v10 = vsel %vm1746_vm2, %v13067_v50, %v5691_v34  ;;  %v5696_v61 = vrot.slane %v5624_v55, 3  ;;  %v5631_v32 = vmul.f32 %v12605_v2, %v15778_v4  ;;  %v13159_v11 = vld [vmem:[#allocation2 + $0x118] sm:$0xf] }
 0x451   : > { %15815 = vst [vmem:[#allocation73_spill] sm:$0xff] %v13131_v10  ;;  %15816 = vst [vmem:[#allocation115_spill] sm:$0xff] %v13135_v3  ;;  %v5625_v49 = vmul.f32 %v13137_v38, %v15783_v27  ;;  %v5630_v25 = vmul.f32 %v12634_v57, %v15783_v27  ;;  %v5633_v63 = vmul.f32 %v12126_v41, %v15765_v30  ;;  %5499 = vrot.lane.b32.xlu1 %v12858_v56, %s7733_s23 }
 0x452   : > { %v5627_v34 = vmul.f32 %v12642_v22, %v15787_v36  ;;  %v5697_v55 = vrot.slane %v13108_v24, 3  ;;  %v5693_v42 = vrot.slane %v5623_v45, 3  ;;  %v5694_v0 = vrot.slane %v5628_v16, 3  ;;  %15818 = vst [vmem:[#allocation80_spill] sm:$0xff] %v13159_v11  ;;  %v15819_v24 = vld [vmem:[#allocation49_spill] sm:$0xff] }
 0x453   : > { %v5635_v3 = vmul.f32 %v12229_v8, %v15783_v27  ;;  %5497 = vrot.lane.b32.xlu0 %v12861_v17, %s7733_s23  ;;  %v13155_v10 = vsel %vm1746_vm2, %v5678_v13, %v5689_v40  ;;  %v5702_v41 = vrot.slane %v5626_v47, 3  ;;  %v5634_v30 = vmul.f32 %v12138_v6, %v12946_v29  ;;  %v15820_v8 = vld [vmem:[#allocation48_spill] sm:$0xff]  ;;  %v13169_v27 = vpop.permute.xlu1 %4878  ;;  %v13173_v6 = vpop.permute.xlu0 %4876 }
 0x454   : > { %15817 = vst [vmem:[#allocation111_spill] sm:$0xff] %v13155_v10  ;;  %v5637_v56 = vmul.f32 %v13159_v11, %v15787_v36  ;;  %v2944_v45 = vsel %vm2235_vm7, %v15812_v9, %v15819_v24  ;;  %v2945_v17 = vsel %vm2235_vm7, %v15819_v24, %v15820_v8  ;;  %15821 = vst [vmem:[#allocation116_spill] sm:$0xff] %v13169_v27  ;;  %v5703_v13 = vrot.slane %v5631_v32, 3  ;;  %v15823_v11 = vld [vmem:[#allocation45_spill] sm:$0xff] }
 0x455   : > { %v5636_v16 = vmul.f32 %v12233_v46, %v15778_v4  ;;  %15822 = vst [vmem:[#allocation114_spill] sm:$0xff] %v13173_v6  ;;  %v5699_v29 = vrot.slane %v5625_v49, 3  ;;  %v5700_v40 = vrot.slane %v5630_v25, 3  ;;  %v5708_v47 = vrot.slane %v5633_v63, 3  ;;  %5503 = vrot.lane.b32.xlu1 %v12874_v54, %s7733_s23  ;;  %v15824_v46 = vld [vmem:[#allocation46_spill] sm:$0xff]  ;;  %v15825_v49 = vld [vmem:[#allocation124_spill] sm:$0xff] }
 0x456   : > { %v5705_v36 = vrot.slane %v5627_v34, 3  ;;  %v13176_v10 = vadd.f32 %v2943_v26, %v15823_v11  ;;  %v13181_v9 = vsel %vm1746_vm2, %v5696_v61, %v5697_v55  ;;  %v13184_v32 = vsel %vm1746_vm2, %v5693_v42, %v5694_v0  ;;  %v15826_v54 = vld [vmem:[#allocation193_spill] sm:$0xff]  ;;  %v15828_v42 = vld [vmem:[#allocation75_spill] sm:$0xff] }
 0x457   : > { %v5712_v24 = vrot.slane %v5635_v3, 3  ;;  %v13187_v4 = vadd.f32 %v2944_v45, %v15824_v46  ;;  %v2946_v25 = vsel %vm2235_vm7, %v15820_v8, %v15825_v49  ;;  %5501 = vrot.lane.b32.xlu0 %v12883_v5, %s7733_s23  ;;  %v5710_v11 = vrot.slane %v5634_v30, 3  ;;  %v13197_v61 = vpop.permute.xlu1 %4882  ;;  %v15829_v3 = vld [vmem:[#allocation76_spill] sm:$0xff]  ;;  %v13206_v8 = vpop.permute.xlu0 %4880  ;;  %v15832_v49 = vld [vmem:[#allocation118_spill] sm:$0xff]  ;;  %v15854_v27 = vld [vmem:[#allocation77_spill] sm:$0xff] }
 0x458   : > { %v5716_v26 = vrot.slane %v5637_v56, 3  ;;  %v13195_v63 = vadd.f32 %v2945_v17, %v15826_v54  ;;  %15827 = vst [vmem:[#allocation248_spill] sm:$0xff] %v13197_v61  ;;  %v5714_v34 = vrot.slane %v5636_v16, 3  ;;  %v13202_v45 = vsel %vm1046_vm4, %v15829_v3, %v15828_v42  ;;  %15830 = vst [vmem:[#allocation186_spill] sm:$0xff] %v13206_v8  ;;  %v15834_v42 = vld [vmem:[#allocation43_spill] sm:$0xff]  ;;  %v15851_v61 = vld [vmem:[#allocation25_spill] sm:$0xff] }
 0x459   : > { %v5841_v46 = vmul.f32 %v12469_v12, %v15829_v3  ;;  %v13209_v5 = vsel %vm1746_vm2, %v5702_v41, %v5703_v13  ;;  %v13212_v30 = vsel %vm1746_vm2, %v5699_v29, %v5700_v40  ;;  %v13215_v56 = vsel %vm1746_vm2, %v5694_v0, %v5708_v47  ;;  %v15833_v12 = vld [vmem:[#allocation40_spill] sm:$0xff]  ;;  %5507 = vrot.lane.b32.xlu1 %v12915_v28, %s7733_s23  ;;  %v15838_v28 = vld [vmem:[#allocation26_spill] sm:$0xff]  ;;  %v15852_v8 = vld [vmem:[#allocation99_spill] sm:$0xff] }
 0x45a   : > { %v13219_v17 = vsel %vm1746_vm2, %v5705_v36, %v13067_v50  ;;  %v13222_v16 = vadd.f32 %v2946_v25, %v12830_v33  ;;  %v2947_v54 = vsel %vm2235_vm7, %v15833_v12, %v15832_v49  ;;  %v2948_v41 = vsel %vm2235_vm7, %v15832_v49, %v15834_v42  ;;  %v15839_v25 = vld [vmem:[#allocation50_spill] sm:$0xff] }
 0x45b   : > { %15831 = vst [vmem:[#allocation247_spill] sm:$0xff] %v13219_v17  ;;  %v13233_v0 = vsel %vm1746_vm2, %v5700_v40, %v5712_v24  ;;  %5505 = vrot.lane.b32.xlu0 %v12936_v48, %s7733_s23  ;;  %v13238_v33 = vsel %vm1746_vm2, %v5697_v55, %v5710_v11  ;;  %v13242_v29 = vsel %vm1746_vm2, %v13067_v50, %v5716_v26  ;;  %v13251_v24 = vpop.permute.xlu1 %4886  ;;  %v5901_v50 = vrot.slane %v5841_v46, 4  ;;  %v15842_v11 = vld [vmem:[#allocation91_spill] sm:$0xff]  ;;  %v15862_v17 = vld [vmem:[#allocation117_spill] sm:$0xff] }
 0x45c   : > { %15835 = vst [vmem:[#allocation159_spill] sm:$0xff] %v13233_v0  ;;  %15836 = vst [vmem:[#allocation62_spill] sm:$0xff] %v13238_v33  ;;  %v5842_v47 = vmul.f32 %v12459_v62, %v13202_v45  ;;  %v5846_v36 = vmul.f32 %v12482_v20, %v15829_v3  ;;  %v3168_v40 = vsel %vm2235_vm7, %v15839_v25, %v15838_v28  ;;  %v15843_v62 = vld [vmem:[#allocation199_spill] sm:$0xff]  ;;  %v13269_v25 = vpop.permute.xlu0 %4884 }
 0x45d   : > { %15837 = vst [vmem:[#allocation253_spill] sm:$0xff] %v13242_v29  ;;  %15840 = vst [vmem:[#allocation68_spill] sm:$0xff] %v13251_v24  ;;  %v13254_v48 = vsel %vm1746_vm2, %v5703_v13, %v5714_v34  ;;  %v13258_v55 = vmul.f32 %v12463_v23, %v13202_v45  ;;  %v13261_v26 = vadd.f32 %v2947_v54, %v15842_v11  ;;  %v15844_v20 = vld [vmem:[#allocation127_spill] sm:$0xff]  ;;  %v15847_v34 = vld [vmem:[#allocation37_spill] sm:$0xff]  ;;  %5511 = vrot.lane.b32.xlu1 %v12953_v44, %s7733_s23 }
 0x45e   : > { %15841 = vst [vmem:[#allocation84_spill] sm:$0xff] %v13254_v48  ;;  %v13264_v49 = vadd.f32 %v2948_v41, %v15843_v62  ;;  %v3169_v12 = vsel %vm2235_vm7, %v15838_v28, %v15844_v20  ;;  %15845 = vst [vmem:[#allocation83_spill] sm:$0xff] %v13269_v25  ;;  %v15846_v24 = vld [vmem:[#allocation203_spill] sm:$0xff]  ;;  %v3170_v23 = vsel %vm2235_vm7, %v15844_v20, %v15847_v34  ;;  %v15848_v54 = vld [vmem:[#allocation78_spill] sm:$0xff]  ;;  %v5904_v62 = vrot.slane %v5842_v47, 4 }
 0x45f   : > { %v5844_v13 = vmul.f32 %v12739_v15, %v15846_v24  ;;  %v13280_v46 = vmul.f32 %v12496_v37, %v15846_v24  ;;  %v5843_v41 = vmul.f32 %v12761_v31, %v15848_v54  ;;  %v5848_v28 = vmul.f32 %v12510_v19, %v15848_v54  ;;  %v15849_v15 = vld [vmem:[#allocation174_spill] sm:$0xff]  ;;  %v15850_v25 = vld [vmem:[#allocation196_spill] sm:$0xff]  ;;  %v13295_v31 = vpop.permute.xlu1 %4890 }
 0x460   : > { %v3200_v11 = vadd.f32 %v3168_v40, %v12928_v51  ;;  %5509 = vrot.lane.b32.xlu0 %v15849_v15, %s7733_s23  ;;  %v5902_v20 = vrot.slane %v5846_v36, 4  ;;  %v5851_v44 = vmul.f32 %v15850_v25, %v15829_v3  ;;  %v2949_v37 = vsel %vm2235_vm7, %v15834_v42, %v15851_v61  ;;  %15853 = vst [vmem:[#allocation49_spill] sm:$0xff] %v13295_v31  ;;  %v15855_v51 = vld [vmem:[#allocation182_spill] sm:$0xff]  ;;  %v15856_v48 = vld [vmem:[#allocation208_spill] sm:$0xff]  ;;  %v15857_v36 = vld [vmem:[#allocation41_spill] sm:$0xff]  ;;  %v13304_v25 = vpop.permute.xlu0 %4888 }
 0x461   : > { %v3201_v6 = vadd.f32 %v3169_v12, %v15852_v8  ;;  %v5905_v19 = vrot.slane %v13258_v55, 4  ;;  %v5845_v40 = vmul.f32 %v15855_v51, %v15854_v27  ;;  %v2950_v47 = vsel %vm2235_vm7, %v15851_v61, %v15856_v48  ;;  %15858 = vst [vmem:[#allocation48_spill] sm:$0xff] %v13304_v25  ;;  %v15859_v42 = vld [vmem:[#allocation184_spill] sm:$0xff]  ;;  %v15860_v8 = vld [vmem:[#allocation173_spill] sm:$0xff]  ;;  %v15861_v51 = vld [vmem:[#allocation71_spill] sm:$0xff] }
 0x462   : > { %v3202_v15 = vadd.f32 %v3170_v23, %v15857_v36  ;;  %v5910_v29 = vrot.slane %v5844_v13, 4  ;;  %v5850_v33 = vmul.f32 %v15859_v42, %v15854_v27  ;;  %5515 = vrot.lane.b32.xlu1 %v15860_v8, %s7733_s23  ;;  %v5907_v12 = vrot.slane %v5843_v41, 4  ;;  %v15863_v48 = vld [vmem:[#allocation94_spill] sm:$0xff]  ;;  %v15865_v42 = vld [vmem:[#allocation183_spill] sm:$0xff]  ;;  %v15866_v25 = vld [vmem:[#allocation204_spill] sm:$0xff] }
 0x463   : > { %v5908_v31 = vrot.slane %v5848_v28, 4  ;;  %v5853_v0 = vmul.f32 %v15861_v51, %v15848_v54  ;;  %v3255_v61 = vadd.f32 %v15862_v17, %v3200_v11  ;;  %v3171_v23 = vsel %vm2235_vm7, %v15847_v34, %v15863_v48  ;;  %v15864_v13 = vld [vmem:[#allocation126_spill] sm:$0xff]  ;;  %v13322_v41 = vpop.permute.xlu1 %4894  ;;  %v15870_v11 = vld [vmem:[#allocation59_spill] sm:$0xff]  ;;  %v15871_v51 = vld [vmem:[#allocation69_spill] sm:$0xff] }
 0x464   : > { %5513 = vrot.lane.b32.xlu0 %v15864_v13, %s7733_s23  ;;  %v5916_v36 = vrot.slane %v5851_v44, 4  ;;  %v5852_v8 = vmul.f32 %v15865_v42, %v13202_v45  ;;  %v3256_v55 = vadd.f32 %v15866_v25, %v3201_v6  ;;  %15867 = vst [vmem:[#allocation45_spill] sm:$0xff] %v13322_v41  ;;  %v13325_v28 = vsel %vm1980_vm5, %v5904_v62, %v5905_v19  ;;  %v15872_v44 = vld [vmem:[#allocation88_spill] sm:$0xff]  ;;  %v13338_v42 = vpop.permute.xlu0 %4892 }
 0x465   : > { %15868 = vst [vmem:[#allocation46_spill] sm:$0xff] %v13325_v28  ;;  %v13328_v17 = vsel %vm1980_vm5, %v5901_v50, %v5902_v20  ;;  %v13332_v34 = vmul.f32 %v15870_v11, %v15854_v27  ;;  %v13335_v48 = vadd.f32 %v2949_v37, %v15871_v51  ;;  %v3257_v13 = vadd.f32 %v15872_v44, %v3202_v15  ;;  %v15874_v41 = vld [vmem:[#allocation32_spill] sm:$0xff]  ;;  %v15875_v28 = vld [vmem:[#allocation27_spill] sm:$0xff] }
 0x466   : > { %15869 = vst [vmem:[#allocation124_spill] sm:$0xff] %v13328_v17  ;;  %15873 = vst [vmem:[#allocation193_spill] sm:$0xff] %v13338_v42  ;;  %v5913_v6 = vrot.slane %v5845_v40, 4  ;;  %v13340_v25 = vrot.slane %v5850_v33, 4  ;;  %v13343_v62 = vadd.f32 %v2950_v47, %v15874_v41  ;;  %v3203_v50 = vadd.f32 %v3171_v23, %v15875_v28  ;;  %v15876_v17 = vld [vmem:[#allocation175_spill] sm:$0xff]  ;;  %v15878_v15 = vld [vmem:[#allocation120_spill] sm:$0xff] }
 0x467   : > { %5519 = vrot.lane.b32.xlu1 %v15876_v17, %s7733_s23  ;;  %v15877_v11 = vrot.slane %v13280_v46, 4  ;;  %v5920_v51 = vrot.slane %v5853_v0, 4  ;;  %v3398_v44 = vadd.f32 %v15878_v15, %v3255_v61  ;;  %v15879_v40 = vld [vmem:[#allocation177_spill] sm:$0xff]  ;;  %v13357_v33 = vsel %vm1980_vm5, %v5907_v12, %v5908_v31  ;;  %v13363_v17 = vpop.permute.xlu1 %5021  ;;  %v7519_v61 = vld [vmem:[#allocation2 + $0xa0] sm:$0xff]  ;;  %v15884_v15 = vld [vmem:[#allocation119_spill] sm:$0xff] }
 0x468   : > { %5517 = vrot.lane.b32.xlu0 %v15879_v40, %s7733_s23  ;;  %15880 = vst [vmem:[#allocation75_spill] sm:$0xff] %v13357_v33  ;;  %v13360_v47 = vsel %vm1980_vm5, %v5902_v20, %v5916_v36  ;;  %v5918_v23 = vrot.slane %v5852_v8, 4  ;;  %v15882_v41 = vld [vmem:[#allocation205_spill] sm:$0xff]  ;;  %15883 = vst [vmem:[#allocation118_spill] sm:$0xff] %v13363_v17  ;;  %v5854_v0 = vmul.f32 %v15803_v18, %v15846_v24  ;;  %v13370_v12 = vpop.permute.xlu0 %5019 }
 0x469   : > { %v13351_v37 = vsel %vm1980_vm5, %v5910_v29, %v15877_v11  ;;  %15881 = vst [vmem:[#allocation76_spill] sm:$0xff] %v13360_v47  ;;  %v3399_v28 = vadd.f32 %v15882_v41, %v3256_v55  ;;  %v5924_v29 = vrot.slane %v13332_v34, 4  ;;  %v5857_v11 = vmul.f32 %v7519_v61, %v13202_v45  ;;  %15885 = vst [vmem:[#allocation40_spill] sm:$0xff] %v13370_v12  ;;  %v15887_v8 = vld [vmem:[#allocation125_spill] sm:$0xff]  ;;  %v15888_v34 = vld [vmem:[#allocation212_spill] sm:$0xff] }
 0x46a   : > { %v3400_v40 = vadd.f32 %v15884_v15, %v3257_v13  ;;  %v13374_v20 = vsel %vm1980_vm5, %v5913_v6, %v13340_v25  ;;  %v13378_v55 = vmul.f32 %v15810_v59, %v13202_v45  ;;  %v5856_v36 = vmul.f32 %v12371_v39, %v15829_v3  ;;  %v15889_v41 = vld [vmem:[#allocation209_spill] sm:$0xff]  ;;  %v15892_v59 = vld [vmem:[#allocation210_spill] sm:$0xff]  ;;  %v15893_v12 = vld [vmem:[#allocation52_spill] sm:$0xff] }
 0x46b   : > { %15886 = vst [vmem:[#allocation43_spill] sm:$0xff] %v13374_v20  ;;  %v3258_v18 = vadd.f32 %v15887_v8, %v3203_v50  ;;  %v3172_v61 = vsel %vm2235_vm7, %v15889_v41, %v15888_v34  ;;  %v15890_v13 = vld [vmem:[#allocation81_spill] sm:$0xff]  ;;  %v13389_v15 = vsel %vm1980_vm5, %v5908_v31, %v5920_v51  ;;  %v13393_v6 = vmul.f32 %v12599_v58, %v15829_v3  ;;  %v15894_v8 = vld [vmem:[#allocation263_spill] sm:$0xff]  ;;  %v7520_v41 = vld [vmem:[#allocation2 + $0xb0] sm:$0xff]  ;;  %v13407_v58 = vpop.permute.xlu1 %5025 }
 0x46c   : > { %5523 = vrot.lane.b32.xlu1 %v15890_v13, %s7733_s23  ;;  %15891 = vst [vmem:[#allocation26_spill] sm:$0xff] %v13389_v15  ;;  %v3173_v39 = vsel %vm2235_vm7, %v15888_v34, %v15892_v59  ;;  %v3541_v50 = vadd.f32 %v15893_v12, %v3398_v44  ;;  %5521 = vrot.lane.b32.xlu0 %v15894_v8, %s7733_s23  ;;  %v15895_v51 = vld [vmem:[#allocation237_spill] sm:$0xff]  ;;  %v5922_v34 = vrot.slane %v5854_v0, 4  ;;  %v5929_v15 = vrot.slane %v5857_v11, 4  ;;  %v15896_v12 = vld [vmem:[#allocation142_spill] sm:$0xff]  ;;  %v13414_v20 = vpop.permute.xlu0 %5023 }
 0x46d   : > { %v5859_v17 = vmul.f32 %v7520_v41, %v15846_v24  ;;  %v13404_v31 = vmul.f32 %v12605_v2, %v15846_v24  ;;  %v3542_v13 = vadd.f32 %v15895_v51, %v3399_v28  ;;  %v13410_v42 = vsel %vm1980_vm5, %v5905_v19, %v5918_v23  ;;  %v15897_v2 = vld [vmem:[#allocation23_spill] sm:$0xff]  ;;  %v15900_v11 = vld [vmem:[#allocation110_spill] sm:$0xff] }
 0x46e   : > { %v3204_v44 = vadd.f32 %v3172_v61, %v13070_v1  ;;  %v3543_v8 = vadd.f32 %v15896_v12, %v3400_v40  ;;  %v14803_v41 = vrot.slane %v13378_v55, 4  ;;  %v5926_v47 = vrot.slane %v5856_v36, 4  ;;  %v15898_v51 = vld [vmem:[#allocation187_spill] sm:$0xff] }
 0x46f   : > { %v3401_v33 = vadd.f32 %v15897_v2, %v3258_v18  ;;  %v3205_v28 = vadd.f32 %v3173_v39, %v13077_v53  ;;  %v5858_v19 = vmul.f32 %v13137_v38, %v15848_v54  ;;  %v13425_v1 = vmul.f32 %v12634_v57, %v15848_v54  ;;  %v15899_v23 = vld [vmem:[#allocation31_spill] sm:$0xff]  ;;  %v15901_v18 = vld [vmem:[#allocation121_spill] sm:$0xff]  ;;  %v13436_v12 = vpop.permute.xlu1 %5029 }
 0x470   : > { %5720 = vrot.lane.b32.xlu1 %v15898_v51, %s7733_s23  ;;  %v3684_v0 = vadd.f32 %v15899_v23, %v3541_v50  ;;  %5718 = vrot.lane.b32.xlu0 %v15900_v11, %s7733_s23  ;;  %v5935_v36 = vrot.slane %v5859_v17, 4  ;;  %v3174_v61 = vsel %vm2235_vm7, %v15892_v59, %v15901_v18  ;;  %v15902_v39 = vld [vmem:[#allocation239_spill] sm:$0xff]  ;;  %15903 = vst [vmem:[#allocation50_spill] sm:$0xff] %v13436_v12  ;;  %v15904_v50 = vrot.slane %v13280_v46, 4  ;;  %v15905_v17 = vld [vmem:[#allocation24_spill] sm:$0xff]  ;;  %v15906_v23 = vld [vmem:[#allocation105_spill] sm:$0xff] }
 0x471   : > { %v3685_v38 = vadd.f32 %v15902_v39, %v3542_v13  ;;  %v13440_v57 = vsel %vm1980_vm5, %v13340_v25, %v5924_v29  ;;  %v3259_v51 = vadd.f32 %v15905_v17, %v3204_v44  ;;  %v3175_v11 = vsel %vm2235_vm7, %v15901_v18, %v15906_v23  ;;  %v15907_v59 = vld [vmem:[#allocation244_spill] sm:$0xff]  ;;  %v13452_v13 = vpop.permute.xlu0 %5027  ;;  %v15909_v39 = vld [vmem:[#allocation207_spill] sm:$0xff] }
 0x472   : > { %v13445_v2 = vsel %vm1980_vm5, %v15904_v50, %v5922_v34  ;;  %v3686_v53 = vadd.f32 %v15907_v59, %v3543_v8  ;;  %15908 = vst [vmem:[#allocation91_spill] sm:$0xff] %v13452_v13  ;;  %v13457_v29 = vsel %vm1980_vm5, %v5929_v15, %v14803_v41  ;;  %v3260_v46 = vadd.f32 %v15909_v39, %v3205_v28  ;;  %v15910_v40 = vld [vmem:[#allocation151_spill] sm:$0xff]  ;;  %v15911_v8 = vld [vmem:[#allocation232_spill] sm:$0xff]  ;;  %v7521_v59 = vld [vmem:[#allocation2 + $0xf8] sm:$0xf] }
 0x473   : > { %v3544_v34 = vadd.f32 %v15910_v40, %v3401_v33  ;;  %v5932_v44 = vrot.slane %v5858_v19, 4  ;;  %v3206_v18 = vadd.f32 %v3174_v61, %v13087_v52  ;;  %v13466_v17 = vadd.f32 %v15911_v8, %v3684_v0  ;;  %v15914_v40 = vld [vmem:[#allocation134_spill] sm:$0xff]  ;;  %v15915_v52 = vld [vmem:[#allocation216_spill] sm:$0xff]  ;;  %v15924_v50 = vld [vmem:[#allocation223_spill] sm:$0xff] }
 0x474   : > { %5724 = vrot.lane.b32.xlu1 %v13082_v43, %s7733_s23  ;;  %5722 = vrot.lane.b32.xlu0 %v13095_v35, %s7733_s23  ;;  %v15912_v15 = vrot.slane %v13393_v6, 4  ;;  %v15913_v33 = vrot.slane %v13404_v31, 4  ;;  %v3207_v19 = vadd.f32 %v3175_v11, %v13090_v21  ;;  %v3176_v0 = vsel %vm2235_vm7, %v15915_v52, %v15914_v40  ;;  %v15916_v61 = vld [vmem:[#allocation148_spill] sm:$0xff]  ;;  %v13487_v35 = vpop.permute.xlu1 %5033  ;;  %v15945_v12 = vld [vmem:[#allocation215_spill] sm:$0xff] }
 0x475   : > { %v13485_v23 = vadd.f32 %v15916_v61, %v3685_v38  ;;  %15917 = vst [vmem:[#allocation199_spill] sm:$0xff] %v13487_v35  ;;  %v15918_v39 = vld [vmem:[#allocation108_spill] sm:$0xff]  ;;  %v13500_v38 = vpop.permute.xlu0 %5031  ;;  %v15923_v61 = vld [vmem:[#allocation107_spill] sm:$0xff] }
 0x476   : > { %v13473_v28 = vsel %vm1980_vm5, %v5926_v47, %v15912_v15  ;;  %v13478_v43 = vsel %vm1980_vm5, %v5935_v36, %v15913_v33  ;;  %v5866_v47 = vmul.f32 %v7521_v59, %v15829_v3  ;;  %v3402_v8 = vadd.f32 %v15918_v39, %v3259_v51  ;;  %v15919_v15 = vld [vmem:[#allocation139_spill] sm:$0xff]  ;;  %v15920_v33 = vld [vmem:[#allocation98_spill] sm:$0xff]  ;;  %v15921_v11 = vld [vmem:[#allocation252_spill] sm:$0xff]  ;;  %15922 = vst [vmem:[#allocation127_spill] sm:$0xff] %v13500_v38 }
 0x477   : > { %v3177_v36 = vsel %vm2235_vm7, %v15914_v40, %v15919_v15  ;;  %v3178_v21 = vsel %vm2235_vm7, %v15919_v15, %v15920_v33  ;;  %v13498_v52 = vadd.f32 %v15921_v11, %v3686_v53  ;;  %v3403_v41 = vadd.f32 %v15923_v61, %v3260_v46  ;;  %v15925_v51 = vld [vmem:[#allocation255_spill] sm:$0xff]  ;;  %v15928_v35 = vld [vmem:[#allocation28_spill] sm:$0xff]  ;;  %v15929_v46 = vld [vmem:[#allocation221_spill] sm:$0xff] }
 0x478   : > { %v3179_v3 = vsel %vm2235_vm7, %v15920_v33, %v15924_v50  ;;  %v3687_v59 = vadd.f32 %v15925_v51, %v3544_v34  ;;  %5728 = vrot.lane.b32.xlu1 %v13098_v60, %s7733_s23  ;;  %v15926_v40 = vrot.slane %v13425_v1, 4  ;;  %v15927_v53 = vld [vmem:[#allocation123_spill] sm:$0xff]  ;;  %v3208_v11 = vadd.f32 %v3176_v0, %v13176_v10  ;;  %5726 = vrot.lane.b32.xlu0 %v13104_v7, %s7733_s23  ;;  %v15930_v60 = vld [vmem:[#allocation122_spill] sm:$0xff]  ;;  %v15931_v51 = vld [vmem:[#allocation141_spill] sm:$0xff] }
 0x479   : > { %v3261_v15 = vadd.f32 %v15927_v53, %v3206_v18  ;;  %v3180_v61 = vsel %vm2235_vm7, %v15929_v46, %v15928_v35  ;;  %v5860_v34 = vmul.f32 %v12642_v22, %v15854_v27  ;;  %v3262_v50 = vadd.f32 %v15930_v60, %v3207_v19  ;;  %v13529_v18 = vpop.permute.xlu1 %5037  ;;  %v13533_v7 = vpop.permute.xlu0 %5035  ;;  %v7522_v22 = vld [vmem:[#allocation2 + $0x108] sm:$0xf]  ;;  %v15939_v60 = vld [vmem:[#allocation56_spill] sm:$0xff] }
 0x47a   : > { %v13512_v39 = vsel %vm1980_vm5, %v5932_v44, %v15926_v40  ;;  %v3209_v33 = vadd.f32 %v3177_v36, %v13187_v4  ;;  %v3210_v44 = vadd.f32 %v3178_v21, %v13195_v63  ;;  %v3181_v10 = vsel %vm2235_vm7, %v15928_v35, %v15931_v51  ;;  %15932 = vst [vmem:[#allocation203_spill] sm:$0xff] %v13529_v18  ;;  %v15933_v40 = vld [vmem:[#allocation195_spill] sm:$0xff]  ;;  %v15942_v18 = vld [vmem:[#allocation89_spill] sm:$0xff] }
 0x47b   : > { %v3211_v0 = vadd.f32 %v3179_v3, %v13222_v16  ;;  %v3545_v53 = vadd.f32 %v15933_v40, %v3402_v8  ;;  %15934 = vst [vmem:[#allocation37_spill] sm:$0xff] %v13533_v7  ;;  %v5941_v46 = vrot.slane %v5866_v47, 4  ;;  %v13536_v19 = vmul.f32 %v7522_v22, %v15848_v54  ;;  %v15935_v63 = vld [vmem:[#allocation51_spill] sm:$0xff]  ;;  %v15937_v16 = vld [vmem:[#allocation194_spill] sm:$0xff]  ;;  %v15938_v47 = vld [vmem:[#allocation128_spill] sm:$0xff] }
 0x47c   : > { %v3212_v4 = vadd.f32 %v3180_v61, %v13261_v26  ;;  %v3182_v36 = vsel %vm2235_vm7, %v15931_v51, %v15935_v63  ;;  %v15936_v35 = vld [vmem:[#allocation231_spill] sm:$0xff]  ;;  %v3546_v3 = vadd.f32 %v15937_v16, %v3403_v41  ;;  %5732 = vrot.lane.b32.xlu1 %v13117_v14, %s7733_s23  ;;  %v3263_v8 = vadd.f32 %v15938_v47, %v3208_v11  ;;  %v15940_v26 = vld [vmem:[#allocation190_spill] sm:$0xff]  ;;  %v15941_v51 = vld [vmem:[#allocation129_spill] sm:$0xff] }
 0x47d   : > { %v3183_v21 = vsel %vm2235_vm7, %v15935_v63, %v15936_v35  ;;  %v3213_v54 = vadd.f32 %v3181_v10, %v13264_v49  ;;  %v13551_v40 = vadd.f32 %v15939_v60, %v3687_v59  ;;  %5730 = vrot.lane.b32.xlu0 %v15940_v26, %s7733_s23  ;;  %v5938_v61 = vrot.slane %v5860_v34, 4  ;;  %v15943_v35 = vld [vmem:[#allocation131_spill] sm:$0xff]  ;;  %v15944_v16 = vld [vmem:[#allocation130_spill] sm:$0xff]  ;;  %v5042_v14 = vpop.permute.xlu1 %5041  ;;  %v5040_v10 = vpop.permute.xlu0 %5039 }
 0x47e   : > { %v3404_v22 = vadd.f32 %v15941_v51, %v3261_v15  ;;  %v3405_v63 = vadd.f32 %v15942_v18, %v3262_v50  ;;  %v3264_v41 = vadd.f32 %v15943_v35, %v3209_v33  ;;  %v3265_v7 = vadd.f32 %v15944_v16, %v3210_v44  ;;  %v15947_v15 = vld [vmem:[#allocation217_spill] sm:$0xff]  ;;  %v15948_v50 = vld [vmem:[#allocation58_spill] sm:$0xff]  ;;  %v15949_v33 = vld [vmem:[#allocation227_spill] sm:$0xff] }
 0x47f   : > { %v3266_v11 = vadd.f32 %v15945_v12, %v3211_v0  ;;  %v3214_v49 = vadd.f32 %v3182_v36, %v13335_v48  ;;  %v3215_v59 = vadd.f32 %v3183_v21, %v13343_v62  ;;  %v15946_v47 = vrot.slane %v13393_v6, 4  ;;  %v15950_v12 = vld [vmem:[#allocation73_spill] sm:$0xff]  ;;  %v15951_v48 = vld [vmem:[#allocation211_spill] sm:$0xff]  ;;  %v15952_v0 = vld [vmem:[#allocation218_spill] sm:$0xff] }
 0x480   : > { %v3267_v60 = vadd.f32 %v15947_v15, %v3212_v4  ;;  %v3688_v18 = vadd.f32 %v15948_v50, %v3545_v53  ;;  %v3689_v26 = vadd.f32 %v15949_v33, %v3546_v3  ;;  %v13571_v44 = vsel %vm1046_vm4, %v5040_v10, %v5042_v14  ;;  %5736 = vrot.lane.b32.xlu1 %v15950_v12, %s7733_s23  ;;  %v15953_v6 = vld [vmem:[#allocation111_spill] sm:$0xff]  ;;  %v15954_v4 = vld [vmem:[#allocation213_spill] sm:$0xff]  ;;  %v15955_v3 = vld [vmem:[#allocation214_spill] sm:$0xff] }
 0x481   : > { %v13565_v34 = vsel %vm1980_vm5, %v15946_v47, %v5941_v46  ;;  %v3406_v62 = vadd.f32 %v15951_v48, %v3263_v8  ;;  %v3268_v36 = vadd.f32 %v15952_v0, %v3213_v54  ;;  %5734 = vrot.lane.b32.xlu0 %v15953_v6, %s7733_s23  ;;  %v13581_v46 = vsel %vm1980_vm5, %v5938_v61, %v13340_v25  ;;  %v15956_v35 = vld [vmem:[#allocation258_spill] sm:$0xff]  ;;  %v15957_v10 = vld [vmem:[#allocation259_spill] sm:$0xff]  ;;  %v5046_v8 = vpop.permute.xlu1 %5045  ;;  %v15958_v15 = vld [vmem:[#allocation137_spill] sm:$0xff]  ;;  %v5044_v0 = vpop.permute.xlu0 %5043 }
 0x482   : > { %v5945_v53 = vrot.slane %v13536_v19, 4  ;;  %v3407_v21 = vadd.f32 %v15954_v4, %v3264_v41  ;;  %v3408_v51 = vadd.f32 %v15955_v3, %v3265_v7  ;;  %v3547_v16 = vadd.f32 %v15956_v35, %v3404_v22  ;;  %v15959_v50 = vld [vmem:[#allocation138_spill] sm:$0xff]  ;;  %v15960_v12 = vld [vmem:[#allocation220_spill] sm:$0xff]  ;;  %v15966_v3 = vld [vmem:[#allocation33_spill] sm:$0xff] }
 0x483   : > { %v3548_v47 = vadd.f32 %v15957_v10, %v3405_v63  ;;  %v3409_v54 = vadd.f32 %v15958_v15, %v3266_v11  ;;  %v3269_v33 = vadd.f32 %v15959_v50, %v3214_v49  ;;  %v3270_v48 = vadd.f32 %v15960_v12, %v3215_v59  ;;  %v7523_v61 = vld [vmem:[#allocation2 + $0x100] sm:$0xf]  ;;  %v15961_v19 = vld [vmem:[#allocation136_spill] sm:$0xff]  ;;  %v15964_v49 = vld [vmem:[#allocation135_spill] sm:$0xff] }
 0x484   : > { %v5867_v6 = vmul.f32 %v7523_v61, %v13202_v45  ;;  %v3410_v38 = vadd.f32 %v15961_v19, %v3267_v60  ;;  %v15962_v41 = vld [vmem:[#allocation228_spill] sm:$0xff]  ;;  %v13597_v7 = vsel %vm1046_vm4, %v5042_v14, %v5044_v0  ;;  %v13600_v22 = vsel %vm1046_vm4, %v5044_v0, %v5046_v8  ;;  %5740 = vrot.lane.b32.xlu1 %v13181_v9, %s7733_s23  ;;  %v15967_v10 = vld [vmem:[#allocation261_spill] sm:$0xff] }
 0x485   : > { %v13594_v4 = vadd.f32 %v15962_v41, %v3688_v18  ;;  %v15963_v63 = vld [vmem:[#allocation224_spill] sm:$0xff]  ;;  %v3549_v59 = vadd.f32 %v15964_v49, %v3406_v62  ;;  %5738 = vrot.lane.b32.xlu0 %v13184_v32, %s7733_s23  ;;  %v3690_v35 = vadd.f32 %v15966_v3, %v3547_v16  ;;  %v3691_v15 = vadd.f32 %v15967_v10, %v3548_v47  ;;  %v15969_v9 = vld [vmem:[#allocation241_spill] sm:$0xff]  ;;  %v15972_v32 = vld [vmem:[#allocation167_spill] sm:$0xff]  ;;  %v5048_v49 = vpop.permute.xlu0 %5047 }
 0x486   : > { %v3411_v11 = vadd.f32 %v15963_v63, %v3268_v36  ;;  %v15965_v45 = vld [vmem:[#allocation80_spill] sm:$0xff]  ;;  %v3551_v0 = vadd.f32 %v15969_v9, %v3408_v51  ;;  %v5050_v36 = vpop.permute.xlu1 %5049  ;;  %v15971_v19 = vld [vmem:[#allocation229_spill] sm:$0xff]  ;;  %v3552_v63 = vadd.f32 %v15972_v32, %v3409_v54  ;;  %v13623_v47 = vsel %vm1046_vm4, %v5046_v8, %v5048_v49  ;;  %v15979_v3 = vld [vmem:[#allocation35_spill] sm:$0xff] }
 0x487   : > { %v5870_v60 = vmul.f32 %v15965_v45, %v15854_v27  ;;  %v7524_v18 = vld [vmem:[#allocation2 + $0x110] sm:$0xf]  ;;  %v3413_v41 = vadd.f32 %v15971_v19, %v3270_v48  ;;  %v5943_v27 = vrot.slane %v5867_v6, 4  ;;  %v15973_v45 = vld [vmem:[#allocation155_spill] sm:$0xff]  ;;  %v15977_v48 = vld [vmem:[#allocation153_spill] sm:$0xff]  ;;  %v3834_v10 = vadd.f32 %v15979_v3, %v3691_v15 }
 0x488   : > { %v5869_v14 = vmul.f32 %v7524_v18, %v15846_v24  ;;  %v15968_v50 = vld [vmem:[#allocation144_spill] sm:$0xff]  ;;  %v13619_v13 = vadd.f32 %v15973_v45, %v3689_v26  ;;  %v15974_v24 = vld [vmem:[#allocation66_spill] sm:$0xff]  ;;  %5744 = vrot.lane.b32.xlu1 %v13209_v5, %s7733_s23  ;;  %v3554_v6 = vadd.f32 %v15977_v48, %v3411_v11  ;;  %v15984_v49 = vld [vmem:[#allocation233_spill] sm:$0xff] }
 0x489   : > { %v3550_v12 = vadd.f32 %v15968_v50, %v3407_v21  ;;  %v15970_v61 = vld [vmem:[#allocation140_spill] sm:$0xff]  ;;  %v3553_v16 = vadd.f32 %v15974_v24, %v3410_v38  ;;  %v15975_v21 = vrot.slane %v13425_v1, 4  ;;  %5742 = vrot.lane.b32.xlu0 %v13212_v30, %s7733_s23  ;;  %v5949_v26 = vrot.slane %v5870_v60, 4  ;;  %v15980_v50 = vld [vmem:[#allocation163_spill] sm:$0xff]  ;;  %v5052_v45 = vpop.permute.xlu0 %5051 }
 0x48a   : > { %v3412_v62 = vadd.f32 %v15970_v61, %v3269_v33  ;;  %v15976_v33 = vld [vmem:[#allocation250_spill] sm:$0xff]  ;;  %v5947_v38 = vrot.slane %v5869_v14, 4  ;;  %v15978_v18 = vld [vmem:[#allocation100_spill] sm:$0xff]  ;;  %v5054_v61 = vpop.permute.xlu1 %5053  ;;  %v3556_v11 = vadd.f32 %v15984_v49, %v3413_v41  ;;  %v15985_v30 = vrot.slane %v13378_v55, 4  ;;  %v15990_v41 = vld [vmem:[#allocation65_spill] sm:$0xff] }
 0x48b   : > { %v13630_v51 = vsel %vm1980_vm5, %v15975_v21, %v5945_v53  ;;  %v3692_v54 = vadd.f32 %v15976_v33, %v3549_v59  ;;  %v3833_v8 = vadd.f32 %v15978_v18, %v3690_v35  ;;  %v3693_v5 = vadd.f32 %v15980_v50, %v3550_v12  ;;  %v15981_v9 = vld [vmem:[#allocation264_spill] sm:$0xff]  ;;  %v15982_v53 = vld [vmem:[#allocation166_spill] sm:$0xff]  ;;  %v15987_v35 = vld [vmem:[#allocation235_spill] sm:$0xff] }
 0x48c   : > { %v3694_v1 = vadd.f32 %v15981_v9, %v3551_v0  ;;  %v3695_v19 = vadd.f32 %v15982_v53, %v3552_v63  ;;  %v15983_v32 = vld [vmem:[#allocation156_spill] sm:$0xff]  ;;  %v13646_v60 = vsel %vm1980_vm5, %v15985_v30, %v5943_v27  ;;  %v15986_v14 = vld [vmem:[#allocation30_spill] sm:$0xff]  ;;  %v13653_v0 = vsel %vm1046_vm4, %v5050_v36, %v5052_v45  ;;  %5748 = vrot.lane.b32.xlu1 %v13215_v56, %s7733_s23  ;;  %v15991_v21 = vld [vmem:[#allocation247_spill] sm:$0xff] }
 0x48d   : > { %v3555_v59 = vadd.f32 %v15983_v32, %v3412_v62  ;;  %v3964_v15 = vsel %vm2146_vm6, %v15987_v35, %v15986_v14  ;;  %v15988_v12 = vld [vmem:[#allocation168_spill] sm:$0xff]  ;;  %v13656_v63 = vsel %vm1046_vm4, %v5052_v45, %v5054_v61  ;;  %v3697_v27 = vadd.f32 %v15990_v41, %v3554_v6  ;;  %5746 = vrot.lane.b32.xlu0 %v15991_v21, %s7733_s23  ;;  %v15994_v48 = vld [vmem:[#allocation95_spill] sm:$0xff]  ;;  %v15995_v18 = vld [vmem:[#allocation42_spill] sm:$0xff]  ;;  %v5056_v30 = vpop.permute.xlu0 %5055 }
 0x48e   : > { %v3696_v24 = vadd.f32 %v15988_v12, %v3553_v16  ;;  %v15989_v62 = vld [vmem:[#allocation160_spill] sm:$0xff]  ;;  %v13666_v33 = vsel %vm1980_vm5, %v13340_v25, %v5949_v26  ;;  %v15992_v36 = vrot.slane %v13404_v31, 4  ;;  %v3965_v56 = vsel %vm2146_vm6, %v15986_v14, %v15994_v48  ;;  %v15997_v50 = vld [vmem:[#allocation133_spill] sm:$0xff]  ;;  %v5058_v53 = vpop.permute.xlu1 %5057  ;;  %v15998_v26 = vld [vmem:[#allocation198_spill] sm:$0xff] }
 0x48f   : > { %v3835_v55 = vadd.f32 %v15989_v62, %v3692_v54  ;;  %v3966_v54 = vsel %vm2146_vm6, %v15994_v48, %v15995_v18  ;;  %v15996_v6 = vld [vmem:[#allocation64_spill] sm:$0xff]  ;;  %v3837_v9 = vadd.f32 %v15997_v50, %v3694_v1  ;;  %v3996_v25 = vadd.f32 %v3964_v15, %v13466_v17  ;;  %v16002_v12 = vld [vmem:[#allocation106_spill] sm:$0xff]  ;;  %v16003_v17 = vld [vmem:[#allocation159_spill] sm:$0xff] }
 0x490   : > { %v13671_v16 = vsel %vm1980_vm5, %v15992_v36, %v5947_v38  ;;  %v3836_v3 = vadd.f32 %v15996_v6, %v3693_v5  ;;  %v3838_v31 = vadd.f32 %v15998_v26, %v3695_v19  ;;  %v15999_v32 = vld [vmem:[#allocation36_spill] sm:$0xff]  ;;  %v3839_v62 = vadd.f32 %v16002_v12, %v3696_v24  ;;  %5752 = vrot.lane.b32.xlu1 %v16003_v17, %s7733_s23  ;;  %v16005_v15 = vld [vmem:[#allocation143_spill] sm:$0xff]  ;;  %v16006_v21 = vld [vmem:[#allocation154_spill] sm:$0xff] }
 0x491   : > { %15993 = vst [vmem:[#allocation78_spill] sm:$0xff] %v13671_v16  ;;  %v3698_v38 = vadd.f32 %v15999_v32, %v3555_v59  ;;  %v16000_v49 = vld [vmem:[#allocation172_spill] sm:$0xff]  ;;  %v13690_v5 = vsel %vm1046_vm4, %v5054_v61, %v5056_v30  ;;  %v13693_v1 = vsel %vm1046_vm4, %v5056_v30, %v5058_v53  ;;  %v3997_v19 = vadd.f32 %v3965_v56, %v13485_v23  ;;  %v16007_v24 = vld [vmem:[#allocation62_spill] sm:$0xff]  ;;  %v16011_v56 = vld [vmem:[#allocation147_spill] sm:$0xff]  ;;  %v5253_v17 = vpop.permute.xlu0 %5252 }
 0x492   : > { %v3699_v45 = vadd.f32 %v16000_v49, %v3556_v11  ;;  %v16001_v35 = vld [vmem:[#allocation236_spill] sm:$0xff]  ;;  %v3998_v59 = vadd.f32 %v3966_v54, %v13498_v52  ;;  %v16004_v11 = vld [vmem:[#allocation145_spill] sm:$0xff]  ;;  %v3840_v36 = vadd.f32 %v16006_v21, %v3697_v27  ;;  %5750 = vrot.lane.b32.xlu0 %v16007_v24, %s7733_s23  ;;  %v16008_v61 = vld [vmem:[#allocation238_spill] sm:$0xff]  ;;  %v5255_v27 = vpop.permute.xlu1 %5254 }
 0x493   : > { %v3967_v14 = vsel %vm2146_vm6, %v15995_v18, %v16001_v35  ;;  %v3968_v41 = vsel %vm2146_vm6, %v16005_v15, %v16004_v11  ;;  %v3969_v48 = vsel %vm2146_vm6, %v16004_v11, %v16008_v61  ;;  %v16009_v18 = vld [vmem:[#allocation242_spill] sm:$0xff]  ;;  %v16010_v23 = vld [vmem:[#allocation240_spill] sm:$0xff]  ;;  %v16013_v26 = vld [vmem:[#allocation249_spill] sm:$0xff] }
 0x494   : > { %v3970_v6 = vsel %vm2146_vm6, %v16008_v61, %v16009_v18  ;;  %v3971_v52 = vsel %vm2146_vm6, %v16009_v18, %v16010_v23  ;;  %v16012_v54 = vld [vmem:[#allocation246_spill] sm:$0xff]  ;;  %v3999_v53 = vadd.f32 %v3967_v14, %v13551_v40  ;;  %v3973_v32 = vsel %vm2146_vm6, %v16011_v56, %v16013_v26  ;;  %v16015_v35 = vld [vmem:[#allocation39_spill] sm:$0xff]  ;;  %v16016_v15 = vld [vmem:[#allocation132_spill] sm:$0xff] }
 0x495   : > { %v3972_v50 = vsel %vm2146_vm6, %v16012_v54, %v16011_v56  ;;  %v16014_v49 = vld [vmem:[#allocation38_spill] sm:$0xff]  ;;  %v3842_v12 = vadd.f32 %v16015_v35, %v3699_v45  ;;  %v4000_v11 = vadd.f32 %v3968_v41, %v13594_v4  ;;  %v3974_v21 = vsel %vm2146_vm6, %v16013_v26, %v16016_v15  ;;  %v16017_v24 = vld [vmem:[#allocation251_spill] sm:$0xff]  ;;  %v16018_v14 = vld [vmem:[#allocation253_spill] sm:$0xff] }
 0x496   : > { %v3841_v30 = vadd.f32 %v16014_v49, %v3698_v38  ;;  %v3975_v61 = vsel %vm2146_vm6, %v16016_v15, %v16017_v24  ;;  %v13731_v40 = vsel %vm1046_vm4, %v5253_v17, %v5255_v27  ;;  %5756 = vrot.lane.b32.xlu1 %v16018_v14, %s7733_s23  ;;  %v4001_v38 = vadd.f32 %v3969_v48, %v13619_v13  ;;  %v16019_v4 = vld [vmem:[#allocation84_spill] sm:$0xff]  ;;  %v16020_v56 = vld [vmem:[#allocation150_spill] sm:$0xff]  ;;  %v16021_v54 = vld [vmem:[#allocation149_spill] sm:$0xff]  ;;  %v5259_v13 = vpop.permute.xlu1 %5258 }
 0x497   : > { %v4002_v45 = vadd.f32 %v3970_v6, %v3833_v8  ;;  %v4003_v18 = vadd.f32 %v3971_v52, %v3834_v10  ;;  %v4004_v23 = vadd.f32 %v3972_v50, %v3835_v55  ;;  %5754 = vrot.lane.b32.xlu0 %v16019_v4, %s7733_s23  ;;  %v4005_v41 = vadd.f32 %v3973_v32, %v3836_v3  ;;  %v16022_v49 = vld [vmem:[#allocation206_spill] sm:$0xff]  ;;  %v16023_v17 = vld [vmem:[#allocation55_spill] sm:$0xff]  ;;  %v16024_v55 = vld [vmem:[#allocation225_spill] sm:$0xff]  ;;  %v5257_v50 = vpop.permute.xlu0 %5256 }
 0x498   : > { %v3976_v26 = vsel %vm2146_vm6, %v16021_v54, %v16020_v56  ;;  %v3977_v35 = vsel %vm2146_vm6, %v16020_v56, %v16022_v49  ;;  %v3978_v15 = vsel %vm2146_vm6, %v16022_v49, %v16023_v17  ;;  %v4006_v8 = vadd.f32 %v3974_v21, %v3837_v9  ;;  %v16025_v3 = vld [vmem:[#allocation226_spill] sm:$0xff]  ;;  %v16026_v6 = vld [vmem:[#allocation219_spill] sm:$0xff]  ;;  %v16027_v32 = vld [vmem:[#allocation257_spill] sm:$0xff] }
 0x499   : > { %v4007_v10 = vadd.f32 %v3975_v61, %v3838_v31  ;;  %v3979_v48 = vsel %vm2146_vm6, %v16023_v17, %v16024_v55  ;;  %v4197_v52 = vsel %vm2146_vm6, %v16026_v6, %v16025_v3  ;;  %v4198_v24 = vsel %vm2146_vm6, %v16025_v3, %v16027_v32  ;;  %v16028_v14 = vld [vmem:[#allocation256_spill] sm:$0xff]  ;;  %v16031_v21 = vld [vmem:[#allocation46_spill] sm:$0xff] }
 0x49a   : > { %v4199_v4 = vsel %vm2146_vm6, %v16027_v32, %v16028_v14  ;;  %v13760_v9 = vsel %vm1046_vm4, %v5255_v27, %v5257_v50  ;;  %v13763_v31 = vsel %vm1046_vm4, %v5257_v50, %v5259_v13  ;;  %5953 = vrot.lane.b32.xlu1 %v16031_v21, %s7733_s23  ;;  %v4008_v61 = vadd.f32 %v3976_v26, %v3839_v62  ;;  %v16032_v49 = vld [vmem:[#allocation234_spill] sm:$0xff]  ;;  %v16033_v55 = vld [vmem:[#allocation124_spill] sm:$0xff]  ;;  %v16036_v32 = vld [vmem:[#allocation87_spill] sm:$0xff]  ;;  %v5263_v26 = vpop.permute.xlu1 %5262 }
 0x49b   : > { %16029 = vst [vmem:[#allocation174_spill] sm:$0xff] %v13760_v9  ;;  %16030 = vst [vmem:[#allocation196_spill] sm:$0xff] %v13763_v31  ;;  %v4009_v56 = vadd.f32 %v3977_v35, %v3840_v36  ;;  %v4010_v54 = vadd.f32 %v3978_v15, %v3841_v30  ;;  %v4200_v17 = vsel %vm2146_vm6, %v16028_v14, %v16032_v49  ;;  %5951 = vrot.lane.b32.xlu0 %v16033_v55, %s7733_s23  ;;  %v16034_v3 = vld [vmem:[#allocation222_spill] sm:$0xff]  ;;  %v16035_v6 = vld [vmem:[#allocation152_spill] sm:$0xff]  ;;  %v5261_v49 = vpop.permute.xlu0 %5260 }
 0x49c   : > { %v4201_v27 = vsel %vm2146_vm6, %v16035_v6, %v16034_v3  ;;  %v4202_v50 = vsel %vm2146_vm6, %v16034_v3, %v16036_v32  ;;  %v16037_v31 = vld [vmem:[#allocation260_spill] sm:$0xff]  ;;  %v16038_v36 = vld [vmem:[#allocation34_spill] sm:$0xff]  ;;  %v4011_v35 = vadd.f32 %v3979_v48, %v3842_v12  ;;  %v13784_v15 = vadd.f32 %v4197_v52, %v3996_v25  ;;  %v16039_v3 = vld [vmem:[#allocation245_spill] sm:$0xff] }
 0x49d   : > { %v4203_v62 = vsel %vm2146_vm6, %v16036_v32, %v16037_v31  ;;  %v4204_v30 = vsel %vm2146_vm6, %v16037_v31, %v16038_v36  ;;  %v13786_v14 = vadd.f32 %v4198_v24, %v3997_v19  ;;  %v13788_v21 = vadd.f32 %v4199_v4, %v3998_v59  ;;  %v16040_v6 = vld [vmem:[#allocation85_spill] sm:$0xff]  ;;  %v16042_v12 = vld [vmem:[#allocation75_spill] sm:$0xff]  ;;  %v16043_v48 = vld [vmem:[#allocation92_spill] sm:$0xff] }
 0x49e   : > { %v13790_v55 = vadd.f32 %v4200_v17, %v3999_v53  ;;  %v4205_v9 = vsel %vm2146_vm6, %v16040_v6, %v16039_v3  ;;  %v16041_v32 = vld [vmem:[#allocation157_spill] sm:$0xff]  ;;  %v13799_v31 = vsel %vm1046_vm4, %v5259_v13, %v5261_v49  ;;  %5957 = vrot.lane.b32.xlu1 %v13351_v37, %s7733_s23  ;;  %v13803_v25 = vadd.f32 %v4201_v27, %v4000_v11  ;;  %v16044_v13 = vld [vmem:[#allocation103_spill] sm:$0xff]  ;;  %v16045_v37 = vld [vmem:[#allocation262_spill] sm:$0xff]  ;;  %v5267_v17 = vpop.permute.xlu1 %5266 }
 0x49f   : > { %v4206_v16 = vsel %vm2146_vm6, %v16039_v3, %v16041_v32  ;;  %v13805_v19 = vadd.f32 %v4202_v50, %v4001_v38  ;;  %v13807_v59 = vadd.f32 %v4203_v62, %v4002_v45  ;;  %v13809_v53 = vadd.f32 %v4204_v30, %v4003_v18  ;;  %5955 = vrot.lane.b32.xlu0 %v16042_v12, %s7733_s23  ;;  %v16046_v11 = vld [vmem:[#allocation54_spill] sm:$0xff]  ;;  %v16048_v45 = vld [vmem:[#allocation104_spill] sm:$0xff]  ;;  %v5265_v3 = vpop.permute.xlu0 %5264  ;;  %v16051_v6 = vld [vmem:[#allocation161_spill] sm:$0xff] }
 0x4a0   : > { %v4207_v52 = vsel %vm2146_vm6, %v16041_v32, %v16043_v48  ;;  %v4208_v24 = vsel %vm2146_vm6, %v16043_v48, %v16044_v13  ;;  %v4209_v38 = vsel %vm2146_vm6, %v16046_v11, %v16045_v37  ;;  %v16047_v4 = vld [vmem:[#allocation170_spill] sm:$0xff]  ;;  %v4237_v27 = vadd.f32 %v4205_v9, %v4004_v23  ;;  %v16049_v62 = vld [vmem:[#allocation96_spill] sm:$0xff]  ;;  %v16053_v48 = vld [vmem:[#allocation47_spill] sm:$0xff] }
 0x4a1   : > { %v4438_v18 = vsel %vm2146_vm6, %v16048_v45, %v16047_v4  ;;  %v4238_v50 = vadd.f32 %v4206_v16, %v4005_v41  ;;  %v4210_v36 = vsel %vm2146_vm6, %v16045_v37, %v16049_v62  ;;  %v16050_v30 = vld [vmem:[#allocation158_spill] sm:$0xff]  ;;  %v16052_v12 = vld [vmem:[#allocation44_spill] sm:$0xff]  ;;  %v13838_v23 = vsel %vm1046_vm4, %v5263_v26, %v5265_v3  ;;  %v16059_v26 = vld [vmem:[#allocation53_spill] sm:$0xff] }
 0x4a2   : > { %v4211_v49 = vsel %vm2146_vm6, %v16049_v62, %v16050_v30  ;;  %v4212_v32 = vsel %vm2146_vm6, %v16050_v30, %v16051_v6  ;;  %v4671_v13 = vsel %vm2146_vm6, %v16053_v48, %v16052_v12  ;;  %16054 = vst [vmem:[#allocation25_spill] sm:$0xff] %v13838_v23  ;;  %v13841_v16 = vsel %vm1046_vm4, %v5265_v3, %v5267_v17  ;;  %v16056_v41 = vld [vmem:[#allocation76_spill] sm:$0xff]  ;;  %v16057_v62 = vld [vmem:[#allocation43_spill] sm:$0xff]  ;;  %v16061_v23 = vld [vmem:[#allocation114_spill] sm:$0xff] }
 0x4a3   : > { %16055 = vst [vmem:[#allocation99_spill] sm:$0xff] %v13841_v16  ;;  %5961 = vrot.lane.b32.xlu1 %v16056_v41, %s7733_s23  ;;  %v4239_v9 = vadd.f32 %v4207_v52, %v4006_v8  ;;  %v4240_v37 = vadd.f32 %v4208_v24, %v4007_v10  ;;  %v4241_v11 = vadd.f32 %v4209_v38, %v4008_v61  ;;  %v16058_v6 = vld [vmem:[#allocation112_spill] sm:$0xff]  ;;  %v5271_v8 = vpop.permute.xlu1 %5270  ;;  %v16062_v52 = vld [vmem:[#allocation162_spill] sm:$0xff]  ;;  %v16063_v24 = vld [vmem:[#allocation265_spill] sm:$0xff] }
 0x4a4   : > { %v4470_v45 = vadd.f32 %v4438_v18, %v4237_v27  ;;  %5959 = vrot.lane.b32.xlu0 %v16057_v62, %s7733_s23  ;;  %v4242_v30 = vadd.f32 %v4210_v36, %v4009_v56  ;;  %v4439_v48 = vsel %vm2146_vm6, %v16047_v4, %v16058_v6  ;;  %v4440_v3 = vsel %vm2146_vm6, %v16058_v6, %v16059_v26  ;;  %v16060_v16 = vld [vmem:[#allocation116_spill] sm:$0xff]  ;;  %v5269_v18 = vpop.permute.xlu0 %5268  ;;  %v16064_v4 = vld [vmem:[#allocation67_spill] sm:$0xff] }
 0x4a5   : > { %v4904_v41 = vsel %vm2146_vm6, %v16061_v23, %v16060_v16  ;;  %v13856_v10 = vadd.f32 %v4211_v49, %v4010_v54  ;;  %v13858_v61 = vadd.f32 %v4212_v32, %v4011_v35  ;;  %v4430_v56 = vsel %vm2146_vm6, %v16063_v24, %v16062_v52  ;;  %v16065_v36 = vld [vmem:[#allocation200_spill] sm:$0xff]  ;;  %v16068_v35 = vld [vmem:[#allocation26_spill] sm:$0xff]  ;;  %v16070_v6 = vld [vmem:[#allocation63_spill] sm:$0xff] }
 0x4a6   : > { %v4703_v38 = vadd.f32 %v4671_v13, %v4470_v45  ;;  %v4672_v27 = vsel %vm2146_vm6, %v16052_v12, %v16064_v4  ;;  %v4673_v62 = vsel %vm2146_vm6, %v16064_v4, %v16065_v36  ;;  %v13870_v23 = vsel %vm1046_vm4, %v5267_v17, %v5269_v18  ;;  %v16069_v49 = vld [vmem:[#allocation146_spill] sm:$0xff] }
 0x4a7   : > { %16066 = vst [vmem:[#allocation77_spill] sm:$0xff] %v13870_v23  ;;  %v13873_v54 = vsel %vm1046_vm4, %v5269_v18, %v5271_v8  ;;  %5965 = vrot.lane.b32.xlu1 %v16068_v35, %s7733_s23  ;;  %v4431_v32 = vsel %vm2146_vm6, %v16062_v52, %v16069_v49  ;;  %v4471_v13 = vadd.f32 %v4439_v48, %v4238_v50  ;;  %v16071_v24 = vld [vmem:[#allocation102_spill] sm:$0xff]  ;;  %v16073_v35 = vld [vmem:[#allocation248_spill] sm:$0xff] }
 0x4a8   : > { %16067 = vst [vmem:[#allocation182_spill] sm:$0xff] %v13873_v54  ;;  %v4472_v45 = vadd.f32 %v4440_v3, %v4239_v9  ;;  %v4936_v12 = vadd.f32 %v4904_v41, %v4703_v38  ;;  %5963 = vrot.lane.b32.xlu0 %v13410_v42, %s7733_s23  ;;  %v4432_v17 = vsel %vm2146_vm6, %v16069_v49, %v16070_v6  ;;  %v16072_v18 = vld [vmem:[#allocation186_spill] sm:$0xff]  ;;  %v5275_v9 = vpop.permute.xlu1 %5274  ;;  %v5273_v49 = vpop.permute.xlu0 %5272 }
 0x4a9   : > { %v4441_v8 = vsel %vm2146_vm6, %v16059_v26, %v16071_v24  ;;  %v4905_v4 = vsel %vm2146_vm6, %v16060_v16, %v16072_v18  ;;  %v4906_v50 = vsel %vm2146_vm6, %v16072_v18, %v16073_v35  ;;  %v16074_v48 = vld [vmem:[#allocation178_spill] sm:$0xff]  ;;  %v4704_v41 = vadd.f32 %v4672_v27, %v4471_v13  ;;  %v16076_v24 = vld [vmem:[#allocation176_spill] sm:$0xff] }
 0x4aa   : > { %v16075_v3 = vld [vmem:[#allocation230_spill] sm:$0xff]  ;;  %v4705_v52 = vadd.f32 %v4673_v62, %v4472_v45  ;;  %v5099_v38 = vadd.f32 %v13571_v44, %v4936_v12  ;;  %v4462_v26 = vadd.f32 %v4430_v56, %v13784_v15  ;;  %v4443_v16 = vsel %vm2146_vm6, %v16074_v48, %v16076_v24 }
 0x4ab   : > { %v4442_v42 = vsel %vm2146_vm6, %v16075_v3, %v16074_v48  ;;  %v16077_v54 = vld [vmem:[#allocation86_spill] sm:$0xff]  ;;  %v5300_v23 = vsel %vm1046_vm4, %v5273_v49, %v5275_v9  ;;  %5969 = vrot.lane.b32.xlu1 %v13440_v57, %s7733_s23  ;;  %v4473_v27 = vadd.f32 %v4441_v8, %v4240_v37  ;;  %v4937_v62 = vadd.f32 %v4905_v4, %v4704_v41  ;;  %v16083_v3 = vld [vmem:[#allocation165_spill] sm:$0xff]  ;;  %v16085_v41 = vld [vmem:[#allocation48_spill] sm:$0xff] }
 0x4ac   : > { %v4674_v18 = vsel %vm2146_vm6, %v16065_v36, %v16077_v54  ;;  %v4938_v13 = vadd.f32 %v4906_v50, %v4705_v52  ;;  %v13908_v44 = vadd.f32 %v5300_v23, %v5099_v38  ;;  %5967 = vrot.lane.b32.xlu0 %v13445_v2, %s7733_s23  ;;  %v13913_v15 = vadd.f32 %v4431_v32, %v13786_v14  ;;  %v16078_v54 = vld [vmem:[#allocation83_spill] sm:$0xff]  ;;  %v5279_v57 = vpop.permute.xlu1 %5278  ;;  %v5277_v4 = vpop.permute.xlu0 %5276  ;;  %v16079_v2 = vld [vmem:[#allocation70_spill] sm:$0xff]  ;;  %v16086_v52 = vld [vmem:[#allocation68_spill] sm:$0xff] }
 0x4ad   : > { %v13916_v56 = vadd.f32 %v4432_v17, %v13788_v21  ;;  %v4474_v36 = vadd.f32 %v4442_v42, %v4241_v11  ;;  %v4907_v45 = vsel %vm2146_vm6, %v16073_v35, %v16078_v54  ;;  %v4475_v37 = vadd.f32 %v4443_v16, %v4242_v30  ;;  %v16080_v50 = vld [vmem:[#allocation79_spill] sm:$0xff]  ;;  %v16081_v32 = vld [vmem:[#allocation82_spill] sm:$0xff]  ;;  %v16082_v30 = vld [vmem:[#allocation181_spill] sm:$0xff] }
 0x4ae   : > { %v4706_v12 = vadd.f32 %v4674_v18, %v4473_v27  ;;  %v5100_v23 = vadd.f32 %v13597_v7, %v4937_v62  ;;  %v5101_v8 = vadd.f32 %v13600_v22, %v4938_v13  ;;  %v4675_v14 = vsel %vm2146_vm6, %v16080_v50, %v16079_v2  ;;  %v16084_v42 = vld [vmem:[#allocation179_spill] sm:$0xff]  ;;  %v16087_v49 = vld [vmem:[#allocation49_spill] sm:$0xff]  ;;  %v16088_v18 = vld [vmem:[#allocation188_spill] sm:$0xff] }
 0x4af   : > { %v4676_v21 = vsel %vm2146_vm6, %v16079_v2, %v16081_v32  ;;  %v5301_v11 = vsel %vm1046_vm4, %v5275_v9, %v5277_v4  ;;  %v5302_v17 = vsel %vm1046_vm4, %v5277_v4, %v5279_v57  ;;  %5973 = vrot.lane.b32.xlu1 %v13457_v29, %s7733_s23  ;;  %v4444_v7 = vsel %vm2146_vm6, %v16076_v24, %v16082_v30  ;;  %v16089_v27 = vld [vmem:[#allocation185_spill] sm:$0xff] }
 0x4b0   : > { %v4939_v22 = vadd.f32 %v4907_v45, %v4706_v12  ;;  %v13936_v35 = vadd.f32 %v5301_v11, %v5100_v23  ;;  %v13938_v48 = vadd.f32 %v5302_v17, %v5101_v8  ;;  %5971 = vrot.lane.b32.xlu0 %v13473_v28, %s7733_s23  ;;  %v4433_v9 = vsel %vm2146_vm6, %v16070_v6, %v16083_v3  ;;  %v5283_v16 = vpop.permute.xlu1 %5282  ;;  %v5281_v54 = vpop.permute.xlu0 %5280  ;;  %v16090_v12 = vld [vmem:[#allocation93_spill] sm:$0xff]  ;;  %v16091_v8 = vld [vmem:[#allocation90_spill] sm:$0xff] }
 0x4b1   : > { %v4445_v29 = vsel %vm2146_vm6, %v16082_v30, %v16084_v42  ;;  %v4908_v38 = vsel %vm2146_vm6, %v16086_v52, %v16085_v41  ;;  %v4909_v24 = vsel %vm2146_vm6, %v16085_v41, %v16087_v49  ;;  %v4663_v28 = vsel %vm2146_vm6, %v16089_v27, %v16088_v18  ;;  %v16096_v3 = vld [vmem:[#allocation101_spill] sm:$0xff]  ;;  %v16100_v27 = vld [vmem:[#allocation60_spill] sm:$0xff] }
 0x4b2   : > { %v4707_v62 = vadd.f32 %v4675_v14, %v4474_v36  ;;  %v4708_v13 = vadd.f32 %v4676_v21, %v4475_v37  ;;  %v5102_v6 = vadd.f32 %v13623_v47, %v4939_v22  ;;  %v4476_v45 = vadd.f32 %v4444_v7, %v13856_v10 }
 0x4b3   : > { %v4677_v23 = vsel %vm2146_vm6, %v16081_v32, %v16090_v12  ;;  %v4678_v4 = vsel %vm2146_vm6, %v16090_v12, %v16091_v8  ;;  %v5303_v2 = vsel %vm1046_vm4, %v5279_v57, %v5281_v54  ;;  %5977 = vrot.lane.b32.xlu1 %v13478_v43, %s7733_s23  ;;  %v4477_v36 = vadd.f32 %v4445_v29, %v13858_v61  ;;  %v16092_v32 = vld [vmem:[#allocation193_spill] sm:$0xff]  ;;  %v16103_v8 = vld [vmem:[#allocation180_spill] sm:$0xff] }
 0x4b4   : > { %v4940_v37 = vadd.f32 %v4908_v38, %v4707_v62  ;;  %v4941_v47 = vadd.f32 %v4909_v24, %v4708_v13  ;;  %v13969_v50 = vadd.f32 %v5303_v2, %v5102_v6  ;;  %5975 = vrot.lane.b32.xlu0 %v13512_v39, %s7733_s23  ;;  %v4465_v10 = vadd.f32 %v4433_v9, %v13790_v55  ;;  %v16093_v57 = vld [vmem:[#allocation45_spill] sm:$0xff]  ;;  %v5287_v11 = vpop.permute.xlu1 %5286  ;;  %v5285_v22 = vpop.permute.xlu0 %5284  ;;  %v16097_v38 = vld [vmem:[#allocation254_spill] sm:$0xff]  ;;  %v16102_v62 = vld [vmem:[#allocation40_spill] sm:$0xff] }
 0x4b5   : > { %v4695_v14 = vadd.f32 %v4663_v28, %v4462_v26  ;;  %v4910_v21 = vsel %vm2146_vm6, %v16087_v49, %v16092_v32  ;;  %v4911_v43 = vsel %vm2146_vm6, %v16092_v32, %v16093_v57  ;;  %v4709_v61 = vadd.f32 %v4677_v23, %v4476_v45  ;;  %v16094_v39 = vld [vmem:[#allocation189_spill] sm:$0xff]  ;;  %v16098_v49 = vld [vmem:[#allocation164_spill] sm:$0xff]  ;;  %v16101_v28 = vld [vmem:[#allocation118_spill] sm:$0xff] }
 0x4b6   : > { %v4710_v17 = vadd.f32 %v4678_v4, %v4477_v36  ;;  %v5103_v30 = vadd.f32 %v13653_v0, %v4940_v37  ;;  %v5104_v7 = vadd.f32 %v13656_v63, %v4941_v47  ;;  %v4664_v55 = vsel %vm2146_vm6, %v16088_v18, %v16094_v39  ;;  %v16095_v26 = vld [vmem:[#allocation97_spill] sm:$0xff] }
 0x4b7   : > { %v4896_v9 = vsel %vm2146_vm6, %v16096_v3, %v16095_v26  ;;  %v5304_v42 = vsel %vm1046_vm4, %v5283_v16, %v5285_v22  ;;  %v5305_v29 = vsel %vm1046_vm4, %v5285_v22, %v5287_v11  ;;  %5981 = vrot.lane.b32.xlu1 %v13565_v34, %s7733_s23  ;;  %v4942_v41 = vadd.f32 %v4910_v21, %v4709_v61  ;;  %v16099_v18 = vld [vmem:[#allocation169_spill] sm:$0xff]  ;;  %v16105_v21 = vld [vmem:[#allocation192_spill] sm:$0xff]  ;;  %v16107_v61 = vld [vmem:[#allocation191_spill] sm:$0xff] }
 0x4b8   : > { %v4943_v0 = vadd.f32 %v4911_v43, %v4710_v17  ;;  %v13992_v52 = vadd.f32 %v5304_v42, %v5103_v30  ;;  %v13994_v63 = vadd.f32 %v5305_v29, %v5104_v7  ;;  %5979 = vrot.lane.b32.xlu0 %v13581_v46, %s7733_s23  ;;  %v4434_v24 = vsel %vm2146_vm6, %v16098_v49, %v16097_v38  ;;  %v5291_v6 = vpop.permute.xlu1 %5290  ;;  %v5289_v23 = vpop.permute.xlu0 %5288  ;;  %v16104_v2 = vld [vmem:[#allocation109_spill] sm:$0xff] }
 0x4b9   : > { %v4435_v16 = vsel %vm2146_vm6, %v16097_v38, %v16099_v18  ;;  %v4665_v34 = vsel %vm2146_vm6, %v16094_v39, %v16100_v27  ;;  %v5059_v13 = vsel %vm1046_vm4, %v16102_v62, %v16101_v28  ;;  %v4696_v54 = vadd.f32 %v4664_v55, %v13913_v15  ;;  %v16108_v39 = vld [vmem:[#allocation243_spill] sm:$0xff] }
 0x4ba   : > { %v4928_v46 = vadd.f32 %v4896_v9, %v4695_v14  ;;  %v5105_v45 = vadd.f32 %v13690_v5, %v4942_v41  ;;  %v5106_v12 = vadd.f32 %v13693_v1, %v4943_v0  ;;  %v4897_v4 = vsel %vm2146_vm6, %v16095_v26, %v16103_v8  ;;  %v16109_v26 = vld [vmem:[#allocation113_spill] sm:$0xff]  ;;  %v16112_v38 = vld [vmem:[#allocation171_spill] sm:$0xff] }
 0x4bb   : > { %v4898_v36 = vsel %vm2146_vm6, %v16103_v8, %v16104_v2  ;;  %v5306_v37 = vsel %vm1046_vm4, %v5287_v11, %v5289_v23  ;;  %v5307_v47 = vsel %vm1046_vm4, %v5289_v23, %v5291_v6  ;;  %5985 = vrot.lane.b32.xlu1 %v13630_v51, %s7733_s23  ;;  %v4697_v5 = vadd.f32 %v4665_v34, %v13916_v56  ;;  %v16106_v11 = vld [vmem:[#allocation197_spill] sm:$0xff] }
 0x4bc   : > { %v5091_v15 = vadd.f32 %v5059_v13, %v4928_v46  ;;  %v14024_v1 = vadd.f32 %v5306_v37, %v5105_v45  ;;  %v14026_v14 = vadd.f32 %v5307_v47, %v5106_v12  ;;  %5983 = vrot.lane.b32.xlu0 %v13646_v60, %s7733_s23  ;;  %v4466_v32 = vadd.f32 %v4434_v24, %v13803_v25  ;;  %v5488_v43 = vpop.permute.xlu1 %5487  ;;  %v5486_v7 = vpop.permute.xlu0 %5485  ;;  %v16111_v41 = vld [vmem:[#allocation29_spill] sm:$0xff]  ;;  %v16115_v13 = vld [vmem:[#allocation196_spill] sm:$0xff]  ;;  %v16116_v46 = vld [vmem:[#allocation74_spill] sm:$0xff] }
 0x4bd   : > { %v4666_v57 = vsel %vm2146_vm6, %v16100_v27, %v16105_v21  ;;  %v5060_v51 = vsel %vm1046_vm4, %v16101_v28, %v13414_v20  ;;  %v5061_v56 = vsel %vm1046_vm4, %v13414_v20, %v13407_v58  ;;  %v4667_v17 = vsel %vm2146_vm6, %v16107_v61, %v16106_v11  ;;  %v16114_v28 = vld [vmem:[#allocation174_spill] sm:$0xff]  ;;  %v16117_v45 = vld [vmem:[#allocation72_spill] sm:$0xff]  ;;  %v16121_v21 = vld [vmem:[#allocation127_spill] sm:$0xff] }
 0x4be   : > { %v4929_v60 = vadd.f32 %v4897_v4, %v4696_v54  ;;  %v4930_v30 = vadd.f32 %v4898_v36, %v4697_v5  ;;  %v5324_v25 = vadd.f32 %v13731_v40, %v5091_v15  ;;  %v4467_v22 = vadd.f32 %v4435_v16, %v13805_v19  ;;  %v16110_v19 = vld [vmem:[#allocation78_spill] sm:$0xff]  ;;  %v16113_v16 = vld [vmem:[#allocation91_spill] sm:$0xff]  ;;  %v16119_v4 = vld [vmem:[#allocation57_spill] sm:$0xff] }
 0x4bf   : > { %v4668_v55 = vsel %vm2146_vm6, %v16106_v11, %v16108_v39  ;;  %v4899_v20 = vsel %vm2146_vm6, %v16104_v2, %v16109_v26  ;;  %v5525_v3 = vsel %vm1046_vm4, %v5486_v7, %v5488_v43  ;;  %5989 = vrot.lane.b32.xlu1 %v13666_v33, %s7733_s23  ;;  %v4698_v9 = vadd.f32 %v4666_v57, %v4465_v10  ;;  %v16118_v12 = vld [vmem:[#allocation202_spill] sm:$0xff]  ;;  %v16120_v15 = vld [vmem:[#allocation61_spill] sm:$0xff]  ;;  %v16124_v7 = vld [vmem:[#allocation115_spill] sm:$0xff] }
 0x4c0   : > { %v5092_v42 = vadd.f32 %v5060_v51, %v4929_v60  ;;  %v5093_v29 = vadd.f32 %v5061_v56, %v4930_v30  ;;  %v14054_v40 = vadd.f32 %v5525_v3, %v5324_v25  ;;  %5987 = vrot.lane.b32.xlu0 %v16110_v19, %s7733_s23  ;;  %v4436_v0 = vsel %vm2146_vm6, %v16099_v18, %v16111_v41  ;;  %v5492_v10 = vpop.permute.xlu1 %5491  ;;  %v5490_v54 = vpop.permute.xlu0 %5489  ;;  %v16122_v57 = vld [vmem:[#allocation50_spill] sm:$0xff]  ;;  %v16123_v56 = vld [vmem:[#allocation199_spill] sm:$0xff] }
 0x4c1   : > { %v4437_v49 = vsel %vm2146_vm6, %v16111_v41, %v16112_v38  ;;  %v4699_v24 = vadd.f32 %v4667_v17, %v4466_v32  ;;  %v5062_v33 = vsel %vm1046_vm4, %v13407_v58, %v16113_v16  ;;  %v4700_v27 = vadd.f32 %v4668_v55, %v4467_v22  ;;  %v16129_v16 = vld [vmem:[#allocation99_spill] sm:$0xff] }
 0x4c2   : > { %v4931_v34 = vadd.f32 %v4899_v20, %v4698_v9  ;;  %v5325_v62 = vadd.f32 %v16114_v28, %v5092_v42  ;;  %v5326_v6 = vadd.f32 %v16115_v13, %v5093_v29  ;;  %v4900_v18 = vsel %vm2146_vm6, %v16117_v45, %v16116_v46  ;;  %v16126_v42 = vld [vmem:[#allocation37_spill] sm:$0xff]  ;;  %v16127_v29 = vld [vmem:[#allocation203_spill] sm:$0xff] }
 0x4c3   : > { %v4901_v23 = vsel %vm2146_vm6, %v16116_v46, %v16118_v12  ;;  %v5526_v8 = vsel %vm1046_vm4, %v5488_v43, %v5490_v54  ;;  %v5527_v58 = vsel %vm1046_vm4, %v5490_v54, %v5492_v10  ;;  %v4669_v2 = vsel %vm2146_vm6, %v16108_v39, %v16119_v4  ;;  %v16125_v39 = vld [vmem:[#allocation201_spill] sm:$0xff] }
 0x4c4   : > { %v5094_v36 = vadd.f32 %v5062_v33, %v4931_v34  ;;  %v14080_v37 = vadd.f32 %v5526_v8, %v5325_v62  ;;  %v14082_v47 = vadd.f32 %v5527_v58, %v5326_v6  ;;  %v4468_v5 = vadd.f32 %v4436_v0, %v13807_v59  ;;  %v5496_v11 = vpop.permute.xlu1 %5495  ;;  %v5494_v59 = vpop.permute.xlu0 %5493  ;;  %v16130_v46 = vld [vmem:[#allocation77_spill] sm:$0xff] }
 0x4c5   : > { %v4670_v32 = vsel %vm2146_vm6, %v16119_v4, %v16120_v15  ;;  %v5063_v51 = vsel %vm1046_vm4, %v16122_v57, %v16121_v21  ;;  %v5064_v43 = vsel %vm1046_vm4, %v16121_v21, %v16123_v56  ;;  %v4469_v61 = vadd.f32 %v4437_v49, %v13809_v53  ;;  %v16128_v49 = vld [vmem:[#allocation25_spill] sm:$0xff] }
 0x4c6   : > { %v4932_v17 = vadd.f32 %v4900_v18, %v4699_v24  ;;  %v4933_v60 = vadd.f32 %v4901_v23, %v4700_v27  ;;  %v5327_v30 = vadd.f32 %v13799_v31, %v5094_v36  ;;  %v4701_v25 = vadd.f32 %v4669_v2, %v4468_v5  ;;  %v16131_v18 = vld [vmem:[#allocation182_spill] sm:$0xff] }
 0x4c7   : > { %v4902_v22 = vsel %vm2146_vm6, %v16118_v12, %v16124_v7  ;;  %v4903_v55 = vsel %vm2146_vm6, %v16124_v7, %v16125_v39  ;;  %v5528_v26 = vsel %vm1046_vm4, %v5492_v10, %v5494_v59  ;;  %v4702_v20 = vadd.f32 %v4670_v32, %v4469_v61 }
 0x4c8   : > { %v5095_v3 = vadd.f32 %v5063_v51, %v4932_v17  ;;  %v5096_v9 = vadd.f32 %v5064_v43, %v4933_v60  ;;  %v14103_v53 = vadd.f32 %v5528_v26, %v5327_v30  ;;  %v5065_v31 = vsel %vm1046_vm4, %v16123_v56, %v16126_v42  ;;  %v5500_v41 = vpop.permute.xlu1 %5499  ;;  %v5498_v10 = vpop.permute.xlu0 %5497 }
 0x4c9   : > { %v5066_v19 = vsel %vm1046_vm4, %v16126_v42, %v16127_v29  ;;  %v4934_v0 = vadd.f32 %v4902_v22, %v4701_v25  ;;  %v4935_v38 = vadd.f32 %v4903_v55, %v4702_v20  ;;  %v5529_v27 = vsel %vm1046_vm4, %v5496_v11, %v5498_v10 }
 0x4ca   : > { %v5328_v24 = vadd.f32 %v16128_v49, %v5095_v3  ;;  %v5329_v33 = vadd.f32 %v16129_v16, %v5096_v9  ;;  %v5530_v34 = vsel %vm1046_vm4, %v5498_v10, %v5500_v41 }
 0x4cb   : > { %v5097_v28 = vadd.f32 %v5065_v31, %v4934_v0  ;;  %v5098_v62 = vadd.f32 %v5066_v19, %v4935_v38 }
 0x4cc   : > { %v5561_v13 = vadd.f32 %v5529_v27, %v5328_v24  ;;  %v14115_v6 = vadd.f32 %v5530_v34, %v5329_v33  ;;  %v5504_v54 = vpop.permute.xlu1 %5503  ;;  %v5502_v23 = vpop.permute.xlu0 %5501 }
 0x4cd   : > { %v5330_v45 = vadd.f32 %v16130_v46, %v5097_v28  ;;  %v5331_v12 = vadd.f32 %v16131_v18, %v5098_v62  ;;  %v5531_v8 = vsel %vm1046_vm4, %v5500_v41, %v5502_v23  ;;  %v5532_v58 = vsel %vm1046_vm4, %v5502_v23, %v5504_v54 }
 0x4cf   : > { %v5563_v4 = vadd.f32 %v5531_v8, %v5330_v45  ;;  %v14121_v2 = vadd.f32 %v5532_v58, %v5331_v12 }
 0x4d0   : > { %v5508_v36 = vpop.permute.xlu1 %5507  ;;  %v5506_v5 = vpop.permute.xlu0 %5505 }
 0x4d1   : > { %v5533_v15 = vsel %vm1046_vm4, %v5506_v5, %v5508_v36 }
 0x4d2   : > { %v14125_v32 = vadd.f32 %v5533_v15, %v13908_v44 }
 0x4d4   : > { %v5512_v21 = vpop.permute.xlu1 %5511  ;;  %v5510_v57 = vpop.permute.xlu0 %5509 }
 0x4d5   : > { %v5534_v51 = vsel %vm1046_vm4, %v5508_v36, %v5510_v57  ;;  %v5535_v56 = vsel %vm1046_vm4, %v5510_v57, %v5512_v21 }
 0x4d6   : > { %v14130_v43 = vadd.f32 %v5534_v51, %v13936_v35  ;;  %v14133_v11 = vadd.f32 %v5535_v56, %v13938_v48 }
 0x4d8   : > { %v5516_v61 = vpop.permute.xlu1 %5515  ;;  %v5514_v17 = vpop.permute.xlu0 %5513 }
 0x4d9   : > { %v5536_v60 = vsel %vm1046_vm4, %v5512_v21, %v5514_v17 }
 0x4da   : > { %v14137_v30 = vadd.f32 %v5536_v60, %v13969_v50 }
 0x4dc   : > { %v5520_v44 = vpop.permute.xlu1 %5519  ;;  %v5518_v59 = vpop.permute.xlu0 %5517 }
 0x4dd   : > { %v5537_v25 = vsel %vm1046_vm4, %v5516_v61, %v5518_v59  ;;  %v5538_v7 = vsel %vm1046_vm4, %v5518_v59, %v5520_v44 }
 0x4de   : > { %v14142_v22 = vadd.f32 %v5537_v25, %v13992_v52  ;;  %v14145_v35 = vadd.f32 %v5538_v7, %v13994_v63 }
 0x4e0   : > { %v5524_v48 = vpop.permute.xlu1 %5523  ;;  %v5522_v39 = vpop.permute.xlu0 %5521 }
 0x4e1   : > { %v5539_v55 = vsel %vm1046_vm4, %v5520_v44, %v5522_v39  ;;  %v5540_v26 = vsel %vm1046_vm4, %v5522_v39, %v5524_v48 }
 0x4e2   : > { %v14150_v50 = vadd.f32 %v5539_v55, %v14024_v1  ;;  %v14153_v20 = vadd.f32 %v5540_v26, %v14026_v14 }
 0x4e4   : > { %v5721_v3 = vpop.permute.xlu1 %5720  ;;  %v5719_v9 = vpop.permute.xlu0 %5718 }
 0x4e5   : > { %v5758_v52 = vsel %vm1046_vm4, %v5719_v9, %v5721_v3 }
 0x4e6   : > { %v5790_v42 = vadd.f32 %v5758_v52, %v14054_v40 }
 0x4e8   : > { %v5725_v63 = vpop.permute.xlu1 %5724  ;;  %v5723_v31 = vpop.permute.xlu0 %5722 }
 0x4e9   : > { %v5759_v29 = vsel %vm1046_vm4, %v5721_v3, %v5723_v31  ;;  %v5760_v19 = vsel %vm1046_vm4, %v5723_v31, %v5725_v63 }
 0x4ea   : > { %v5791_v41 = vadd.f32 %v5759_v29, %v14080_v37  ;;  %v5792_v1 = vadd.f32 %v5760_v19, %v14082_v47 }
 0x4ec   : > { %v5729_v0 = vpop.permute.xlu1 %5728  ;;  %v5727_v38 = vpop.permute.xlu0 %5726 }
 0x4ed   : > { %v5761_v14 = vsel %vm1046_vm4, %v5725_v63, %v5727_v38 }
 0x4ee   : > { %v5793_v49 = vadd.f32 %v5761_v14, %v14103_v53 }
 0x4f0   : > { %v5733_v24 = vpop.permute.xlu1 %5732  ;;  %v5731_v16 = vpop.permute.xlu0 %5730 }
 0x4f1   : > { %v5762_v40 = vsel %vm1046_vm4, %v5729_v0, %v5731_v16  ;;  %v5763_v15 = vsel %vm1046_vm4, %v5731_v16, %v5733_v24 }
 0x4f2   : > { %v5794_v33 = vadd.f32 %v5762_v40, %v5561_v13  ;;  %v5795_v57 = vadd.f32 %v5763_v15, %v14115_v6 }
 0x4f4   : > { %v5737_v10 = vpop.permute.xlu1 %5736  ;;  %v5735_v27 = vpop.permute.xlu0 %5734 }
 0x4f5   : > { %v5764_v34 = vsel %vm1046_vm4, %v5733_v24, %v5735_v27  ;;  %v5765_v61 = vsel %vm1046_vm4, %v5735_v27, %v5737_v10 }
 0x4f6   : > { %v5796_v28 = vadd.f32 %v5764_v34, %v5563_v4  ;;  %v5797_v55 = vadd.f32 %v5765_v61, %v14121_v2 }
 0x4f8   : > { %v5741_v62 = vpop.permute.xlu1 %5740  ;;  %v5739_v37 = vpop.permute.xlu0 %5738 }
 0x4f9   : > { %v5766_v2 = vsel %vm1046_vm4, %v5739_v37, %v5741_v62 }
 0x4fc   : > { %v5745_v54 = vpop.permute.xlu1 %5744  ;;  %v5743_v47 = vpop.permute.xlu0 %5742 }
 0x4fd   : > { %v5767_v10 = vsel %vm1046_vm4, %v5741_v62, %v5743_v47 }
 0x500   : > { %v14165_v46 = vpop.permute.xlu1 %5748  ;;  %v5747_v45 = vpop.permute.xlu0 %5746 }
 0x504   : > { %v14167_v18 = vpop.permute.xlu1 %5752  ;;  %v14169_v53 = vpop.permute.xlu0 %5750 }
 0x508   : > { %v14171_v12 = vpop.permute.xlu1 %5756 }
 0x509   : > { %v14173_v23 = vpop.permute.xlu0 %5754 }
 0x50c   : > { %v5954_v13 = vpop.permute.xlu1 %5953 }
 0x50d   : > { %v5952_v8 = vpop.permute.xlu0 %5951 }
 0x50e   : > { %v5991_v51 = vsel %vm1046_vm4, %v5952_v8, %v5954_v13 }
 0x50f   : > { %v14183_v7 = vadd.f32 %v5991_v51, %v5790_v42 }
 0x510   : > { %v5958_v58 = vpop.permute.xlu1 %5957 }
 0x511   : > { %v5956_v36 = vpop.permute.xlu0 %5955  ;;  %v6039_v38 = vadd.f32 3.0, %v14183_v7 }
 0x512   : > { %v5992_v17 = vsel %vm1046_vm4, %v5954_v13, %v5956_v36  ;;  %v5993_v59 = vsel %vm1046_vm4, %v5956_v36, %v5958_v58  ;;  %v5769_v13 = vsel %vm1046_vm4, %v5745_v54, %v5747_v45  ;;  %v5770_v45 = vsel %vm1046_vm4, %v14165_v46, %v14169_v53 }
 0x513   : > { %v14187_v26 = vadd.f32 %v5992_v17, %v5791_v41  ;;  %v14189_v9 = vadd.f32 %v5993_v59, %v5792_v1  ;;  %v6055_v37 = vmax.f32 %v6039_v38, 0.0  ;;  %v5801_v51 = vadd.f32 %v5769_v13, %v14137_v30 }
 0x515   : > { %v5962_v4 = vpop.permute.xlu1 %5961  ;;  %v6040_v41 = vadd.f32 3.0, %v14187_v26  ;;  %v6041_v40 = vadd.f32 3.0, %v14189_v9  ;;  %v6071_v61 = vmin.f32 %v6055_v37, 6.0 }
 0x516   : > { %v5960_v5 = vpop.permute.xlu0 %5959 }
 0x517   : > { %v5994_v48 = vsel %vm1046_vm4, %v5958_v58, %v5960_v5  ;;  %v6056_v58 = vmax.f32 %v6040_v41, 0.0  ;;  %v14232_v38 = vmul.f32 %v6071_v61, %v14183_v7 }
 0x518   : > { %v14193_v29 = vadd.f32 %v5994_v48, %v5793_v49  ;;  %v5768_v49 = vsel %vm1046_vm4, %v5743_v47, %v5745_v54  ;;  %v6057_v47 = vmax.f32 %v6041_v40, 0.0 }
 0x519   : > { %v5966_v21 = vpop.permute.xlu1 %5965  ;;  %v5800_v62 = vadd.f32 %v5768_v49, %v14133_v11  ;;  %v5771_v11 = vsel %vm1046_vm4, %v14169_v53, %v14167_v18  ;;  %v5772_v53 = vsel %vm1046_vm4, %v14167_v18, %v14173_v23 }
 0x51a   : > { %v5964_v56 = vpop.permute.xlu0 %5963  ;;  %v6042_v27 = vadd.f32 3.0, %v14193_v29  ;;  %v5803_v7 = vadd.f32 %v5771_v11, %v14145_v35  ;;  %v5804_v35 = vadd.f32 %v5772_v53, %v14150_v50 }
 0x51b   : > { %v5995_v60 = vsel %vm1046_vm4, %v5962_v4, %v5964_v56  ;;  %v5996_v44 = vsel %vm1046_vm4, %v5964_v56, %v5966_v21 }
 0x51c   : > { %v6027_v25 = vadd.f32 %v5995_v60, %v5794_v33  ;;  %v6028_v39 = vadd.f32 %v5996_v44, %v5795_v57  ;;  %v6058_v56 = vmax.f32 %v6042_v27, 0.0  ;;  %v6072_v44 = vmin.f32 %v6056_v58, 6.0 }
 0x51d   : > { %v5970_v6 = vpop.permute.xlu1 %5969 }
 0x51e   : > { %v5968_v3 = vpop.permute.xlu0 %5967  ;;  %v6043_v52 = vadd.f32 3.0, %v6027_v25  ;;  %v6044_v42 = vadd.f32 3.0, %v6028_v39 }
 0x51f   : > { %v5997_v63 = vsel %vm1046_vm4, %v5966_v21, %v5968_v3  ;;  %v5998_v31 = vsel %vm1046_vm4, %v5968_v3, %v5970_v6  ;;  %v5799_v21 = vadd.f32 %v5767_v10, %v14130_v43  ;;  %v6073_v6 = vmin.f32 %v6057_v47, 6.0 }
 0x520   : > { %v6029_v19 = vadd.f32 %v5997_v63, %v5796_v28  ;;  %v6030_v0 = vadd.f32 %v5998_v31, %v5797_v55  ;;  %v6059_v33 = vmax.f32 %v6043_v52, 0.0  ;;  %v6060_v34 = vmax.f32 %v6044_v42, 0.0 }
 0x521   : > { %v5974_v14 = vpop.permute.xlu1 %5973  ;;  %v5798_v28 = vadd.f32 %v5766_v2, %v14125_v32  ;;  %v5802_v52 = vadd.f32 %v5770_v45, %v14142_v22  ;;  %v6074_v63 = vmin.f32 %v6058_v56, 6.0  ;;  %v5773_v22 = vsel %vm1046_vm4, %v14173_v23, %v14171_v12 }
 0x522   : > { %v6045_v24 = vadd.f32 3.0, %v6029_v19  ;;  %v6046_v1 = vadd.f32 3.0, %v6030_v0  ;;  %v5972_v16 = vpop.permute.xlu0 %5971  ;;  %v6075_v57 = vmin.f32 %v6059_v33, 6.0  ;;  %v6076_v32 = vmin.f32 %v6060_v34, 6.0 }
 0x523   : > { %v5999_v5 = vsel %vm1046_vm4, %v5972_v16, %v5974_v14  ;;  %v14255_v12 = vmul.f32 %v6074_v63, %v14193_v29 }
 0x524   : > { %v6061_v36 = vmax.f32 %v6045_v24, 0.0  ;;  %v6062_v4 = vmax.f32 %v6046_v1, 0.0  ;;  %v14212_v17 = vadd.f32 %v5999_v5, %v5798_v28  ;;  %v14218_v55 = vmul.f32 %v6075_v57, %v6027_v25 }
 0x525   : > { %v5978_v8 = vpop.permute.xlu1 %5977  ;;  %v14224_v31 = vmul.f32 %v6076_v32, %v6028_v39  ;;  %v14241_v39 = vmul.f32 %v6072_v44, %v14187_v26  ;;  %v14249_v1 = vmul.f32 %v6073_v6, %v14189_v9  ;;  %v5805_v9 = vadd.f32 %v5773_v22, %v14153_v20 }
 0x526   : > { %v5976_v15 = vpop.permute.xlu0 %5975  ;;  %v6077_v30 = vmin.f32 %v6061_v36, 6.0  ;;  %v6078_v59 = vmin.f32 %v6062_v4, 6.0  ;;  %v6047_v25 = vadd.f32 3.0, %v14212_v17  ;;  %v6103_v16 = vadd.f32 %v14218_v55, %v14232_v38 }
 0x527   : > { %v6000_v54 = vsel %vm1046_vm4, %v5974_v14, %v5976_v15  ;;  %v6001_v60 = vsel %vm1046_vm4, %v5976_v15, %v5978_v8  ;;  %v6110_v23 = vadd.f32 %v14224_v31, %v14241_v39 }
 0x528   : > { %v14220_v3 = vadd.f32 %v6000_v54, %v5799_v21  ;;  %v14226_v42 = vadd.f32 %v6001_v60, %v5800_v62  ;;  %v14243_v41 = vmul.f32 %v6077_v30, %v6029_v19  ;;  %v14245_v24 = vmul.f32 %v6078_v59, %v6030_v0 }
 0x529   : > { %v5982_v43 = vpop.permute.xlu1 %5981  ;;  %v6063_v0 = vmax.f32 %v6047_v25, 0.0  ;;  %v6104_v13 = vrot.slane %v6103_v16, 4  ;;  %v6111_v20 = vrot.slane %v6110_v23, 4 }
 0x52a   : > { %v5980_v48 = vpop.permute.xlu0 %5979  ;;  %v6048_v40 = vadd.f32 3.0, %v14220_v3  ;;  %v6049_v26 = vadd.f32 3.0, %v14226_v42  ;;  %v6117_v49 = vadd.f32 %v14243_v41, %v14249_v1  ;;  %v6124_v29 = vadd.f32 %v14245_v24, %v14255_v12 }
 0x52b   : > { %v6002_v46 = vsel %vm1046_vm4, %v5978_v8, %v5980_v48  ;;  %v6105_v60 = vadd.f32 %v6104_v13, %v6103_v16 }
 0x52c   : > { %v14235_v14 = vadd.f32 %v6002_v46, %v5801_v51  ;;  %v6064_v37 = vmax.f32 %v6048_v40, 0.0  ;;  %v6065_v58 = vmax.f32 %v6049_v26, 0.0  ;;  %v6118_v47 = vrot.slane %v6117_v49, 4 }
 0x52d   : > { %v5986_v2 = vpop.permute.xlu1 %5985  ;;  %v6125_v57 = vrot.slane %v6124_v29, 4  ;;  %v6079_v51 = vmin.f32 %v6063_v0, 6.0 }
 0x52e   : > { %v5984_v18 = vpop.permute.xlu0 %5983  ;;  %v6050_v33 = vadd.f32 3.0, %v14235_v14  ;;  %v6080_v32 = vmin.f32 %v6064_v37, 6.0  ;;  %v6081_v11 = vmin.f32 %v6065_v58, 6.0  ;;  %v6119_v46 = vadd.f32 %v6118_v47, %v6117_v49 }
 0x52f   : > { %v6003_v19 = vsel %vm1046_vm4, %v5982_v43, %v5984_v18  ;;  %v6004_v27 = vsel %vm1046_vm4, %v5984_v18, %v5986_v2  ;;  %v6112_v43 = vadd.f32 %v6111_v20, %v6110_v23  ;;  %v14272_v63 = vmul.f32 %v6079_v51, %v14212_v17 }
 0x530   : > { %v6035_v34 = vadd.f32 %v6003_v19, %v5802_v52  ;;  %v6036_v8 = vadd.f32 %v6004_v27, %v5803_v7  ;;  %v6066_v5 = vmax.f32 %v6050_v33, 0.0  ;;  %v6126_v52 = vadd.f32 %v6125_v57, %v6124_v29 }
 0x531   : > { %v5990_v10 = vpop.permute.xlu1 %5989  ;;  %v14277_v25 = vmul.f32 %v6080_v32, %v14220_v3  ;;  %v6106_v7 = vrot.slane %v6105_v60, 2  ;;  %v6113_v16 = vrot.slane %v6112_v43, 2  ;;  %v14282_v40 = vmul.f32 %v6081_v11, %v14226_v42 }
 0x532   : > { %v5988_v28 = vpop.permute.xlu0 %5987  ;;  %v6051_v36 = vadd.f32 3.0, %v6035_v34  ;;  %v6052_v15 = vadd.f32 3.0, %v6036_v8  ;;  %v6082_v30 = vmin.f32 %v6066_v5, 6.0 }
 0x533   : > { %v6005_v50 = vsel %vm1046_vm4, %v5986_v2, %v5988_v28  ;;  %v6006_v4 = vsel %vm1046_vm4, %v5988_v28, %v5990_v10  ;;  %v6107_v49 = vadd.f32 %v6106_v7, %v6105_v60  ;;  %v6114_v29 = vadd.f32 %v6113_v16, %v6112_v43 }
 0x534   : > { %v6037_v21 = vadd.f32 %v6005_v50, %v5804_v35  ;;  %v6038_v62 = vadd.f32 %v6006_v4, %v5805_v9  ;;  %v6067_v56 = vmax.f32 %v6051_v36, 0.0  ;;  %v6068_v54 = vmax.f32 %v6052_v15, 0.0 }
 0x535   : > { %v14287_v17 = vmul.f32 %v6082_v30, %v14235_v14  ;;  %v6120_v35 = vrot.slane %v6119_v46, 2  ;;  %v6127_v9 = vrot.slane %v6126_v52, 2  ;;  %v6108_v36 = vrot.slane %v6107_v49, 1 }
 0x536   : > { %v6053_v45 = vadd.f32 3.0, %v6037_v21  ;;  %v6054_v61 = vadd.f32 3.0, %v6038_v62  ;;  %v6083_v44 = vmin.f32 %v6067_v56, 6.0  ;;  %v6084_v59 = vmin.f32 %v6068_v54, 6.0 }
 0x537   : > { %v6121_v13 = vadd.f32 %v6120_v35, %v6119_v46  ;;  %v6128_v37 = vadd.f32 %v6127_v9, %v6126_v52  ;;  %v6115_v5 = vrot.slane %v6114_v29, 1 }
 0x538   : > { %v6069_v48 = vmax.f32 %v6053_v45, 0.0  ;;  %v6070_v6 = vmax.f32 %v6054_v61, 0.0  ;;  %v14274_v53 = vmul.f32 %v6083_v44, %v6035_v34  ;;  %v14279_v2 = vmul.f32 %v6084_v59, %v6036_v8 }
 0x539   : > { %v6122_v47 = vrot.slane %v6121_v13, 1  ;;  %v6129_v57 = vrot.slane %v6128_v37, 1  ;;  %v6109_v61 = vadd.f32 %v6108_v36, %v6107_v49  ;;  %v6116_v60 = vadd.f32 %v6115_v5, %v6114_v29 }
 0x53a   : > { %v6085_v22 = vmin.f32 %v6069_v48, 6.0  ;;  %v6086_v18 = vmin.f32 %v6070_v6, 6.0  ;;  %v6131_v23 = vadd.f32 %v14274_v53, %v14272_v63  ;;  %v6138_v26 = vadd.f32 %v14279_v2, %v14277_v25 }
 0x53b   : > { %v6123_v30 = vadd.f32 %v6122_v47, %v6121_v13  ;;  %v6130_v59 = vadd.f32 %v6129_v57, %v6128_v37 }
 0x53c   : > { %v14291_v3 = vmul.f32 %v6085_v22, %v6037_v21  ;;  %v14293_v19 = vmul.f32 %v6086_v18, %v6038_v62  ;;  %v6132_v0 = vrot.slane %v6131_v23, 4  ;;  %v6139_v33 = vrot.slane %v6138_v26, 4 }
 0x53e   : > { %v6145_v42 = vadd.f32 %v14291_v3, %v14282_v40  ;;  %v6152_v10 = vadd.f32 %v14293_v19, %v14287_v17  ;;  %v6133_v14 = vadd.f32 %v6132_v0, %v6131_v23  ;;  %v6140_v27 = vadd.f32 %v6139_v33, %v6138_v26 }
 0x540   : > { %v6146_v34 = vrot.slane %v6145_v42, 4  ;;  %v6153_v28 = vrot.slane %v6152_v10, 4  ;;  %v6134_v8 = vrot.slane %v6133_v14, 2  ;;  %v6141_v50 = vrot.slane %v6140_v27, 2 }
 0x542   : > { %v6147_v20 = vadd.f32 %v6146_v34, %v6145_v42  ;;  %v6154_v58 = vadd.f32 %v6153_v28, %v6152_v10  ;;  %v6135_v4 = vadd.f32 %v6134_v8, %v6133_v14  ;;  %v6142_v15 = vadd.f32 %v6141_v50, %v6140_v27 }
 0x544   : > { %v6148_v21 = vrot.slane %v6147_v20, 2  ;;  %v6155_v62 = vrot.slane %v6154_v58, 2  ;;  %v6136_v51 = vrot.slane %v6135_v4, 1  ;;  %v6143_v56 = vrot.slane %v6142_v15, 1 }
 0x546   : > { %v6149_v32 = vadd.f32 %v6148_v21, %v6147_v20  ;;  %v6156_v54 = vadd.f32 %v6155_v62, %v6154_v58  ;;  %v6137_v45 = vadd.f32 %v6136_v51, %v6135_v4  ;;  %v6144_v43 = vadd.f32 %v6143_v56, %v6142_v15  ;;  %v6281_v51 = vld [vmem:[%s14438_s5] sm:$0xff]  ;;  %v6282_v56 = vld [vmem:[%s14438_s5 + $0x8] sm:$0xff] }
 0x548   : > { %v6150_v11 = vrot.slane %v6149_v32, 1  ;;  %v6157_v44 = vrot.slane %v6156_v54, 1  ;;  %v6168_v48 = vsel %vm6167_vm8, %v6137_v45, %v6109_v61  ;;  %v6169_v52 = vsel %vm6167_vm8, %v6144_v43, %v6116_v60 }
 0x549   : > { %v6174_v22 = vrot.slane %v6168_v48, 1  ;;  %v6175_v18 = vrot.slane %v6169_v52, 1  ;;  %v6186_v0 = vadd.f32 %v6168_v48, %v6123_v30  ;;  %v6187_v42 = vadd.f32 %v6169_v52, %v6130_v59 }
 0x54a   : > { %v6151_v6 = vadd.f32 %v6150_v11, %v6149_v32  ;;  %v6158_v46 = vadd.f32 %v6157_v44, %v6156_v54  ;;  %v7737_v32 = vmov 0.0|0.0   ;;  %v7225_v54 = vpack.c.bf16 %v6282_v56, %v6281_v51  ;;  %v7378_v51 = vld [vmem:[#allocation9] sm:$0xff]  }
 0x54b   : > { %7224 = vmatprep.subr.bf16.mxu0 %v7737_v32  ;;  %7230 = vmatprep.subr.bf16.mxu1 %v7737_v32  ;;  %v7379_v56 = vld [vmem:[#allocation9 + $0x80] sm:$0xff]  }
 0x54c   : > { %v6170_v7 = vsel %vm6167_vm8, %v6151_v6, %v6123_v30  ;;  %v6171_v16 = vsel %vm6167_vm8, %v6158_v46, %v6130_v59  ;;  %v6190_v23 = vadd.f32 %v6174_v22, %v6151_v6  ;;  %v6191_v26 = vadd.f32 %v6175_v18, %v6158_v46  ;;  %7226 = vmatpush3.bf16.msra.mxu0 %v7225_v54  ;;  %v7381_v54 = vld [vmem:[#allocation9 + $0xc8] sm:$0xff]  }
 0x54d   : > { %v6173_v35 = vrot.slane %v6171_v16, 1  ;;  %v6172_v9 = vrot.slane %v6170_v7, 1  ;;  %v6185_v27 = vadd.f32 %v6171_v16, %v6116_v60  ;;  %v6184_v50 = vadd.f32 %v6170_v7, %v6109_v61  ;;  %7227 = vmatprep.subr.bf16.mxu0 %v7737_v32  ;;  %v6283_v16 = vld [vmem:[%s14438_s5 + $0x10] sm:$0xff]  ;;  %v7380_v32 = vld [vmem:[#allocation9 + $0x48] sm:$0xff]  }
 0x54e   : > { %v6200_v33 = vrot.slane %v6190_v23, 7  ;;  %v6202_v10 = vrot.slane %v6191_v26, 7 }
 0x54f   : > { %v6189_v49 = vadd.f32 %v6173_v35, %v6144_v43  ;;  %v6188_v13 = vadd.f32 %v6172_v9, %v6137_v45  ;;  %v16132_v43 = vlaneseq }
 0x550   : > { %v6201_v14 = vsel %vm6167_vm8, %v6200_v33, %v6186_v0  ;;  %v6203_v29 = vsel %vm6167_vm8, %v6202_v10, %v6187_v42  ;;  %v7525_v33 = vld [vmem:[#allocation2 + $0x30] sm:$0xff]  ;;  %v6370_v10 = vld [vmem:[%s14440_s7 + $0x8] sm:$0xff] }
 0x551   : > { %v6198_v34 = vrot.slane %v6189_v49, 7  ;;  %v6206_v28 = vrot.slane %v6201_v14, 1  ;;  %v6204_v37 = vrot.slane %v6203_v29, 1  ;;  %v6213_v4 = vadd.f32 %v6203_v29, %v6184_v50  ;;  %7214 = vmatprep.mubr.msk.f32.mxu0 %vm7738_vm10, %v7525_v33  ;;  %7221 = vmatprep.mubr.msk.f32.mxu1 %vm7738_vm10, %v7525_v33  ;;  %v7395_v33 = vld [vmem:[#allocation9 + $0xa0] sm:$0xff]  }
 0x552   : > { %v6215_v61 = vadd.f32 %v6201_v14, %v6187_v42  ;;  %v6241_v11 = vand.u32 127, %v16132_v43  ;;  %v6369_v42 = vld [vmem:[%s14440_s7] sm:$0xff]  ;;  %v7385_v43 = vld [vmem:[#allocation9 + $0xd0] sm:$0xff]  }
 0x553   : > { %v6199_v8 = vsel %vm6167_vm8, %v6198_v34, %v6185_v27  ;;  %v6216_v20 = vadd.f32 %v6204_v37, %v6188_v13  ;;  %v6218_v36 = vadd.f32 %v6206_v28, %v6191_v26  ;;  %v7231_v49 = vpack.c.bf16 %v6370_v10, %v6369_v42  ;;  %v7396_v42 = vld [vmem:[#allocation9 + $0x68] sm:$0xff]  }
 0x554   : > { %v6205_v58 = vrot.slane %v6199_v8, 1  ;;  %v6214_v21 = vadd.f32 %v6199_v8, %v6186_v0  ;;  %vm6242_vm9 = vcmp.lt.s32.totalorder %v6241_v11, 64  ;;  %vm6271_vm11 = vcmp.lt.s32.totalorder %v6241_v11, 32  ;;  %v7386_v11 = vld [vmem:[#allocation9 + $0x10] sm:$0xff]   ;;  %v7397_v10 = vld [vmem:[#allocation9 + $0xe8] sm:$0xff]  }
 0x555   : > { %v6225_v5 = vrot.slane %v6216_v20, 7  ;;  %v6229_v57 = vrot.slane %v6218_v36, 7  ;;  %7232 = vmatpush3.bf16.msra.mxu1 %v7231_v49  ;;  %v7398_v49 = vld [vmem:[#allocation9 + $0x28] sm:$0xff]  }
 0x556   : > { %v6217_v15 = vadd.f32 %v6205_v58, %v6190_v23  ;;  %v6284_v23 = vld [vmem:[%s14438_s5 + $0x18] sm:$0xff] }
 0x557   : > { %v6226_v62 = vsel %vm6167_vm8, %v6225_v5, %v6213_v4  ;;  %v6230_v60 = vsel %vm6167_vm8, %v6229_v57, %v6215_v61  ;;  %v7228_v0 = vpack.c.bf16 %v6284_v23, %v6283_v16  ;;  %v7377_v57 = vld [vmem:[#allocation9 + $0xc0] sm:$0xff]   ;;  %v7390_v16 = vld [vmem:[#allocation9 + $0x18] sm:$0xff]  }
 0x558   : > { %v6227_v47 = vrot.slane %v6217_v15, 7  ;;  %6234 = vrot.lane.b32.xlu0 %v6226_v62, %s7733_s23  ;;  %7178 = vmatprep.subr.bf16.mxu1 %v7377_v57  ;;  %v7391_v23 = vld [vmem:[#allocation9 + $0x98] sm:$0xff]  }
 0x559   : > { %7229 = vmatpush3.bf16.msra.mxu0 %v7228_v0 }
 0x55a   : > { %v6228_v45 = vsel %vm6167_vm8, %v6227_v47, %v6214_v21  ;;  %v7376_v47 = vld [vmem:[#allocation9 + $0x40] sm:$0xff]  }
 0x55b   : > { %6236 = vrot.lane.b32.xlu1 %v6228_v45, %s7733_s23  ;;  %7150 = vmatprep.subr.bf16.mxu0 %v7376_v47  ;;  %v7382_v45 = vld [vmem:[#allocation9 + $0x8] sm:$0xff]  }
 0x55c   : > { %6238 = vrot.lane.b32.xlu0 %v6230_v60, %s7733_s23  ;;  %v7384_v60 = vld [vmem:[#allocation9 + $0x50] sm:$0xff]  }
 0x5ca   : > { %v6235_v44 = vpop.permute.xlu0 %6234 }
 0x5cd   : > { %v6237_v30 = vpop.permute.xlu1 %6236 }
 0x5ce   : > { %v6239_v59 = vpop.permute.xlu0 %6238 }
 0x5cf   : > { %v6243_v48 = vsel %vm6242_vm9, %v6237_v30, %v6239_v59  ;;  %v6244_v6 = vsel %vm6242_vm9, %v6239_v59, %v6235_v44  ;;  %v7387_v44 = vld [vmem:[#allocation9 + $0x90] sm:$0xff]   ;;  %v7096_v30 = vld [vmem:[%s14441_s8] ss:$0 sm:$0xff] }
 0x5d0   : > { %v6247_v46 = vrot.slane %v6244_v6, 1  ;;  %v6248_v52 = vrot.slane %v6243_v48, 1  ;;  %v6253_v7 = vadd.f32 %v6244_v6, %v6213_v4  ;;  %v6254_v26 = vadd.f32 %v6243_v48, %v6215_v61  ;;  %v7094_v4 = vld [vmem:[%s14439_s6] ss:$0 sm:$0xff]  ;;  %v7383_v61 = vld [vmem:[#allocation9 + $0x88] sm:$0xff]  }
 0x5d2   : > { %v6255_v22 = vadd.f32 %v6247_v46, %v6216_v20  ;;  %v6256_v18 = vadd.f32 %v6248_v52, %v6218_v36 }
 0x5d4   : > { %v6261_v35 = vrot.slane %v6255_v22, 7  ;;  %v6263_v9 = vrot.slane %v6256_v18, 7  ;;  %v7388_v18 = vld [vmem:[#allocation9 + $0x58] sm:$0xff]  }
 0x5d6   : > { %v6262_v14 = vsel %vm6167_vm8, %v6261_v35, %v6253_v7  ;;  %v6264_v29 = vsel %vm6167_vm8, %v6263_v9, %v6254_v26  ;;  %v7392_v26 = vld [vmem:[#allocation9 + $0x60] sm:$0xff]  }
 0x5d7   : > { %6267 = vrot.lane.b32.xlu1 %v6262_v14, %s7736_s27  ;;  %6269 = vrot.lane.b32.xlu0 %v6264_v29, %s7736_s27  ;;  %v7393_v35 = vld [vmem:[#allocation9 + $0xe0] sm:$0xff]   ;;  %v7399_v14 = vld [vmem:[#allocation9 + $0xa8] sm:$0xff]   ;;  %v7400_v29 = vld [vmem:[#allocation9 + $0x70] sm:$0xff]  }
 0x5d8   : > { %v7394_v9 = vld [vmem:[#allocation9 + $0x20] sm:$0xff]  }
 0x649   : > { %v6268_v27 = vpop.permute.xlu1 %6267  ;;  %v6270_v34 = vpop.permute.xlu0 %6269 }
 0x64a   : > { %v6272_v28 = vsel %vm6271_vm11, %v6270_v34, %v6268_v27  ;;  %v7401_v27 = vld [vmem:[#allocation9 + $0xf0] sm:$0xff]  }
 0x64b   : > { %v6274_v13 = vrot.slane %v6272_v28, 1  ;;  %v6277_v37 = vadd.f32 %v6272_v28, %v6253_v7  ;;  %v7389_v7 = vld [vmem:[#allocation9 + $0xd8] sm:$0xff]   ;;  %v7402_v34 = vld [vmem:[#allocation9 + $0x30] sm:$0xff]  }
 0x64c   : > { %v7403_v28 = vld [vmem:[#allocation9 + $0xb0] sm:$0xff]  }
 0x64d   : > { %v6278_v8 = vadd.f32 %v6274_v13, %v6255_v22  ;;  %v6279_v20 = vmul.f32 0.0006510417, %v6277_v37  ;;  %v7404_v13 = vld [vmem:[#allocation9 + $0x78] sm:$0xff]  }
 0x64e   : > { %v7405_v37 = vld [vmem:[#allocation9 + $0xf8] sm:$0xff]  }
 0x64f   : > { %v6280_v50 = vmul.f32 0.0006510417, %v6278_v8  ;;  %v7406_v8 = vld [vmem:[#allocation9 + $0x38] sm:$0xff]  }
 0x651   : > { %v6294_v58 = vrot.slane %v6280_v50, 7  ;;  %v7407_v50 = vld [vmem:[#allocation9 + $0xb8] sm:$0xff]  }
 0x653   : > { %v6295_v36 = vsel %vm6167_vm8, %v6294_v58, %v6279_v20  ;;  %v7739_v20 = vmov 1966171168  }
 0x654   : > { %7215 = vmatmul.mubr.msk.f32.vlgmr.msra.gmra.mrb[8].mxu0 %vm2235_vm7, %v6295_v36  ;;  %v6474_v58 = vunpack.c.l.s4 %v7739_v20 }
 0x655   : > { %7151 = vmatpush3.bf16.msra.mxu0 %v7378_v51 }
 0x656   : > { %7152 = vmatprep.subr.bf16.mxu0 %v7380_v32 }
 0x659   : > { %7153 = vmatpush3.bf16.msra.mxu0 %v7382_v45 }
 0x65a   : > { %7154 = vmatprep.subr.bf16.mxu0 %v7384_v60 }
 0x65d   : > { %7155 = vmatpush3.bf16.msra.mxu0 %v7386_v11 }
 0x65e   : > { %7156 = vmatprep.subr.bf16.mxu0 %v7388_v18 }
 0x661   : > { %7157 = vmatpush3.bf16.msra.mxu0 %v7390_v16 }
 0x662   : > { %7158 = vmatprep.subr.bf16.mxu0 %v7392_v26 }
 0x665   : > { %7159 = vmatpush3.bf16.msra.mxu0 %v7394_v9 }
 0x666   : > { %7160 = vmatprep.subr.bf16.mxu0 %v7396_v42 }
 0x669   : > { %7161 = vmatpush3.bf16.msra.mxu0 %v7398_v49 }
 0x66a   : > { %7162 = vmatprep.subr.bf16.mxu0 %v7400_v29 }
 0x66d   : > { %7163 = vmatpush3.bf16.msra.mxu0 %v7402_v34 }
 0x66e   : > { %7164 = vmatprep.subr.bf16.mxu0 %v7404_v13 }
 0x671   : > { %7165 = vmatpush3.bf16.msra.mxu0 %v7406_v8 }
 0x727   : > { %v6364_v5 = vpop.f32.mrb[8].mxu0 }
 0x728   : > { %v6365_v15 = vadd.f32 %v7094_v4, %v6364_v5  ;;  %v7216_v21 = vpop.f32.mrb[9].mxu0  ;;  %v6475_v4 = vunpack.c.0.s8 %v6474_v58 }
 0x72a   : > { %v6368_v62 = vmax.f32 %v6365_v15, 0.0 }
 0x72c   : > { %7222 = vmatmul.mubr.msk.f32.vlgmr.msra.gmra.mrb[8].mxu1 %vm6378_vm12, %v6368_v62  ;;  %v16133_v62 = vld [vmem:[#allocation18_spill] sm:$0xff] }
 0x72d   : > { %7179 = vmatpush3.bf16.msra.mxu1 %v7379_v56  ;;  %v6478_v47 = vsub.s32 %v6475_v4, %v16133_v62 }
 0x72e   : > { %7180 = vmatprep.subr.bf16.mxu1 %v7381_v54 }
 0x731   : > { %7181 = vmatpush3.bf16.msra.mxu1 %v7383_v61 }
 0x732   : > { %7182 = vmatprep.subr.bf16.mxu1 %v7385_v43  ;;  %v16134_v43 = vld [vmem:[#allocation22_spill] sm:$0xff] }
 0x735   : > { %7183 = vmatpush3.bf16.msra.mxu1 %v7387_v44  ;;  %v16135_v44 = vld [vmem:[#allocation21_spill] sm:$0xff] }
 0x736   : > { %7184 = vmatprep.subr.bf16.mxu1 %v7389_v7 }
 0x739   : > { %7185 = vmatpush3.bf16.msra.mxu1 %v7391_v23 }
 0x73a   : > { %7186 = vmatprep.subr.bf16.mxu1 %v7393_v35 }
 0x73d   : > { %7187 = vmatpush3.bf16.msra.mxu1 %v7395_v33 }
 0x73e   : > { %7188 = vmatprep.subr.bf16.mxu1 %v7397_v10 }
 0x741   : > { %7189 = vmatpush3.bf16.msra.mxu1 %v7399_v14 }
 0x742   : > { %7190 = vmatprep.subr.bf16.mxu1 %v7401_v27 }
 0x745   : > { %7191 = vmatpush3.bf16.msra.mxu1 %v7403_v28 }
 0x746   : > { %7192 = vmatprep.subr.bf16.mxu1 %v7405_v37 }
 0x749   : > { %7193 = vmatpush3.bf16.msra.mxu1 %v7407_v50 }
 0x7ff   : > { %v6448_v59 = vpop.f32.mrb[8].mxu1 }
 0x800   : > { %v6449_v48 = vadd.f32 %v7096_v30, %v6448_v59  ;;  %v7223_v6 = vpop.f32.mrb[9].mxu1  ;;  %v16136_v59 = vld [vmem:[#allocation20_spill] sm:$0xff] }
 0x801   : > { %v16137_v6 = vld [vmem:[#allocation19_spill] sm:$0xff] }
 0x802   : > { %v7098_v46 = vmul.f32 -1.442695, %v6449_v48 }
 0x804   : > { %7408 = vpow2.f32 %v7098_v46 }
 0x80e   : > { %v7409_v52 = vpop.eup %7408 }
 0x80f   : > { %v6455_v22 = vadd.f32 1.0, %v7409_v52 }
 0x811   : > { %7410 = vrcp.f32 %v6455_v22 }
 0x81b   : > { %v7411_v0 = vpop.eup %7410 }
 0x81c   : > { %6462 = vrot.lane.b32.xlu0 %v7411_v0, %s7733_s23  ;;  %6459 = vrot.lane.b32.xlu1 %v7411_v0, %s7736_s27  ;;  %s16138_s27 = sld [smem:[#allocation267_spill]]  ;;  %s7650_s23 = scalar_lea.vmem %s7649_s1, 1024 }
 0x81d   : > { %p7652_p2 = scmp.lt.s32.totalorder %s7650_s23, %s7644_s11 }
 0x81f   : > { %p7653_p1 = por %p7652_p2, %p7651_p12 }
 0x820   : > { %6465 = vrot.lane.b32.xlu1 %v7411_v0, %s7734_s25 }
 0x821   : > { %p7654_p4 = pnand %p7653_p1, %p7647_p7 }
 0x822   : > { %v7099_v28 = vld [vmem:[%s16138_s27] ss:$0 sm:$0xff] }
 0x88e   : > { %v6460_v36 = vpop.permute.xlu1 %6459  ;;  %v6463_v5 = vpop.permute.xlu0 %6462 }
 0x88f   : > { %v6468_v15 = vsel %vm2235_vm7, %v7411_v0, %v6460_v36 }
 0x890   : > { %v6469_v21 = vsel %vm1046_vm4, %v6468_v15, %v6463_v5  ;;  %v7526_v15 = vld [vmem:[%s7999_s28] sm:$0xff] }
 0x892   : > { %v6466_v57 = vpop.permute.xlu1 %6465 }
 0x893   : > { %v6470_v51 = vsel %vm2146_vm6, %v6469_v21, %v6466_v57 }
 0x894   : > { %v6472_v56 = vcombine.low %v6470_v51, %v6470_v51 }
 0x896   : > { %v6479_v32 = vrot.slane %v6472_v56, %v6478_v47 }
 0x898   : > { %v6480_v54 = vcombine.low %v6479_v32, %v6479_v32  ;;  %v6481_v45 = vcombine.high %v6479_v32, %v6479_v32  ;;  %v7527_v32 = vld [vmem:[%s7999_s28 + $0x8] sm:$0xff] }
 0x89a   : > { %v6488_v61 = vrot.slane %v6480_v54, %v6478_v47  ;;  %v6495_v60 = vrot.slane %v6481_v45, %v6478_v47 }
 0x89c   : > { %v6503_v11 = vrot.slane %v6488_v61, %v16134_v43  ;;  %v6511_v30 = vrot.slane %v6488_v61, %v16135_v44  ;;  %v6499_v48 = vrot.slane %v6488_v61, %v16136_v59  ;;  %v6507_v46 = vrot.slane %v6488_v61, %v16137_v6 }
 0x89d   : > { %v6519_v52 = vrot.slane %v6495_v60, %v16134_v43  ;;  %v6527_v22 = vrot.slane %v6495_v60, %v16135_v44  ;;  %v6515_v18 = vrot.slane %v6495_v60, %v16136_v59  ;;  %v6523_v7 = vrot.slane %v6495_v60, %v16137_v6 }
 0x89e   : > { %v6537_v16 = vmul.f32 %v6503_v11, %v14241_v39  ;;  %v6541_v23 = vmul.f32 %v6503_v11, %v14224_v31  ;;  %v6539_v26 = vmul.f32 %v6511_v30, %v14255_v12  ;;  %v6543_v35 = vmul.f32 %v6511_v30, %v14245_v24 }
 0x89f   : > { %v6536_v9 = vmul.f32 %v6499_v48, %v14232_v38  ;;  %v6540_v0 = vmul.f32 %v6499_v48, %v14218_v55  ;;  %v6538_v33 = vmul.f32 %v6507_v46, %v14249_v1  ;;  %v6542_v42 = vmul.f32 %v6507_v46, %v14243_v41 }
 0x8a0   : > { %v6553_v10 = vpack.c.bf16 %v6541_v23, %v6537_v16  ;;  %v6555_v49 = vpack.c.bf16 %v6543_v35, %v6539_v26  ;;  %v6545_v14 = vmul.f32 %v6519_v52, %v14277_v25  ;;  %v6549_v39 = vmul.f32 %v6519_v52, %v14279_v2  ;;  %v7528_v52 = vld [vmem:[%s7999_s28 + $0x10] sm:$0xff] }
 0x8a1   : > { %v6552_v29 = vpack.c.bf16 %v6540_v0, %v6536_v9  ;;  %v6554_v31 = vpack.c.bf16 %v6542_v42, %v6538_v33  ;;  %v6547_v12 = vmul.f32 %v6527_v22, %v14287_v17  ;;  %v6551_v24 = vmul.f32 %v6527_v22, %v14293_v19 }
 0x8a2   : > { %6855 = vmatprep.mubr.bf16.mxu0 %v6553_v10  ;;  %6904 = vmatprep.mubr.bf16.mxu1 %v6555_v49  ;;  %v6557_v38 = vpack.c.bf16 %v6549_v39, %v6545_v14  ;;  %v6544_v41 = vmul.f32 %v6515_v18, %v14272_v63  ;;  %v6548_v1 = vmul.f32 %v6515_v18, %v14274_v53 }
 0x8a3   : > { %6856 = vmatmul.mubr.bf16.vlgmr.msra.gmra.mrb[12].mxu0 %v6552_v29  ;;  %6905 = vmatmul.mubr.bf16.vlgmr.msra.gmra.mrb[12].mxu1 %v6554_v31  ;;  %v6559_v55 = vpack.c.bf16 %v6551_v24, %v6547_v12  ;;  %v6546_v25 = vmul.f32 %v6523_v7, %v14282_v40  ;;  %v6550_v2 = vmul.f32 %v6523_v7, %v14291_v3  ;;  %v7529_v7 = vld [vmem:[%s7999_s28 + $0x18] sm:$0xff] }
 0x8a4   : > { %6863 = vmatprep.mubr.bf16.mxu0 %v6557_v38  ;;  %v6556_v27 = vpack.c.bf16 %v6548_v1, %v6544_v41 }
 0x8a5   : > { %6912 = vmatprep.mubr.bf16.mxu1 %v6559_v55  ;;  %v6558_v17 = vpack.c.bf16 %v6550_v2, %v6546_v25 }
 0x8ab   : > { %6864 = vmatmul.mubr.bf16.gmra.mrb[16].mxu0 %v6556_v27  ;;  %6913 = vmatmul.mubr.bf16.gmra.mrb[16].mxu1 %v6558_v17 }
 0x976   : > { %v7166_v19 = vpop.f32.mrb[12].mxu0  ;;  %v7194_v34 = vpop.f32.mrb[12].mxu1 }
 0x977   : > { %v7167_v13 = vpop.f32.mrb[13].mxu0  ;;  %v7195_v37 = vpop.f32.mrb[13].mxu1 }
 0x978   : > { %v7168_v63 = vadd.f32 %v7167_v13, %v7166_v19  ;;  %v7196_v8 = vadd.f32 %v7195_v37, %v7194_v34  ;;  %v7169_v53 = vpop.f32.mrb[14].mxu0  ;;  %v7197_v40 = vpop.f32.mrb[14].mxu1 }
 0x979   : > { %v7170_v50 = vpop.f32.mrb[15].mxu0  ;;  %v7198_v3 = vpop.f32.mrb[15].mxu1 }
 0x97a   : > { %v6858_v20 = vadd.f32 %v7168_v63, %v7099_v28  ;;  %v7171_v58 = vadd.f32 %v7170_v50, %v7169_v53  ;;  %v7199_v36 = vadd.f32 %v7198_v3, %v7197_v40 }
 0x97c   : > { %v6907_v4 = vadd.f32 %v7196_v8, %v6858_v20  ;;  %v6861_v5 = vadd.f32 %v7171_v58, %v7099_v28 }
 0x97e   : > { %v6921_v21 = vadd.f32 %v7526_v15, %v6907_v4  ;;  %v6910_v62 = vadd.f32 %v7199_v36, %v6861_v5  ;;  %v7172_v47 = vpop.f32.mrb[16].mxu0  ;;  %v7200_v57 = vpop.f32.mrb[16].mxu1 }
 0x97f   : > { %v7173_v51 = vpop.f32.mrb[17].mxu0  ;;  %v7201_v56 = vpop.f32.mrb[17].mxu1 }
 0x980   : > { %6925 = vst [vmem:[%s449_s22] sm:$0xff] %v6921_v21  ;;  %v6922_v54 = vadd.f32 %v7527_v32, %v6910_v62  ;;  %v7174_v45 = vadd.f32 %v7173_v51, %v7172_v47  ;;  %v7202_v61 = vadd.f32 %v7201_v56, %v7200_v57  ;;  %v7175_v60 = vpop.f32.mrb[18].mxu0  ;;  %v7203_v43 = vpop.f32.mrb[18].mxu1 }
 0x981   : > { %v7176_v11 = vpop.f32.mrb[19].mxu0  ;;  %v7204_v44 = vpop.f32.mrb[19].mxu1 }
 0x982   : > { %6926 = vst [vmem:[%s449_s22 + $0x8] sm:$0xff] %v6922_v54  ;;  %v6866_v30 = vadd.f32 %v7174_v45, %v7099_v28  ;;  %v7177_v59 = vadd.f32 %v7176_v11, %v7175_v60  ;;  %v7205_v48 = vadd.f32 %v7204_v44, %v7203_v43 }
 0x984   : > { %v6915_v6 = vadd.f32 %v7202_v61, %v6866_v30  ;;  %v6869_v46 = vadd.f32 %v7177_v59, %v7099_v28 }
 0x986   : > { %v6923_v22 = vadd.f32 %v7528_v52, %v6915_v6  ;;  %v6918_v18 = vadd.f32 %v7205_v48, %v6869_v46 }
 0x988   : > { %6927 = vst [vmem:[%s449_s22 + $0x10] sm:$0xff] %v6923_v22  ;;  %v6924_v16 = vadd.f32 %v7529_v7, %v6918_v18 }
 0x98a   : > { %6928 = vst [vmem:[%s449_s22 + $0x18] sm:$0xff] %v6924_v16 }
 0x98b   : > { %7657 = shalt.err (!%p7654_p4)
}
 0x98c   : > { %s7658_s28 = scalar_lea.hbm %s14388_s13, 512  ;;  %s7662_s22 = scalar_lea.hbm %s16139_s10, 1024 }
 0x98d   : > { %p7659_p9 = scmp.ne.s32.totalorder %s14388_s13, %s7658_s28  ;;  %p7663_p8 = scmp.lt.u32.totalorder %s14388_s13, %s16139_s10 }
 0x98e   : > { %p7664_p13 = scmp.lt.u32.totalorder %s7662_s22, %s7658_s28  ;;  %p7666_p10 = scmp.lt.u32.totalorder %s7658_s28, %s14388_s13 }
 0x98f   : > { %p7660_p0 = pnand %p7659_p9, %p7945_p5 }
 0x990   : > { %p7665_p6 = por %p7664_p13, %p7663_p8 }
 0x991   : > { %p7661_p11 = pneg %p7660_p0 }
 0x992   : > { %p7667_p3 = por %p7666_p10, %p7665_p6 }
 0x994   : > { %p7668_p7 = pnand %p7667_p3, %p7661_p11 }
 0x996   : > { %7671 = shalt.err (!%p7668_p7)
}
 0x997   : > { %s7741_s24 = smov 128   ;;  %s7742_s11 = smov 8  }
 0x998   : > { %7247 = dma.vmem_to_hbm [thread:$0]  (%p7945_p5), %s14382_s12, 512, %s14388_s13, %s6930_s29, %s7741_s24, %s7741_s24, %s7742_s11  }
 0x999 PF: > { %s16140_s21 = sld [smem:[#allocation16_spill]]  ;;  %s16141_s1 = sld [smem:[#allocation17_spill]] }
 0x99a   : > { %p16143_p2 = scmp.ge.s32.totalorder %s7718_s20, 2 }
 0x99f   : > { %s6959_s23 = sand.u32 1, %s16140_s21   ;;  %p16142_p12 = scmp.ne.s32.totalorder %s16141_s1, 0 }
 0x9a0   : > { %s6960_s28 = scalar_lea.sflag [#allocation5], %s6959_s23 }
 0x9a1   : > { %p7264_p1 = pnand %p16143_p2, %p16142_p12 }
 0x9a3   : > { %7701 = dma.done.wait (!%p7264_p1), %s6960_s28, 512  }
 0x9a4   : > { %7703 = vsyncadd (!%p7264_p1), %s6960_s28, 4294966784  ;;  %s16144_s25 = smov %s7931_s17  ;;  %p26_p4 = scmp.ge.s32.totalorder %s7931_s17, 4  }
 0x9a5   : > { %s16145_s17 = smov %s7710_s18  ;;  %s16146_s18 = smov %s7714_s19 }
 0x9a6   : > { %s16147_s19 = smov %s7941_s15  ;;  %s16148_s20 = smov %s16144_s25 }
 0x9a7   :  { %28 = sbr.rel (!%p26_p4) target bundleno = 11 (0xb), region = 145 }
 0x9ae   :  { %6965 = vsyncpa [#allocation4], 1 }
 0x9af   :  { %6967 = vsyncpa [#allocation4 + $0x1], 1 }
 0x9b0   :  { %6968 = vsyncpa [#allocation7], 1 }
 0x9b1   :  { %6969 = vsyncpa [#allocation10], 1 }
 0x9b2   :  { %6970 = vsyncpa [#allocation5], 1 }
 0x9b3   :  { %6972 = vsyncpa [#allocation5 + $0x1], 1 }

</bundles_post_ra>
